<compile_context>
chip_gen: v6e
topology: v6e:2x2x1
jax: 0.10.0
libtpu: 0.0.40
codegen_flags: <defaults>
</compile_context>

<pallas_src>
import functools
import math

import jax
import jax.numpy as jnp
from jax.experimental import pallas as pl
from jax.experimental.pallas import tpu as pltpu

BATCH = 1
IMG = 32          # backbone needs spatial % 16 == 0
CHANNEL = 32


# ----------------------------------------------------------------------------
# Fused Pallas GEMM kernel: out = act((A @ B) * scale + bias)
def _gemm_kernel(a_ref, b_ref, s_ref, c_ref, o_ref, *, act):
    y = jnp.dot(a_ref[...], b_ref[...], preferred_element_type=jnp.float32)
    y = y * s_ref[...] + c_ref[...]
    if act == "leaky":
        y = jnp.maximum(y, 0.1 * y)          # LeakyReLU(0.1)
    elif act == "relu":
        y = jnp.maximum(y, 0.0)
    o_ref[...] = y


@functools.lru_cache(maxsize=None)
def _get_gemm(m_pad, tm, k_pad, n_pad, act):
    kernel = functools.partial(_gemm_kernel, act=act)
    return pl.pallas_call(
        kernel,
        out_shape=jax.ShapeDtypeStruct((m_pad, n_pad), jnp.float32),
        grid_spec=pltpu.PrefetchScalarGridSpec(
            num_scalar_prefetch=0,
            grid=(m_pad // tm,),                                   # 1-D grid over M tiles
            in_specs=[
                pl.BlockSpec((tm, k_pad), lambda i: (i, 0)),       # patches (bf16)
                pl.BlockSpec((k_pad, n_pad), lambda i: (0, 0)),    # weights: VMEM-resident
                pl.BlockSpec((1, n_pad), lambda i: (0, 0)),        # folded-BN scale
                pl.BlockSpec((1, n_pad), lambda i: (0, 0)),        # folded-BN bias
            ],
            out_specs=pl.BlockSpec((tm, n_pad), lambda i: (i, 0)),
        ),
        compiler_params=pltpu.CompilerParams(
            dimension_semantics=("parallel",),
            vmem_limit_bytes=32 * 1024 * 1024),
    )


def _round_up(x, m):
    return ((x + m - 1) // m) * m


def _pad_m(m):
    return _round_up(m, 64) if m <= 256 else _round_up(m, 256)


def _choose_tm(m_pad):
    if m_pad > 256:
        return 256
    return m_pad // 2        # >= 2 M tiles -> both v7x TensorCores get work


# ----------------------------------------------------------------------------
# Conv parameters as a pytree node: arrays are traced, geometry/activation static.
@jax.tree_util.register_pytree_node_class
class ConvP:
    def __init__(self, w_flat, scale, bias, ksize, pad, dil, act, cout):
        self.w_flat, self.scale, self.bias = w_flat, scale, bias
        self.ksize, self.pad, self.dil = ksize, pad, dil
        self.act, self.cout = act, cout

    def tree_flatten(self):
        return ((self.w_flat, self.scale, self.bias),
                (self.ksize, self.pad, self.dil, self.act, self.cout))

    @classmethod
    def tree_unflatten(cls, aux, children):
        return cls(*children, *aux)


def apply_conv(x, p):
    """im2col in fused XLA glue; fused GEMM + folded-BN + activation in Pallas."""
    n, h, w, c = x.shape
    kh, kw = p.ksize
    ph, pw = p.pad
    dh, dw = p.dil
    cout = p.cout

    if (kh, kw) == (1, 1):
        patches = x
    else:
        xp = jnp.pad(x, ((0, 0), (ph, ph), (pw, pw), (0, 0)))
        cols = [xp[:, i * dh:i * dh + h, j * dw:j * dw + w, :]
                for i in range(kh) for j in range(kw)]
        patches = jnp.concatenate(cols, axis=-1)

    a = patches.reshape(n * h * w, kh * kw * c)
    m, kdim = a.shape
    m_pad, k_pad, n_pad = _pad_m(m), _round_up(kdim, 128), _round_up(cout, 128)
    tm = _choose_tm(m_pad)

    a = jnp.pad(a, ((0, m_pad - m), (0, k_pad - kdim))).astype(jnp.bfloat16)
    b = jnp.pad(p.w_flat, ((0, k_pad - kdim), (0, n_pad - cout))).astype(jnp.bfloat16)
    s = jnp.pad(p.scale, (0, n_pad - cout)).reshape(1, n_pad)
    bb = jnp.pad(p.bias, (0, n_pad - cout)).reshape(1, n_pad)

    out = _get_gemm(m_pad, tm, k_pad, n_pad, p.act)(a, b, s, bb)
    return out[:m, :cout].reshape(n, h, w, cout)


def _seq(convs, x):
    for p in convs:
        x = apply_conv(x, p)
    return x


def maxpool2x2(x):
    n, h, w, c = x.shape
    return x.reshape(n, h // 2, 2, w // 2, 2, c).max(axis=(2, 4))


def upsample_bilinear(x, scale, align_corners):
    # Matches torch.nn.Upsample(mode='bilinear') for both align_corners settings.
    n, h, w, c = x.shape
    ho, wo = h * scale, w * scale

    def coords(out_size, in_size):
        i = jnp.arange(out_size, dtype=jnp.float32)
        if align_corners:
            src = i * ((in_size - 1) / (out_size - 1)) if out_size > 1 else jnp.zeros_like(i)
        else:
            src = jnp.clip((i + 0.5) * (in_size / out_size) - 0.5, 0.0, in_size - 1.0)
        i0 = jnp.clip(jnp.floor(src).astype(jnp.int32), 0, in_size - 1)
        i1 = jnp.minimum(i0 + 1, in_size - 1)
        frac = src - i0.astype(jnp.float32)
        return i0, i1, frac

    h0, h1, fh = coords(ho, h)
    w0, w1, fw = coords(wo, w)
    fh = fh[None, :, None, None]
    fw = fw[None, None, :, None]
    rows = x[:, h0, :, :] * (1.0 - fh) + x[:, h1, :, :] * fh
    return rows[:, :, w0, :] * (1.0 - fw) + rows[:, :, w1, :] * fw


# ----------------------------------------------------------------------------
# Deterministic parameter construction.
class KeyGen:
    def __init__(self, key):
        self._key = key

    def __call__(self):
        self._key, sub = jax.random.split(self._key)
        return sub


def make_conv(kg, cin, cout, ksize, pad, dil=(1, 1), act="none", bn=True):
    kh, kw = ksize
    fan_in = kh * kw * cin
    w = jax.random.normal(kg(), (kh, kw, cin, cout), jnp.float32) * math.sqrt(2.0 / fan_in)
    if bn:   # BatchNorm2d (eval) folded: running_mean=0, running_var=1, eps=1e-5.
        gamma = 1.0 + 0.05 * jax.random.normal(kg(), (cout,), jnp.float32)
        beta = 0.05 * jax.random.normal(kg(), (cout,), jnp.float32)
        scale, bias = gamma / math.sqrt(1.0 + 1e-5), beta
    else:    # plain nn.Conv2d bias
        scale = jnp.ones((cout,), jnp.float32)
        bias = 0.05 * jax.random.normal(kg(), (cout,), jnp.float32)
    return ConvP(w.reshape(kh * kw * cin, cout), scale, bias, ksize, pad, dil, act, cout)


def _dk(kg, cin, cout, k):   # darknet conv: Conv(no bias) + BN + LeakyReLU(0.1)
    return make_conv(kg, cin, cout, (k, k), (k // 2, k // 2), act="leaky", bn=True)


def _d19_block4(kg):
    return [_dk(kg, 128, 256, 3), _dk(kg, 256, 128, 1), _dk(kg, 128, 256, 3)]


def _d19_block5(kg):
    return [_dk(kg, 256, 512, 3), _dk(kg, 512, 256, 1), _dk(kg, 256, 512, 3),
            _dk(kg, 512, 256, 1), _dk(kg, 256, 512, 3)]


def make_d19_a(kg):          # DarkNet-19 attention branch (stem through conv5)
    return dict(conv1=[_dk(kg, 3, 32, 3)],
                conv2=[_dk(kg, 32, 64, 3)],
                conv3=[_dk(kg, 64, 128, 3), _dk(kg, 128, 64, 1), _dk(kg, 64, 128, 3)],
                conv4=_d19_block4(kg),
                conv5=_d19_block5(kg))


def make_d19_d(kg):          # DarkNet-19 detection branch (second conv4/conv5)
    return dict(conv4=_d19_block4(kg), conv5=_d19_block5(kg))


def make_rfb(kg, cin, cout):
    def bc(ci, co, ks, pd, dl=(1, 1)):     # BasicConv2d: Conv(no bias)+BN, no act
        return make_conv(kg, ci, co, ks, pd, dil=dl, act="none", bn=True)
    return dict(
        branch0=[bc(cin, cout, (1, 1), (0, 0))],
        branch1=[bc(cin, cout, (1, 1), (0, 0)),
                 bc(cout, cout, (1, 3), (0, 1)),
                 bc(cout, cout, (3, 1), (1, 0)),
                 bc(cout, cout, (3, 3), (3, 3), (3, 3))],
        branch2=[bc(cin, cout, (1, 1), (0, 0)),
                 bc(cout, cout, (1, 5), (0, 2)),
                 bc(cout, cout, (5, 1), (2, 0)),
                 bc(cout, cout, (3, 3), (5, 5), (5, 5))],
        branch3=[bc(cin, cout, (1, 1), (0, 0)),
                 bc(cout, cout, (1, 7), (0, 3)),
                 bc(cout, cout, (7, 1), (3, 0)),
                 bc(cout, cout, (3, 3), (7, 7), (7, 7))],
        conv_cat=bc(4 * cout, cout, (3, 3), (1, 1)),
        conv_res=bc(cin, cout, (1, 1), (0, 0)),
    )


def make_agg(kg, ch):
    def bc(ci, co):
        return make_conv(kg, ci, co, (3, 3), (1, 1), act="none", bn=True)
    return dict(
        conv_upsample1=bc(ch, ch), conv_upsample2=bc(ch, ch),
        conv_upsample3=bc(ch, ch), conv_upsample4=bc(ch, ch),
        conv_upsample5=bc(2 * ch, 2 * ch),
        conv_concat2=bc(2 * ch, 2 * ch), conv_concat3=bc(3 * ch, 3 * ch),
        conv4=bc(3 * ch, 3 * ch),
        conv5=make_conv(kg, 3 * ch, 1, (1, 1), (0, 0), act="none", bn=False),
    )


def _gauss_row(kernlen=31, nsig=4):
    # gkern(31, 4) from the reference HA module: kernel = sqrt(outer(k1d,k1d))/sum,
    # i.e. outer(row, row) with row = sqrt(k1d)/sum(sqrt(k1d)) -> exactly separable.
    interval = (2.0 * nsig + 1.0) / kernlen
    lo, hi = -nsig - interval / 2.0, nsig + interval / 2.0
    xs = [lo + (hi - lo) * i / kernlen for i in range(kernlen + 1)]
    cdf = [0.5 * (1.0 + math.erf(v / math.sqrt(2.0))) for v in xs]
    k1d = [cdf[i + 1] - cdf[i] for i in range(kernlen)]
    s = [math.sqrt(v) for v in k1d]
    tot = sum(s)
    return jnp.asarray([v / tot for v in s], jnp.float32)


def init_cpd_d19(key, channel):
    kg = KeyGen(key)
    return dict(
        d19_a=make_d19_a(kg), d19_d=make_d19_d(kg),
        rfb3_1=make_rfb(kg, 128, channel), rfb4_1=make_rfb(kg, 256, channel),
        rfb5_1=make_rfb(kg, 512, channel), agg1=make_agg(kg, channel),
        rfb3_2=make_rfb(kg, 128, channel), rfb4_2=make_rfb(kg, 256, channel),
        rfb5_2=make_rfb(kg, 512, channel), agg2=make_agg(kg, channel),
        gauss_row=_gauss_row(),
    )


# ----------------------------------------------------------------------------
# Forward passes.
def d19_a_forward(p, x):
    x = maxpool2x2(_seq(p['conv1'], x))
    x = maxpool2x2(_seq(p['conv2'], x))
    x3 = _seq(p['conv3'], x)                     # 128 ch, 1/4 res
    x4 = _seq(p['conv4'], maxpool2x2(x3))        # 256 ch, 1/8 res
    x5 = _seq(p['conv5'], maxpool2x2(x4))        # 512 ch, 1/16 res
    return x3, x4, x5


def d19_d_forward(p, x3_2):
    x4 = _seq(p['conv4'], maxpool2x2(x3_2))
    x5 = _seq(p['conv5'], maxpool2x2(x4))
    return x4, x5


def rfb_forward(p, x):
    x0 = _seq(p['branch0'], x)
    x1 = _seq(p['branch1'], x)
    x2 = _seq(p['branch2'], x)
    x3 = _seq(p['branch3'], x)
    x_cat = apply_conv(jnp.concatenate([x0, x1, x2, x3], axis=-1), p['conv_cat'])
    return jnp.maximum(x_cat + apply_conv(x, p['conv_res']), 0.0)


def agg_forward(p, x1, x2, x3):
    # x1 = rfb(x5) (coarsest), x2 = rfb(x4), x3 = rfb(x3) (finest)
    up = lambda t: upsample_bilinear(t, 2, align_corners=True)
    x1_1 = x1
    x2_1 = apply_conv(up(x1), p['conv_upsample1']) * x2
    x3_1 = (apply_conv(up(up(x1)), p['conv_upsample2'])
            * apply_conv(up(x2), p['conv_upsample3']) * x3)
    x2_2 = jnp.concatenate([x2_1, apply_conv(up(x1_1), p['conv_upsample4'])], axis=-1)
    x2_2 = apply_conv(x2_2, p['conv_concat2'])
    x3_2 = jnp.concatenate([x3_1, apply_conv(up(x2_2), p['conv_upsample5'])], axis=-1)
    x3_2 = apply_conv(x3_2, p['conv_concat3'])
    return apply_conv(apply_conv(x3_2, p['conv4']), p['conv5'])


def ha_forward(gauss_row, attention, x3):
    # TODO(synk): the 31x31 Gaussian blur + min-max norm stays in fused JAX glue
    # (single-channel 8x8 map; the kernel is rank-1 so it is two tiny banded matmuls).
    att = jax.nn.sigmoid(attention)               # (N, H, W, 1)
    klen = gauss_row.shape[0]
    half = (klen - 1) // 2

    def band(size):                               # banded Toeplitz blur matrix
        idx = half + jnp.arange(size)[None, :] - jnp.arange(size)[:, None]
        ok = (idx >= 0) & (idx < klen)
        return jnp.where(ok, gauss_row[jnp.clip(idx, 0, klen - 1)], 0.0)

    soft = jnp.einsum('yu,nuvc,xv->nyxc', band(att.shape[1]), att, band(att.shape[2]))
    mx = soft.max(axis=(1, 2), keepdims=True)
    mn = soft.min(axis=(1, 2), keepdims=True)
    soft = (soft - mn) / (mx - mn + 1e-8)
    return x3 * jnp.maximum(soft, att)


def cpd_d19_forward(params, x_nchw):
    x = jnp.transpose(x_nchw, (0, 2, 3, 1))       # NCHW -> NHWC
    x3, x4_1, x5_1 = d19_a_forward(params['d19_a'], x)

    x3_1 = rfb_forward(params['rfb3_1'], x3)
    x4_1r = rfb_forward(params['rfb4_1'], x4_1)
    x5_1r = rfb_forward(params['rfb5_1'], x5_1)
    attention = agg_forward(params['agg1'], x5_1r, x4_1r, x3_1)

    x3_2 = ha_forward(params['gauss_row'], attention, x3)
    x4_2, x5_2 = d19_d_forward(params['d19_d'], x3_2)
    x3_2r = rfb_forward(params['rfb3_2'], x3_2)
    x4_2r = rfb_forward(params['rfb4_2'], x4_2)
    x5_2r = rfb_forward(params['rfb5_2'], x5_2)
    detection = agg_forward(params['agg2'], x5_2r, x4_2r, x3_2r)

    att_up = upsample_bilinear(attention, 4, align_corners=False)
    det_up = upsample_bilinear(detection, 4, align_corners=False)
    return (jnp.transpose(att_up, (0, 3, 1, 2)),   # (N, 1, H, W)
            jnp.transpose(det_up, (0, 3, 1, 2)))


# ----------------------------------------------------------------------------
if __name__ == "__main__":
    root = jax.random.PRNGKey(0)
    data_key, param_key = jax.random.split(root)
    params = init_cpd_d19(param_key, CHANNEL)
    x = jax.random.normal(data_key, (BATCH, 3, IMG, IMG), jnp.float32)

    forward = jax.jit(cpd_d19_forward)
    attention, detection = forward(params, x)
    attention = jax.block_until_ready(attention)
    detection = jax.block_until_ready(detection)

    assert attention.shape == (BATCH, 1, IMG, IMG), attention.shape
    assert detection.shape == (BATCH, 1, IMG, IMG), detection.shape
    assert bool(jnp.all(jnp.isfinite(attention)))
    assert bool(jnp.all(jnp.isfinite(detection)))
    print("KERNEL_OK")
</pallas_src>

<mosaic_0001>
module attributes {stable_mosaic.version = 11 : i64} {
  func.func @_gemm_kernel(%arg0: i32, %arg1: memref<256x128xbf16, #tpu.memory_space<vmem>>, %arg2: memref<128x128xbf16, #tpu.memory_space<vmem>>, %arg3: memref<1x128xf32, #tpu.memory_space<vmem>>, %arg4: memref<1x128xf32, #tpu.memory_space<vmem>>, %arg5: memref<256x128xf32, #tpu.memory_space<vmem>>) attributes {dimension_semantics = [#tpu.dimension_semantics<parallel>], iteration_bounds = array<i64: 4>, scalar_prefetch = 0 : i64, scratch_operands = 0 : i64, tpu.core_type = #tpu.core_type<tc>, window_params = [{transform_indices = @transform_0, window_bounds = array<i64: 256, 128>}, {pipeline_mode = #tpu.pipeline_mode<synchronous>, transform_indices = @transform_1, window_bounds = array<i64: 128, 128>}, {pipeline_mode = #tpu.pipeline_mode<synchronous>, transform_indices = @transform_2, window_bounds = array<i64: 1, 128>}, {pipeline_mode = #tpu.pipeline_mode<synchronous>, transform_indices = @transform_3, window_bounds = array<i64: 1, 128>}, {transform_indices = @transform_4, window_bounds = array<i64: 256, 128>}]} {
    %c0 = arith.constant 0 : index
    %c0_0 = arith.constant 0 : index
    %0 = vector.load %arg1[%c0, %c0_0] : memref<256x128xbf16, #tpu.memory_space<vmem>>, vector<256x128xbf16>
    %c0_1 = arith.constant 0 : index
    %c0_2 = arith.constant 0 : index
    %1 = vector.load %arg2[%c0_1, %c0_2] : memref<128x128xbf16, #tpu.memory_space<vmem>>, vector<128x128xbf16>
    %cst = arith.constant dense<0.000000e+00> : vector<256x128xf32>
    %2 = tpu.matmul %0, %1, %cst {dimension_numbers = #tpu.dot_dimension_numbers<[1], [0], [0], [1], [0, 0, 1, 1], [], []>} : vector<256x128xbf16>, vector<128x128xbf16>, vector<256x128xf32> -> vector<256x128xf32>
    %c0_3 = arith.constant 0 : index
    %c0_4 = arith.constant 0 : index
    %3 = vector.load %arg3[%c0_3, %c0_4] : memref<1x128xf32, #tpu.memory_space<vmem>>, vector<1x128xf32>
    %4 = vector.broadcast %3 : vector<1x128xf32> to vector<256x128xf32>
    %5 = arith.mulf %2, %4 : vector<256x128xf32>
    %c0_5 = arith.constant 0 : index
    %c0_6 = arith.constant 0 : index
    %6 = vector.load %arg4[%c0_5, %c0_6] : memref<1x128xf32, #tpu.memory_space<vmem>>, vector<1x128xf32>
    %7 = vector.broadcast %6 : vector<1x128xf32> to vector<256x128xf32>
    %8 = arith.addf %5, %7 : vector<256x128xf32>
    %cst_7 = arith.constant 1.000000e-01 : f32
    %9 = vector.broadcast %cst_7 : f32 to vector<256x128xf32>
    %10 = arith.mulf %9, %8 : vector<256x128xf32>
    %11 = arith.maximumf %8, %10 : vector<256x128xf32>
    %c0_8 = arith.constant 0 : index
    %c0_9 = arith.constant 0 : index
    %12 = vector.load %arg5[%c0_8, %c0_9] : memref<256x128xf32, #tpu.memory_space<vmem>>, vector<256x128xf32>
    tpu.vector_store %arg5[%c0_8, %c0_9], %11 {strides = array<i32>} : memref<256x128xf32, #tpu.memory_space<vmem>>, vector<256x128xf32>,
    return
  }
  func.func @transform_0(%arg0: i32) -> (i32, i32) {
    %c0_i32 = arith.constant 0 : i32
    %c0_i32_0 = arith.constant 0 : i32
    return %arg0, %c0_i32 : i32, i32
  }
  func.func @transform_1(%arg0: i32) -> (i32, i32) {
    %c0_i32 = arith.constant 0 : i32
    %c0_i32_0 = arith.constant 0 : i32
    %c0_i32_1 = arith.constant 0 : i32
    return %c0_i32, %c0_i32_0 : i32, i32
  }
  func.func @transform_2(%arg0: i32) -> (i32, i32) {
    %c0_i32 = arith.constant 0 : i32
    %c0_i32_0 = arith.constant 0 : i32
    %c0_i32_1 = arith.constant 0 : i32
    return %c0_i32, %c0_i32_0 : i32, i32
  }
  func.func @transform_3(%arg0: i32) -> (i32, i32) {
    %c0_i32 = arith.constant 0 : i32
    %c0_i32_0 = arith.constant 0 : i32
    %c0_i32_1 = arith.constant 0 : i32
    return %c0_i32, %c0_i32_0 : i32, i32
  }
  func.func @transform_4(%arg0: i32) -> (i32, i32) {
    %c0_i32 = arith.constant 0 : i32
    %c0_i32_0 = arith.constant 0 : i32
    return %arg0, %c0_i32 : i32, i32
  }
}

module attributes {stable_mosaic.version = 11 : i64} {
  func.func @_gemm_kernel(%arg0: i32, %arg1: memref<128x384xbf16, #tpu.memory_space<vmem>>, %arg2: memref<384x128xbf16, #tpu.memory_space<vmem>>, %arg3: memref<1x128xf32, #tpu.memory_space<vmem>>, %arg4: memref<1x128xf32, #tpu.memory_space<vmem>>, %arg5: memref<128x128xf32, #tpu.memory_space<vmem>>) attributes {dimension_semantics = [#tpu.dimension_semantics<parallel>], iteration_bounds = array<i64: 2>, scalar_prefetch = 0 : i64, scratch_operands = 0 : i64, tpu.core_type = #tpu.core_type<tc>, window_params = [{transform_indices = @transform_0, window_bounds = array<i64: 128, 384>}, {pipeline_mode = #tpu.pipeline_mode<synchronous>, transform_indices = @transform_1, window_bounds = array<i64: 384, 128>}, {pipeline_mode = #tpu.pipeline_mode<synchronous>, transform_indices = @transform_2, window_bounds = array<i64: 1, 128>}, {pipeline_mode = #tpu.pipeline_mode<synchronous>, transform_indices = @transform_3, window_bounds = array<i64: 1, 128>}, {transform_indices = @transform_4, window_bounds = array<i64: 128, 128>}]} {
    %c0 = arith.constant 0 : index
    %c0_0 = arith.constant 0 : index
    %0 = vector.load %arg1[%c0, %c0_0] : memref<128x384xbf16, #tpu.memory_space<vmem>>, vector<128x384xbf16>
    %c0_1 = arith.constant 0 : index
    %c0_2 = arith.constant 0 : index
    %1 = vector.load %arg2[%c0_1, %c0_2] : memref<384x128xbf16, #tpu.memory_space<vmem>>, vector<384x128xbf16>
    %cst = arith.constant dense<0.000000e+00> : vector<128x128xf32>
    %2 = tpu.matmul %0, %1, %cst {dimension_numbers = #tpu.dot_dimension_numbers<[1], [0], [0], [1], [0, 0, 1, 1], [], []>} : vector<128x384xbf16>, vector<384x128xbf16>, vector<128x128xf32> -> vector<128x128xf32>
    %c0_3 = arith.constant 0 : index
    %c0_4 = arith.constant 0 : index
    %3 = vector.load %arg3[%c0_3, %c0_4] : memref<1x128xf32, #tpu.memory_space<vmem>>, vector<1x128xf32>
    %4 = vector.broadcast %3 : vector<1x128xf32> to vector<128x128xf32>
    %5 = arith.mulf %2, %4 : vector<128x128xf32>
    %c0_5 = arith.constant 0 : index
    %c0_6 = arith.constant 0 : index
    %6 = vector.load %arg4[%c0_5, %c0_6] : memref<1x128xf32, #tpu.memory_space<vmem>>, vector<1x128xf32>
    %7 = vector.broadcast %6 : vector<1x128xf32> to vector<128x128xf32>
    %8 = arith.addf %5, %7 : vector<128x128xf32>
    %cst_7 = arith.constant 1.000000e-01 : f32
    %9 = vector.broadcast %cst_7 : f32 to vector<128x128xf32>
    %10 = arith.mulf %9, %8 : vector<128x128xf32>
    %11 = arith.maximumf %8, %10 : vector<128x128xf32>
    %c0_8 = arith.constant 0 : index
    %c0_9 = arith.constant 0 : index
    %12 = vector.load %arg5[%c0_8, %c0_9] : memref<128x128xf32, #tpu.memory_space<vmem>>, vector<128x128xf32>
    tpu.vector_store %arg5[%c0_8, %c0_9], %11 {strides = array<i32>} : memref<128x128xf32, #tpu.memory_space<vmem>>, vector<128x128xf32>,
    return
  }
  func.func @transform_0(%arg0: i32) -> (i32, i32) {
    %c0_i32 = arith.constant 0 : i32
    %c0_i32_0 = arith.constant 0 : i32
    return %arg0, %c0_i32 : i32, i32
  }
  func.func @transform_1(%arg0: i32) -> (i32, i32) {
    %c0_i32 = arith.constant 0 : i32
    %c0_i32_0 = arith.constant 0 : i32
    %c0_i32_1 = arith.constant 0 : i32
    return %c0_i32, %c0_i32_0 : i32, i32
  }
  func.func @transform_2(%arg0: i32) -> (i32, i32) {
    %c0_i32 = arith.constant 0 : i32
    %c0_i32_0 = arith.constant 0 : i32
    %c0_i32_1 = arith.constant 0 : i32
    return %c0_i32, %c0_i32_0 : i32, i32
  }
  func.func @transform_3(%arg0: i32) -> (i32, i32) {
    %c0_i32 = arith.constant 0 : i32
    %c0_i32_0 = arith.constant 0 : i32
    %c0_i32_1 = arith.constant 0 : i32
    return %c0_i32, %c0_i32_0 : i32, i32
  }
  func.func @transform_4(%arg0: i32) -> (i32, i32) {
    %c0_i32 = arith.constant 0 : i32
    %c0_i32_0 = arith.constant 0 : i32
    return %arg0, %c0_i32 : i32, i32
  }
}

module attributes {stable_mosaic.version = 11 : i64} {
  func.func @_gemm_kernel(%arg0: i32, %arg1: memref<32x640xbf16, #tpu.memory_space<vmem>>, %arg2: memref<640x128xbf16, #tpu.memory_space<vmem>>, %arg3: memref<1x128xf32, #tpu.memory_space<vmem>>, %arg4: memref<1x128xf32, #tpu.memory_space<vmem>>, %arg5: memref<32x128xf32, #tpu.memory_space<vmem>>) attributes {dimension_semantics = [#tpu.dimension_semantics<parallel>], iteration_bounds = array<i64: 2>, scalar_prefetch = 0 : i64, scratch_operands = 0 : i64, tpu.core_type = #tpu.core_type<tc>, window_params = [{transform_indices = @transform_0, window_bounds = array<i64: 32, 640>}, {pipeline_mode = #tpu.pipeline_mode<synchronous>, transform_indices = @transform_1, window_bounds = array<i64: 640, 128>}, {pipeline_mode = #tpu.pipeline_mode<synchronous>, transform_indices = @transform_2, window_bounds = array<i64: 1, 128>}, {pipeline_mode = #tpu.pipeline_mode<synchronous>, transform_indices = @transform_3, window_bounds = array<i64: 1, 128>}, {transform_indices = @transform_4, window_bounds = array<i64: 32, 128>}]} {
    %c0 = arith.constant 0 : index
    %c0_0 = arith.constant 0 : index
    %0 = vector.load %arg1[%c0, %c0_0] : memref<32x640xbf16, #tpu.memory_space<vmem>>, vector<32x640xbf16>
    %c0_1 = arith.constant 0 : index
    %c0_2 = arith.constant 0 : index
    %1 = vector.load %arg2[%c0_1, %c0_2] : memref<640x128xbf16, #tpu.memory_space<vmem>>, vector<640x128xbf16>
    %cst = arith.constant dense<0.000000e+00> : vector<32x128xf32>
    %2 = tpu.matmul %0, %1, %cst {dimension_numbers = #tpu.dot_dimension_numbers<[1], [0], [0], [1], [0, 0, 1, 1], [], []>} : vector<32x640xbf16>, vector<640x128xbf16>, vector<32x128xf32> -> vector<32x128xf32>
    %c0_3 = arith.constant 0 : index
    %c0_4 = arith.constant 0 : index
    %3 = vector.load %arg3[%c0_3, %c0_4] : memref<1x128xf32, #tpu.memory_space<vmem>>, vector<1x128xf32>
    %4 = vector.broadcast %3 : vector<1x128xf32> to vector<32x128xf32>
    %5 = arith.mulf %2, %4 : vector<32x128xf32>
    %c0_5 = arith.constant 0 : index
    %c0_6 = arith.constant 0 : index
    %6 = vector.load %arg4[%c0_5, %c0_6] : memref<1x128xf32, #tpu.memory_space<vmem>>, vector<1x128xf32>
    %7 = vector.broadcast %6 : vector<1x128xf32> to vector<32x128xf32>
    %8 = arith.addf %5, %7 : vector<32x128xf32>
    %cst_7 = arith.constant 1.000000e-01 : f32
    %9 = vector.broadcast %cst_7 : f32 to vector<32x128xf32>
    %10 = arith.mulf %9, %8 : vector<32x128xf32>
    %11 = arith.maximumf %8, %10 : vector<32x128xf32>
    %c0_8 = arith.constant 0 : index
    %c0_9 = arith.constant 0 : index
    %12 = vector.load %arg5[%c0_8, %c0_9] : memref<32x128xf32, #tpu.memory_space<vmem>>, vector<32x128xf32>
    tpu.vector_store %arg5[%c0_8, %c0_9], %11 {strides = array<i32>} : memref<32x128xf32, #tpu.memory_space<vmem>>, vector<32x128xf32>,
    return
  }
  func.func @transform_0(%arg0: i32) -> (i32, i32) {
    %c0_i32 = arith.constant 0 : i32
    %c0_i32_0 = arith.constant 0 : i32
    return %arg0, %c0_i32 : i32, i32
  }
  func.func @transform_1(%arg0: i32) -> (i32, i32) {
    %c0_i32 = arith.constant 0 : i32
    %c0_i32_0 = arith.constant 0 : i32
    %c0_i32_1 = arith.constant 0 : i32
    return %c0_i32, %c0_i32_0 : i32, i32
  }
  func.func @transform_2(%arg0: i32) -> (i32, i32) {
    %c0_i32 = arith.constant 0 : i32
    %c0_i32_0 = arith.constant 0 : i32
    %c0_i32_1 = arith.constant 0 : i32
    return %c0_i32, %c0_i32_0 : i32, i32
  }
  func.func @transform_3(%arg0: i32) -> (i32, i32) {
    %c0_i32 = arith.constant 0 : i32
    %c0_i32_0 = arith.constant 0 : i32
    %c0_i32_1 = arith.constant 0 : i32
    return %c0_i32, %c0_i32_0 : i32, i32
  }
  func.func @transform_4(%arg0: i32) -> (i32, i32) {
    %c0_i32 = arith.constant 0 : i32
    %c0_i32_0 = arith.constant 0 : i32
    return %arg0, %c0_i32 : i32, i32
  }
}

module attributes {stable_mosaic.version = 11 : i64} {
  func.func @_gemm_kernel(%arg0: i32, %arg1: memref<32x128xbf16, #tpu.memory_space<vmem>>, %arg2: memref<128x128xbf16, #tpu.memory_space<vmem>>, %arg3: memref<1x128xf32, #tpu.memory_space<vmem>>, %arg4: memref<1x128xf32, #tpu.memory_space<vmem>>, %arg5: memref<32x128xf32, #tpu.memory_space<vmem>>) attributes {dimension_semantics = [#tpu.dimension_semantics<parallel>], iteration_bounds = array<i64: 2>, scalar_prefetch = 0 : i64, scratch_operands = 0 : i64, tpu.core_type = #tpu.core_type<tc>, window_params = [{transform_indices = @transform_0, window_bounds = array<i64: 32, 128>}, {pipeline_mode = #tpu.pipeline_mode<synchronous>, transform_indices = @transform_1, window_bounds = array<i64: 128, 128>}, {pipeline_mode = #tpu.pipeline_mode<synchronous>, transform_indices = @transform_2, window_bounds = array<i64: 1, 128>}, {pipeline_mode = #tpu.pipeline_mode<synchronous>, transform_indices = @transform_3, window_bounds = array<i64: 1, 128>}, {transform_indices = @transform_4, window_bounds = array<i64: 32, 128>}]} {
    %c0 = arith.constant 0 : index
    %c0_0 = arith.constant 0 : index
    %0 = vector.load %arg1[%c0, %c0_0] : memref<32x128xbf16, #tpu.memory_space<vmem>>, vector<32x128xbf16>
    %c0_1 = arith.constant 0 : index
    %c0_2 = arith.constant 0 : index
    %1 = vector.load %arg2[%c0_1, %c0_2] : memref<128x128xbf16, #tpu.memory_space<vmem>>, vector<128x128xbf16>
    %cst = arith.constant dense<0.000000e+00> : vector<32x128xf32>
    %2 = tpu.matmul %0, %1, %cst {dimension_numbers = #tpu.dot_dimension_numbers<[1], [0], [0], [1], [0, 0, 1, 1], [], []>} : vector<32x128xbf16>, vector<128x128xbf16>, vector<32x128xf32> -> vector<32x128xf32>
    %c0_3 = arith.constant 0 : index
    %c0_4 = arith.constant 0 : index
    %3 = vector.load %arg3[%c0_3, %c0_4] : memref<1x128xf32, #tpu.memory_space<vmem>>, vector<1x128xf32>
    %4 = vector.broadcast %3 : vector<1x128xf32> to vector<32x128xf32>
    %5 = arith.mulf %2, %4 : vector<32x128xf32>
    %c0_5 = arith.constant 0 : index
    %c0_6 = arith.constant 0 : index
    %6 = vector.load %arg4[%c0_5, %c0_6] : memref<1x128xf32, #tpu.memory_space<vmem>>, vector<1x128xf32>
    %7 = vector.broadcast %6 : vector<1x128xf32> to vector<32x128xf32>
    %8 = arith.addf %5, %7 : vector<32x128xf32>
    %cst_7 = arith.constant 1.000000e-01 : f32
    %9 = vector.broadcast %cst_7 : f32 to vector<32x128xf32>
    %10 = arith.mulf %9, %8 : vector<32x128xf32>
    %11 = arith.maximumf %8, %10 : vector<32x128xf32>
    %c0_8 = arith.constant 0 : index
    %c0_9 = arith.constant 0 : index
    %12 = vector.load %arg5[%c0_8, %c0_9] : memref<32x128xf32, #tpu.memory_space<vmem>>, vector<32x128xf32>
    tpu.vector_store %arg5[%c0_8, %c0_9], %11 {strides = array<i32>} : memref<32x128xf32, #tpu.memory_space<vmem>>, vector<32x128xf32>,
    return
  }
  func.func @transform_0(%arg0: i32) -> (i32, i32) {
    %c0_i32 = arith.constant 0 : i32
    %c0_i32_0 = arith.constant 0 : i32
    return %arg0, %c0_i32 : i32, i32
  }
  func.func @transform_1(%arg0: i32) -> (i32, i32) {
    %c0_i32 = arith.constant 0 : i32
    %c0_i32_0 = arith.constant 0 : i32
    %c0_i32_1 = arith.constant 0 : i32
    return %c0_i32, %c0_i32_0 : i32, i32
  }
  func.func @transform_2(%arg0: i32) -> (i32, i32) {
    %c0_i32 = arith.constant 0 : i32
    %c0_i32_0 = arith.constant 0 : i32
    %c0_i32_1 = arith.constant 0 : i32
    return %c0_i32, %c0_i32_0 : i32, i32
  }
  func.func @transform_3(%arg0: i32) -> (i32, i32) {
    %c0_i32 = arith.constant 0 : i32
    %c0_i32_0 = arith.constant 0 : i32
    %c0_i32_1 = arith.constant 0 : i32
    return %c0_i32, %c0_i32_0 : i32, i32
  }
  func.func @transform_4(%arg0: i32) -> (i32, i32) {
    %c0_i32 = arith.constant 0 : i32
    %c0_i32_0 = arith.constant 0 : i32
    return %arg0, %c0_i32 : i32, i32
  }
}

module attributes {stable_mosaic.version = 11 : i64} {
  func.func @_gemm_kernel(%arg0: i32, %arg1: memref<32x1152xbf16, #tpu.memory_space<vmem>>, %arg2: memref<1152x256xbf16, #tpu.memory_space<vmem>>, %arg3: memref<1x256xf32, #tpu.memory_space<vmem>>, %arg4: memref<1x256xf32, #tpu.memory_space<vmem>>, %arg5: memref<32x256xf32, #tpu.memory_space<vmem>>) attributes {dimension_semantics = [#tpu.dimension_semantics<parallel>], iteration_bounds = array<i64: 2>, scalar_prefetch = 0 : i64, scratch_operands = 0 : i64, tpu.core_type = #tpu.core_type<tc>, window_params = [{transform_indices = @transform_0, window_bounds = array<i64: 32, 1152>}, {pipeline_mode = #tpu.pipeline_mode<synchronous>, transform_indices = @transform_1, window_bounds = array<i64: 1152, 256>}, {pipeline_mode = #tpu.pipeline_mode<synchronous>, transform_indices = @transform_2, window_bounds = array<i64: 1, 256>}, {pipeline_mode = #tpu.pipeline_mode<synchronous>, transform_indices = @transform_3, window_bounds = array<i64: 1, 256>}, {transform_indices = @transform_4, window_bounds = array<i64: 32, 256>}]} {
    %c0 = arith.constant 0 : index
    %c0_0 = arith.constant 0 : index
    %0 = vector.load %arg1[%c0, %c0_0] : memref<32x1152xbf16, #tpu.memory_space<vmem>>, vector<32x1152xbf16>
    %c0_1 = arith.constant 0 : index
    %c0_2 = arith.constant 0 : index
    %1 = vector.load %arg2[%c0_1, %c0_2] : memref<1152x256xbf16, #tpu.memory_space<vmem>>, vector<1152x256xbf16>
    %cst = arith.constant dense<0.000000e+00> : vector<32x256xf32>
    %2 = tpu.matmul %0, %1, %cst {dimension_numbers = #tpu.dot_dimension_numbers<[1], [0], [0], [1], [0, 0, 1, 1], [], []>} : vector<32x1152xbf16>, vector<1152x256xbf16>, vector<32x256xf32> -> vector<32x256xf32>
    %c0_3 = arith.constant 0 : index
    %c0_4 = arith.constant 0 : index
    %3 = vector.load %arg3[%c0_3, %c0_4] : memref<1x256xf32, #tpu.memory_space<vmem>>, vector<1x256xf32>
    %4 = vector.broadcast %3 : vector<1x256xf32> to vector<32x256xf32>
    %5 = arith.mulf %2, %4 : vector<32x256xf32>
    %c0_5 = arith.constant 0 : index
    %c0_6 = arith.constant 0 : index
    %6 = vector.load %arg4[%c0_5, %c0_6] : memref<1x256xf32, #tpu.memory_space<vmem>>, vector<1x256xf32>
    %7 = vector.broadcast %6 : vector<1x256xf32> to vector<32x256xf32>
    %8 = arith.addf %5, %7 : vector<32x256xf32>
    %cst_7 = arith.constant 1.000000e-01 : f32
    %9 = vector.broadcast %cst_7 : f32 to vector<32x256xf32>
    %10 = arith.mulf %9, %8 : vector<32x256xf32>
    %11 = arith.maximumf %8, %10 : vector<32x256xf32>
    %c0_8 = arith.constant 0 : index
    %c0_9 = arith.constant 0 : index
    %12 = vector.load %arg5[%c0_8, %c0_9] : memref<32x256xf32, #tpu.memory_space<vmem>>, vector<32x256xf32>
    tpu.vector_store %arg5[%c0_8, %c0_9], %11 {strides = array<i32>} : memref<32x256xf32, #tpu.memory_space<vmem>>, vector<32x256xf32>,
    return
  }
  func.func @transform_0(%arg0: i32) -> (i32, i32) {
    %c0_i32 = arith.constant 0 : i32
    %c0_i32_0 = arith.constant 0 : i32
    return %arg0, %c0_i32 : i32, i32
  }
  func.func @transform_1(%arg0: i32) -> (i32, i32) {
    %c0_i32 = arith.constant 0 : i32
    %c0_i32_0 = arith.constant 0 : i32
    %c0_i32_1 = arith.constant 0 : i32
    return %c0_i32, %c0_i32_0 : i32, i32
  }
  func.func @transform_2(%arg0: i32) -> (i32, i32) {
    %c0_i32 = arith.constant 0 : i32
    %c0_i32_0 = arith.constant 0 : i32
    %c0_i32_1 = arith.constant 0 : i32
    return %c0_i32, %c0_i32_0 : i32, i32
  }
  func.func @transform_3(%arg0: i32) -> (i32, i32) {
    %c0_i32 = arith.constant 0 : i32
    %c0_i32_0 = arith.constant 0 : i32
    %c0_i32_1 = arith.constant 0 : i32
    return %c0_i32, %c0_i32_0 : i32, i32
  }
  func.func @transform_4(%arg0: i32) -> (i32, i32) {
    %c0_i32 = arith.constant 0 : i32
    %c0_i32_0 = arith.constant 0 : i32
    return %arg0, %c0_i32 : i32, i32
  }
}

module attributes {stable_mosaic.version = 11 : i64} {
  func.func @_gemm_kernel(%arg0: i32, %arg1: memref<32x256xbf16, #tpu.memory_space<vmem>>, %arg2: memref<256x128xbf16, #tpu.memory_space<vmem>>, %arg3: memref<1x128xf32, #tpu.memory_space<vmem>>, %arg4: memref<1x128xf32, #tpu.memory_space<vmem>>, %arg5: memref<32x128xf32, #tpu.memory_space<vmem>>) attributes {dimension_semantics = [#tpu.dimension_semantics<parallel>], iteration_bounds = array<i64: 2>, scalar_prefetch = 0 : i64, scratch_operands = 0 : i64, tpu.core_type = #tpu.core_type<tc>, window_params = [{transform_indices = @transform_0, window_bounds = array<i64: 32, 256>}, {pipeline_mode = #tpu.pipeline_mode<synchronous>, transform_indices = @transform_1, window_bounds = array<i64: 256, 128>}, {pipeline_mode = #tpu.pipeline_mode<synchronous>, transform_indices = @transform_2, window_bounds = array<i64: 1, 128>}, {pipeline_mode = #tpu.pipeline_mode<synchronous>, transform_indices = @transform_3, window_bounds = array<i64: 1, 128>}, {transform_indices = @transform_4, window_bounds = array<i64: 32, 128>}]} {
    %c0 = arith.constant 0 : index
    %c0_0 = arith.constant 0 : index
    %0 = vector.load %arg1[%c0, %c0_0] : memref<32x256xbf16, #tpu.memory_space<vmem>>, vector<32x256xbf16>
    %c0_1 = arith.constant 0 : index
    %c0_2 = arith.constant 0 : index
    %1 = vector.load %arg2[%c0_1, %c0_2] : memref<256x128xbf16, #tpu.memory_space<vmem>>, vector<256x128xbf16>
    %cst = arith.constant dense<0.000000e+00> : vector<32x128xf32>
    %2 = tpu.matmul %0, %1, %cst {dimension_numbers = #tpu.dot_dimension_numbers<[1], [0], [0], [1], [0, 0, 1, 1], [], []>} : vector<32x256xbf16>, vector<256x128xbf16>, vector<32x128xf32> -> vector<32x128xf32>
    %c0_3 = arith.constant 0 : index
    %c0_4 = arith.constant 0 : index
    %3 = vector.load %arg3[%c0_3, %c0_4] : memref<1x128xf32, #tpu.memory_space<vmem>>, vector<1x128xf32>
    %4 = vector.broadcast %3 : vector<1x128xf32> to vector<32x128xf32>
    %5 = arith.mulf %2, %4 : vector<32x128xf32>
    %c0_5 = arith.constant 0 : index
    %c0_6 = arith.constant 0 : index
    %6 = vector.load %arg4[%c0_5, %c0_6] : memref<1x128xf32, #tpu.memory_space<vmem>>, vector<1x128xf32>
    %7 = vector.broadcast %6 : vector<1x128xf32> to vector<32x128xf32>
    %8 = arith.addf %5, %7 : vector<32x128xf32>
    %cst_7 = arith.constant 1.000000e-01 : f32
    %9 = vector.broadcast %cst_7 : f32 to vector<32x128xf32>
    %10 = arith.mulf %9, %8 : vector<32x128xf32>
    %11 = arith.maximumf %8, %10 : vector<32x128xf32>
    %c0_8 = arith.constant 0 : index
    %c0_9 = arith.constant 0 : index
    %12 = vector.load %arg5[%c0_8, %c0_9] : memref<32x128xf32, #tpu.memory_space<vmem>>, vector<32x128xf32>
    tpu.vector_store %arg5[%c0_8, %c0_9], %11 {strides = array<i32>} : memref<32x128xf32, #tpu.memory_space<vmem>>, vector<32x128xf32>,
    return
  }
  func.func @transform_0(%arg0: i32) -> (i32, i32) {
    %c0_i32 = arith.constant 0 : i32
    %c0_i32_0 = arith.constant 0 : i32
    return %arg0, %c0_i32 : i32, i32
  }
  func.func @transform_1(%arg0: i32) -> (i32, i32) {
    %c0_i32 = arith.constant 0 : i32
    %c0_i32_0 = arith.constant 0 : i32
    %c0_i32_1 = arith.constant 0 : i32
    return %c0_i32, %c0_i32_0 : i32, i32
  }
  func.func @transform_2(%arg0: i32) -> (i32, i32) {
    %c0_i32 = arith.constant 0 : i32
    %c0_i32_0 = arith.constant 0 : i32
    %c0_i32_1 = arith.constant 0 : i32
    return %c0_i32, %c0_i32_0 : i32, i32
  }
  func.func @transform_3(%arg0: i32) -> (i32, i32) {
    %c0_i32 = arith.constant 0 : i32
    %c0_i32_0 = arith.constant 0 : i32
    %c0_i32_1 = arith.constant 0 : i32
    return %c0_i32, %c0_i32_0 : i32, i32
  }
  func.func @transform_4(%arg0: i32) -> (i32, i32) {
    %c0_i32 = arith.constant 0 : i32
    %c0_i32_0 = arith.constant 0 : i32
    return %arg0, %c0_i32 : i32, i32
  }
}

module attributes {stable_mosaic.version = 11 : i64} {
  func.func @_gemm_kernel(%arg0: i32, %arg1: memref<32x256xbf16, #tpu.memory_space<vmem>>, %arg2: memref<256x128xbf16, #tpu.memory_space<vmem>>, %arg3: memref<1x128xf32, #tpu.memory_space<vmem>>, %arg4: memref<1x128xf32, #tpu.memory_space<vmem>>, %arg5: memref<32x128xf32, #tpu.memory_space<vmem>>) attributes {dimension_semantics = [#tpu.dimension_semantics<parallel>], iteration_bounds = array<i64: 2>, scalar_prefetch = 0 : i64, scratch_operands = 0 : i64, tpu.core_type = #tpu.core_type<tc>, window_params = [{transform_indices = @transform_0, window_bounds = array<i64: 32, 256>}, {pipeline_mode = #tpu.pipeline_mode<synchronous>, transform_indices = @transform_1, window_bounds = array<i64: 256, 128>}, {pipeline_mode = #tpu.pipeline_mode<synchronous>, transform_indices = @transform_2, window_bounds = array<i64: 1, 128>}, {pipeline_mode = #tpu.pipeline_mode<synchronous>, transform_indices = @transform_3, window_bounds = array<i64: 1, 128>}, {transform_indices = @transform_4, window_bounds = array<i64: 32, 128>}]} {
    %c0 = arith.constant 0 : index
    %c0_0 = arith.constant 0 : index
    %0 = vector.load %arg1[%c0, %c0_0] : memref<32x256xbf16, #tpu.memory_space<vmem>>, vector<32x256xbf16>
    %c0_1 = arith.constant 0 : index
    %c0_2 = arith.constant 0 : index
    %1 = vector.load %arg2[%c0_1, %c0_2] : memref<256x128xbf16, #tpu.memory_space<vmem>>, vector<256x128xbf16>
    %cst = arith.constant dense<0.000000e+00> : vector<32x128xf32>
    %2 = tpu.matmul %0, %1, %cst {dimension_numbers = #tpu.dot_dimension_numbers<[1], [0], [0], [1], [0, 0, 1, 1], [], []>} : vector<32x256xbf16>, vector<256x128xbf16>, vector<32x128xf32> -> vector<32x128xf32>
    %c0_3 = arith.constant 0 : index
    %c0_4 = arith.constant 0 : index
    %3 = vector.load %arg3[%c0_3, %c0_4] : memref<1x128xf32, #tpu.memory_space<vmem>>, vector<1x128xf32>
    %4 = vector.broadcast %3 : vector<1x128xf32> to vector<32x128xf32>
    %5 = arith.mulf %2, %4 : vector<32x128xf32>
    %c0_5 = arith.constant 0 : index
    %c0_6 = arith.constant 0 : index
    %6 = vector.load %arg4[%c0_5, %c0_6] : memref<1x128xf32, #tpu.memory_space<vmem>>, vector<1x128xf32>
    %7 = vector.broadcast %6 : vector<1x128xf32> to vector<32x128xf32>
    %8 = arith.addf %5, %7 : vector<32x128xf32>
    %c0_7 = arith.constant 0 : index
    %c0_8 = arith.constant 0 : index
    %9 = vector.load %arg5[%c0_7, %c0_8] : memref<32x128xf32, #tpu.memory_space<vmem>>, vector<32x128xf32>
    tpu.vector_store %arg5[%c0_7, %c0_8], %8 {strides = array<i32>} : memref<32x128xf32, #tpu.memory_space<vmem>>, vector<32x128xf32>,
    return
  }
  func.func @transform_0(%arg0: i32) -> (i32, i32) {
    %c0_i32 = arith.constant 0 : i32
    %c0_i32_0 = arith.constant 0 : i32
    return %arg0, %c0_i32 : i32, i32
  }
  func.func @transform_1(%arg0: i32) -> (i32, i32) {
    %c0_i32 = arith.constant 0 : i32
    %c0_i32_0 = arith.constant 0 : i32
    %c0_i32_1 = arith.constant 0 : i32
    return %c0_i32, %c0_i32_0 : i32, i32
  }
  func.func @transform_2(%arg0: i32) -> (i32, i32) {
    %c0_i32 = arith.constant 0 : i32
    %c0_i32_0 = arith.constant 0 : i32
    %c0_i32_1 = arith.constant 0 : i32
    return %c0_i32, %c0_i32_0 : i32, i32
  }
  func.func @transform_3(%arg0: i32) -> (i32, i32) {
    %c0_i32 = arith.constant 0 : i32
    %c0_i32_0 = arith.constant 0 : i32
    %c0_i32_1 = arith.constant 0 : i32
    return %c0_i32, %c0_i32_0 : i32, i32
  }
  func.func @transform_4(%arg0: i32) -> (i32, i32) {
    %c0_i32 = arith.constant 0 : i32
    %c0_i32_0 = arith.constant 0 : i32
    return %arg0, %c0_i32 : i32, i32
  }
}

module attributes {stable_mosaic.version = 11 : i64} {
  func.func @_gemm_kernel(%arg0: i32, %arg1: memref<32x128xbf16, #tpu.memory_space<vmem>>, %arg2: memref<128x128xbf16, #tpu.memory_space<vmem>>, %arg3: memref<1x128xf32, #tpu.memory_space<vmem>>, %arg4: memref<1x128xf32, #tpu.memory_space<vmem>>, %arg5: memref<32x128xf32, #tpu.memory_space<vmem>>) attributes {dimension_semantics = [#tpu.dimension_semantics<parallel>], iteration_bounds = array<i64: 2>, scalar_prefetch = 0 : i64, scratch_operands = 0 : i64, tpu.core_type = #tpu.core_type<tc>, window_params = [{transform_indices = @transform_0, window_bounds = array<i64: 32, 128>}, {pipeline_mode = #tpu.pipeline_mode<synchronous>, transform_indices = @transform_1, window_bounds = array<i64: 128, 128>}, {pipeline_mode = #tpu.pipeline_mode<synchronous>, transform_indices = @transform_2, window_bounds = array<i64: 1, 128>}, {pipeline_mode = #tpu.pipeline_mode<synchronous>, transform_indices = @transform_3, window_bounds = array<i64: 1, 128>}, {transform_indices = @transform_4, window_bounds = array<i64: 32, 128>}]} {
    %c0 = arith.constant 0 : index
    %c0_0 = arith.constant 0 : index
    %0 = vector.load %arg1[%c0, %c0_0] : memref<32x128xbf16, #tpu.memory_space<vmem>>, vector<32x128xbf16>
    %c0_1 = arith.constant 0 : index
    %c0_2 = arith.constant 0 : index
    %1 = vector.load %arg2[%c0_1, %c0_2] : memref<128x128xbf16, #tpu.memory_space<vmem>>, vector<128x128xbf16>
    %cst = arith.constant dense<0.000000e+00> : vector<32x128xf32>
    %2 = tpu.matmul %0, %1, %cst {dimension_numbers = #tpu.dot_dimension_numbers<[1], [0], [0], [1], [0, 0, 1, 1], [], []>} : vector<32x128xbf16>, vector<128x128xbf16>, vector<32x128xf32> -> vector<32x128xf32>
    %c0_3 = arith.constant 0 : index
    %c0_4 = arith.constant 0 : index
    %3 = vector.load %arg3[%c0_3, %c0_4] : memref<1x128xf32, #tpu.memory_space<vmem>>, vector<1x128xf32>
    %4 = vector.broadcast %3 : vector<1x128xf32> to vector<32x128xf32>
    %5 = arith.mulf %2, %4 : vector<32x128xf32>
    %c0_5 = arith.constant 0 : index
    %c0_6 = arith.constant 0 : index
    %6 = vector.load %arg4[%c0_5, %c0_6] : memref<1x128xf32, #tpu.memory_space<vmem>>, vector<1x128xf32>
    %7 = vector.broadcast %6 : vector<1x128xf32> to vector<32x128xf32>
    %8 = arith.addf %5, %7 : vector<32x128xf32>
    %c0_7 = arith.constant 0 : index
    %c0_8 = arith.constant 0 : index
    %9 = vector.load %arg5[%c0_7, %c0_8] : memref<32x128xf32, #tpu.memory_space<vmem>>, vector<32x128xf32>
    tpu.vector_store %arg5[%c0_7, %c0_8], %8 {strides = array<i32>} : memref<32x128xf32, #tpu.memory_space<vmem>>, vector<32x128xf32>,
    return
  }
  func.func @transform_0(%arg0: i32) -> (i32, i32) {
    %c0_i32 = arith.constant 0 : i32
    %c0_i32_0 = arith.constant 0 : i32
    return %arg0, %c0_i32 : i32, i32
  }
  func.func @transform_1(%arg0: i32) -> (i32, i32) {
    %c0_i32 = arith.constant 0 : i32
    %c0_i32_0 = arith.constant 0 : i32
    %c0_i32_1 = arith.constant 0 : i32
    return %c0_i32, %c0_i32_0 : i32, i32
  }
  func.func @transform_2(%arg0: i32) -> (i32, i32) {
    %c0_i32 = arith.constant 0 : i32
    %c0_i32_0 = arith.constant 0 : i32
    %c0_i32_1 = arith.constant 0 : i32
    return %c0_i32, %c0_i32_0 : i32, i32
  }
  func.func @transform_3(%arg0: i32) -> (i32, i32) {
    %c0_i32 = arith.constant 0 : i32
    %c0_i32_0 = arith.constant 0 : i32
    %c0_i32_1 = arith.constant 0 : i32
    return %c0_i32, %c0_i32_0 : i32, i32
  }
  func.func @transform_4(%arg0: i32) -> (i32, i32) {
    %c0_i32 = arith.constant 0 : i32
    %c0_i32_0 = arith.constant 0 : i32
    return %arg0, %c0_i32 : i32, i32
  }
}

module attributes {stable_mosaic.version = 11 : i64} {
  func.func @_gemm_kernel(%arg0: i32, %arg1: memref<32x384xbf16, #tpu.memory_space<vmem>>, %arg2: memref<384x128xbf16, #tpu.memory_space<vmem>>, %arg3: memref<1x128xf32, #tpu.memory_space<vmem>>, %arg4: memref<1x128xf32, #tpu.memory_space<vmem>>, %arg5: memref<32x128xf32, #tpu.memory_space<vmem>>) attributes {dimension_semantics = [#tpu.dimension_semantics<parallel>], iteration_bounds = array<i64: 2>, scalar_prefetch = 0 : i64, scratch_operands = 0 : i64, tpu.core_type = #tpu.core_type<tc>, window_params = [{transform_indices = @transform_0, window_bounds = array<i64: 32, 384>}, {pipeline_mode = #tpu.pipeline_mode<synchronous>, transform_indices = @transform_1, window_bounds = array<i64: 384, 128>}, {pipeline_mode = #tpu.pipeline_mode<synchronous>, transform_indices = @transform_2, window_bounds = array<i64: 1, 128>}, {pipeline_mode = #tpu.pipeline_mode<synchronous>, transform_indices = @transform_3, window_bounds = array<i64: 1, 128>}, {transform_indices = @transform_4, window_bounds = array<i64: 32, 128>}]} {
    %c0 = arith.constant 0 : index
    %c0_0 = arith.constant 0 : index
    %0 = vector.load %arg1[%c0, %c0_0] : memref<32x384xbf16, #tpu.memory_space<vmem>>, vector<32x384xbf16>
    %c0_1 = arith.constant 0 : index
    %c0_2 = arith.constant 0 : index
    %1 = vector.load %arg2[%c0_1, %c0_2] : memref<384x128xbf16, #tpu.memory_space<vmem>>, vector<384x128xbf16>
    %cst = arith.constant dense<0.000000e+00> : vector<32x128xf32>
    %2 = tpu.matmul %0, %1, %cst {dimension_numbers = #tpu.dot_dimension_numbers<[1], [0], [0], [1], [0, 0, 1, 1], [], []>} : vector<32x384xbf16>, vector<384x128xbf16>, vector<32x128xf32> -> vector<32x128xf32>
    %c0_3 = arith.constant 0 : index
    %c0_4 = arith.constant 0 : index
    %3 = vector.load %arg3[%c0_3, %c0_4] : memref<1x128xf32, #tpu.memory_space<vmem>>, vector<1x128xf32>
    %4 = vector.broadcast %3 : vector<1x128xf32> to vector<32x128xf32>
    %5 = arith.mulf %2, %4 : vector<32x128xf32>
    %c0_5 = arith.constant 0 : index
    %c0_6 = arith.constant 0 : index
    %6 = vector.load %arg4[%c0_5, %c0_6] : memref<1x128xf32, #tpu.memory_space<vmem>>, vector<1x128xf32>
    %7 = vector.broadcast %6 : vector<1x128xf32> to vector<32x128xf32>
    %8 = arith.addf %5, %7 : vector<32x128xf32>
    %c0_7 = arith.constant 0 : index
    %c0_8 = arith.constant 0 : index
    %9 = vector.load %arg5[%c0_7, %c0_8] : memref<32x128xf32, #tpu.memory_space<vmem>>, vector<32x128xf32>
    tpu.vector_store %arg5[%c0_7, %c0_8], %8 {strides = array<i32>} : memref<32x128xf32, #tpu.memory_space<vmem>>, vector<32x128xf32>,
    return
  }
  func.func @transform_0(%arg0: i32) -> (i32, i32) {
    %c0_i32 = arith.constant 0 : i32
    %c0_i32_0 = arith.constant 0 : i32
    return %arg0, %c0_i32 : i32, i32
  }
  func.func @transform_1(%arg0: i32) -> (i32, i32) {
    %c0_i32 = arith.constant 0 : i32
    %c0_i32_0 = arith.constant 0 : i32
    %c0_i32_1 = arith.constant 0 : i32
    return %c0_i32, %c0_i32_0 : i32, i32
  }
  func.func @transform_2(%arg0: i32) -> (i32, i32) {
    %c0_i32 = arith.constant 0 : i32
    %c0_i32_0 = arith.constant 0 : i32
    %c0_i32_1 = arith.constant 0 : i32
    return %c0_i32, %c0_i32_0 : i32, i32
  }
  func.func @transform_3(%arg0: i32) -> (i32, i32) {
    %c0_i32 = arith.constant 0 : i32
    %c0_i32_0 = arith.constant 0 : i32
    %c0_i32_1 = arith.constant 0 : i32
    return %c0_i32, %c0_i32_0 : i32, i32
  }
  func.func @transform_4(%arg0: i32) -> (i32, i32) {
    %c0_i32 = arith.constant 0 : i32
    %c0_i32_0 = arith.constant 0 : i32
    return %arg0, %c0_i32 : i32, i32
  }
}

module attributes {stable_mosaic.version = 11 : i64} {
  func.func @_gemm_kernel(%arg0: i32, %arg1: memref<32x1152xbf16, #tpu.memory_space<vmem>>, %arg2: memref<1152x128xbf16, #tpu.memory_space<vmem>>, %arg3: memref<1x128xf32, #tpu.memory_space<vmem>>, %arg4: memref<1x128xf32, #tpu.memory_space<vmem>>, %arg5: memref<32x128xf32, #tpu.memory_space<vmem>>) attributes {dimension_semantics = [#tpu.dimension_semantics<parallel>], iteration_bounds = array<i64: 2>, scalar_prefetch = 0 : i64, scratch_operands = 0 : i64, tpu.core_type = #tpu.core_type<tc>, window_params = [{transform_indices = @transform_0, window_bounds = array<i64: 32, 1152>}, {pipeline_mode = #tpu.pipeline_mode<synchronous>, transform_indices = @transform_1, window_bounds = array<i64: 1152, 128>}, {pipeline_mode = #tpu.pipeline_mode<synchronous>, transform_indices = @transform_2, window_bounds = array<i64: 1, 128>}, {pipeline_mode = #tpu.pipeline_mode<synchronous>, transform_indices = @transform_3, window_bounds = array<i64: 1, 128>}, {transform_indices = @transform_4, window_bounds = array<i64: 32, 128>}]} {
    %c0 = arith.constant 0 : index
    %c0_0 = arith.constant 0 : index
    %0 = vector.load %arg1[%c0, %c0_0] : memref<32x1152xbf16, #tpu.memory_space<vmem>>, vector<32x1152xbf16>
    %c0_1 = arith.constant 0 : index
    %c0_2 = arith.constant 0 : index
    %1 = vector.load %arg2[%c0_1, %c0_2] : memref<1152x128xbf16, #tpu.memory_space<vmem>>, vector<1152x128xbf16>
    %cst = arith.constant dense<0.000000e+00> : vector<32x128xf32>
    %2 = tpu.matmul %0, %1, %cst {dimension_numbers = #tpu.dot_dimension_numbers<[1], [0], [0], [1], [0, 0, 1, 1], [], []>} : vector<32x1152xbf16>, vector<1152x128xbf16>, vector<32x128xf32> -> vector<32x128xf32>
    %c0_3 = arith.constant 0 : index
    %c0_4 = arith.constant 0 : index
    %3 = vector.load %arg3[%c0_3, %c0_4] : memref<1x128xf32, #tpu.memory_space<vmem>>, vector<1x128xf32>
    %4 = vector.broadcast %3 : vector<1x128xf32> to vector<32x128xf32>
    %5 = arith.mulf %2, %4 : vector<32x128xf32>
    %c0_5 = arith.constant 0 : index
    %c0_6 = arith.constant 0 : index
    %6 = vector.load %arg4[%c0_5, %c0_6] : memref<1x128xf32, #tpu.memory_space<vmem>>, vector<1x128xf32>
    %7 = vector.broadcast %6 : vector<1x128xf32> to vector<32x128xf32>
    %8 = arith.addf %5, %7 : vector<32x128xf32>
    %c0_7 = arith.constant 0 : index
    %c0_8 = arith.constant 0 : index
    %9 = vector.load %arg5[%c0_7, %c0_8] : memref<32x128xf32, #tpu.memory_space<vmem>>, vector<32x128xf32>
    tpu.vector_store %arg5[%c0_7, %c0_8], %8 {strides = array<i32>} : memref<32x128xf32, #tpu.memory_space<vmem>>, vector<32x128xf32>,
    return
  }
  func.func @transform_0(%arg0: i32) -> (i32, i32) {
    %c0_i32 = arith.constant 0 : i32
    %c0_i32_0 = arith.constant 0 : i32
    return %arg0, %c0_i32 : i32, i32
  }
  func.func @transform_1(%arg0: i32) -> (i32, i32) {
    %c0_i32 = arith.constant 0 : i32
    %c0_i32_0 = arith.constant 0 : i32
    %c0_i32_1 = arith.constant 0 : i32
    return %c0_i32, %c0_i32_0 : i32, i32
  }
  func.func @transform_2(%arg0: i32) -> (i32, i32) {
    %c0_i32 = arith.constant 0 : i32
    %c0_i32_0 = arith.constant 0 : i32
    %c0_i32_1 = arith.constant 0 : i32
    return %c0_i32, %c0_i32_0 : i32, i32
  }
  func.func @transform_3(%arg0: i32) -> (i32, i32) {
    %c0_i32 = arith.constant 0 : i32
    %c0_i32_0 = arith.constant 0 : i32
    %c0_i32_1 = arith.constant 0 : i32
    return %c0_i32, %c0_i32_0 : i32, i32
  }
  func.func @transform_4(%arg0: i32) -> (i32, i32) {
    %c0_i32 = arith.constant 0 : i32
    %c0_i32_0 = arith.constant 0 : i32
    return %arg0, %c0_i32 : i32, i32
  }
}

module attributes {stable_mosaic.version = 11 : i64} {
  func.func @_gemm_kernel(%arg0: i32, %arg1: memref<32x2304xbf16, #tpu.memory_space<vmem>>, %arg2: memref<2304x512xbf16, #tpu.memory_space<vmem>>, %arg3: memref<1x512xf32, #tpu.memory_space<vmem>>, %arg4: memref<1x512xf32, #tpu.memory_space<vmem>>, %arg5: memref<32x512xf32, #tpu.memory_space<vmem>>) attributes {dimension_semantics = [#tpu.dimension_semantics<parallel>], iteration_bounds = array<i64: 2>, scalar_prefetch = 0 : i64, scratch_operands = 0 : i64, tpu.core_type = #tpu.core_type<tc>, window_params = [{transform_indices = @transform_0, window_bounds = array<i64: 32, 2304>}, {pipeline_mode = #tpu.pipeline_mode<synchronous>, transform_indices = @transform_1, window_bounds = array<i64: 2304, 512>}, {pipeline_mode = #tpu.pipeline_mode<synchronous>, transform_indices = @transform_2, window_bounds = array<i64: 1, 512>}, {pipeline_mode = #tpu.pipeline_mode<synchronous>, transform_indices = @transform_3, window_bounds = array<i64: 1, 512>}, {transform_indices = @transform_4, window_bounds = array<i64: 32, 512>}]} {
    %c0 = arith.constant 0 : index
    %c0_0 = arith.constant 0 : index
    %0 = vector.load %arg1[%c0, %c0_0] : memref<32x2304xbf16, #tpu.memory_space<vmem>>, vector<32x2304xbf16>
    %c0_1 = arith.constant 0 : index
    %c0_2 = arith.constant 0 : index
    %1 = vector.load %arg2[%c0_1, %c0_2] : memref<2304x512xbf16, #tpu.memory_space<vmem>>, vector<2304x512xbf16>
    %cst = arith.constant dense<0.000000e+00> : vector<32x512xf32>
    %2 = tpu.matmul %0, %1, %cst {dimension_numbers = #tpu.dot_dimension_numbers<[1], [0], [0], [1], [0, 0, 1, 1], [], []>} : vector<32x2304xbf16>, vector<2304x512xbf16>, vector<32x512xf32> -> vector<32x512xf32>
    %c0_3 = arith.constant 0 : index
    %c0_4 = arith.constant 0 : index
    %3 = vector.load %arg3[%c0_3, %c0_4] : memref<1x512xf32, #tpu.memory_space<vmem>>, vector<1x512xf32>
    %4 = vector.broadcast %3 : vector<1x512xf32> to vector<32x512xf32>
    %5 = arith.mulf %2, %4 : vector<32x512xf32>
    %c0_5 = arith.constant 0 : index
    %c0_6 = arith.constant 0 : index
    %6 = vector.load %arg4[%c0_5, %c0_6] : memref<1x512xf32, #tpu.memory_space<vmem>>, vector<1x512xf32>
    %7 = vector.broadcast %6 : vector<1x512xf32> to vector<32x512xf32>
    %8 = arith.addf %5, %7 : vector<32x512xf32>
    %cst_7 = arith.constant 1.000000e-01 : f32
    %9 = vector.broadcast %cst_7 : f32 to vector<32x512xf32>
    %10 = arith.mulf %9, %8 : vector<32x512xf32>
    %11 = arith.maximumf %8, %10 : vector<32x512xf32>
    %c0_8 = arith.constant 0 : index
    %c0_9 = arith.constant 0 : index
    %12 = vector.load %arg5[%c0_8, %c0_9] : memref<32x512xf32, #tpu.memory_space<vmem>>, vector<32x512xf32>
    tpu.vector_store %arg5[%c0_8, %c0_9], %11 {strides = array<i32>} : memref<32x512xf32, #tpu.memory_space<vmem>>, vector<32x512xf32>,
    return
  }
  func.func @transform_0(%arg0: i32) -> (i32, i32) {
    %c0_i32 = arith.constant 0 : i32
    %c0_i32_0 = arith.constant 0 : i32
    return %arg0, %c0_i32 : i32, i32
  }
  func.func @transform_1(%arg0: i32) -> (i32, i32) {
    %c0_i32 = arith.constant 0 : i32
    %c0_i32_0 = arith.constant 0 : i32
    %c0_i32_1 = arith.constant 0 : i32
    return %c0_i32, %c0_i32_0 : i32, i32
  }
  func.func @transform_2(%arg0: i32) -> (i32, i32) {
    %c0_i32 = arith.constant 0 : i32
    %c0_i32_0 = arith.constant 0 : i32
    %c0_i32_1 = arith.constant 0 : i32
    return %c0_i32, %c0_i32_0 : i32, i32
  }
  func.func @transform_3(%arg0: i32) -> (i32, i32) {
    %c0_i32 = arith.constant 0 : i32
    %c0_i32_0 = arith.constant 0 : i32
    %c0_i32_1 = arith.constant 0 : i32
    return %c0_i32, %c0_i32_0 : i32, i32
  }
  func.func @transform_4(%arg0: i32) -> (i32, i32) {
    %c0_i32 = arith.constant 0 : i32
    %c0_i32_0 = arith.constant 0 : i32
    return %arg0, %c0_i32 : i32, i32
  }
}

module attributes {stable_mosaic.version = 11 : i64} {
  func.func @_gemm_kernel(%arg0: i32, %arg1: memref<32x512xbf16, #tpu.memory_space<vmem>>, %arg2: memref<512x256xbf16, #tpu.memory_space<vmem>>, %arg3: memref<1x256xf32, #tpu.memory_space<vmem>>, %arg4: memref<1x256xf32, #tpu.memory_space<vmem>>, %arg5: memref<32x256xf32, #tpu.memory_space<vmem>>) attributes {dimension_semantics = [#tpu.dimension_semantics<parallel>], iteration_bounds = array<i64: 2>, scalar_prefetch = 0 : i64, scratch_operands = 0 : i64, tpu.core_type = #tpu.core_type<tc>, window_params = [{transform_indices = @transform_0, window_bounds = array<i64: 32, 512>}, {pipeline_mode = #tpu.pipeline_mode<synchronous>, transform_indices = @transform_1, window_bounds = array<i64: 512, 256>}, {pipeline_mode = #tpu.pipeline_mode<synchronous>, transform_indices = @transform_2, window_bounds = array<i64: 1, 256>}, {pipeline_mode = #tpu.pipeline_mode<synchronous>, transform_indices = @transform_3, window_bounds = array<i64: 1, 256>}, {transform_indices = @transform_4, window_bounds = array<i64: 32, 256>}]} {
    %c0 = arith.constant 0 : index
    %c0_0 = arith.constant 0 : index
    %0 = vector.load %arg1[%c0, %c0_0] : memref<32x512xbf16, #tpu.memory_space<vmem>>, vector<32x512xbf16>
    %c0_1 = arith.constant 0 : index
    %c0_2 = arith.constant 0 : index
    %1 = vector.load %arg2[%c0_1, %c0_2] : memref<512x256xbf16, #tpu.memory_space<vmem>>, vector<512x256xbf16>
    %cst = arith.constant dense<0.000000e+00> : vector<32x256xf32>
    %2 = tpu.matmul %0, %1, %cst {dimension_numbers = #tpu.dot_dimension_numbers<[1], [0], [0], [1], [0, 0, 1, 1], [], []>} : vector<32x512xbf16>, vector<512x256xbf16>, vector<32x256xf32> -> vector<32x256xf32>
    %c0_3 = arith.constant 0 : index
    %c0_4 = arith.constant 0 : index
    %3 = vector.load %arg3[%c0_3, %c0_4] : memref<1x256xf32, #tpu.memory_space<vmem>>, vector<1x256xf32>
    %4 = vector.broadcast %3 : vector<1x256xf32> to vector<32x256xf32>
    %5 = arith.mulf %2, %4 : vector<32x256xf32>
    %c0_5 = arith.constant 0 : index
    %c0_6 = arith.constant 0 : index
    %6 = vector.load %arg4[%c0_5, %c0_6] : memref<1x256xf32, #tpu.memory_space<vmem>>, vector<1x256xf32>
    %7 = vector.broadcast %6 : vector<1x256xf32> to vector<32x256xf32>
    %8 = arith.addf %5, %7 : vector<32x256xf32>
    %cst_7 = arith.constant 1.000000e-01 : f32
    %9 = vector.broadcast %cst_7 : f32 to vector<32x256xf32>
    %10 = arith.mulf %9, %8 : vector<32x256xf32>
    %11 = arith.maximumf %8, %10 : vector<32x256xf32>
    %c0_8 = arith.constant 0 : index
    %c0_9 = arith.constant 0 : index
    %12 = vector.load %arg5[%c0_8, %c0_9] : memref<32x256xf32, #tpu.memory_space<vmem>>, vector<32x256xf32>
    tpu.vector_store %arg5[%c0_8, %c0_9], %11 {strides = array<i32>} : memref<32x256xf32, #tpu.memory_space<vmem>>, vector<32x256xf32>,
    return
  }
  func.func @transform_0(%arg0: i32) -> (i32, i32) {
    %c0_i32 = arith.constant 0 : i32
    %c0_i32_0 = arith.constant 0 : i32
    return %arg0, %c0_i32 : i32, i32
  }
  func.func @transform_1(%arg0: i32) -> (i32, i32) {
    %c0_i32 = arith.constant 0 : i32
    %c0_i32_0 = arith.constant 0 : i32
    %c0_i32_1 = arith.constant 0 : i32
    return %c0_i32, %c0_i32_0 : i32, i32
  }
  func.func @transform_2(%arg0: i32) -> (i32, i32) {
    %c0_i32 = arith.constant 0 : i32
    %c0_i32_0 = arith.constant 0 : i32
    %c0_i32_1 = arith.constant 0 : i32
    return %c0_i32, %c0_i32_0 : i32, i32
  }
  func.func @transform_3(%arg0: i32) -> (i32, i32) {
    %c0_i32 = arith.constant 0 : i32
    %c0_i32_0 = arith.constant 0 : i32
    %c0_i32_1 = arith.constant 0 : i32
    return %c0_i32, %c0_i32_0 : i32, i32
  }
  func.func @transform_4(%arg0: i32) -> (i32, i32) {
    %c0_i32 = arith.constant 0 : i32
    %c0_i32_0 = arith.constant 0 : i32
    return %arg0, %c0_i32 : i32, i32
  }
}

module attributes {stable_mosaic.version = 11 : i64} {
  func.func @_gemm_kernel(%arg0: i32, %arg1: memref<32x512xbf16, #tpu.memory_space<vmem>>, %arg2: memref<512x128xbf16, #tpu.memory_space<vmem>>, %arg3: memref<1x128xf32, #tpu.memory_space<vmem>>, %arg4: memref<1x128xf32, #tpu.memory_space<vmem>>, %arg5: memref<32x128xf32, #tpu.memory_space<vmem>>) attributes {dimension_semantics = [#tpu.dimension_semantics<parallel>], iteration_bounds = array<i64: 2>, scalar_prefetch = 0 : i64, scratch_operands = 0 : i64, tpu.core_type = #tpu.core_type<tc>, window_params = [{transform_indices = @transform_0, window_bounds = array<i64: 32, 512>}, {pipeline_mode = #tpu.pipeline_mode<synchronous>, transform_indices = @transform_1, window_bounds = array<i64: 512, 128>}, {pipeline_mode = #tpu.pipeline_mode<synchronous>, transform_indices = @transform_2, window_bounds = array<i64: 1, 128>}, {pipeline_mode = #tpu.pipeline_mode<synchronous>, transform_indices = @transform_3, window_bounds = array<i64: 1, 128>}, {transform_indices = @transform_4, window_bounds = array<i64: 32, 128>}]} {
    %c0 = arith.constant 0 : index
    %c0_0 = arith.constant 0 : index
    %0 = vector.load %arg1[%c0, %c0_0] : memref<32x512xbf16, #tpu.memory_space<vmem>>, vector<32x512xbf16>
    %c0_1 = arith.constant 0 : index
    %c0_2 = arith.constant 0 : index
    %1 = vector.load %arg2[%c0_1, %c0_2] : memref<512x128xbf16, #tpu.memory_space<vmem>>, vector<512x128xbf16>
    %cst = arith.constant dense<0.000000e+00> : vector<32x128xf32>
    %2 = tpu.matmul %0, %1, %cst {dimension_numbers = #tpu.dot_dimension_numbers<[1], [0], [0], [1], [0, 0, 1, 1], [], []>} : vector<32x512xbf16>, vector<512x128xbf16>, vector<32x128xf32> -> vector<32x128xf32>
    %c0_3 = arith.constant 0 : index
    %c0_4 = arith.constant 0 : index
    %3 = vector.load %arg3[%c0_3, %c0_4] : memref<1x128xf32, #tpu.memory_space<vmem>>, vector<1x128xf32>
    %4 = vector.broadcast %3 : vector<1x128xf32> to vector<32x128xf32>
    %5 = arith.mulf %2, %4 : vector<32x128xf32>
    %c0_5 = arith.constant 0 : index
    %c0_6 = arith.constant 0 : index
    %6 = vector.load %arg4[%c0_5, %c0_6] : memref<1x128xf32, #tpu.memory_space<vmem>>, vector<1x128xf32>
    %7 = vector.broadcast %6 : vector<1x128xf32> to vector<32x128xf32>
    %8 = arith.addf %5, %7 : vector<32x128xf32>
    %c0_7 = arith.constant 0 : index
    %c0_8 = arith.constant 0 : index
    %9 = vector.load %arg5[%c0_7, %c0_8] : memref<32x128xf32, #tpu.memory_space<vmem>>, vector<32x128xf32>
    tpu.vector_store %arg5[%c0_7, %c0_8], %8 {strides = array<i32>} : memref<32x128xf32, #tpu.memory_space<vmem>>, vector<32x128xf32>,
    return
  }
  func.func @transform_0(%arg0: i32) -> (i32, i32) {
    %c0_i32 = arith.constant 0 : i32
    %c0_i32_0 = arith.constant 0 : i32
    return %arg0, %c0_i32 : i32, i32
  }
  func.func @transform_1(%arg0: i32) -> (i32, i32) {
    %c0_i32 = arith.constant 0 : i32
    %c0_i32_0 = arith.constant 0 : i32
    %c0_i32_1 = arith.constant 0 : i32
    return %c0_i32, %c0_i32_0 : i32, i32
  }
  func.func @transform_2(%arg0: i32) -> (i32, i32) {
    %c0_i32 = arith.constant 0 : i32
    %c0_i32_0 = arith.constant 0 : i32
    %c0_i32_1 = arith.constant 0 : i32
    return %c0_i32, %c0_i32_0 : i32, i32
  }
  func.func @transform_3(%arg0: i32) -> (i32, i32) {
    %c0_i32 = arith.constant 0 : i32
    %c0_i32_0 = arith.constant 0 : i32
    %c0_i32_1 = arith.constant 0 : i32
    return %c0_i32, %c0_i32_0 : i32, i32
  }
  func.func @transform_4(%arg0: i32) -> (i32, i32) {
    %c0_i32 = arith.constant 0 : i32
    %c0_i32_0 = arith.constant 0 : i32
    return %arg0, %c0_i32 : i32, i32
  }
}

module attributes {stable_mosaic.version = 11 : i64} {
  func.func @_gemm_kernel(%arg0: i32, %arg1: memref<32x640xbf16, #tpu.memory_space<vmem>>, %arg2: memref<640x128xbf16, #tpu.memory_space<vmem>>, %arg3: memref<1x128xf32, #tpu.memory_space<vmem>>, %arg4: memref<1x128xf32, #tpu.memory_space<vmem>>, %arg5: memref<32x128xf32, #tpu.memory_space<vmem>>) attributes {dimension_semantics = [#tpu.dimension_semantics<parallel>], iteration_bounds = array<i64: 2>, scalar_prefetch = 0 : i64, scratch_operands = 0 : i64, tpu.core_type = #tpu.core_type<tc>, window_params = [{transform_indices = @transform_0, window_bounds = array<i64: 32, 640>}, {pipeline_mode = #tpu.pipeline_mode<synchronous>, transform_indices = @transform_1, window_bounds = array<i64: 640, 128>}, {pipeline_mode = #tpu.pipeline_mode<synchronous>, transform_indices = @transform_2, window_bounds = array<i64: 1, 128>}, {pipeline_mode = #tpu.pipeline_mode<synchronous>, transform_indices = @transform_3, window_bounds = array<i64: 1, 128>}, {transform_indices = @transform_4, window_bounds = array<i64: 32, 128>}]} {
    %c0 = arith.constant 0 : index
    %c0_0 = arith.constant 0 : index
    %0 = vector.load %arg1[%c0, %c0_0] : memref<32x640xbf16, #tpu.memory_space<vmem>>, vector<32x640xbf16>
    %c0_1 = arith.constant 0 : index
    %c0_2 = arith.constant 0 : index
    %1 = vector.load %arg2[%c0_1, %c0_2] : memref<640x128xbf16, #tpu.memory_space<vmem>>, vector<640x128xbf16>
    %cst = arith.constant dense<0.000000e+00> : vector<32x128xf32>
    %2 = tpu.matmul %0, %1, %cst {dimension_numbers = #tpu.dot_dimension_numbers<[1], [0], [0], [1], [0, 0, 1, 1], [], []>} : vector<32x640xbf16>, vector<640x128xbf16>, vector<32x128xf32> -> vector<32x128xf32>
    %c0_3 = arith.constant 0 : index
    %c0_4 = arith.constant 0 : index
    %3 = vector.load %arg3[%c0_3, %c0_4] : memref<1x128xf32, #tpu.memory_space<vmem>>, vector<1x128xf32>
    %4 = vector.broadcast %3 : vector<1x128xf32> to vector<32x128xf32>
    %5 = arith.mulf %2, %4 : vector<32x128xf32>
    %c0_5 = arith.constant 0 : index
    %c0_6 = arith.constant 0 : index
    %6 = vector.load %arg4[%c0_5, %c0_6] : memref<1x128xf32, #tpu.memory_space<vmem>>, vector<1x128xf32>
    %7 = vector.broadcast %6 : vector<1x128xf32> to vector<32x128xf32>
    %8 = arith.addf %5, %7 : vector<32x128xf32>
    %c0_7 = arith.constant 0 : index
    %c0_8 = arith.constant 0 : index
    %9 = vector.load %arg5[%c0_7, %c0_8] : memref<32x128xf32, #tpu.memory_space<vmem>>, vector<32x128xf32>
    tpu.vector_store %arg5[%c0_7, %c0_8], %8 {strides = array<i32>} : memref<32x128xf32, #tpu.memory_space<vmem>>, vector<32x128xf32>,
    return
  }
  func.func @transform_0(%arg0: i32) -> (i32, i32) {
    %c0_i32 = arith.constant 0 : i32
    %c0_i32_0 = arith.constant 0 : i32
    return %arg0, %c0_i32 : i32, i32
  }
  func.func @transform_1(%arg0: i32) -> (i32, i32) {
    %c0_i32 = arith.constant 0 : i32
    %c0_i32_0 = arith.constant 0 : i32
    %c0_i32_1 = arith.constant 0 : i32
    return %c0_i32, %c0_i32_0 : i32, i32
  }
  func.func @transform_2(%arg0: i32) -> (i32, i32) {
    %c0_i32 = arith.constant 0 : i32
    %c0_i32_0 = arith.constant 0 : i32
    %c0_i32_1 = arith.constant 0 : i32
    return %c0_i32, %c0_i32_0 : i32, i32
  }
  func.func @transform_3(%arg0: i32) -> (i32, i32) {
    %c0_i32 = arith.constant 0 : i32
    %c0_i32_0 = arith.constant 0 : i32
    %c0_i32_1 = arith.constant 0 : i32
    return %c0_i32, %c0_i32_0 : i32, i32
  }
  func.func @transform_4(%arg0: i32) -> (i32, i32) {
    %c0_i32 = arith.constant 0 : i32
    %c0_i32_0 = arith.constant 0 : i32
    return %arg0, %c0_i32 : i32, i32
  }
}

module attributes {stable_mosaic.version = 11 : i64} {
  func.func @_gemm_kernel(%arg0: i32, %arg1: memref<32x896xbf16, #tpu.memory_space<vmem>>, %arg2: memref<896x128xbf16, #tpu.memory_space<vmem>>, %arg3: memref<1x128xf32, #tpu.memory_space<vmem>>, %arg4: memref<1x128xf32, #tpu.memory_space<vmem>>, %arg5: memref<32x128xf32, #tpu.memory_space<vmem>>) attributes {dimension_semantics = [#tpu.dimension_semantics<parallel>], iteration_bounds = array<i64: 2>, scalar_prefetch = 0 : i64, scratch_operands = 0 : i64, tpu.core_type = #tpu.core_type<tc>, window_params = [{transform_indices = @transform_0, window_bounds = array<i64: 32, 896>}, {pipeline_mode = #tpu.pipeline_mode<synchronous>, transform_indices = @transform_1, window_bounds = array<i64: 896, 128>}, {pipeline_mode = #tpu.pipeline_mode<synchronous>, transform_indices = @transform_2, window_bounds = array<i64: 1, 128>}, {pipeline_mode = #tpu.pipeline_mode<synchronous>, transform_indices = @transform_3, window_bounds = array<i64: 1, 128>}, {transform_indices = @transform_4, window_bounds = array<i64: 32, 128>}]} {
    %c0 = arith.constant 0 : index
    %c0_0 = arith.constant 0 : index
    %0 = vector.load %arg1[%c0, %c0_0] : memref<32x896xbf16, #tpu.memory_space<vmem>>, vector<32x896xbf16>
    %c0_1 = arith.constant 0 : index
    %c0_2 = arith.constant 0 : index
    %1 = vector.load %arg2[%c0_1, %c0_2] : memref<896x128xbf16, #tpu.memory_space<vmem>>, vector<896x128xbf16>
    %cst = arith.constant dense<0.000000e+00> : vector<32x128xf32>
    %2 = tpu.matmul %0, %1, %cst {dimension_numbers = #tpu.dot_dimension_numbers<[1], [0], [0], [1], [0, 0, 1, 1], [], []>} : vector<32x896xbf16>, vector<896x128xbf16>, vector<32x128xf32> -> vector<32x128xf32>
    %c0_3 = arith.constant 0 : index
    %c0_4 = arith.constant 0 : index
    %3 = vector.load %arg3[%c0_3, %c0_4] : memref<1x128xf32, #tpu.memory_space<vmem>>, vector<1x128xf32>
    %4 = vector.broadcast %3 : vector<1x128xf32> to vector<32x128xf32>
    %5 = arith.mulf %2, %4 : vector<32x128xf32>
    %c0_5 = arith.constant 0 : index
    %c0_6 = arith.constant 0 : index
    %6 = vector.load %arg4[%c0_5, %c0_6] : memref<1x128xf32, #tpu.memory_space<vmem>>, vector<1x128xf32>
    %7 = vector.broadcast %6 : vector<1x128xf32> to vector<32x128xf32>
    %8 = arith.addf %5, %7 : vector<32x128xf32>
    %c0_7 = arith.constant 0 : index
    %c0_8 = arith.constant 0 : index
    %9 = vector.load %arg5[%c0_7, %c0_8] : memref<32x128xf32, #tpu.memory_space<vmem>>, vector<32x128xf32>
    tpu.vector_store %arg5[%c0_7, %c0_8], %8 {strides = array<i32>} : memref<32x128xf32, #tpu.memory_space<vmem>>, vector<32x128xf32>,
    return
  }
  func.func @transform_0(%arg0: i32) -> (i32, i32) {
    %c0_i32 = arith.constant 0 : i32
    %c0_i32_0 = arith.constant 0 : i32
    return %arg0, %c0_i32 : i32, i32
  }
  func.func @transform_1(%arg0: i32) -> (i32, i32) {
    %c0_i32 = arith.constant 0 : i32
    %c0_i32_0 = arith.constant 0 : i32
    %c0_i32_1 = arith.constant 0 : i32
    return %c0_i32, %c0_i32_0 : i32, i32
  }
  func.func @transform_2(%arg0: i32) -> (i32, i32) {
    %c0_i32 = arith.constant 0 : i32
    %c0_i32_0 = arith.constant 0 : i32
    %c0_i32_1 = arith.constant 0 : i32
    return %c0_i32, %c0_i32_0 : i32, i32
  }
  func.func @transform_3(%arg0: i32) -> (i32, i32) {
    %c0_i32 = arith.constant 0 : i32
    %c0_i32_0 = arith.constant 0 : i32
    %c0_i32_1 = arith.constant 0 : i32
    return %c0_i32, %c0_i32_0 : i32, i32
  }
  func.func @transform_4(%arg0: i32) -> (i32, i32) {
    %c0_i32 = arith.constant 0 : i32
    %c0_i32_0 = arith.constant 0 : i32
    return %arg0, %c0_i32 : i32, i32
  }
}

</mosaic_0001>

<bundles_post_ra>
// kernel: cpd_d19_forward.129
= control target key start
LH: loop header
LB: loop body
LE: loop exit
PB: predicated region body
PF: predicated region fallthrough
CT: control target
= control target key end

     0   :  { %s975_s15 = smov 0   ;;  %s1146_s0 = inlined_call_operand.vmem [shape: bf16[1024,128], index: 0, kind: input, shape index: {}]   ;;  %s1147_s1 = inlined_call_operand.vmem [shape: bf16[128,128], index: 1, kind: input, shape index: {}]   ;;  %s1148_s2 = inlined_call_operand.vmem [shape: f32[1,128], index: 2, kind: input, shape index: {}]   ;;  %s1149_s3 = inlined_call_operand.vmem [shape: f32[1,128], index: 3, kind: input, shape index: {}]   ;;  %s1150_s4 = inlined_call_operand.vmem [shape: f32[1024,128], index: 4, kind: output, shape index: {}]  }
   0x1 LB: > { %s785_s16 = sadd.s32 4294967295, %s948_s15   ;;  %p789_p0 = scmp.ge.s32.totalorder %s948_s15, 1  ;;  %s948_s15 = sphi %s975_s15, %s14_s15  }
   0x2   : > { %p163_p1 = scmp.lt.s32.totalorder %s948_s15, 5 }
   0x4   : > { %p164_p2 = pnand %p789_p0, %p163_p1 }
   0x5   : > { %s790_s19 = sshll.u32 (!%p164_p2), %s785_s16, 5 }
   0x6   : > { %167 = sbr.rel (%p164_p2) target bundleno = 279 (0x117), region = 36  ;;  %p190_p3 = scmp.lt.s32.totalorder (!%p164_p2), %s790_s19, 127 }
   0xb   : > { %v918_v0 = vld [vmem:[%s1147_s1 + $0x38] sm:$0xff]   ;;  %v919_v1 = vld [vmem:[%s1147_s1 + $0x30] sm:$0xff]   ;;  %s1152_s19 = smov (!%p190_p3, %s790_s19), 127  ;;  %v920_v2 = vld [vmem:[%s1147_s1 + $0x28] sm:$0xff]  }
   0xc   : > { %846 = vmatprep.subr.bf16.mxu0 %v918_v0  ;;  %894 = vmatprep.subr.bf16.mxu1 %v918_v0  ;;  %s791_s24 = sshll.u32 %s1152_s19, 2  ;;  %v921_v3 = vld [vmem:[%s1147_s1 + $0x20] sm:$0xff]   ;;  %v922_v6 = vld [vmem:[%s1147_s1 + $0x18] sm:$0xff]   ;;  %v923_v7 = vld [vmem:[%s1147_s1 + $0x10] sm:$0xff]   ;;  %s793_s17 = sshll.u32 %s1152_s19, 3 }
   0xd   : > { %847 = vmatpush3.bf16.msra.mxu0 %v918_v0  ;;  %902 = vmatpush3.bf16.msra.mxu1 %v918_v0  ;;  %s998_s27 = scalar_lea.vmem %s1146_s0, %s791_s24  ;;  %v924_v8 = vld [vmem:[%s1147_s1 + $0x8] sm:$0xff]   ;;  %v925_v9 = vld [vmem:[%s1147_s1] sm:$0xff]   ;;  %s1053_s19 = scalar_lea.vmem %s1150_s4, %s793_s17 }
   0xe   : > { %848 = vmatprep.subr.bf16.mxu0 %v919_v1  ;;  %895 = vmatprep.subr.bf16.mxu1 %v919_v1  ;;  %v926_v4 = vld [vmem:[%s998_s27] sm:$0xff]   ;;  %v928_v10 = vld [vmem:[%s998_s27 + $0x8] sm:$0xff]   ;;  %v930_v12 = vld [vmem:[%s998_s27 + $0x10] sm:$0xff]  }
   0xf   : > { %v927_v5 = vld [vmem:[%s998_s27 + $0x40] sm:$0xff]   ;;  %862 = vmatprep.mubr.bf16.mxu0 %v926_v4  ;;  %v929_v11 = vld [vmem:[%s998_s27 + $0x48] sm:$0xff]   ;;  %v931_v13 = vld [vmem:[%s998_s27 + $0x50] sm:$0xff]  }
  0x10   : > { %878 = vmatprep.mubr.bf16.mxu1 %v927_v5  ;;  %v932_v14 = vld [vmem:[%s998_s27 + $0x18] sm:$0xff]   ;;  %v934_v16 = vld [vmem:[%s998_s27 + $0x20] sm:$0xff]   ;;  %v936_v18 = vld [vmem:[%s998_s27 + $0x28] sm:$0xff]  }
  0x11   : > { %849 = vmatpush3.bf16.msra.mxu0 %v919_v1  ;;  %903 = vmatpush3.bf16.msra.mxu1 %v919_v1  ;;  %v933_v15 = vld [vmem:[%s998_s27 + $0x58] sm:$0xff]   ;;  %v935_v17 = vld [vmem:[%s998_s27 + $0x60] sm:$0xff]   ;;  %v937_v19 = vld [vmem:[%s998_s27 + $0x68] sm:$0xff]  }
  0x12   : > { %850 = vmatprep.subr.bf16.mxu0 %v920_v2  ;;  %896 = vmatprep.subr.bf16.mxu1 %v920_v2  ;;  %v938_v20 = vld [vmem:[%s998_s27 + $0x30] sm:$0xff]   ;;  %v940_v22 = vld [vmem:[%s998_s27 + $0x38] sm:$0xff]   ;;  %v1034_v24 = vld [vmem:[%s1148_s2] ss:$0 sm:$0xff] }
  0x13   : > { %v939_v21 = vld [vmem:[%s998_s27 + $0x70] sm:$0xff]   ;;  %v941_v23 = vld [vmem:[%s998_s27 + $0x78] sm:$0xff]   ;;  %v1039_v26 = vld [vmem:[%s1149_s3] ss:$0 sm:$0xff] }
  0x15   : > { %851 = vmatpush3.bf16.msra.mxu0 %v920_v2  ;;  %904 = vmatpush3.bf16.msra.mxu1 %v920_v2 }
  0x16   : > { %852 = vmatprep.subr.bf16.mxu0 %v921_v3  ;;  %897 = vmatprep.subr.bf16.mxu1 %v921_v3 }
  0x19   : > { %853 = vmatpush3.bf16.msra.mxu0 %v921_v3  ;;  %905 = vmatpush3.bf16.msra.mxu1 %v921_v3 }
  0x1a   : > { %854 = vmatprep.subr.bf16.mxu0 %v922_v6  ;;  %898 = vmatprep.subr.bf16.mxu1 %v922_v6 }
  0x1d   : > { %855 = vmatpush3.bf16.msra.mxu0 %v922_v6  ;;  %906 = vmatpush3.bf16.msra.mxu1 %v922_v6 }
  0x1e   : > { %856 = vmatprep.subr.bf16.mxu0 %v923_v7  ;;  %899 = vmatprep.subr.bf16.mxu1 %v923_v7 }
  0x21   : > { %857 = vmatpush3.bf16.msra.mxu0 %v923_v7  ;;  %907 = vmatpush3.bf16.msra.mxu1 %v923_v7 }
  0x22   : > { %858 = vmatprep.subr.bf16.mxu0 %v924_v8  ;;  %900 = vmatprep.subr.bf16.mxu1 %v924_v8 }
  0x25   : > { %859 = vmatpush3.bf16.msra.mxu0 %v924_v8  ;;  %908 = vmatpush3.bf16.msra.mxu1 %v924_v8 }
  0x26   : > { %860 = vmatprep.subr.bf16.mxu0 %v925_v9  ;;  %901 = vmatprep.subr.bf16.mxu1 %v925_v9 }
  0x29   : > { %861 = vmatpush3.bf16.msra.mxu0 %v925_v9  ;;  %909 = vmatpush3.bf16.msra.mxu1 %v925_v9 }
  0x2c   : > { %863 = vmatmul.mubr.bf16.vlgmr.msra.gmra.mxu0 %v928_v10  ;;  %879 = vmatmul.mubr.bf16.vlgmr.msra.gmra.mxu1 %v929_v11 }
  0x2d   : > { %866 = vmatprep.mubr.bf16.mxu0 %v930_v12  ;;  %882 = vmatprep.mubr.bf16.mxu1 %v931_v13 }
  0x34   : > { %867 = vmatmul.mubr.bf16.gmra.mxu0 %v932_v14  ;;  %883 = vmatmul.mubr.bf16.gmra.mxu1 %v933_v15 }
  0x35   : > { %870 = vmatprep.mubr.bf16.mxu0 %v934_v16  ;;  %886 = vmatprep.mubr.bf16.mxu1 %v935_v17 }
  0x3c   : > { %871 = vmatmul.mubr.bf16.gmra.mxu0 %v936_v18  ;;  %887 = vmatmul.mubr.bf16.gmra.mxu1 %v937_v19 }
  0x3d   : > { %874 = vmatprep.mubr.bf16.mxu0 %v938_v20  ;;  %890 = vmatprep.mubr.bf16.mxu1 %v939_v21 }
  0x44   : > { %875 = vmatmul.mubr.bf16.gmra.mxu0 %v940_v22  ;;  %891 = vmatmul.mubr.bf16.gmra.mxu1 %v941_v23 }
  0xec   : > { %v864_v25 = vpop.f32.mrf.mxu0  ;;  %v880_v27 = vpop.f32.mrf.mxu1 }
  0xed   : > { %v564_v28 = vmul.f32 %v864_v25, %v1034_v24  ;;  %v580_v29 = vmul.f32 %v880_v27, %v1034_v24 }
  0xee   : > { %v428_v30 = vpop.f32.mrf.mxu0  ;;  %v492_v31 = vpop.f32.mrf.mxu1 }
  0xef   : > { %v603_v32 = vadd.f32 %v1039_v26, %v564_v28  ;;  %v619_v33 = vadd.f32 %v1039_v26, %v580_v29  ;;  %v562_v34 = vmul.f32 %v1034_v24, %v428_v30  ;;  %v578_v35 = vmul.f32 %v1034_v24, %v492_v31 }
  0xf0   : > { %v865_v36 = vpop.f32.mrf.mxu0  ;;  %v881_v37 = vpop.f32.mrf.mxu1 }
  0xf1   : > { %v635_v38 = vmul.f32 0.1, %v603_v32  ;;  %v651_v39 = vmul.f32 0.1, %v619_v33  ;;  %v601_v40 = vadd.f32 %v1039_v26, %v562_v34  ;;  %v617_v41 = vadd.f32 %v1039_v26, %v578_v35 }
  0xf2   : > { %v565_v42 = vmul.f32 %v865_v36, %v1034_v24  ;;  %v581_v43 = vmul.f32 %v881_v37, %v1034_v24  ;;  %v431_v44 = vpop.f32.mrf.mxu0  ;;  %v495_v45 = vpop.f32.mrf.mxu1 }
  0xf3   : > { %v667_v46 = vmax.f32 %v603_v32, %v635_v38  ;;  %v683_v47 = vmax.f32 %v619_v33, %v651_v39  ;;  %v633_v48 = vmul.f32 0.1, %v601_v40  ;;  %v649_v49 = vmul.f32 0.1, %v617_v41 }
  0xf4   : > { %v604_v50 = vadd.f32 %v1039_v26, %v565_v42  ;;  %v620_v51 = vadd.f32 %v1039_v26, %v581_v43  ;;  %v563_v52 = vmul.f32 %v1034_v24, %v431_v44  ;;  %v579_v53 = vmul.f32 %v1034_v24, %v495_v45  ;;  %v868_v54 = vpop.f32.mrf.mxu0  ;;  %v884_v55 = vpop.f32.mrf.mxu1 }
  0xf5   : > { %699 = vst [vmem:[%s1053_s19 + $0x10] sm:$0xff] %v667_v46  ;;  %715 = vst [vmem:[%s1053_s19 + $0x90] sm:$0xff] %v683_v47  ;;  %v665_v56 = vmax.f32 %v601_v40, %v633_v48  ;;  %v681_v57 = vmax.f32 %v617_v41, %v649_v49  ;;  %v568_v58 = vmul.f32 %v868_v54, %v1034_v24 }
  0xf6   : > { %v584_v59 = vmul.f32 %v884_v55, %v1034_v24  ;;  %v636_v60 = vmul.f32 0.1, %v604_v50  ;;  %v652_v61 = vmul.f32 0.1, %v620_v51  ;;  %v602_v62 = vadd.f32 %v1039_v26, %v563_v52  ;;  %v444_v0 = vpop.f32.mrf.mxu0  ;;  %v508_v1 = vpop.f32.mrf.mxu1 }
  0xf7   : > { %v618_v63 = vadd.f32 %v1039_v26, %v579_v53  ;;  %697 = vst [vmem:[%s1053_s19] sm:$0xff] %v665_v56  ;;  %713 = vst [vmem:[%s1053_s19 + $0x80] sm:$0xff] %v681_v57  ;;  %v607_v2 = vadd.f32 %v1039_v26, %v568_v58  ;;  %v566_v4 = vmul.f32 %v1034_v24, %v444_v0 }
  0xf8   : > { %v623_v3 = vadd.f32 %v1039_v26, %v584_v59  ;;  %v582_v5 = vmul.f32 %v1034_v24, %v508_v1  ;;  %v668_v6 = vmax.f32 %v604_v50, %v636_v60  ;;  %v684_v7 = vmax.f32 %v620_v51, %v652_v61  ;;  %v869_v10 = vpop.f32.mrf.mxu0  ;;  %v885_v11 = vpop.f32.mrf.mxu1 }
  0xf9   : > { %v634_v8 = vmul.f32 0.1, %v602_v62  ;;  %v650_v9 = vmul.f32 0.1, %v618_v63  ;;  %v639_v12 = vmul.f32 0.1, %v607_v2  ;;  %v605_v14 = vadd.f32 %v1039_v26, %v566_v4 }
  0xfa   : > { %v655_v13 = vmul.f32 0.1, %v623_v3  ;;  %v621_v15 = vadd.f32 %v1039_v26, %v582_v5  ;;  %700 = vst [vmem:[%s1053_s19 + $0x18] sm:$0xff] %v668_v6  ;;  %716 = vst [vmem:[%s1053_s19 + $0x98] sm:$0xff] %v684_v7  ;;  %v569_v18 = vmul.f32 %v869_v10, %v1034_v24  ;;  %v585_v19 = vmul.f32 %v885_v11, %v1034_v24  ;;  %v447_v20 = vpop.f32.mrf.mxu0  ;;  %v511_v21 = vpop.f32.mrf.mxu1 }
  0xfb   : > { %v666_v16 = vmax.f32 %v602_v62, %v634_v8  ;;  %v682_v17 = vmax.f32 %v618_v63, %v650_v9  ;;  %v671_v22 = vmax.f32 %v607_v2, %v639_v12  ;;  %v637_v25 = vmul.f32 0.1, %v605_v14 }
  0xfc   : > { %v687_v23 = vmax.f32 %v623_v3, %v655_v13  ;;  %v653_v27 = vmul.f32 0.1, %v621_v15  ;;  %v608_v28 = vadd.f32 %v1039_v26, %v569_v18  ;;  %v624_v29 = vadd.f32 %v1039_v26, %v585_v19  ;;  %v872_v32 = vpop.f32.mrf.mxu0  ;;  %v888_v33 = vpop.f32.mrf.mxu1 }
  0xfd   : > { %698 = vst [vmem:[%s1053_s19 + $0x8] sm:$0xff] %v666_v16  ;;  %714 = vst [vmem:[%s1053_s19 + $0x88] sm:$0xff] %v682_v17  ;;  %v567_v30 = vmul.f32 %v1034_v24, %v447_v20  ;;  %v583_v31 = vmul.f32 %v1034_v24, %v511_v21  ;;  %v669_v34 = vmax.f32 %v605_v14, %v637_v25 }
  0xfe   : > { %703 = vst [vmem:[%s1053_s19 + $0x30] sm:$0xff] %v671_v22  ;;  %719 = vst [vmem:[%s1053_s19 + $0xb0] sm:$0xff] %v687_v23  ;;  %v685_v35 = vmax.f32 %v621_v15, %v653_v27  ;;  %v572_v36 = vmul.f32 %v872_v32, %v1034_v24  ;;  %v588_v37 = vmul.f32 %v888_v33, %v1034_v24  ;;  %v640_v38 = vmul.f32 0.1, %v608_v28  ;;  %v460_v42 = vpop.f32.mrf.mxu0  ;;  %v524_v43 = vpop.f32.mrf.mxu1 }
  0xff   : > { %v656_v39 = vmul.f32 0.1, %v624_v29  ;;  %v606_v40 = vadd.f32 %v1039_v26, %v567_v30  ;;  %v622_v41 = vadd.f32 %v1039_v26, %v583_v31  ;;  %701 = vst [vmem:[%s1053_s19 + $0x20] sm:$0xff] %v669_v34  ;;  %v570_v46 = vmul.f32 %v1034_v24, %v460_v42 }
 0x100   : > { %717 = vst [vmem:[%s1053_s19 + $0xa0] sm:$0xff] %v685_v35  ;;  %v611_v44 = vadd.f32 %v1039_v26, %v572_v36  ;;  %v627_v45 = vadd.f32 %v1039_v26, %v588_v37  ;;  %v586_v47 = vmul.f32 %v1034_v24, %v524_v43  ;;  %v672_v48 = vmax.f32 %v608_v28, %v640_v38  ;;  %v873_v52 = vpop.f32.mrf.mxu0  ;;  %v889_v53 = vpop.f32.mrf.mxu1 }
 0x101   : > { %v688_v49 = vmax.f32 %v624_v29, %v656_v39  ;;  %v638_v50 = vmul.f32 0.1, %v606_v40  ;;  %v654_v51 = vmul.f32 0.1, %v622_v41  ;;  %v609_v56 = vadd.f32 %v1039_v26, %v570_v46 }
 0x102   : > { %v643_v54 = vmul.f32 0.1, %v611_v44  ;;  %v659_v55 = vmul.f32 0.1, %v627_v45  ;;  %v625_v57 = vadd.f32 %v1039_v26, %v586_v47  ;;  %704 = vst [vmem:[%s1053_s19 + $0x38] sm:$0xff] %v672_v48  ;;  %v573_v60 = vmul.f32 %v873_v52, %v1034_v24  ;;  %v463_v62 = vpop.f32.mrf.mxu0  ;;  %v527_v63 = vpop.f32.mrf.mxu1 }
 0x103   : > { %720 = vst [vmem:[%s1053_s19 + $0xb8] sm:$0xff] %v688_v49  ;;  %v670_v58 = vmax.f32 %v606_v40, %v638_v50  ;;  %v686_v59 = vmax.f32 %v622_v41, %v654_v51  ;;  %v589_v61 = vmul.f32 %v889_v53, %v1034_v24  ;;  %v641_v2 = vmul.f32 0.1, %v609_v56 }
 0x104   : > { %v675_v0 = vmax.f32 %v611_v44, %v643_v54  ;;  %v691_v1 = vmax.f32 %v627_v45, %v659_v55  ;;  %v657_v3 = vmul.f32 0.1, %v625_v57  ;;  %v612_v4 = vadd.f32 %v1039_v26, %v573_v60  ;;  %v876_v8 = vpop.f32.mrf.mxu0  ;;  %v892_v9 = vpop.f32.mrf.mxu1 }
 0x105   : > { %702 = vst [vmem:[%s1053_s19 + $0x28] sm:$0xff] %v670_v58  ;;  %718 = vst [vmem:[%s1053_s19 + $0xa8] sm:$0xff] %v686_v59  ;;  %v628_v5 = vadd.f32 %v1039_v26, %v589_v61  ;;  %v571_v6 = vmul.f32 %v1034_v24, %v463_v62  ;;  %v587_v7 = vmul.f32 %v1034_v24, %v527_v63 }
 0x106   : > { %707 = vst [vmem:[%s1053_s19 + $0x50] sm:$0xff] %v675_v0  ;;  %723 = vst [vmem:[%s1053_s19 + $0xd0] sm:$0xff] %v691_v1  ;;  %v673_v10 = vmax.f32 %v609_v56, %v641_v2  ;;  %v689_v11 = vmax.f32 %v625_v57, %v657_v3  ;;  %v576_v12 = vmul.f32 %v876_v8, %v1034_v24  ;;  %v644_v14 = vmul.f32 0.1, %v612_v4  ;;  %v476_v18 = vpop.f32.mrf.mxu0  ;;  %v540_v19 = vpop.f32.mrf.mxu1 }
 0x107   : > { %v592_v13 = vmul.f32 %v892_v9, %v1034_v24  ;;  %v660_v15 = vmul.f32 0.1, %v628_v5  ;;  %v610_v16 = vadd.f32 %v1039_v26, %v571_v6  ;;  %v626_v17 = vadd.f32 %v1039_v26, %v587_v7 }
 0x108   : > { %705 = vst [vmem:[%s1053_s19 + $0x40] sm:$0xff] %v673_v10  ;;  %721 = vst [vmem:[%s1053_s19 + $0xc0] sm:$0xff] %v689_v11  ;;  %v615_v20 = vadd.f32 %v1039_v26, %v576_v12  ;;  %v574_v22 = vmul.f32 %v1034_v24, %v476_v18  ;;  %v590_v23 = vmul.f32 %v1034_v24, %v540_v19  ;;  %v877_v30 = vpop.f32.mrf.mxu0  ;;  %v893_v31 = vpop.f32.mrf.mxu1 }
 0x109   : > { %v631_v21 = vadd.f32 %v1039_v26, %v592_v13  ;;  %v676_v25 = vmax.f32 %v612_v4, %v644_v14  ;;  %v692_v27 = vmax.f32 %v628_v5, %v660_v15  ;;  %v642_v28 = vmul.f32 0.1, %v610_v16 }
 0x10a   : > { %v658_v29 = vmul.f32 0.1, %v626_v17  ;;  %v647_v32 = vmul.f32 0.1, %v615_v20  ;;  %v613_v34 = vadd.f32 %v1039_v26, %v574_v22  ;;  %v629_v35 = vadd.f32 %v1039_v26, %v590_v23  ;;  %v479_v40 = vpop.f32.mrf.mxu0  ;;  %v543_v41 = vpop.f32.mrf.mxu1 }
 0x10b   : > { %v663_v33 = vmul.f32 0.1, %v631_v21  ;;  %708 = vst [vmem:[%s1053_s19 + $0x58] sm:$0xff] %v676_v25  ;;  %724 = vst [vmem:[%s1053_s19 + $0xd8] sm:$0xff] %v692_v27  ;;  %v674_v36 = vmax.f32 %v610_v16, %v642_v28  ;;  %v577_v38 = vmul.f32 %v877_v30, %v1034_v24  ;;  %v593_v39 = vmul.f32 %v893_v31, %v1034_v24 }
 0x10c   : > { %v690_v37 = vmax.f32 %v626_v17, %v658_v29  ;;  %v679_v42 = vmax.f32 %v615_v20, %v647_v32  ;;  %v645_v44 = vmul.f32 0.1, %v613_v34  ;;  %v661_v45 = vmul.f32 0.1, %v629_v35 }
 0x10d   : > { %v695_v43 = vmax.f32 %v631_v21, %v663_v33  ;;  %706 = vst [vmem:[%s1053_s19 + $0x48] sm:$0xff] %v674_v36  ;;  %v616_v46 = vadd.f32 %v1039_v26, %v577_v38  ;;  %v632_v47 = vadd.f32 %v1039_v26, %v593_v39  ;;  %v575_v48 = vmul.f32 %v1034_v24, %v479_v40 }
 0x10e   : > { %722 = vst [vmem:[%s1053_s19 + $0xc8] sm:$0xff] %v690_v37  ;;  %v591_v49 = vmul.f32 %v1034_v24, %v543_v41  ;;  %711 = vst [vmem:[%s1053_s19 + $0x70] sm:$0xff] %v679_v42  ;;  %v677_v50 = vmax.f32 %v613_v34, %v645_v44  ;;  %v693_v51 = vmax.f32 %v629_v35, %v661_v45 }
 0x10f   : > { %727 = vst [vmem:[%s1053_s19 + $0xf0] sm:$0xff] %v695_v43  ;;  %v648_v52 = vmul.f32 0.1, %v616_v46  ;;  %v664_v53 = vmul.f32 0.1, %v632_v47  ;;  %v614_v54 = vadd.f32 %v1039_v26, %v575_v48 }
 0x110   : > { %v630_v55 = vadd.f32 %v1039_v26, %v591_v49  ;;  %709 = vst [vmem:[%s1053_s19 + $0x60] sm:$0xff] %v677_v50  ;;  %725 = vst [vmem:[%s1053_s19 + $0xe0] sm:$0xff] %v693_v51 }
 0x111   : > { %v680_v56 = vmax.f32 %v616_v46, %v648_v52  ;;  %v696_v57 = vmax.f32 %v632_v47, %v664_v53  ;;  %v646_v58 = vmul.f32 0.1, %v614_v54 }
 0x112   : > { %v662_v59 = vmul.f32 0.1, %v630_v55 }
 0x113   : > { %712 = vst [vmem:[%s1053_s19 + $0x78] sm:$0xff] %v680_v56  ;;  %728 = vst [vmem:[%s1053_s19 + $0xf8] sm:$0xff] %v696_v57  ;;  %v678_v24 = vmax.f32 %v614_v54, %v646_v58 }
 0x114   : > { %v694_v60 = vmax.f32 %v630_v55, %v662_v59 }
 0x115   : > { %710 = vst [vmem:[%s1053_s19 + $0x68] sm:$0xff] %v678_v24 }
 0x116   : > { %726 = vst [vmem:[%s1053_s19 + $0xe8] sm:$0xff] %v694_v60 }
 0x117 PF: > { %s14_s15 = sadd.s32 1, %s948_s15  }
 0x118   : > { %p11_p4 = scmp.ge.s32.totalorder %s14_s15, 6  }
 0x11a   :  { %13 = sbr.rel (!%p11_p4) target bundleno = 1 (0x1), region = 66 }

// kernel: cpd_d19_forward.130
= control target key start
LH: loop header
LB: loop body
LE: loop exit
PB: predicated region body
PF: predicated region fallthrough
CT: control target
= control target key end

     0   :  { %s1172_s15 = smov 0   ;;  %s1351_s0 = inlined_call_operand.vmem [shape: bf16[256,384], index: 0, kind: input, shape index: {}]   ;;  %s1352_s1 = inlined_call_operand.vmem [shape: bf16[384,128], index: 1, kind: input, shape index: {}]   ;;  %s1353_s2 = inlined_call_operand.vmem [shape: f32[1,128], index: 2, kind: input, shape index: {}]   ;;  %s1354_s3 = inlined_call_operand.vmem [shape: f32[1,128], index: 3, kind: input, shape index: {}]   ;;  %s1355_s4 = inlined_call_operand.vmem [shape: f32[256,128], index: 4, kind: output, shape index: {}]  }
   0x1 LB: > { %s901_s16 = sadd.s32 4294967295, %s1145_s15   ;;  %p905_p0 = scmp.ge.s32.totalorder %s1145_s15, 1  ;;  %s1145_s15 = sphi %s1172_s15, %s14_s15  }
   0x2   : > { %p164_p1 = scmp.lt.s32.totalorder %s1145_s15, 3 }
   0x4   : > { %p165_p2 = pnand %p905_p0, %p164_p1 }
   0x5   : > { %s906_s7 = sshll.u32 (!%p165_p2), %s901_s16, 4 }
   0x6   : > { %168 = sbr.rel (%p165_p2) target bundleno = 312 (0x138), region = 36  ;;  %p192_p3 = scmp.lt.s32.totalorder (!%p165_p2), %s906_s7, 31 }
   0xb   : > { %v1083_v0 = vld [vmem:[%s1352_s1 + $0x78] sm:$0xff]   ;;  %v1086_v3 = vld [vmem:[%s1352_s1 + $0x70] sm:$0xff]   ;;  %v1089_v6 = vld [vmem:[%s1352_s1 + $0x68] sm:$0xff]   ;;  %s1357_s7 = smov (!%p192_p3, %s906_s7), 31 }
   0xc   : > { %v1084_v1 = vld [vmem:[%s1352_s1 + $0x38] sm:$0xff]   ;;  %962 = vmatprep.subr.bf16.mxu0 %v1083_v0  ;;  %v1087_v4 = vld [vmem:[%s1352_s1 + $0x30] sm:$0xff]   ;;  %v1090_v7 = vld [vmem:[%s1352_s1 + $0x28] sm:$0xff]   ;;  %s1074_s27 = smul.u32 12, %s1357_s7  ;;  %s909_s25 = sshll.u32 %s1357_s7, 3 }
   0xd   : > { %v1085_v2 = vld [vmem:[%s1352_s1 + $0xb8] sm:$0xff]   ;;  %963 = vmatpush3.bf16.msra.mxu0 %v1084_v1  ;;  %v1088_v5 = vld [vmem:[%s1352_s1 + $0xb0] sm:$0xff]   ;;  %v1091_v8 = vld [vmem:[%s1352_s1 + $0xa8] sm:$0xff]   ;;  %s1301_s28 = scalar_lea.vmem %s1355_s4, %s909_s25 }
   0xe   : > { %1042 = vmatprep.subr.bf16.mxu1 %v1085_v2  ;;  %964 = vmatprep.subr.bf16.mxu0 %v1086_v3  ;;  %v1092_v9 = vld [vmem:[%s1352_s1 + $0x60] sm:$0xff]   ;;  %v1095_v12 = vld [vmem:[%s1352_s1 + $0x58] sm:$0xff]   ;;  %v1098_v15 = vld [vmem:[%s1352_s1 + $0x50] sm:$0xff]   ;;  %s1249_s13 = scalar_lea.vmem %s1351_s0, %s1074_s27 }
   0xf   : > { %1043 = vmatpush3.bf16.msra.mxu1 %v1085_v2  ;;  %v1093_v10 = vld [vmem:[%s1352_s1 + $0x20] sm:$0xff]   ;;  %v1097_v13 = vld [vmem:[%s1352_s1 + $0x98] sm:$0xff]   ;;  %v1100_v16 = vld [vmem:[%s1352_s1 + $0x90] sm:$0xff]  }
  0x10   : > { %1044 = vmatprep.subr.bf16.mxu1 %v1088_v5  ;;  %v1094_v11 = vld [vmem:[%s1352_s1 + $0xa0] sm:$0xff]   ;;  %v1096_v14 = vld [vmem:[%s1352_s1 + $0x18] sm:$0xff]   ;;  %v1099_v17 = vld [vmem:[%s1352_s1 + $0x10] sm:$0xff]  }
  0x11   : > { %965 = vmatpush3.bf16.msra.mxu0 %v1087_v4  ;;  %v1101_v18 = vld [vmem:[%s1352_s1 + $0x48] sm:$0xff]   ;;  %v1104_v21 = vld [vmem:[%s1352_s1 + $0x40] sm:$0xff]   ;;  %v1119_v32 = vld [vmem:[%s1249_s13 + $0x50] ss:$12 sps:$4 sm:$0xff]  }
  0x12   : > { %966 = vmatprep.subr.bf16.mxu0 %v1089_v6  ;;  %v1102_v19 = vld [vmem:[%s1352_s1 + $0x8] sm:$0xff]   ;;  %v1106_v22 = vld [vmem:[%s1352_s1 + $0x80] sm:$0xff]   ;;  %v1117_v34 = vld [vmem:[%s1249_s13 + $0x30] ss:$12 sps:$4 sm:$0xff]  }
  0x13   : > { %1045 = vmatpush3.bf16.msra.mxu1 %v1088_v5  ;;  %v1103_v20 = vld [vmem:[%s1352_s1 + $0x88] sm:$0xff]   ;;  %v1109_v23 = vld [vmem:[%s1249_s13 + $0x4] ss:$12 sps:$4 sm:$0xff]   ;;  %v1115_v31 = vld [vmem:[%s1249_s13 + $0x34] ss:$12 sps:$4 sm:$0xff]  }
  0x14   : > { %1046 = vmatprep.subr.bf16.mxu1 %v1091_v8  ;;  %v1110_v24 = vld [vmem:[%s1249_s13 + $0x8] ss:$12 sps:$4 sm:$0xff]   ;;  %v1105_v25 = vld [vmem:[%s1352_s1] sm:$0xff]   ;;  %589 = vmatprep.mubr.bf16.mxu0 %v1109_v23  ;;  %v1120_v35 = vld [vmem:[%s1249_s13 + $0x4c] ss:$12 sps:$4 sm:$0xff]  }
  0x15   : > { %967 = vmatpush3.bf16.msra.mxu0 %v1090_v7  ;;  %1058 = vmatprep.mubr.bf16.mxu1 %v1110_v24  ;;  %v1107_v26 = vld [vmem:[%s1249_s13] ss:$12 sps:$4 sm:$0xff]   ;;  %v1112_v27 = vld [vmem:[%s1249_s13 + $0x1c] ss:$12 sps:$4 sm:$0xff]   ;;  %v1118_v29 = vld [vmem:[%s1249_s13 + $0x38] ss:$12 sps:$4 sm:$0xff]  }
  0x16   : > { %968 = vmatprep.subr.bf16.mxu0 %v1092_v9  ;;  %v1111_v28 = vld [vmem:[%s1249_s13 + $0x20] ss:$12 sps:$4 sm:$0xff]   ;;  %v1114_v30 = vld [vmem:[%s1249_s13 + $0x18] ss:$12 sps:$4 sm:$0xff]   ;;  %v1126_v33 = vld [vmem:[%s1249_s13 + $0x68] ss:$12 sps:$4 sm:$0xff]  }
  0x17   : > { %1047 = vmatpush3.bf16.msra.mxu1 %v1091_v8  ;;  %v1127_v36 = vld [vmem:[%s1249_s13 + $0x80] ss:$12 sps:$4 sm:$0xff]   ;;  %v1134_v37 = vld [vmem:[%s1249_s13 + $0x98] ss:$12 sps:$4 sm:$0xff]   ;;  %v1122_v38 = vld [vmem:[%s1249_s13 + $0x48] ss:$12 sps:$4 sm:$0xff]  }
  0x18   : > { %1048 = vmatprep.subr.bf16.mxu1 %v1094_v11  ;;  %v1123_v39 = vld [vmem:[%s1249_s13 + $0x64] ss:$12 sps:$4 sm:$0xff]   ;;  %v1125_v41 = vld [vmem:[%s1249_s13 + $0x60] ss:$12 sps:$4 sm:$0xff]   ;;  %v1128_v42 = vld [vmem:[%s1249_s13 + $0x7c] ss:$12 sps:$4 sm:$0xff]  }
  0x19   : > { %969 = vmatpush3.bf16.msra.mxu0 %v1093_v10  ;;  %v1135_v40 = vld [vmem:[%s1249_s13 + $0xb0] ss:$12 sps:$4 sm:$0xff]   ;;  %v1130_v43 = vld [vmem:[%s1249_s13 + $0x78] ss:$12 sps:$4 sm:$0xff]   ;;  %v1131_v44 = vld [vmem:[%s1249_s13 + $0x94] ss:$12 sps:$4 sm:$0xff]  }
  0x1a   : > { %970 = vmatprep.subr.bf16.mxu0 %v1095_v12  ;;  %v1133_v45 = vld [vmem:[%s1249_s13 + $0x90] ss:$12 sps:$4 sm:$0xff]   ;;  %v1136_v46 = vld [vmem:[%s1249_s13 + $0xac] ss:$12 sps:$4 sm:$0xff]   ;;  %v1138_v47 = vld [vmem:[%s1249_s13 + $0xa8] ss:$12 sps:$4 sm:$0xff]  }
  0x1b   : > { %1049 = vmatpush3.bf16.msra.mxu1 %v1094_v11  ;;  %v1287_v54 = vld [vmem:[%s1353_s2] ss:$0 sm:$0xff] }
  0x1c   : > { %1050 = vmatprep.subr.bf16.mxu1 %v1097_v13  ;;  %v1292_v56 = vld [vmem:[%s1354_s3] ss:$0 sm:$0xff] }
  0x1d   : > { %971 = vmatpush3.bf16.msra.mxu0 %v1096_v14 }
  0x1e   : > { %972 = vmatprep.subr.bf16.mxu0 %v1098_v15 }
  0x1f   : > { %1051 = vmatpush3.bf16.msra.mxu1 %v1097_v13 }
  0x20   : > { %1052 = vmatprep.subr.bf16.mxu1 %v1100_v16 }
  0x21   : > { %973 = vmatpush3.bf16.msra.mxu0 %v1099_v17 }
  0x22   : > { %974 = vmatprep.subr.bf16.mxu0 %v1101_v18 }
  0x23   : > { %1053 = vmatpush3.bf16.msra.mxu1 %v1100_v16 }
  0x24   : > { %1054 = vmatprep.subr.bf16.mxu1 %v1103_v20 }
  0x25   : > { %975 = vmatpush3.bf16.msra.mxu0 %v1102_v19 }
  0x26   : > { %976 = vmatprep.subr.bf16.mxu0 %v1104_v21 }
  0x27   : > { %1055 = vmatpush3.bf16.msra.mxu1 %v1103_v20 }
  0x28   : > { %1056 = vmatprep.subr.bf16.mxu1 %v1106_v22 }
  0x29   : > { %977 = vmatpush3.bf16.msra.mxu0 %v1105_v25 }
  0x2b   : > { %1057 = vmatpush3.bf16.msra.mxu1 %v1106_v22 }
  0x2c   : > { %590 = vmatmul.mubr.bf16.vlgmr.msra.gmra.mxu0 %v1107_v26 }
  0x2d   : > { %597 = vmatprep.mubr.bf16.mxu0 %v1112_v27 }
  0x2e   : > { %1059 = vmatmul.mubr.bf16.vlgmr.msra.gmra.mxu1 %v1111_v28 }
  0x2f   : > { %1062 = vmatprep.mubr.bf16.mxu1 %v1118_v29 }
  0x34   : > { %598 = vmatmul.mubr.bf16.gmra.mxu0 %v1114_v30 }
  0x35   : > { %605 = vmatprep.mubr.bf16.mxu0 %v1115_v31 }
  0x36   : > { %1063 = vmatmul.mubr.bf16.gmra.mxu1 %v1119_v32 }
  0x37   : > { %1066 = vmatprep.mubr.bf16.mxu1 %v1126_v33 }
  0x3c   : > { %606 = vmatmul.mubr.bf16.gmra.mxu0 %v1117_v34 }
  0x3d   : > { %613 = vmatprep.mubr.bf16.mxu0 %v1120_v35 }
  0x3e   : > { %1067 = vmatmul.mubr.bf16.gmra.mxu1 %v1127_v36 }
  0x3f   : > { %1070 = vmatprep.mubr.bf16.mxu1 %v1134_v37 }
  0x44   : > { %614 = vmatmul.mubr.bf16.gmra.mxu0 %v1122_v38 }
  0x45   : > { %621 = vmatprep.mubr.bf16.mxu0 %v1123_v39 }
  0x46   : > { %1071 = vmatmul.mubr.bf16.gmra.mxu1 %v1135_v40 }
  0x4c   : > { %622 = vmatmul.mubr.bf16.gmra.mxu0 %v1125_v41 }
  0x4d   : > { %629 = vmatprep.mubr.bf16.mxu0 %v1128_v42 }
  0x54   : > { %630 = vmatmul.mubr.bf16.gmra.mxu0 %v1130_v43 }
  0x55   : > { %637 = vmatprep.mubr.bf16.mxu0 %v1131_v44 }
  0x5c   : > { %638 = vmatmul.mubr.bf16.gmra.mxu0 %v1133_v45 }
  0x5d   : > { %645 = vmatprep.mubr.bf16.mxu0 %v1136_v46 }
  0x64   : > { %646 = vmatmul.mubr.bf16.gmra.mxu0 %v1138_v47 }
  0xec   : > { %v978_v48 = vpop.f32.mrf.mxu0 }
  0xee   : > { %v979_v49 = vpop.f32.mrf.mxu0  ;;  %v1060_v50 = vpop.f32.mrf.mxu1 }
  0xef   : > { %v980_v51 = vadd.f32 %v979_v49, %v978_v48 }
  0xf0   : > { %v981_v52 = vpop.f32.mrf.mxu0  ;;  %v688_v53 = vpop.f32.mrf.mxu1 }
  0xf1   : > { %v689_v55 = vadd.f32 %v980_v51, %v688_v53 }
  0xf2   : > { %v982_v57 = vpop.f32.mrf.mxu0  ;;  %v1061_v58 = vpop.f32.mrf.mxu1 }
  0xf3   : > { %v758_v59 = vmul.f32 %v1287_v54, %v689_v55  ;;  %v983_v60 = vadd.f32 %v982_v57, %v981_v52 }
  0xf4   : > { %v984_v61 = vpop.f32.mrf.mxu0  ;;  %v691_v62 = vpop.f32.mrf.mxu1 }
  0xf5   : > { %v781_v63 = vadd.f32 %v1292_v56, %v758_v59  ;;  %v692_v0 = vadd.f32 %v983_v60, %v691_v62 }
  0xf6   : > { %v985_v1 = vpop.f32.mrf.mxu0  ;;  %v1064_v2 = vpop.f32.mrf.mxu1 }
  0xf7   : > { %v797_v3 = vmul.f32 0.1, %v781_v63  ;;  %v759_v4 = vmul.f32 %v1287_v54, %v692_v0  ;;  %v986_v5 = vadd.f32 %v985_v1, %v984_v61 }
  0xf8   : > { %v987_v6 = vpop.f32.mrf.mxu0  ;;  %v704_v11 = vpop.f32.mrf.mxu1 }
  0xf9   : > { %v813_v7 = vmax.f32 %v781_v63, %v797_v3  ;;  %v782_v8 = vadd.f32 %v1292_v56, %v759_v4  ;;  %v697_v9 = vadd.f32 %v1060_v50, %v986_v5 }
  0xfa   : > { %v988_v10 = vpop.f32.mrf.mxu0  ;;  %v1065_v20 = vpop.f32.mrf.mxu1 }
  0xfb   : > { %829 = vst [vmem:[%s1301_s28] sm:$0xff] %v813_v7  ;;  %v798_v12 = vmul.f32 0.1, %v782_v8  ;;  %v760_v13 = vmul.f32 %v1287_v54, %v697_v9  ;;  %v989_v14 = vadd.f32 %v988_v10, %v987_v6 }
  0xfc   : > { %v990_v15 = vpop.f32.mrf.mxu0  ;;  %v707_v29 = vpop.f32.mrf.mxu1 }
  0xfd   : > { %v814_v16 = vmax.f32 %v782_v8, %v798_v12  ;;  %v783_v17 = vadd.f32 %v1292_v56, %v760_v13  ;;  %v700_v18 = vadd.f32 %v1061_v58, %v989_v14 }
  0xfe   : > { %v991_v19 = vpop.f32.mrf.mxu0  ;;  %v1068_v38 = vpop.f32.mrf.mxu1 }
  0xff   : > { %830 = vst [vmem:[%s1301_s28 + $0x8] sm:$0xff] %v814_v16  ;;  %v799_v21 = vmul.f32 0.1, %v783_v17  ;;  %v761_v22 = vmul.f32 %v1287_v54, %v700_v18  ;;  %v992_v23 = vadd.f32 %v991_v19, %v990_v15 }
 0x100   : > { %v993_v24 = vpop.f32.mrf.mxu0  ;;  %v720_v47 = vpop.f32.mrf.mxu1 }
 0x101   : > { %v815_v25 = vmax.f32 %v783_v17, %v799_v21  ;;  %v784_v26 = vadd.f32 %v1292_v56, %v761_v22  ;;  %v705_v27 = vadd.f32 %v992_v23, %v704_v11 }
 0x102   : > { %v994_v28 = vpop.f32.mrf.mxu0  ;;  %v1069_v58 = vpop.f32.mrf.mxu1 }
 0x103   : > { %831 = vst [vmem:[%s1301_s28 + $0x10] sm:$0xff] %v815_v25  ;;  %v800_v30 = vmul.f32 0.1, %v784_v26  ;;  %v762_v31 = vmul.f32 %v1287_v54, %v705_v27  ;;  %v995_v32 = vadd.f32 %v994_v28, %v993_v24 }
 0x104   : > { %v996_v33 = vpop.f32.mrf.mxu0  ;;  %v723_v3 = vpop.f32.mrf.mxu1 }
 0x105   : > { %v816_v34 = vmax.f32 %v784_v26, %v800_v30  ;;  %v785_v35 = vadd.f32 %v1292_v56, %v762_v31  ;;  %v708_v36 = vadd.f32 %v995_v32, %v707_v29 }
 0x106   : > { %v997_v37 = vpop.f32.mrf.mxu0  ;;  %v1072_v12 = vpop.f32.mrf.mxu1 }
 0x107   : > { %832 = vst [vmem:[%s1301_s28 + $0x18] sm:$0xff] %v816_v34  ;;  %v801_v39 = vmul.f32 0.1, %v785_v35  ;;  %v763_v40 = vmul.f32 %v1287_v54, %v708_v36  ;;  %v998_v41 = vadd.f32 %v997_v37, %v996_v33 }
 0x108   : > { %v999_v42 = vpop.f32.mrf.mxu0  ;;  %v736_v21 = vpop.f32.mrf.mxu1 }
 0x109   : > { %v817_v43 = vmax.f32 %v785_v35, %v801_v39  ;;  %v786_v44 = vadd.f32 %v1292_v56, %v763_v40  ;;  %v713_v45 = vadd.f32 %v1064_v2, %v998_v41 }
 0x10a   : > { %v1000_v46 = vpop.f32.mrf.mxu0  ;;  %v1073_v30 = vpop.f32.mrf.mxu1 }
 0x10b   : > { %833 = vst [vmem:[%s1301_s28 + $0x20] sm:$0xff] %v817_v43  ;;  %v802_v48 = vmul.f32 0.1, %v786_v44  ;;  %v764_v49 = vmul.f32 %v1287_v54, %v713_v45  ;;  %v1001_v50 = vadd.f32 %v1000_v46, %v999_v42 }
 0x10c   : > { %v1002_v51 = vpop.f32.mrf.mxu0  ;;  %v739_v39 = vpop.f32.mrf.mxu1 }
 0x10d   : > { %v818_v52 = vmax.f32 %v786_v44, %v802_v48  ;;  %v787_v53 = vadd.f32 %v1292_v56, %v764_v49  ;;  %v716_v55 = vadd.f32 %v1065_v20, %v1001_v50 }
 0x10e   : > { %v1003_v57 = vpop.f32.mrf.mxu0 }
 0x10f   : > { %834 = vst [vmem:[%s1301_s28 + $0x28] sm:$0xff] %v818_v52  ;;  %v803_v59 = vmul.f32 0.1, %v787_v53  ;;  %v765_v60 = vmul.f32 %v1287_v54, %v716_v55  ;;  %v1004_v61 = vadd.f32 %v1003_v57, %v1002_v51 }
 0x110   : > { %v1005_v62 = vpop.f32.mrf.mxu0 }
 0x111   : > { %v819_v63 = vmax.f32 %v787_v53, %v803_v59  ;;  %v788_v0 = vadd.f32 %v1292_v56, %v765_v60  ;;  %v721_v1 = vadd.f32 %v1004_v61, %v720_v47 }
 0x112   : > { %v1006_v2 = vpop.f32.mrf.mxu0 }
 0x113   : > { %835 = vst [vmem:[%s1301_s28 + $0x30] sm:$0xff] %v819_v63  ;;  %v804_v4 = vmul.f32 0.1, %v788_v0  ;;  %v766_v5 = vmul.f32 %v1287_v54, %v721_v1  ;;  %v1007_v6 = vadd.f32 %v1006_v2, %v1005_v62 }
 0x114   : > { %v1008_v7 = vpop.f32.mrf.mxu0 }
 0x115   : > { %v820_v8 = vmax.f32 %v788_v0, %v804_v4  ;;  %v789_v9 = vadd.f32 %v1292_v56, %v766_v5  ;;  %v724_v10 = vadd.f32 %v1007_v6, %v723_v3 }
 0x116   : > { %v1009_v11 = vpop.f32.mrf.mxu0 }
 0x117   : > { %836 = vst [vmem:[%s1301_s28 + $0x38] sm:$0xff] %v820_v8  ;;  %v805_v13 = vmul.f32 0.1, %v789_v9  ;;  %v767_v14 = vmul.f32 %v1287_v54, %v724_v10  ;;  %v1010_v15 = vadd.f32 %v1009_v11, %v1008_v7 }
 0x118   : > { %v1011_v16 = vpop.f32.mrf.mxu0 }
 0x119   : > { %v821_v17 = vmax.f32 %v789_v9, %v805_v13  ;;  %v790_v18 = vadd.f32 %v1292_v56, %v767_v14  ;;  %v729_v19 = vadd.f32 %v1068_v38, %v1010_v15 }
 0x11a   : > { %v1012_v20 = vpop.f32.mrf.mxu0 }
 0x11b   : > { %837 = vst [vmem:[%s1301_s28 + $0x40] sm:$0xff] %v821_v17  ;;  %v806_v22 = vmul.f32 0.1, %v790_v18  ;;  %v768_v23 = vmul.f32 %v1287_v54, %v729_v19  ;;  %v1013_v24 = vadd.f32 %v1012_v20, %v1011_v16 }
 0x11c   : > { %v1014_v25 = vpop.f32.mrf.mxu0 }
 0x11d   : > { %v822_v26 = vmax.f32 %v790_v18, %v806_v22  ;;  %v791_v27 = vadd.f32 %v1292_v56, %v768_v23  ;;  %v732_v28 = vadd.f32 %v1069_v58, %v1013_v24 }
 0x11e   : > { %v1015_v29 = vpop.f32.mrf.mxu0 }
 0x11f   : > { %838 = vst [vmem:[%s1301_s28 + $0x48] sm:$0xff] %v822_v26  ;;  %v807_v31 = vmul.f32 0.1, %v791_v27  ;;  %v769_v32 = vmul.f32 %v1287_v54, %v732_v28  ;;  %v1016_v33 = vadd.f32 %v1015_v29, %v1014_v25 }
 0x120   : > { %v1017_v34 = vpop.f32.mrf.mxu0 }
 0x121   : > { %v823_v35 = vmax.f32 %v791_v27, %v807_v31  ;;  %v792_v36 = vadd.f32 %v1292_v56, %v769_v32  ;;  %v737_v37 = vadd.f32 %v1016_v33, %v736_v21 }
 0x122   : > { %v1018_v38 = vpop.f32.mrf.mxu0 }
 0x123   : > { %839 = vst [vmem:[%s1301_s28 + $0x50] sm:$0xff] %v823_v35  ;;  %v808_v40 = vmul.f32 0.1, %v792_v36  ;;  %v770_v41 = vmul.f32 %v1287_v54, %v737_v37  ;;  %v1019_v42 = vadd.f32 %v1018_v38, %v1017_v34 }
 0x124   : > { %v1020_v43 = vpop.f32.mrf.mxu0 }
 0x125   : > { %v824_v44 = vmax.f32 %v792_v36, %v808_v40  ;;  %v793_v45 = vadd.f32 %v1292_v56, %v770_v41  ;;  %v740_v46 = vadd.f32 %v1019_v42, %v739_v39 }
 0x126   : > { %v1021_v47 = vpop.f32.mrf.mxu0 }
 0x127   : > { %840 = vst [vmem:[%s1301_s28 + $0x58] sm:$0xff] %v824_v44  ;;  %v809_v48 = vmul.f32 0.1, %v793_v45  ;;  %v771_v49 = vmul.f32 %v1287_v54, %v740_v46  ;;  %v1022_v50 = vadd.f32 %v1021_v47, %v1020_v43 }
 0x128   : > { %v1023_v51 = vpop.f32.mrf.mxu0 }
 0x129   : > { %v825_v52 = vmax.f32 %v793_v45, %v809_v48  ;;  %v794_v53 = vadd.f32 %v1292_v56, %v771_v49  ;;  %v745_v55 = vadd.f32 %v1072_v12, %v1022_v50 }
 0x12a   : > { %v1024_v57 = vpop.f32.mrf.mxu0 }
 0x12b   : > { %841 = vst [vmem:[%s1301_s28 + $0x60] sm:$0xff] %v825_v52  ;;  %v810_v58 = vmul.f32 0.1, %v794_v53  ;;  %v772_v59 = vmul.f32 %v1287_v54, %v745_v55  ;;  %v1025_v60 = vadd.f32 %v1024_v57, %v1023_v51 }
 0x12d   : > { %v826_v61 = vmax.f32 %v794_v53, %v810_v58  ;;  %v795_v62 = vadd.f32 %v1292_v56, %v772_v59  ;;  %v748_v63 = vadd.f32 %v1073_v30, %v1025_v60 }
 0x12f   : > { %842 = vst [vmem:[%s1301_s28 + $0x68] sm:$0xff] %v826_v61  ;;  %v811_v0 = vmul.f32 0.1, %v795_v62  ;;  %v773_v1 = vmul.f32 %v1287_v54, %v748_v63 }
 0x131   : > { %v827_v2 = vmax.f32 %v795_v62, %v811_v0  ;;  %v796_v3 = vadd.f32 %v1292_v56, %v773_v1 }
 0x133   : > { %843 = vst [vmem:[%s1301_s28 + $0x70] sm:$0xff] %v827_v2  ;;  %v812_v4 = vmul.f32 0.1, %v796_v3 }
 0x135   : > { %v828_v5 = vmax.f32 %v796_v3, %v812_v4 }
 0x137   : > { %844 = vst [vmem:[%s1301_s28 + $0x78] sm:$0xff] %v828_v5 }
 0x138 PF: > { %s14_s15 = sadd.s32 1, %s1145_s15  }
 0x139   : > { %p11_p4 = scmp.ge.s32.totalorder %s14_s15, 4  }
 0x13b   :  { %13 = sbr.rel (!%p11_p4) target bundleno = 1 (0x1), region = 66 }

// kernel: cpd_d19_forward.132
= control target key start
LH: loop header
LB: loop body
LE: loop exit
PB: predicated region body
PF: predicated region fallthrough
CT: control target
= control target key end

     0   :  { %s525_s15 = smov 0   ;;  %s576_s0 = inlined_call_operand.vmem [shape: bf16[64,128], index: 0, kind: input, shape index: {}]   ;;  %s577_s1 = inlined_call_operand.vmem [shape: bf16[128,128], index: 1, kind: input, shape index: {}]   ;;  %s578_s2 = inlined_call_operand.vmem [shape: f32[1,128], index: 2, kind: input, shape index: {}]   ;;  %s579_s3 = inlined_call_operand.vmem [shape: f32[1,128], index: 3, kind: input, shape index: {}]   ;;  %s580_s4 = inlined_call_operand.vmem [shape: f32[64,128], index: 4, kind: output, shape index: {}]  }
   0x1 LB: > { %s421_s16 = sadd.s32 4294967295, %s498_s15   ;;  %p425_p0 = scmp.ge.s32.totalorder %s498_s15, 1  ;;  %s498_s15 = sphi %s525_s15, %s14_s15  }
   0x2   : > { %p163_p1 = scmp.lt.s32.totalorder %s498_s15, 3 }
   0x4   : > { %p164_p2 = pnand %p425_p0, %p163_p1 }
   0x5   : > { %s426_s19 = sshll.u32 (!%p164_p2), %s421_s16, 2 }
   0x6   : > { %167 = sbr.rel (%p164_p2) target bundleno = 252 (0xfc), region = 36  ;;  %p190_p3 = scmp.lt.s32.totalorder (!%p164_p2), %s426_s19, 7 }
   0xb   : > { %v482_v0 = vld [vmem:[%s577_s1 + $0x38] sm:$0xff]   ;;  %v483_v1 = vld [vmem:[%s577_s1 + $0x30] sm:$0xff]   ;;  %s582_s19 = smov (!%p190_p3, %s426_s19), 7  ;;  %v484_v2 = vld [vmem:[%s577_s1 + $0x28] sm:$0xff]  }
   0xc   : > { %454 = vmatprep.subr.bf16.mxu0 %v482_v0  ;;  %s427_s24 = sshll.u32 %s582_s19, 2  ;;  %v485_v3 = vld [vmem:[%s577_s1 + $0x20] sm:$0xff]   ;;  %v486_v5 = vld [vmem:[%s577_s1 + $0x18] sm:$0xff]   ;;  %v487_v6 = vld [vmem:[%s577_s1 + $0x10] sm:$0xff]   ;;  %s429_s17 = sshll.u32 %s582_s19, 3 }
   0xd   : > { %455 = vmatpush3.bf16.msra.mxu0 %v482_v0  ;;  %s193_s27 = scalar_lea.vmem %s576_s0, %s427_s24  ;;  %v488_v7 = vld [vmem:[%s577_s1 + $0x8] sm:$0xff]   ;;  %v489_v8 = vld [vmem:[%s577_s1] sm:$0xff]   ;;  %s199_s21 = scalar_lea.vmem %s580_s4, %s429_s17 }
   0xe   : > { %456 = vmatprep.subr.bf16.mxu0 %v483_v1  ;;  %v490_v4 = vld [vmem:[%s193_s27] sm:$0xff]   ;;  %v491_v9 = vld [vmem:[%s193_s27 + $0x8] sm:$0xff]  }
   0xf   : > { %470 = vmatprep.mubr.bf16.mxu0 %v490_v4  ;;  %v440_v10 = vld [vmem:[%s578_s2] ss:$0 sm:$0xff] }
  0x10   : > { %v441_v14 = vld [vmem:[%s579_s3] ss:$0 sm:$0xff] }
  0x11   : > { %457 = vmatpush3.bf16.msra.mxu0 %v483_v1 }
  0x12   : > { %458 = vmatprep.subr.bf16.mxu0 %v484_v2 }
  0x15   : > { %459 = vmatpush3.bf16.msra.mxu0 %v484_v2 }
  0x16   : > { %460 = vmatprep.subr.bf16.mxu0 %v485_v3 }
  0x19   : > { %461 = vmatpush3.bf16.msra.mxu0 %v485_v3 }
  0x1a   : > { %462 = vmatprep.subr.bf16.mxu0 %v486_v5 }
  0x1d   : > { %463 = vmatpush3.bf16.msra.mxu0 %v486_v5 }
  0x1e   : > { %464 = vmatprep.subr.bf16.mxu0 %v487_v6 }
  0x21   : > { %465 = vmatpush3.bf16.msra.mxu0 %v487_v6 }
  0x22   : > { %466 = vmatprep.subr.bf16.mxu0 %v488_v7 }
  0x25   : > { %467 = vmatpush3.bf16.msra.mxu0 %v488_v7 }
  0x26   : > { %468 = vmatprep.subr.bf16.mxu0 %v489_v8 }
  0x29   : > { %469 = vmatpush3.bf16.msra.mxu0 %v489_v8 }
  0x2c   : > { %471 = vmatmul.mubr.bf16.vlgmr.msra.gmra.mxu0 %v491_v9 }
  0xec   : > { %v472_v11 = vpop.f32.mrf.mxu0 }
  0xed   : > { %v340_v12 = vmul.f32 %v472_v11, %v440_v10 }
  0xee   : > { %v316_v13 = vpop.f32.mrf.mxu0 }
  0xef   : > { %v338_v15 = vmul.f32 %v440_v10, %v316_v13  ;;  %v351_v19 = vadd.f32 %v441_v14, %v340_v12 }
  0xf0   : > { %v473_v16 = vpop.f32.mrf.mxu0 }
  0xf1   : > { %v349_v17 = vadd.f32 %v441_v14, %v338_v15  ;;  %v341_v18 = vmul.f32 %v473_v16, %v440_v10  ;;  %v355_v26 = vmul.f32 0.1, %v351_v19 }
  0xf2   : > { %v319_v20 = vpop.f32.mrf.mxu0 }
  0xf3   : > { %v353_v21 = vmul.f32 0.1, %v349_v17  ;;  %v352_v22 = vadd.f32 %v441_v14, %v341_v18  ;;  %v339_v23 = vmul.f32 %v440_v10, %v319_v20  ;;  %v359_v30 = vmax.f32 %v351_v19, %v355_v26 }
  0xf5   : > { %v357_v24 = vmax.f32 %v349_v17, %v353_v21  ;;  %v350_v25 = vadd.f32 %v441_v14, %v339_v23  ;;  %v356_v27 = vmul.f32 0.1, %v352_v22  ;;  %363 = vst [vmem:[%s199_s21 + $0x10] sm:$0xff] %v359_v30 }
  0xf7   : > { %361 = vst [vmem:[%s199_s21] sm:$0xff] %v357_v24  ;;  %v354_v28 = vmul.f32 0.1, %v350_v25  ;;  %v360_v31 = vmax.f32 %v352_v22, %v356_v27 }
  0xf9   : > { %v358_v29 = vmax.f32 %v350_v25, %v354_v28  ;;  %364 = vst [vmem:[%s199_s21 + $0x18] sm:$0xff] %v360_v31 }
  0xfb   : > { %362 = vst [vmem:[%s199_s21 + $0x8] sm:$0xff] %v358_v29 }
  0xfc PF: > { %s14_s15 = sadd.s32 1, %s498_s15  }
  0xfd   : > { %p11_p4 = scmp.ge.s32.totalorder %s14_s15, 4  }
  0xff   :  { %13 = sbr.rel (!%p11_p4) target bundleno = 1 (0x1), region = 66 }

// kernel: cpd_d19_forward.131
= control target key start
LH: loop header
LB: loop body
LE: loop exit
PB: predicated region body
PF: predicated region fallthrough
CT: control target
= control target key end

     0   :  { %s1071_s15 = smov 0   ;;  %s1232_s0 = inlined_call_operand.vmem [shape: bf16[64,640], index: 0, kind: input, shape index: {}]   ;;  %s1233_s1 = inlined_call_operand.vmem [shape: bf16[640,128], index: 1, kind: input, shape index: {}]   ;;  %s1234_s2 = inlined_call_operand.vmem [shape: f32[1,128], index: 2, kind: input, shape index: {}]   ;;  %s1235_s3 = inlined_call_operand.vmem [shape: f32[1,128], index: 3, kind: input, shape index: {}]   ;;  %s1236_s4 = inlined_call_operand.vmem [shape: f32[64,128], index: 4, kind: output, shape index: {}]  }
   0x1 LB: > { %s826_s16 = sadd.s32 4294967295, %s1044_s15   ;;  %p830_p0 = scmp.ge.s32.totalorder %s1044_s15, 1  ;;  %s1044_s15 = sphi %s1071_s15, %s14_s15  }
   0x2   : > { %p164_p1 = scmp.lt.s32.totalorder %s1044_s15, 3 }
   0x4   : > { %p165_p2 = pnand %p830_p0, %p164_p1 }
   0x5   : > { %s831_s23 = sshll.u32 (!%p165_p2), %s826_s16, 2 }
   0x6   : > { %168 = sbr.rel (%p165_p2) target bundleno = 287 (0x11f), region = 36  ;;  %p192_p3 = scmp.lt.s32.totalorder (!%p165_p2), %s831_s23, 7 }
   0xb   : > { %v984_v0 = vld [vmem:[%s1233_s1 + $0x78] sm:$0xff]   ;;  %v988_v4 = vld [vmem:[%s1233_s1 + $0x70] sm:$0xff]   ;;  %v992_v8 = vld [vmem:[%s1233_s1 + $0x68] sm:$0xff]   ;;  %s1238_s23 = smov (!%p192_p3, %s831_s23), 7 }
   0xc   : > { %v985_v1 = vld [vmem:[%s1233_s1 + $0xf8] sm:$0xff]   ;;  %889 = vmatprep.subr.bf16.mxu0 %v984_v0  ;;  %v989_v5 = vld [vmem:[%s1233_s1 + $0xf0] sm:$0xff]   ;;  %v993_v9 = vld [vmem:[%s1233_s1 + $0xe8] sm:$0xff]   ;;  %s975_s21 = smul.u32 20, %s1238_s23  ;;  %s834_s7 = sshll.u32 %s1238_s23, 3 }
   0xd   : > { %v986_v2 = vld [vmem:[%s1233_s1 + $0x38] sm:$0xff]   ;;  %917 = vmatprep.subr.bf16.mxu1 %v985_v1  ;;  %v990_v6 = vld [vmem:[%s1233_s1 + $0x30] sm:$0xff]   ;;  %v994_v10 = vld [vmem:[%s1233_s1 + $0x28] sm:$0xff]   ;;  %s202_s10 = scalar_lea.vmem %s1236_s4, %s834_s7 }
   0xe   : > { %v987_v3 = vld [vmem:[%s1233_s1 + $0xb8] sm:$0xff]   ;;  %890 = vmatpush3.bf16.msra.mxu0 %v986_v2  ;;  %v991_v7 = vld [vmem:[%s1233_s1 + $0xb0] sm:$0xff]   ;;  %v995_v11 = vld [vmem:[%s1233_s1 + $0xa8] sm:$0xff]   ;;  %s1177_s6 = scalar_lea.vmem %s1232_s0, %s975_s21 }
   0xf   : > { %918 = vmatpush3.bf16.msra.mxu1 %v987_v3  ;;  %891 = vmatprep.subr.bf16.mxu0 %v988_v4  ;;  %v996_v12 = vld [vmem:[%s1233_s1 + $0x60] sm:$0xff]   ;;  %v1000_v16 = vld [vmem:[%s1233_s1 + $0x58] sm:$0xff]   ;;  %v1004_v20 = vld [vmem:[%s1233_s1 + $0x50] sm:$0xff]  }
  0x10   : > { %919 = vmatprep.subr.bf16.mxu1 %v989_v5  ;;  %v997_v13 = vld [vmem:[%s1233_s1 + $0xe0] sm:$0xff]   ;;  %v1001_v17 = vld [vmem:[%s1233_s1 + $0xd8] sm:$0xff]   ;;  %v1005_v21 = vld [vmem:[%s1233_s1 + $0xd0] sm:$0xff]  }
  0x11   : > { %v998_v14 = vld [vmem:[%s1233_s1 + $0x20] sm:$0xff]   ;;  %v1002_v18 = vld [vmem:[%s1233_s1 + $0x18] sm:$0xff]   ;;  %v1006_v22 = vld [vmem:[%s1233_s1 + $0x10] sm:$0xff]  }
  0x12   : > { %892 = vmatpush3.bf16.msra.mxu0 %v990_v6  ;;  %v999_v15 = vld [vmem:[%s1233_s1 + $0xa0] sm:$0xff]   ;;  %v1003_v19 = vld [vmem:[%s1233_s1 + $0x98] sm:$0xff]   ;;  %v1007_v23 = vld [vmem:[%s1233_s1 + $0x90] sm:$0xff]  }
  0x13   : > { %920 = vmatpush3.bf16.msra.mxu1 %v991_v7  ;;  %893 = vmatprep.subr.bf16.mxu0 %v992_v8  ;;  %v1008_v24 = vld [vmem:[%s1233_s1 + $0x48] sm:$0xff]   ;;  %v1012_v28 = vld [vmem:[%s1233_s1 + $0x40] sm:$0xff]   ;;  %v1022_v36 = vld [vmem:[%s1233_s1 + $0x138] sm:$0xff]  }
  0x14   : > { %921 = vmatprep.subr.bf16.mxu1 %v993_v9  ;;  %v1009_v25 = vld [vmem:[%s1233_s1 + $0xc8] sm:$0xff]   ;;  %v1013_v29 = vld [vmem:[%s1233_s1 + $0xc0] sm:$0xff]   ;;  %v1023_v37 = vld [vmem:[%s1233_s1 + $0x130] sm:$0xff]  }
  0x15   : > { %v1010_v26 = vld [vmem:[%s1233_s1 + $0x8] sm:$0xff]   ;;  %v1014_v30 = vld [vmem:[%s1233_s1] sm:$0xff]   ;;  %v1026_v45 = vld [vmem:[%s1233_s1 + $0x118] sm:$0xff]  }
  0x16   : > { %894 = vmatpush3.bf16.msra.mxu0 %v994_v10  ;;  %v1011_v27 = vld [vmem:[%s1233_s1 + $0x88] sm:$0xff]   ;;  %v1015_v31 = vld [vmem:[%s1233_s1 + $0x80] sm:$0xff]   ;;  %v1033_v46 = vld [vmem:[%s1233_s1 + $0x110] sm:$0xff]  }
  0x17   : > { %922 = vmatpush3.bf16.msra.mxu1 %v995_v11  ;;  %895 = vmatprep.subr.bf16.mxu0 %v996_v12  ;;  %v1016_v32 = vld [vmem:[%s1177_s6] ss:$20 sps:$4 sm:$0xff]   ;;  %v1018_v33 = vld [vmem:[%s1177_s6 + $0x4] ss:$20 sps:$4 sm:$0xff]   ;;  %v1019_v34 = vld [vmem:[%s1177_s6 + $0x8] ss:$20 sps:$4 sm:$0xff]  }
  0x18   : > { %923 = vmatprep.subr.bf16.mxu1 %v997_v13  ;;  %v1021_v35 = vld [vmem:[%s1177_s6 + $0xc] ss:$20 sps:$4 sm:$0xff]   ;;  %621 = vmatprep.mubr.bf16.mxu0 %v1018_v33  ;;  %v1029_v40 = vld [vmem:[%s1177_s6 + $0x34] ss:$20 sps:$4 sm:$0xff]   ;;  %v1032_v42 = vld [vmem:[%s1177_s6 + $0x30] ss:$20 sps:$4 sm:$0xff]  }
  0x19   : > { %670 = vmatprep.mubr.bf16.mxu1 %v1021_v35  ;;  %v1024_v38 = vld [vmem:[%s1233_s1 + $0x128] sm:$0xff]   ;;  %v1025_v43 = vld [vmem:[%s1233_s1 + $0x120] sm:$0xff]  }
  0x1a   : > { %896 = vmatpush3.bf16.msra.mxu0 %v998_v14  ;;  %v1027_v39 = vld [vmem:[%s1177_s6 + $0x2c] ss:$20 sps:$4 sm:$0xff]   ;;  %v1031_v41 = vld [vmem:[%s1177_s6 + $0x28] ss:$20 sps:$4 sm:$0xff]   ;;  %v1036_v44 = vld [vmem:[%s1177_s6 + $0x10] ss:$20 sps:$4 sm:$0xff]  }
  0x1b   : > { %924 = vmatpush3.bf16.msra.mxu1 %v999_v15  ;;  %897 = vmatprep.subr.bf16.mxu0 %v1000_v16  ;;  %v1034_v47 = vld [vmem:[%s1233_s1 + $0x108] sm:$0xff]   ;;  %v1035_v48 = vld [vmem:[%s1233_s1 + $0x100] sm:$0xff]  }
  0x1c   : > { %925 = vmatprep.subr.bf16.mxu1 %v1001_v17  ;;  %v1037_v49 = vld [vmem:[%s1177_s6 + $0x38] ss:$20 sps:$4 sm:$0xff]   ;;  %v885_v13 = vld [vmem:[%s1234_s2] ss:$0 sm:$0xff] }
  0x1e   : > { %898 = vmatpush3.bf16.msra.mxu0 %v1002_v18 }
  0x1f   : > { %926 = vmatpush3.bf16.msra.mxu1 %v1003_v19  ;;  %899 = vmatprep.subr.bf16.mxu0 %v1004_v20  ;;  %v886_v20 = vld [vmem:[%s1235_s3] ss:$0 sm:$0xff] }
  0x20   : > { %927 = vmatprep.subr.bf16.mxu1 %v1005_v21 }
  0x22   : > { %900 = vmatpush3.bf16.msra.mxu0 %v1006_v22 }
  0x23   : > { %928 = vmatpush3.bf16.msra.mxu1 %v1007_v23  ;;  %901 = vmatprep.subr.bf16.mxu0 %v1008_v24 }
  0x24   : > { %929 = vmatprep.subr.bf16.mxu1 %v1009_v25 }
  0x26   : > { %902 = vmatpush3.bf16.msra.mxu0 %v1010_v26 }
  0x27   : > { %930 = vmatpush3.bf16.msra.mxu1 %v1011_v27  ;;  %903 = vmatprep.subr.bf16.mxu0 %v1012_v28 }
  0x28   : > { %931 = vmatprep.subr.bf16.mxu1 %v1013_v29 }
  0x2a   : > { %904 = vmatpush3.bf16.msra.mxu0 %v1014_v30 }
  0x2b   : > { %932 = vmatpush3.bf16.msra.mxu1 %v1015_v31  ;;  %955 = vmatprep.subr.bf16.mxu0 %v1022_v36 }
  0x2d   : > { %622 = vmatmul.mubr.bf16.vlgmr.msra.gmra.mxu0 %v1016_v32 }
  0x2e   : > { %671 = vmatmul.mubr.bf16.vlgmr.msra.gmra.mxu1 %v1019_v34  ;;  %956 = vmatpush3.bf16.msra.mxu0 %v1022_v36 }
  0x2f   : > { %957 = vmatprep.subr.bf16.mxu0 %v1023_v37  ;;  %629 = vmatprep.mubr.bf16.mxu0 %v1027_v39 }
  0x30   : > { %678 = vmatprep.mubr.bf16.mxu1 %v1029_v40 }
  0x32   : > { %958 = vmatpush3.bf16.msra.mxu0 %v1023_v37 }
  0x33   : > { %959 = vmatprep.subr.bf16.mxu0 %v1024_v38 }
  0x35   : > { %630 = vmatmul.mubr.bf16.gmra.mxu0 %v1031_v41 }
  0x36   : > { %679 = vmatmul.mubr.bf16.gmra.mxu1 %v1032_v42  ;;  %960 = vmatpush3.bf16.msra.mxu0 %v1024_v38 }
  0x37   : > { %961 = vmatprep.subr.bf16.mxu0 %v1025_v43  ;;  %971 = vmatprep.mubr.bf16.mxu0 %v1036_v44 }
  0x3a   : > { %962 = vmatpush3.bf16.msra.mxu0 %v1025_v43 }
  0x3b   : > { %963 = vmatprep.subr.bf16.mxu0 %v1026_v45 }
  0x3e   : > { %964 = vmatpush3.bf16.msra.mxu0 %v1026_v45 }
  0x3f   : > { %965 = vmatprep.subr.bf16.mxu0 %v1033_v46 }
  0x42   : > { %966 = vmatpush3.bf16.msra.mxu0 %v1033_v46 }
  0x43   : > { %967 = vmatprep.subr.bf16.mxu0 %v1034_v47 }
  0x46   : > { %968 = vmatpush3.bf16.msra.mxu0 %v1034_v47 }
  0x47   : > { %969 = vmatprep.subr.bf16.mxu0 %v1035_v48 }
  0x4a   : > { %970 = vmatpush3.bf16.msra.mxu0 %v1035_v48 }
  0x4d   : > { %972 = vmatmul.mubr.bf16.vlgmr.msra.gmra.mxu0 %v1037_v49 }
  0xed   : > { %v905_v50 = vpop.f32.mrf.mxu0 }
  0xee   : > { %v933_v51 = vpop.f32.mrf.mxu1 }
  0xef   : > { %v906_v52 = vpop.f32.mrf.mxu0 }
  0xf0   : > { %v934_v53 = vpop.f32.mrf.mxu1  ;;  %v907_v4 = vadd.f32 %v906_v52, %v905_v50 }
  0xf1   : > { %v908_v54 = vpop.f32.mrf.mxu0  ;;  %v935_v5 = vadd.f32 %v934_v53, %v933_v51 }
  0xf2   : > { %v936_v55 = vpop.f32.mrf.mxu1 }
  0xf3   : > { %v909_v56 = vpop.f32.mrf.mxu0  ;;  %v673_v14 = vadd.f32 %v935_v5, %v907_v4 }
  0xf4   : > { %v937_v57 = vpop.f32.mrf.mxu1  ;;  %v910_v10 = vadd.f32 %v909_v56, %v908_v54 }
  0xf5   : > { %v911_v58 = vpop.f32.mrf.mxu0  ;;  %v938_v11 = vadd.f32 %v937_v57, %v936_v55 }
  0xf6   : > { %v939_v59 = vpop.f32.mrf.mxu1 }
  0xf7   : > { %v912_v60 = vpop.f32.mrf.mxu0  ;;  %v676_v23 = vadd.f32 %v938_v11, %v910_v10 }
  0xf8   : > { %v940_v61 = vpop.f32.mrf.mxu1  ;;  %v913_v0 = vadd.f32 %v912_v60, %v911_v58 }
  0xf9   : > { %v914_v62 = vpop.f32.mrf.mxu0  ;;  %v941_v1 = vadd.f32 %v940_v61, %v939_v59 }
  0xfa   : > { %v942_v63 = vpop.f32.mrf.mxu1 }
  0xfb   : > { %v915_v2 = vpop.f32.mrf.mxu0  ;;  %v681_v8 = vadd.f32 %v941_v1, %v913_v0 }
  0xfc   : > { %v943_v3 = vpop.f32.mrf.mxu1  ;;  %v916_v6 = vadd.f32 %v915_v2, %v914_v62 }
  0xfd   : > { %v944_v7 = vadd.f32 %v943_v3, %v942_v63 }
  0xff   : > { %v684_v17 = vadd.f32 %v944_v7, %v916_v6 }
 0x10d   : > { %v973_v9 = vpop.f32.mrf.mxu0 }
 0x10e   : > { %v730_v12 = vadd.f32 %v973_v9, %v681_v8 }
 0x10f   : > { %v721_v15 = vpop.f32.mrf.mxu0 }
 0x110   : > { %v722_v16 = vadd.f32 %v721_v15, %v673_v14  ;;  %v745_v18 = vmul.f32 %v885_v13, %v730_v12 }
 0x111   : > { %v974_v19 = vpop.f32.mrf.mxu0 }
 0x112   : > { %v743_v21 = vmul.f32 %v885_v13, %v722_v16  ;;  %v733_v22 = vadd.f32 %v974_v19, %v684_v17  ;;  %v756_v28 = vadd.f32 %v886_v20, %v745_v18 }
 0x113   : > { %v724_v24 = vpop.f32.mrf.mxu0 }
 0x114   : > { %v754_v25 = vadd.f32 %v886_v20, %v743_v21  ;;  %v746_v26 = vmul.f32 %v885_v13, %v733_v22  ;;  %v725_v27 = vadd.f32 %v724_v24, %v676_v23  ;;  %v760_v34 = vmul.f32 0.1, %v756_v28 }
 0x116   : > { %v758_v29 = vmul.f32 0.1, %v754_v25  ;;  %v757_v30 = vadd.f32 %v886_v20, %v746_v26  ;;  %v744_v31 = vmul.f32 %v885_v13, %v725_v27  ;;  %v764_v38 = vmax.f32 %v756_v28, %v760_v34 }
 0x118   : > { %v762_v32 = vmax.f32 %v754_v25, %v758_v29  ;;  %v755_v33 = vadd.f32 %v886_v20, %v744_v31  ;;  %v761_v35 = vmul.f32 0.1, %v757_v30  ;;  %768 = vst [vmem:[%s202_s10 + $0x10] sm:$0xff] %v764_v38 }
 0x11a   : > { %766 = vst [vmem:[%s202_s10] sm:$0xff] %v762_v32  ;;  %v759_v36 = vmul.f32 0.1, %v755_v33  ;;  %v765_v39 = vmax.f32 %v757_v30, %v761_v35 }
 0x11c   : > { %v763_v37 = vmax.f32 %v755_v33, %v759_v36  ;;  %769 = vst [vmem:[%s202_s10 + $0x18] sm:$0xff] %v765_v39 }
 0x11e   : > { %767 = vst [vmem:[%s202_s10 + $0x8] sm:$0xff] %v763_v37 }
 0x11f PF: > { %s14_s15 = sadd.s32 1, %s1044_s15  }
 0x120   : > { %p11_p4 = scmp.ge.s32.totalorder %s14_s15, 4  }
 0x122   :  { %13 = sbr.rel (!%p11_p4) target bundleno = 1 (0x1), region = 66 }

// kernel: cpd_d19_forward.135
= control target key start
LH: loop header
LB: loop body
LE: loop exit
PB: predicated region body
PF: predicated region fallthrough
CT: control target
= control target key end

     0   :  { %s638_s15 = smov 0   ;;  %s716_s0 = inlined_call_operand.vmem [shape: bf16[64,256], index: 0, kind: input, shape index: {}]   ;;  %s717_s1 = inlined_call_operand.vmem [shape: bf16[256,128], index: 1, kind: input, shape index: {}]   ;;  %s718_s2 = inlined_call_operand.vmem [shape: f32[1,128], index: 2, kind: input, shape index: {}]   ;;  %s719_s3 = inlined_call_operand.vmem [shape: f32[1,128], index: 3, kind: input, shape index: {}]   ;;  %s720_s4 = inlined_call_operand.vmem [shape: f32[64,128], index: 4, kind: output, shape index: {}]  }
   0x1 LB: > { %s496_s16 = sadd.s32 4294967295, %s611_s15   ;;  %p500_p0 = scmp.ge.s32.totalorder %s611_s15, 1  ;;  %s611_s15 = sphi %s638_s15, %s14_s15  }
   0x2   : > { %p164_p1 = scmp.lt.s32.totalorder %s611_s15, 3 }
   0x4   : > { %p165_p2 = pnand %p500_p0, %p164_p1 }
   0x5   : > { %s501_s19 = sshll.u32 (!%p165_p2), %s496_s16, 2 }
   0x6   : > { %168 = sbr.rel (%p165_p2) target bundleno = 254 (0xfe), region = 36  ;;  %p192_p3 = scmp.lt.s32.totalorder (!%p165_p2), %s501_s19, 7 }
   0xb   : > { %v583_v0 = vld [vmem:[%s717_s1 + $0x78] sm:$0xff]   ;;  %v585_v2 = vld [vmem:[%s717_s1 + $0x70] sm:$0xff]   ;;  %v587_v4 = vld [vmem:[%s717_s1 + $0x68] sm:$0xff]   ;;  %s722_s19 = smov (!%p192_p3, %s501_s19), 7 }
   0xc   : > { %v584_v1 = vld [vmem:[%s717_s1 + $0x38] sm:$0xff]   ;;  %531 = vmatprep.subr.bf16.mxu0 %v583_v0  ;;  %559 = vmatprep.subr.bf16.mxu1 %v583_v0  ;;  %v586_v3 = vld [vmem:[%s717_s1 + $0x30] sm:$0xff]   ;;  %v588_v5 = vld [vmem:[%s717_s1 + $0x28] sm:$0xff]   ;;  %s530_s8 = sshll.u32 %s722_s19, 3 }
   0xd   : > { %532 = vmatpush3.bf16.msra.mxu0 %v584_v1  ;;  %567 = vmatpush3.bf16.msra.mxu1 %v584_v1  ;;  %v589_v6 = vld [vmem:[%s717_s1 + $0x60] sm:$0xff]   ;;  %v591_v8 = vld [vmem:[%s717_s1 + $0x58] sm:$0xff]   ;;  %s196_s13 = scalar_lea.vmem %s716_s0, %s530_s8  ;;  %v593_v10 = vld [vmem:[%s717_s1 + $0x50] sm:$0xff]   ;;  %s202_s11 = scalar_lea.vmem %s720_s4, %s530_s8 }
   0xe   : > { %533 = vmatprep.subr.bf16.mxu0 %v585_v2  ;;  %560 = vmatprep.subr.bf16.mxu1 %v585_v2  ;;  %v590_v7 = vld [vmem:[%s717_s1 + $0x20] sm:$0xff]   ;;  %v592_v9 = vld [vmem:[%s717_s1 + $0x18] sm:$0xff]   ;;  %v594_v13 = vld [vmem:[%s717_s1 + $0x10] sm:$0xff]  }
   0xf   : > { %v601_v11 = vld [vmem:[%s196_s13 + $0x4] ss:$8 sps:$4 sm:$0xff]   ;;  %v604_v12 = vld [vmem:[%s196_s13 + $0x14] ss:$8 sps:$4 sm:$0xff]   ;;  %v599_v18 = vld [vmem:[%s196_s13] ss:$8 sps:$4 sm:$0xff]  }
  0x10   : > { %v595_v14 = vld [vmem:[%s717_s1 + $0x48] sm:$0xff]   ;;  %389 = vmatprep.mubr.bf16.mxu0 %v601_v11  ;;  %397 = vmatprep.mubr.bf16.mxu1 %v604_v12  ;;  %v597_v16 = vld [vmem:[%s717_s1 + $0x40] sm:$0xff]   ;;  %v602_v19 = vld [vmem:[%s196_s13 + $0x10] ss:$8 sps:$4 sm:$0xff]  }
  0x11   : > { %534 = vmatpush3.bf16.msra.mxu0 %v586_v3  ;;  %568 = vmatpush3.bf16.msra.mxu1 %v586_v3  ;;  %v596_v15 = vld [vmem:[%s717_s1 + $0x8] sm:$0xff]   ;;  %v598_v17 = vld [vmem:[%s717_s1] sm:$0xff]  }
  0x12   : > { %535 = vmatprep.subr.bf16.mxu0 %v587_v4  ;;  %561 = vmatprep.subr.bf16.mxu1 %v587_v4  ;;  %v526_v23 = vld [vmem:[%s718_s2] ss:$0 sm:$0xff] }
  0x13   : > { %v527_v27 = vld [vmem:[%s719_s3] ss:$0 sm:$0xff] }
  0x15   : > { %536 = vmatpush3.bf16.msra.mxu0 %v588_v5  ;;  %569 = vmatpush3.bf16.msra.mxu1 %v588_v5 }
  0x16   : > { %537 = vmatprep.subr.bf16.mxu0 %v589_v6  ;;  %562 = vmatprep.subr.bf16.mxu1 %v589_v6 }
  0x19   : > { %538 = vmatpush3.bf16.msra.mxu0 %v590_v7  ;;  %570 = vmatpush3.bf16.msra.mxu1 %v590_v7 }
  0x1a   : > { %539 = vmatprep.subr.bf16.mxu0 %v591_v8  ;;  %563 = vmatprep.subr.bf16.mxu1 %v591_v8 }
  0x1d   : > { %540 = vmatpush3.bf16.msra.mxu0 %v592_v9  ;;  %571 = vmatpush3.bf16.msra.mxu1 %v592_v9 }
  0x1e   : > { %541 = vmatprep.subr.bf16.mxu0 %v593_v10  ;;  %564 = vmatprep.subr.bf16.mxu1 %v593_v10 }
  0x21   : > { %542 = vmatpush3.bf16.msra.mxu0 %v594_v13  ;;  %572 = vmatpush3.bf16.msra.mxu1 %v594_v13 }
  0x22   : > { %543 = vmatprep.subr.bf16.mxu0 %v595_v14  ;;  %565 = vmatprep.subr.bf16.mxu1 %v595_v14 }
  0x25   : > { %544 = vmatpush3.bf16.msra.mxu0 %v596_v15  ;;  %573 = vmatpush3.bf16.msra.mxu1 %v596_v15 }
  0x26   : > { %545 = vmatprep.subr.bf16.mxu0 %v597_v16  ;;  %566 = vmatprep.subr.bf16.mxu1 %v597_v16 }
  0x29   : > { %546 = vmatpush3.bf16.msra.mxu0 %v598_v17  ;;  %574 = vmatpush3.bf16.msra.mxu1 %v598_v17 }
  0x2c   : > { %390 = vmatmul.mubr.bf16.vlgmr.msra.gmra.mxu0 %v599_v18  ;;  %398 = vmatmul.mubr.bf16.vlgmr.msra.gmra.mxu1 %v602_v19 }
  0xec   : > { %v547_v20 = vpop.f32.mrf.mxu0  ;;  %v553_v21 = vpop.f32.mrf.mxu1 }
  0xee   : > { %v548_v22 = vpop.f32.mrf.mxu0  ;;  %v554_v24 = vpop.f32.mrf.mxu1 }
  0xef   : > { %v549_v25 = vadd.f32 %v548_v22, %v547_v20  ;;  %v555_v26 = vadd.f32 %v554_v24, %v553_v21 }
  0xf0   : > { %v550_v28 = vpop.f32.mrf.mxu0  ;;  %v556_v29 = vpop.f32.mrf.mxu1 }
  0xf1   : > { %v413_v30 = vmul.f32 %v549_v25, %v526_v23  ;;  %v415_v31 = vmul.f32 %v555_v26, %v526_v23 }
  0xf2   : > { %v551_v32 = vpop.f32.mrf.mxu0  ;;  %v557_v33 = vpop.f32.mrf.mxu1 }
  0xf3   : > { %v424_v34 = vadd.f32 %v527_v27, %v413_v30  ;;  %v552_v35 = vadd.f32 %v551_v32, %v550_v28  ;;  %v558_v36 = vadd.f32 %v557_v33, %v556_v29  ;;  %v426_v37 = vadd.f32 %v527_v27, %v415_v31 }
  0xf5   : > { %v428_v38 = vmul.f32 0.1, %v424_v34  ;;  %v414_v39 = vmul.f32 %v552_v35, %v526_v23  ;;  %v416_v40 = vmul.f32 %v558_v36, %v526_v23  ;;  %v430_v44 = vmul.f32 0.1, %v426_v37 }
  0xf7   : > { %v432_v41 = vmax.f32 %v424_v34, %v428_v38  ;;  %v425_v42 = vadd.f32 %v527_v27, %v414_v39  ;;  %v427_v43 = vadd.f32 %v527_v27, %v416_v40  ;;  %v434_v48 = vmax.f32 %v426_v37, %v430_v44 }
  0xf9   : > { %436 = vst [vmem:[%s202_s11] sm:$0xff] %v432_v41  ;;  %v429_v45 = vmul.f32 0.1, %v425_v42  ;;  %v431_v46 = vmul.f32 0.1, %v427_v43  ;;  %438 = vst [vmem:[%s202_s11 + $0x10] sm:$0xff] %v434_v48 }
  0xfb   : > { %v433_v47 = vmax.f32 %v425_v42, %v429_v45  ;;  %v435_v49 = vmax.f32 %v427_v43, %v431_v46 }
  0xfd   : > { %437 = vst [vmem:[%s202_s11 + $0x8] sm:$0xff] %v433_v47  ;;  %439 = vst [vmem:[%s202_s11 + $0x18] sm:$0xff] %v435_v49 }
  0xfe PF: > { %s14_s15 = sadd.s32 1, %s611_s15  }
  0xff   : > { %p11_p4 = scmp.ge.s32.totalorder %s14_s15, 4  }
 0x101   :  { %13 = sbr.rel (!%p11_p4) target bundleno = 1 (0x1), region = 66 }

// kernel: cpd_d19_forward.134
= control target key start
LH: loop header
LB: loop body
LE: loop exit
PB: predicated region body
PF: predicated region fallthrough
CT: control target
= control target key end

     0   :  { %s2047_s15 = smov 0   ;;  %s2538_s0 = inlined_call_operand.vmem [shape: bf16[64,1152], index: 0, kind: input, shape index: {}]   ;;  %s2539_s1 = inlined_call_operand.vmem [shape: bf16[1152,256], index: 1, kind: input, shape index: {}]   ;;  %s2540_s2 = inlined_call_operand.vmem [shape: f32[1,256], index: 2, kind: input, shape index: {}]   ;;  %s2541_s3 = inlined_call_operand.vmem [shape: f32[1,256], index: 3, kind: input, shape index: {}]   ;;  %s2542_s4 = inlined_call_operand.vmem [shape: f32[64,256], index: 4, kind: output, shape index: {}]  }
   0x1 LB: > { %s1570_s16 = sadd.s32 4294967295, %s2019_s15   ;;  %p1574_p0 = scmp.ge.s32.totalorder %s2019_s15, 1  ;;  %s2019_s15 = sphi %s2047_s15, %s14_s15  }
   0x2   : > { %p164_p1 = scmp.lt.s32.totalorder %s2019_s15, 3 }
   0x4   : > { %p165_p2 = pnand %p1574_p0, %p164_p1 }
   0x5   : > { %s1575_s29 = sshll.u32 (!%p165_p2), %s1570_s16, 2 }
   0x6   : > { %168 = sbr.rel (%p165_p2) target bundleno = 383 (0x17f), region = 36  ;;  %p193_p3 = scmp.lt.s32.totalorder (!%p165_p2), %s1575_s29, 7 }
   0xb   : > { %v1771_v0 = vld [vmem:[%s2539_s1 + $0x74] ss:$8 sps:$4 sm:$0xff]   ;;  %v1775_v2 = vld [vmem:[%s2539_s1 + $0x70] ss:$8 sps:$4 sm:$0xff]   ;;  %v1777_v4 = vld [vmem:[%s2539_s1 + $0x64] ss:$8 sps:$4 sm:$0xff]  }
   0xc   : > { %v1773_v1 = vld [vmem:[%s2539_s1 + $0x174] ss:$8 sps:$4 sm:$0xff]   ;;  %1183 = vmatprep.subr.bf16.mxu0 %v1771_v0  ;;  %v1776_v3 = vld [vmem:[%s2539_s1 + $0x170] ss:$8 sps:$4 sm:$0xff]   ;;  %v1779_v5 = vld [vmem:[%s2539_s1 + $0x164] ss:$8 sps:$4 sm:$0xff]  }
   0xd   : > { %1236 = vmatprep.subr.bf16.mxu1 %v1773_v1  ;;  %1184 = vmatpush1.bf16.msra.mxu0 %v1775_v2  ;;  %v1781_v6 = vld [vmem:[%s2539_s1 + $0x60] ss:$8 sps:$4 sm:$0xff]   ;;  %v1783_v8 = vld [vmem:[%s2539_s1 + $0x54] ss:$8 sps:$4 sm:$0xff]   ;;  %v1787_v10 = vld [vmem:[%s2539_s1 + $0x50] ss:$8 sps:$4 sm:$0xff]  }
   0xe   : > { %1237 = vmatpush1.bf16.msra.mxu1 %v1776_v3  ;;  %1185 = vmatprep.subr.bf16.mxu0 %v1777_v4  ;;  %v1782_v7 = vld [vmem:[%s2539_s1 + $0x160] ss:$8 sps:$4 sm:$0xff]   ;;  %v1785_v9 = vld [vmem:[%s2539_s1 + $0x154] ss:$8 sps:$4 sm:$0xff]   ;;  %v1788_v11 = vld [vmem:[%s2539_s1 + $0x150] ss:$8 sps:$4 sm:$0xff]  }
   0xf   : > { %1238 = vmatprep.subr.bf16.mxu1 %v1779_v5  ;;  %v1789_v12 = vld [vmem:[%s2539_s1 + $0x44] ss:$8 sps:$4 sm:$0xff]   ;;  %v1793_v14 = vld [vmem:[%s2539_s1 + $0x40] ss:$8 sps:$4 sm:$0xff]   ;;  %v1795_v16 = vld [vmem:[%s2539_s1 + $0x34] ss:$8 sps:$4 sm:$0xff]  }
  0x10   : > { %v1791_v13 = vld [vmem:[%s2539_s1 + $0x144] ss:$8 sps:$4 sm:$0xff]   ;;  %v1794_v15 = vld [vmem:[%s2539_s1 + $0x140] ss:$8 sps:$4 sm:$0xff]   ;;  %v1797_v17 = vld [vmem:[%s2539_s1 + $0x134] ss:$8 sps:$4 sm:$0xff]  }
  0x11   : > { %1186 = vmatpush1.bf16.msra.mxu0 %v1781_v6  ;;  %v1799_v18 = vld [vmem:[%s2539_s1 + $0x30] ss:$8 sps:$4 sm:$0xff]   ;;  %v1801_v20 = vld [vmem:[%s2539_s1 + $0x24] ss:$8 sps:$4 sm:$0xff]   ;;  %v1805_v22 = vld [vmem:[%s2539_s1 + $0x20] ss:$8 sps:$4 sm:$0xff]  }
  0x12   : > { %1239 = vmatpush1.bf16.msra.mxu1 %v1782_v7  ;;  %1187 = vmatprep.subr.bf16.mxu0 %v1783_v8  ;;  %v1800_v19 = vld [vmem:[%s2539_s1 + $0x130] ss:$8 sps:$4 sm:$0xff]   ;;  %v1803_v21 = vld [vmem:[%s2539_s1 + $0x124] ss:$8 sps:$4 sm:$0xff]   ;;  %v1806_v23 = vld [vmem:[%s2539_s1 + $0x120] ss:$8 sps:$4 sm:$0xff]  }
  0x13   : > { %1240 = vmatprep.subr.bf16.mxu1 %v1785_v9  ;;  %v1807_v24 = vld [vmem:[%s2539_s1 + $0x14] ss:$8 sps:$4 sm:$0xff]   ;;  %v1811_v26 = vld [vmem:[%s2539_s1 + $0x10] ss:$8 sps:$4 sm:$0xff]   ;;  %v1813_v28 = vld [vmem:[%s2539_s1 + $0x4] ss:$8 sps:$4 sm:$0xff]  }
  0x14   : > { %v1809_v25 = vld [vmem:[%s2539_s1 + $0x114] ss:$8 sps:$4 sm:$0xff]   ;;  %v1812_v27 = vld [vmem:[%s2539_s1 + $0x110] ss:$8 sps:$4 sm:$0xff]   ;;  %v1815_v29 = vld [vmem:[%s2539_s1 + $0x104] ss:$8 sps:$4 sm:$0xff]  }
  0x15   : > { %1188 = vmatpush1.bf16.msra.mxu0 %v1787_v10  ;;  %v1817_v30 = vld [vmem:[%s2539_s1] ss:$8 sps:$4 sm:$0xff]   ;;  %v1819_v32 = vld [vmem:[%s2539_s1 + $0xf4] ss:$8 sps:$4 sm:$0xff]   ;;  %v1823_v34 = vld [vmem:[%s2539_s1 + $0xf0] ss:$8 sps:$4 sm:$0xff]  }
  0x16   : > { %1241 = vmatpush1.bf16.msra.mxu1 %v1788_v11  ;;  %1189 = vmatprep.subr.bf16.mxu0 %v1789_v12  ;;  %v1818_v31 = vld [vmem:[%s2539_s1 + $0x100] ss:$8 sps:$4 sm:$0xff]   ;;  %v1821_v33 = vld [vmem:[%s2539_s1 + $0x1f4] ss:$8 sps:$4 sm:$0xff]   ;;  %v1824_v35 = vld [vmem:[%s2539_s1 + $0x1f0] ss:$8 sps:$4 sm:$0xff]  }
  0x17   : > { %1242 = vmatprep.subr.bf16.mxu1 %v1791_v13  ;;  %v1825_v36 = vld [vmem:[%s2539_s1 + $0xe4] ss:$8 sps:$4 sm:$0xff]   ;;  %s2544_s29 = smov (!%p193_p3, %s1575_s29), 7  ;;  %v1829_v38 = vld [vmem:[%s2539_s1 + $0xe0] ss:$8 sps:$4 sm:$0xff]  }
  0x18   : > { %v1827_v37 = vld [vmem:[%s2539_s1 + $0x1e4] ss:$8 sps:$4 sm:$0xff]   ;;  %v1830_v39 = vld [vmem:[%s2539_s1 + $0x1e0] ss:$8 sps:$4 sm:$0xff]   ;;  %v1831_v40 = vld [vmem:[%s2539_s1 + $0xd4] ss:$8 sps:$4 sm:$0xff]  }
  0x19   : > { %1190 = vmatpush1.bf16.msra.mxu0 %v1793_v14  ;;  %s1761_s27 = smul.u32 36, %s2544_s29  ;;  %v1833_v41 = vld [vmem:[%s2539_s1 + $0x1d4] ss:$8 sps:$4 sm:$0xff]   ;;  %v1835_v42 = vld [vmem:[%s2539_s1 + $0xd0] ss:$8 sps:$4 sm:$0xff]   ;;  %s1744_s7 = sshll.u32 %s2544_s29, 4 }
  0x1a   : > { %1243 = vmatpush1.bf16.msra.mxu1 %v1794_v15  ;;  %1191 = vmatprep.subr.bf16.mxu0 %v1795_v16  ;;  %v1836_v43 = vld [vmem:[%s2539_s1 + $0x1d0] ss:$8 sps:$4 sm:$0xff]   ;;  %v1837_v44 = vld [vmem:[%s2539_s1 + $0xc4] ss:$8 sps:$4 sm:$0xff]   ;;  %v1841_v46 = vld [vmem:[%s2539_s1 + $0xc0] ss:$8 sps:$4 sm:$0xff]   ;;  %s2525_s10 = scalar_lea.vmem %s2542_s4, %s1744_s7 }
  0x1b   : > { %1244 = vmatprep.subr.bf16.mxu1 %v1797_v17  ;;  %s2198_s12 = scalar_lea.vmem %s2538_s0, %s1761_s27  ;;  %v1839_v45 = vld [vmem:[%s2539_s1 + $0x1c4] ss:$8 sps:$4 sm:$0xff]   ;;  %v1842_v47 = vld [vmem:[%s2539_s1 + $0x1c0] ss:$8 sps:$4 sm:$0xff]   ;;  %v1843_v48 = vld [vmem:[%s2539_s1 + $0xb4] ss:$8 sps:$4 sm:$0xff]  }
  0x1c   : > { %v1869_v49 = vld [vmem:[%s2198_s12 + $0x4] ss:$36 sps:$4 sm:$0xff]   ;;  %v1845_v50 = vld [vmem:[%s2539_s1 + $0x1b4] ss:$8 sps:$4 sm:$0xff]   ;;  %v1872_v51 = vld [vmem:[%s2198_s12 + $0xc] ss:$36 sps:$4 sm:$0xff]  }
  0x1d   : > { %1192 = vmatpush1.bf16.msra.mxu0 %v1799_v18  ;;  %1215 = vmatprep.mubr.bf16.mxu0 %v1869_v49  ;;  %v1847_v52 = vld [vmem:[%s2539_s1 + $0xb0] ss:$8 sps:$4 sm:$0xff]   ;;  %v1849_v54 = vld [vmem:[%s2539_s1 + $0xa4] ss:$8 sps:$4 sm:$0xff]   ;;  %v1853_v56 = vld [vmem:[%s2539_s1 + $0xa0] ss:$8 sps:$4 sm:$0xff]  }
  0x1e   : > { %1245 = vmatpush1.bf16.msra.mxu1 %v1800_v19  ;;  %1193 = vmatprep.subr.bf16.mxu0 %v1801_v20  ;;  %v1848_v53 = vld [vmem:[%s2539_s1 + $0x1b0] ss:$8 sps:$4 sm:$0xff]   ;;  %v1851_v55 = vld [vmem:[%s2539_s1 + $0x1a4] ss:$8 sps:$4 sm:$0xff]   ;;  %v1854_v57 = vld [vmem:[%s2539_s1 + $0x1a0] ss:$8 sps:$4 sm:$0xff]  }
  0x1f   : > { %1246 = vmatprep.subr.bf16.mxu1 %v1803_v21  ;;  %1268 = vmatprep.mubr.bf16.mxu1 %v1872_v51  ;;  %v1855_v58 = vld [vmem:[%s2539_s1 + $0x94] ss:$8 sps:$4 sm:$0xff]   ;;  %v1859_v60 = vld [vmem:[%s2539_s1 + $0x90] ss:$8 sps:$4 sm:$0xff]   ;;  %v1861_v62 = vld [vmem:[%s2539_s1 + $0x84] ss:$8 sps:$4 sm:$0xff]  }
  0x20   : > { %v1857_v59 = vld [vmem:[%s2539_s1 + $0x194] ss:$8 sps:$4 sm:$0xff]   ;;  %v1860_v61 = vld [vmem:[%s2539_s1 + $0x190] ss:$8 sps:$4 sm:$0xff]   ;;  %v1863_v63 = vld [vmem:[%s2539_s1 + $0x184] ss:$8 sps:$4 sm:$0xff]  }
  0x21   : > { %1194 = vmatpush1.bf16.msra.mxu0 %v1805_v22  ;;  %v1865_v0 = vld [vmem:[%s2539_s1 + $0x80] ss:$8 sps:$4 sm:$0xff]   ;;  %v1875_v2 = vld [vmem:[%s2539_s1 + $0x274] ss:$8 sps:$4 sm:$0xff]   ;;  %v1873_v6 = vld [vmem:[%s2539_s1 + $0x270] ss:$8 sps:$4 sm:$0xff]  }
  0x22   : > { %1247 = vmatpush1.bf16.msra.mxu1 %v1806_v23  ;;  %1195 = vmatprep.subr.bf16.mxu0 %v1807_v24  ;;  %v1866_v1 = vld [vmem:[%s2539_s1 + $0x180] ss:$8 sps:$4 sm:$0xff]   ;;  %v1878_v3 = vld [vmem:[%s2539_s1 + $0x374] ss:$8 sps:$4 sm:$0xff]   ;;  %v1876_v7 = vld [vmem:[%s2539_s1 + $0x370] ss:$8 sps:$4 sm:$0xff]  }
  0x23   : > { %1248 = vmatprep.subr.bf16.mxu1 %v1809_v25  ;;  %v1867_v4 = vld [vmem:[%s2198_s12] ss:$36 sps:$4 sm:$0xff]   ;;  %v1870_v5 = vld [vmem:[%s2198_s12 + $0x8] ss:$36 sps:$4 sm:$0xff]   ;;  %v1887_v12 = vld [vmem:[%s2539_s1 + $0x254] ss:$8 sps:$4 sm:$0xff]  }
  0x24   : > { %v1881_v8 = vld [vmem:[%s2539_s1 + $0x264] ss:$8 sps:$4 sm:$0xff]   ;;  %v1879_v10 = vld [vmem:[%s2539_s1 + $0x260] ss:$8 sps:$4 sm:$0xff]   ;;  %v1890_v13 = vld [vmem:[%s2539_s1 + $0x354] ss:$8 sps:$4 sm:$0xff]  }
  0x25   : > { %1196 = vmatpush1.bf16.msra.mxu0 %v1811_v26  ;;  %v1884_v9 = vld [vmem:[%s2539_s1 + $0x364] ss:$8 sps:$4 sm:$0xff]   ;;  %v1882_v11 = vld [vmem:[%s2539_s1 + $0x360] ss:$8 sps:$4 sm:$0xff]   ;;  %v1885_v14 = vld [vmem:[%s2539_s1 + $0x250] ss:$8 sps:$4 sm:$0xff]  }
  0x26   : > { %1249 = vmatpush1.bf16.msra.mxu1 %v1812_v27  ;;  %1197 = vmatprep.subr.bf16.mxu0 %v1813_v28  ;;  %v1888_v15 = vld [vmem:[%s2539_s1 + $0x350] ss:$8 sps:$4 sm:$0xff]   ;;  %v1893_v16 = vld [vmem:[%s2539_s1 + $0x244] ss:$8 sps:$4 sm:$0xff]   ;;  %v1891_v18 = vld [vmem:[%s2539_s1 + $0x240] ss:$8 sps:$4 sm:$0xff]  }
  0x27   : > { %1250 = vmatprep.subr.bf16.mxu1 %v1815_v29  ;;  %v1896_v17 = vld [vmem:[%s2539_s1 + $0x344] ss:$8 sps:$4 sm:$0xff]   ;;  %v1894_v19 = vld [vmem:[%s2539_s1 + $0x340] ss:$8 sps:$4 sm:$0xff]   ;;  %v1899_v20 = vld [vmem:[%s2539_s1 + $0x234] ss:$8 sps:$4 sm:$0xff]  }
  0x28   : > { %v1902_v21 = vld [vmem:[%s2539_s1 + $0x334] ss:$8 sps:$4 sm:$0xff]   ;;  %v1897_v22 = vld [vmem:[%s2539_s1 + $0x230] ss:$8 sps:$4 sm:$0xff]   ;;  %v1905_v24 = vld [vmem:[%s2539_s1 + $0x224] ss:$8 sps:$4 sm:$0xff]  }
  0x29   : > { %1198 = vmatpush1.bf16.msra.mxu0 %v1817_v30  ;;  %v1900_v23 = vld [vmem:[%s2539_s1 + $0x330] ss:$8 sps:$4 sm:$0xff]   ;;  %v1908_v25 = vld [vmem:[%s2539_s1 + $0x324] ss:$8 sps:$4 sm:$0xff]   ;;  %v1903_v30 = vld [vmem:[%s2539_s1 + $0x220] ss:$8 sps:$4 sm:$0xff]  }
  0x2a   : > { %1251 = vmatpush1.bf16.msra.mxu1 %v1818_v31  ;;  %1199 = vmatprep.subr.bf16.mxu0 %v1819_v32  ;;  %v1951_v26 = vld [vmem:[%s2198_s12 + $0x4c] ss:$36 sps:$4 sm:$0xff]   ;;  %v1953_v27 = vld [vmem:[%s2198_s12 + $0x54] ss:$36 sps:$4 sm:$0xff]   ;;  %v1906_v31 = vld [vmem:[%s2539_s1 + $0x320] ss:$8 sps:$4 sm:$0xff]  }
  0x2b   : > { %1252 = vmatprep.subr.bf16.mxu1 %v1821_v33  ;;  %v1955_v28 = vld [vmem:[%s2198_s12 + $0x48] ss:$36 sps:$4 sm:$0xff]   ;;  %v1956_v29 = vld [vmem:[%s2198_s12 + $0x50] ss:$36 sps:$4 sm:$0xff]  }
  0x2c   : > { %v1911_v32 = vld [vmem:[%s2539_s1 + $0x214] ss:$8 sps:$4 sm:$0xff]   ;;  %v1930_v49 = vld [vmem:[%s2539_s1 + $0x3e0] ss:$8 sps:$4 sm:$0xff]  }
  0x2d   : > { %1200 = vmatpush2.bf16.msra.mxu0 %v1823_v34  ;;  %v1914_v33 = vld [vmem:[%s2539_s1 + $0x314] ss:$8 sps:$4 sm:$0xff]   ;;  %v1909_v34 = vld [vmem:[%s2539_s1 + $0x210] ss:$8 sps:$4 sm:$0xff]  }
  0x2e   : > { %1253 = vmatpush2.bf16.msra.mxu1 %v1824_v35  ;;  %1201 = vmatprep.subr.bf16.mxu0 %v1825_v36  ;;  %v1912_v35 = vld [vmem:[%s2539_s1 + $0x310] ss:$8 sps:$4 sm:$0xff]   ;;  %v1917_v36 = vld [vmem:[%s2539_s1 + $0x204] ss:$8 sps:$4 sm:$0xff]   ;;  %v1938_v51 = vld [vmem:[%s2539_s1 + $0x3d4] ss:$8 sps:$4 sm:$0xff]  }
  0x2f   : > { %1254 = vmatprep.subr.bf16.mxu1 %v1827_v37  ;;  %v1920_v37 = vld [vmem:[%s2539_s1 + $0x304] ss:$8 sps:$4 sm:$0xff]  }
  0x31   : > { %1202 = vmatpush2.bf16.msra.mxu0 %v1829_v38  ;;  %v1915_v38 = vld [vmem:[%s2539_s1 + $0x200] ss:$8 sps:$4 sm:$0xff]  }
  0x32   : > { %1255 = vmatpush2.bf16.msra.mxu1 %v1830_v39  ;;  %1203 = vmatprep.subr.bf16.mxu0 %v1831_v40  ;;  %v1918_v39 = vld [vmem:[%s2539_s1 + $0x300] ss:$8 sps:$4 sm:$0xff]   ;;  %v1923_v40 = vld [vmem:[%s2539_s1 + $0x2f4] ss:$8 sps:$4 sm:$0xff]  }
  0x33   : > { %1256 = vmatprep.subr.bf16.mxu1 %v1833_v41  ;;  %v1977_v41 = vld [vmem:[%s2198_s12 + $0x14] ss:$36 sps:$4 sm:$0xff]  }
  0x35   : > { %1204 = vmatpush2.bf16.msra.mxu0 %v1835_v42  ;;  %v1926_v42 = vld [vmem:[%s2539_s1 + $0x3f4] ss:$8 sps:$4 sm:$0xff]  }
  0x36   : > { %1257 = vmatpush2.bf16.msra.mxu1 %v1836_v43  ;;  %1205 = vmatprep.subr.bf16.mxu0 %v1837_v44  ;;  %v1980_v43 = vld [vmem:[%s2198_s12 + $0x1c] ss:$36 sps:$4 sm:$0xff]   ;;  %v1921_v44 = vld [vmem:[%s2539_s1 + $0x2f0] ss:$8 sps:$4 sm:$0xff]  }
  0x37   : > { %1258 = vmatprep.subr.bf16.mxu1 %v1839_v45  ;;  %v1924_v45 = vld [vmem:[%s2539_s1 + $0x3f0] ss:$8 sps:$4 sm:$0xff]  }
  0x39   : > { %1206 = vmatpush2.bf16.msra.mxu0 %v1841_v46  ;;  %v1929_v46 = vld [vmem:[%s2539_s1 + $0x2e4] ss:$8 sps:$4 sm:$0xff]  }
  0x3a   : > { %1259 = vmatpush2.bf16.msra.mxu1 %v1842_v47  ;;  %1207 = vmatprep.subr.bf16.mxu0 %v1843_v48  ;;  %v1932_v47 = vld [vmem:[%s2539_s1 + $0x3e4] ss:$8 sps:$4 sm:$0xff]   ;;  %v1927_v48 = vld [vmem:[%s2539_s1 + $0x2e0] ss:$8 sps:$4 sm:$0xff]  }
  0x3b   : > { %1260 = vmatprep.subr.bf16.mxu1 %v1845_v50  ;;  %v1935_v50 = vld [vmem:[%s2539_s1 + $0x2d4] ss:$8 sps:$4 sm:$0xff]  }
  0x3d   : > { %1208 = vmatpush2.bf16.msra.mxu0 %v1847_v52  ;;  %v1933_v52 = vld [vmem:[%s2539_s1 + $0x2d0] ss:$8 sps:$4 sm:$0xff]  }
  0x3e   : > { %1261 = vmatpush2.bf16.msra.mxu1 %v1848_v53  ;;  %1209 = vmatprep.subr.bf16.mxu0 %v1849_v54  ;;  %v1936_v53 = vld [vmem:[%s2539_s1 + $0x3d0] ss:$8 sps:$4 sm:$0xff]   ;;  %v1941_v54 = vld [vmem:[%s2539_s1 + $0x2c4] ss:$8 sps:$4 sm:$0xff]  }
  0x3f   : > { %1262 = vmatprep.subr.bf16.mxu1 %v1851_v55  ;;  %v1944_v55 = vld [vmem:[%s2539_s1 + $0x3c4] ss:$8 sps:$4 sm:$0xff]  }
  0x41   : > { %1210 = vmatpush2.bf16.msra.mxu0 %v1853_v56  ;;  %v1939_v56 = vld [vmem:[%s2539_s1 + $0x2c0] ss:$8 sps:$4 sm:$0xff]  }
  0x42   : > { %1263 = vmatpush2.bf16.msra.mxu1 %v1854_v57  ;;  %1211 = vmatprep.subr.bf16.mxu0 %v1855_v58  ;;  %v1942_v57 = vld [vmem:[%s2539_s1 + $0x3c0] ss:$8 sps:$4 sm:$0xff]   ;;  %v1947_v58 = vld [vmem:[%s2539_s1 + $0x2b4] ss:$8 sps:$4 sm:$0xff]  }
  0x43   : > { %1264 = vmatprep.subr.bf16.mxu1 %v1857_v59  ;;  %v1950_v59 = vld [vmem:[%s2539_s1 + $0x3b4] ss:$8 sps:$4 sm:$0xff]  }
  0x45   : > { %1212 = vmatpush2.bf16.msra.mxu0 %v1859_v60  ;;  %v1945_v60 = vld [vmem:[%s2539_s1 + $0x2b0] ss:$8 sps:$4 sm:$0xff]  }
  0x46   : > { %1265 = vmatpush2.bf16.msra.mxu1 %v1860_v61  ;;  %1213 = vmatprep.subr.bf16.mxu0 %v1861_v62  ;;  %v1948_v61 = vld [vmem:[%s2539_s1 + $0x3b0] ss:$8 sps:$4 sm:$0xff]   ;;  %v1959_v62 = vld [vmem:[%s2539_s1 + $0x2a4] ss:$8 sps:$4 sm:$0xff]  }
  0x47   : > { %1266 = vmatprep.subr.bf16.mxu1 %v1863_v63  ;;  %v1962_v63 = vld [vmem:[%s2539_s1 + $0x3a4] ss:$8 sps:$4 sm:$0xff]  }
  0x49   : > { %1214 = vmatpush2.bf16.msra.mxu0 %v1865_v0  ;;  %v1957_v0 = vld [vmem:[%s2539_s1 + $0x2a0] ss:$8 sps:$4 sm:$0xff]  }
  0x4a   : > { %1267 = vmatpush2.bf16.msra.mxu1 %v1866_v1  ;;  %1289 = vmatprep.subr.bf16.mxu0 %v1875_v2  ;;  %v1960_v1 = vld [vmem:[%s2539_s1 + $0x3a0] ss:$8 sps:$4 sm:$0xff]   ;;  %v1965_v2 = vld [vmem:[%s2539_s1 + $0x294] ss:$8 sps:$4 sm:$0xff]  }
  0x4b   : > { %1342 = vmatprep.subr.bf16.mxu1 %v1878_v3  ;;  %v1968_v3 = vld [vmem:[%s2539_s1 + $0x394] ss:$8 sps:$4 sm:$0xff]  }
  0x4c   : > { %1216 = vmatmul.mubr.bf16.vlgmr.msra.gmra.mxu0 %v1867_v4  ;;  %v1963_v4 = vld [vmem:[%s2539_s1 + $0x290] ss:$8 sps:$4 sm:$0xff]  }
  0x4d   : > { %1269 = vmatmul.mubr.bf16.vlgmr.msra.gmra.mxu1 %v1870_v5  ;;  %1290 = vmatpush1.bf16.msra.mxu0 %v1873_v6  ;;  %v1966_v5 = vld [vmem:[%s2539_s1 + $0x390] ss:$8 sps:$4 sm:$0xff]   ;;  %v1971_v6 = vld [vmem:[%s2539_s1 + $0x284] ss:$8 sps:$4 sm:$0xff]  }
  0x4e   : > { %1343 = vmatpush1.bf16.msra.mxu1 %v1876_v7  ;;  %1291 = vmatprep.subr.bf16.mxu0 %v1881_v8  ;;  %v1974_v7 = vld [vmem:[%s2539_s1 + $0x384] ss:$8 sps:$4 sm:$0xff]   ;;  %v1969_v8 = vld [vmem:[%s2539_s1 + $0x280] ss:$8 sps:$4 sm:$0xff]  }
  0x4f   : > { %1344 = vmatprep.subr.bf16.mxu1 %v1884_v9  ;;  %1225 = vmatprep.mubr.bf16.mxu0 %v1951_v26  ;;  %v1972_v9 = vld [vmem:[%s2539_s1 + $0x380] ss:$8 sps:$4 sm:$0xff]   ;;  %v1999_v26 = vld [vmem:[%s2539_s1 + $0x430] ss:$8 sps:$4 sm:$0xff]  }
  0x50   : > { %1278 = vmatprep.mubr.bf16.mxu1 %v1953_v27  ;;  %v2004_v27 = vld [vmem:[%s2539_s1 + $0x424] ss:$8 sps:$4 sm:$0xff]  }
  0x51   : > { %1292 = vmatpush1.bf16.msra.mxu0 %v1879_v10  ;;  %v1983_v10 = vld [vmem:[%s2539_s1 + $0x474] ss:$8 sps:$4 sm:$0xff]  }
  0x52   : > { %1345 = vmatpush1.bf16.msra.mxu1 %v1882_v11  ;;  %1293 = vmatprep.subr.bf16.mxu0 %v1887_v12  ;;  %v1975_v11 = vld [vmem:[%s2198_s12 + $0x10] ss:$36 sps:$4 sm:$0xff]   ;;  %v1978_v12 = vld [vmem:[%s2198_s12 + $0x18] ss:$36 sps:$4 sm:$0xff]  }
  0x53   : > { %1346 = vmatprep.subr.bf16.mxu1 %v1890_v13  ;;  %v1981_v13 = vld [vmem:[%s2539_s1 + $0x470] ss:$8 sps:$4 sm:$0xff]  }
  0x54   : > { %1226 = vmatmul.mubr.bf16.gmra.mxu0 %v1955_v28  ;;  %v2002_v28 = vld [vmem:[%s2539_s1 + $0x420] ss:$8 sps:$4 sm:$0xff]  }
  0x55   : > { %1294 = vmatpush1.bf16.msra.mxu0 %v1885_v14  ;;  %1279 = vmatmul.mubr.bf16.gmra.mxu1 %v1956_v29  ;;  %v1986_v14 = vld [vmem:[%s2539_s1 + $0x464] ss:$8 sps:$4 sm:$0xff]   ;;  %v2007_v29 = vld [vmem:[%s2539_s1 + $0x414] ss:$8 sps:$4 sm:$0xff]  }
  0x56   : > { %1347 = vmatpush1.bf16.msra.mxu1 %v1888_v15  ;;  %1295 = vmatprep.subr.bf16.mxu0 %v1893_v16  ;;  %v1987_v15 = vld [vmem:[%s2198_s12 + $0x5c] ss:$36 sps:$4 sm:$0xff]   ;;  %v1993_v16 = vld [vmem:[%s2198_s12 + $0x64] ss:$36 sps:$4 sm:$0xff]  }
  0x57   : > { %1348 = vmatprep.subr.bf16.mxu1 %v1896_v17  ;;  %1321 = vmatprep.mubr.bf16.mxu0 %v1977_v41  ;;  %v1984_v17 = vld [vmem:[%s2539_s1 + $0x460] ss:$8 sps:$4 sm:$0xff]  }
  0x58   : > { %1374 = vmatprep.mubr.bf16.mxu1 %v1980_v43 }
  0x59   : > { %1296 = vmatpush1.bf16.msra.mxu0 %v1891_v18  ;;  %v1992_v18 = vld [vmem:[%s2539_s1 + $0x454] ss:$8 sps:$4 sm:$0xff]  }
  0x5a   : > { %1349 = vmatpush1.bf16.msra.mxu1 %v1894_v19  ;;  %1297 = vmatprep.subr.bf16.mxu0 %v1899_v20  ;;  %v1989_v19 = vld [vmem:[%s2198_s12 + $0x58] ss:$36 sps:$4 sm:$0xff]   ;;  %v1995_v20 = vld [vmem:[%s2198_s12 + $0x60] ss:$36 sps:$4 sm:$0xff]  }
  0x5b   : > { %1350 = vmatprep.subr.bf16.mxu1 %v1902_v21  ;;  %v1990_v21 = vld [vmem:[%s2539_s1 + $0x450] ss:$8 sps:$4 sm:$0xff]  }
  0x5d   : > { %1298 = vmatpush1.bf16.msra.mxu0 %v1897_v22  ;;  %v1998_v22 = vld [vmem:[%s2539_s1 + $0x444] ss:$8 sps:$4 sm:$0xff]  }
  0x5e   : > { %1351 = vmatpush1.bf16.msra.mxu1 %v1900_v23  ;;  %1299 = vmatprep.subr.bf16.mxu0 %v1905_v24  ;;  %v1996_v23 = vld [vmem:[%s2539_s1 + $0x440] ss:$8 sps:$4 sm:$0xff]   ;;  %v2001_v24 = vld [vmem:[%s2539_s1 + $0x434] ss:$8 sps:$4 sm:$0xff]  }
  0x5f   : > { %1352 = vmatprep.subr.bf16.mxu1 %v1908_v25  ;;  %v2021_v25 = vmov 0  }
  0x61   : > { %1300 = vmatpush1.bf16.msra.mxu0 %v1903_v30  ;;  %v2005_v30 = vld [vmem:[%s2539_s1 + $0x410] ss:$8 sps:$4 sm:$0xff]  }
  0x62   : > { %1353 = vmatpush1.bf16.msra.mxu1 %v1906_v31  ;;  %1301 = vmatprep.subr.bf16.mxu0 %v1911_v32  ;;  %v2010_v31 = vld [vmem:[%s2539_s1 + $0x404] ss:$8 sps:$4 sm:$0xff]   ;;  %v2008_v32 = vld [vmem:[%s2539_s1 + $0x400] ss:$8 sps:$4 sm:$0xff]  }
  0x63   : > { %1354 = vmatprep.subr.bf16.mxu1 %v1914_v33  ;;  %v2011_v33 = vld [vmem:[%s2198_s12 + $0x20] ss:$36 sps:$4 sm:$0xff]  }
  0x65   : > { %1302 = vmatpush1.bf16.msra.mxu0 %v1909_v34  ;;  %v2012_v34 = vld [vmem:[%s2198_s12 + $0x68] ss:$36 sps:$4 sm:$0xff]  }
  0x66   : > { %1355 = vmatpush1.bf16.msra.mxu1 %v1912_v35  ;;  %1303 = vmatprep.subr.bf16.mxu0 %v1917_v36 }
  0x67   : > { %1356 = vmatprep.subr.bf16.mxu1 %v1920_v37 }
  0x69   : > { %1304 = vmatpush1.bf16.msra.mxu0 %v1915_v38 }
  0x6a   : > { %1357 = vmatpush1.bf16.msra.mxu1 %v1918_v39  ;;  %1305 = vmatprep.subr.bf16.mxu0 %v1923_v40 }
  0x6b   : > { %1358 = vmatprep.subr.bf16.mxu1 %v1926_v42 }
  0x6d   : > { %1306 = vmatpush2.bf16.msra.mxu0 %v1921_v44 }
  0x6e   : > { %1359 = vmatpush2.bf16.msra.mxu1 %v1924_v45  ;;  %1307 = vmatprep.subr.bf16.mxu0 %v1929_v46 }
  0x6f   : > { %1360 = vmatprep.subr.bf16.mxu1 %v1932_v47 }
  0x71   : > { %1308 = vmatpush2.bf16.msra.mxu0 %v1927_v48 }
  0x72   : > { %1361 = vmatpush2.bf16.msra.mxu1 %v1930_v49  ;;  %1309 = vmatprep.subr.bf16.mxu0 %v1935_v50 }
  0x73   : > { %1362 = vmatprep.subr.bf16.mxu1 %v1938_v51 }
  0x75   : > { %1310 = vmatpush2.bf16.msra.mxu0 %v1933_v52 }
  0x76   : > { %1363 = vmatpush2.bf16.msra.mxu1 %v1936_v53  ;;  %1311 = vmatprep.subr.bf16.mxu0 %v1941_v54 }
  0x77   : > { %1364 = vmatprep.subr.bf16.mxu1 %v1944_v55 }
  0x79   : > { %1312 = vmatpush2.bf16.msra.mxu0 %v1939_v56 }
  0x7a   : > { %1365 = vmatpush2.bf16.msra.mxu1 %v1942_v57  ;;  %1313 = vmatprep.subr.bf16.mxu0 %v1947_v58 }
  0x7b   : > { %1366 = vmatprep.subr.bf16.mxu1 %v1950_v59 }
  0x7d   : > { %1314 = vmatpush2.bf16.msra.mxu0 %v1945_v60 }
  0x7e   : > { %1367 = vmatpush2.bf16.msra.mxu1 %v1948_v61  ;;  %1315 = vmatprep.subr.bf16.mxu0 %v1959_v62  ;;  %v1450_v61 = vlaneseq }
  0x7f   : > { %1368 = vmatprep.subr.bf16.mxu1 %v1962_v63 }
  0x81   : > { %1316 = vmatpush2.bf16.msra.mxu0 %v1957_v0  ;;  %v1451_v0 = vshrl.u32 %v1450_v61, 7 }
  0x82   : > { %1369 = vmatpush2.bf16.msra.mxu1 %v1960_v1  ;;  %1317 = vmatprep.subr.bf16.mxu0 %v1965_v2 }
  0x83   : > { %1370 = vmatprep.subr.bf16.mxu1 %v1968_v3 }
  0x85   : > { %1318 = vmatpush2.bf16.msra.mxu0 %v1963_v4 }
  0x86   : > { %1371 = vmatpush2.bf16.msra.mxu1 %v1966_v5  ;;  %1319 = vmatprep.subr.bf16.mxu0 %v1971_v6  ;;  %v1452_v5 = vsub.s32 0, %v1451_v0  ;;  %v1456_v6 = vsub.s32 1, %v1451_v0 }
  0x87   : > { %1372 = vmatprep.subr.bf16.mxu1 %v1974_v7 }
  0x89   : > { %1320 = vmatpush2.bf16.msra.mxu0 %v1969_v8 }
  0x8a   : > { %1373 = vmatpush2.bf16.msra.mxu1 %v1972_v9  ;;  %1395 = vmatprep.subr.bf16.mxu0 %v1983_v10 }
  0x8b   : > { %1745 = vmatprep.subr.bf16.mxu1 %v1983_v10 }
  0x8c   : > { %1322 = vmatmul.mubr.bf16.vlgmr.msra.gmra.mxu0 %v1975_v11  ;;  %v1448_v11 = vld [vmem:[%s2540_s2] sm:$0x3] }
  0x8d   : > { %1375 = vmatmul.mubr.bf16.vlgmr.msra.gmra.mxu1 %v1978_v12  ;;  %1396 = vmatpush1.bf16.msra.mxu0 %v1981_v13  ;;  %v1468_v12 = vld [vmem:[%s2541_s3] sm:$0x3] }
  0x8e   : > { %1753 = vmatpush1.bf16.msra.mxu1 %v1981_v13  ;;  %1397 = vmatprep.subr.bf16.mxu0 %v1986_v14 }
  0x8f   : > { %1746 = vmatprep.subr.bf16.mxu1 %v1986_v14  ;;  %1331 = vmatprep.mubr.bf16.mxu0 %v1987_v15 }
  0x90   : > { %1384 = vmatprep.mubr.bf16.mxu1 %v1993_v16 }
  0x91   : > { %1398 = vmatpush1.bf16.msra.mxu0 %v1984_v17 }
  0x92   : > { %1754 = vmatpush1.bf16.msra.mxu1 %v1984_v17  ;;  %1399 = vmatprep.subr.bf16.mxu0 %v1992_v18 }
  0x93   : > { %1747 = vmatprep.subr.bf16.mxu1 %v1992_v18 }
  0x94   : > { %1332 = vmatmul.mubr.bf16.gmra.mxu0 %v1989_v19  ;;  %v1453_v19 = vrot.slane %v1448_v11, %v1452_v5 }
  0x95   : > { %1385 = vmatmul.mubr.bf16.gmra.mxu1 %v1995_v20  ;;  %1400 = vmatpush1.bf16.msra.mxu0 %v1990_v21 }
  0x96   : > { %1755 = vmatpush1.bf16.msra.mxu1 %v1990_v21  ;;  %1401 = vmatprep.subr.bf16.mxu0 %v1998_v22 }
  0x97   : > { %1748 = vmatprep.subr.bf16.mxu1 %v1998_v22  ;;  %1427 = vmatprep.mubr.bf16.mxu0 %v2021_v25  ;;  %v1473_v22 = vrot.slane %v1468_v12, %v1452_v5 }
  0x98   : > { %1437 = vmatprep.mubr.bf16.mxu1 %v2021_v25 }
  0x99   : > { %1402 = vmatpush1.bf16.msra.mxu0 %v1996_v23 }
  0x9a   : > { %1756 = vmatpush1.bf16.msra.mxu1 %v1996_v23  ;;  %1403 = vmatprep.subr.bf16.mxu0 %v2001_v24  ;;  %v1457_v23 = vrot.slane %v1448_v11, %v1456_v6 }
  0x9b   : > { %1749 = vmatprep.subr.bf16.mxu1 %v2001_v24 }
  0x9d   : > { %1404 = vmatpush1.bf16.msra.mxu0 %v1999_v26 }
  0x9e   : > { %1757 = vmatpush1.bf16.msra.mxu1 %v1999_v26  ;;  %1405 = vmatprep.subr.bf16.mxu0 %v2004_v27 }
  0x9f   : > { %1750 = vmatprep.subr.bf16.mxu1 %v2004_v27 }
  0xa1   : > { %1406 = vmatpush1.bf16.msra.mxu0 %v2002_v28 }
  0xa2   : > { %1758 = vmatpush1.bf16.msra.mxu1 %v2002_v28  ;;  %1407 = vmatprep.subr.bf16.mxu0 %v2007_v29 }
  0xa3   : > { %1751 = vmatprep.subr.bf16.mxu1 %v2007_v29 }
  0xa5   : > { %1408 = vmatpush1.bf16.msra.mxu0 %v2005_v30 }
  0xa6   : > { %1759 = vmatpush1.bf16.msra.mxu1 %v2005_v30  ;;  %1409 = vmatprep.subr.bf16.mxu0 %v2010_v31 }
  0xa7   : > { %1752 = vmatprep.subr.bf16.mxu1 %v2010_v31 }
  0xa9   : > { %1410 = vmatpush1.bf16.msra.mxu0 %v2008_v32 }
  0xaa   : > { %1760 = vmatpush1.bf16.msra.mxu1 %v2008_v32 }
  0xac   : > { %1428 = vmatmul.mubr.bf16.vlgmr.msra.gmra.mxu0 %v2011_v33 }
  0xad   : > { %1438 = vmatmul.mubr.bf16.vlgmr.msra.gmra.mxu1 %v2012_v34 }
 0x10c   : > { %v1217_v35 = vpop.f32.mrf.mxu0 }
 0x10d   : > { %v1270_v36 = vpop.f32.mrf.mxu1 }
 0x10e   : > { %v1219_v37 = vpop.f32.mrf.mxu0  ;;  %v1271_v1 = vadd.f32 %v1270_v36, %v1217_v35 }
 0x10f   : > { %v1272_v38 = vpop.f32.mrf.mxu1 }
 0x110   : > { %v1221_v39 = vpop.f32.mrf.mxu0  ;;  %v1273_v7 = vadd.f32 %v1272_v38, %v1219_v37  ;;  %v1477_v37 = vrot.slane %v1468_v12, %v1456_v6 }
 0x111   : > { %v1274_v40 = vpop.f32.mrf.mxu1 }
 0x112   : > { %v1223_v41 = vpop.f32.mrf.mxu0  ;;  %v1275_v15 = vadd.f32 %v1274_v40, %v1221_v39 }
 0x113   : > { %v1276_v42 = vpop.f32.mrf.mxu1 }
 0x114   : > { %v1227_v43 = vpop.f32.mrf.mxu0  ;;  %v1277_v24 = vadd.f32 %v1276_v42, %v1223_v41 }
 0x115   : > { %v1280_v44 = vpop.f32.mrf.mxu1 }
 0x116   : > { %v1229_v45 = vpop.f32.mrf.mxu0  ;;  %v1281_v2 = vadd.f32 %v1280_v44, %v1227_v43 }
 0x117   : > { %v1282_v46 = vpop.f32.mrf.mxu1 }
 0x118   : > { %v1231_v47 = vpop.f32.mrf.mxu0  ;;  %v1283_v8 = vadd.f32 %v1282_v46, %v1229_v45 }
 0x119   : > { %v1284_v48 = vpop.f32.mrf.mxu1 }
 0x11a   : > { %v1233_v49 = vpop.f32.mrf.mxu0  ;;  %v1285_v16 = vadd.f32 %v1284_v48, %v1231_v47 }
 0x11b   : > { %v1286_v50 = vpop.f32.mrf.mxu1 }
 0x11c   : > { %v1287_v25 = vadd.f32 %v1286_v50, %v1233_v49 }
 0x14c   : > { %v1323_v51 = vpop.f32.mrf.mxu0 }
 0x14d   : > { %v1376_v52 = vpop.f32.mrf.mxu1  ;;  %v1324_v9 = vadd.f32 %v1323_v51, %v1271_v1 }
 0x14e   : > { %v1325_v53 = vpop.f32.mrf.mxu0 }
 0x14f   : > { %v1378_v54 = vpop.f32.mrf.mxu1  ;;  %v1326_v13 = vadd.f32 %v1325_v53, %v1273_v7  ;;  %v1377_v20 = vadd.f32 %v1376_v52, %v1324_v9 }
 0x150   : > { %v1327_v55 = vpop.f32.mrf.mxu0 }
 0x151   : > { %v1380_v56 = vpop.f32.mrf.mxu1  ;;  %v1328_v26 = vadd.f32 %v1327_v55, %v1275_v15  ;;  %v1379_v30 = vadd.f32 %v1378_v54, %v1326_v13 }
 0x152   : > { %v1329_v57 = vpop.f32.mrf.mxu0 }
 0x153   : > { %v1382_v58 = vpop.f32.mrf.mxu1  ;;  %v1330_v34 = vadd.f32 %v1329_v57, %v1277_v24  ;;  %v1381_v41 = vadd.f32 %v1380_v56, %v1328_v26 }
 0x154   : > { %v1333_v59 = vpop.f32.mrf.mxu0 }
 0x155   : > { %v1386_v60 = vpop.f32.mrf.mxu1  ;;  %v1334_v10 = vadd.f32 %v1333_v59, %v1281_v2  ;;  %v1383_v50 = vadd.f32 %v1382_v58, %v1330_v34 }
 0x156   : > { %v1335_v62 = vpop.f32.mrf.mxu0 }
 0x157   : > { %v1388_v63 = vpop.f32.mrf.mxu1  ;;  %v1336_v14 = vadd.f32 %v1335_v62, %v1283_v8  ;;  %v1387_v21 = vadd.f32 %v1386_v60, %v1334_v10 }
 0x158   : > { %v1337_v3 = vpop.f32.mrf.mxu0 }
 0x159   : > { %v1390_v4 = vpop.f32.mrf.mxu1  ;;  %v1338_v27 = vadd.f32 %v1337_v3, %v1285_v16  ;;  %v1389_v31 = vadd.f32 %v1388_v63, %v1336_v14 }
 0x15a   : > { %v1339_v17 = vpop.f32.mrf.mxu0 }
 0x15b   : > { %v1392_v18 = vpop.f32.mrf.mxu1  ;;  %v1340_v35 = vadd.f32 %v1339_v17, %v1287_v25  ;;  %v1391_v42 = vadd.f32 %v1390_v4, %v1338_v27 }
 0x15d   : > { %v1393_v51 = vadd.f32 %v1392_v18, %v1340_v35 }
 0x16c   : > { %v1429_v28 = vpop.f32.mrf.mxu0 }
 0x16d   : > { %v1439_v29 = vpop.f32.mrf.mxu1  ;;  %v1430_v32 = vadd.f32 %v1429_v28, %v1377_v20 }
 0x16e   : > { %v1440_v33 = vadd.f32 %v1439_v29, %v1387_v21  ;;  %v1431_v36 = vpop.f32.mrf.mxu0 }
 0x16f   : > { %v1441_v38 = vpop.f32.mrf.mxu1  ;;  %v1460_v39 = vmul.f32 %v1453_v19, %v1430_v32  ;;  %v1432_v43 = vadd.f32 %v1431_v36, %v1379_v30 }
 0x170   : > { %v1464_v40 = vmul.f32 %v1453_v19, %v1440_v33  ;;  %v1442_v44 = vadd.f32 %v1441_v38, %v1389_v31  ;;  %v1433_v45 = vpop.f32.mrf.mxu0 }
 0x171   : > { %v1443_v46 = vpop.f32.mrf.mxu1  ;;  %v1480_v47 = vadd.f32 %v1473_v22, %v1460_v39  ;;  %v1461_v48 = vmul.f32 %v1457_v23, %v1432_v43  ;;  %v1434_v52 = vadd.f32 %v1433_v45, %v1381_v41 }
 0x172   : > { %v1465_v49 = vmul.f32 %v1457_v23, %v1442_v44  ;;  %v1444_v53 = vadd.f32 %v1443_v46, %v1391_v42  ;;  %v1435_v54 = vpop.f32.mrf.mxu0  ;;  %v1484_v59 = vadd.f32 %v1473_v22, %v1464_v40 }
 0x173   : > { %v1445_v55 = vpop.f32.mrf.mxu1  ;;  %v1488_v57 = vmul.f32 0.1, %v1480_v47  ;;  %v1481_v60 = vadd.f32 %v1477_v37, %v1461_v48  ;;  %v1462_v56 = vmul.f32 %v1453_v19, %v1434_v52  ;;  %v1436_v62 = vadd.f32 %v1435_v54, %v1383_v50 }
 0x174   : > { %v1466_v61 = vmul.f32 %v1453_v19, %v1444_v53  ;;  %v1446_v63 = vadd.f32 %v1445_v55, %v1393_v51  ;;  %v1485_v1 = vadd.f32 %v1477_v37, %v1465_v49  ;;  %v1492_v6 = vmul.f32 0.1, %v1484_v59 }
 0x175   : > { %v1496_v58 = vmax.f32 %v1480_v47, %v1488_v57  ;;  %v1489_v0 = vmul.f32 0.1, %v1481_v60  ;;  %v1482_v2 = vadd.f32 %v1473_v22, %v1462_v56  ;;  %v1463_v4 = vmul.f32 %v1457_v23, %v1436_v62 }
 0x176   : > { %v1486_v3 = vadd.f32 %v1473_v22, %v1466_v61  ;;  %v1467_v5 = vmul.f32 %v1457_v23, %v1446_v63  ;;  %v1493_v12 = vmul.f32 0.1, %v1485_v1  ;;  %v1500_v16 = vmax.f32 %v1484_v59, %v1492_v6 }
 0x177   : > { %1504 = vst [vmem:[%s2525_s10] sm:$0xff] %v1496_v58  ;;  %v1497_v7 = vmax.f32 %v1481_v60, %v1489_v0  ;;  %v1490_v8 = vmul.f32 0.1, %v1482_v2  ;;  %v1483_v10 = vadd.f32 %v1477_v37, %v1463_v4 }
 0x178   : > { %v1494_v9 = vmul.f32 0.1, %v1486_v3  ;;  %v1487_v11 = vadd.f32 %v1477_v37, %v1467_v5  ;;  %v1501_v19 = vmax.f32 %v1485_v1, %v1493_v12  ;;  %1508 = vst [vmem:[%s2525_s10 + $0x20] sm:$0xff] %v1500_v16 }
 0x179   : > { %1505 = vst [vmem:[%s2525_s10 + $0x8] sm:$0xff] %v1497_v7  ;;  %v1498_v13 = vmax.f32 %v1482_v2, %v1490_v8  ;;  %v1491_v14 = vmul.f32 0.1, %v1483_v10 }
 0x17a   : > { %v1495_v15 = vmul.f32 0.1, %v1487_v11  ;;  %v1502_v17 = vmax.f32 %v1486_v3, %v1494_v9  ;;  %1509 = vst [vmem:[%s2525_s10 + $0x28] sm:$0xff] %v1501_v19 }
 0x17b   : > { %1506 = vst [vmem:[%s2525_s10 + $0x10] sm:$0xff] %v1498_v13  ;;  %v1499_v18 = vmax.f32 %v1483_v10, %v1491_v14 }
 0x17c   : > { %1510 = vst [vmem:[%s2525_s10 + $0x30] sm:$0xff] %v1502_v17  ;;  %v1503_v20 = vmax.f32 %v1487_v11, %v1495_v15 }
 0x17d   : > { %1507 = vst [vmem:[%s2525_s10 + $0x18] sm:$0xff] %v1499_v18 }
 0x17e   : > { %1511 = vst [vmem:[%s2525_s10 + $0x38] sm:$0xff] %v1503_v20 }
 0x17f PF: > { %s14_s15 = sadd.s32 1, %s2019_s15  }
 0x180   : > { %p11_p4 = scmp.ge.s32.totalorder %s14_s15, 4  }
 0x182   :  { %13 = sbr.rel (!%p11_p4) target bundleno = 1 (0x1), region = 66 }

// kernel: cpd_d19_forward.158
= control target key start
LH: loop header
LB: loop body
LE: loop exit
PB: predicated region body
PF: predicated region fallthrough
CT: control target
= control target key end

     0   :  { %s630_s15 = smov 0   ;;  %s708_s0 = inlined_call_operand.vmem [shape: bf16[64,256], index: 0, kind: input, shape index: {}]   ;;  %s709_s1 = inlined_call_operand.vmem [shape: bf16[256,128], index: 1, kind: input, shape index: {}]   ;;  %s710_s2 = inlined_call_operand.vmem [shape: f32[1,128], index: 2, kind: input, shape index: {}]   ;;  %s711_s3 = inlined_call_operand.vmem [shape: f32[1,128], index: 3, kind: input, shape index: {}]   ;;  %s712_s4 = inlined_call_operand.vmem [shape: f32[64,128], index: 4, kind: output, shape index: {}]  }
   0x1 LB: > { %s488_s16 = sadd.s32 4294967295, %s603_s15   ;;  %p492_p0 = scmp.ge.s32.totalorder %s603_s15, 1  ;;  %s603_s15 = sphi %s630_s15, %s14_s15  }
   0x2   : > { %p164_p1 = scmp.lt.s32.totalorder %s603_s15, 3 }
   0x4   : > { %p165_p2 = pnand %p492_p0, %p164_p1 }
   0x5   : > { %s493_s19 = sshll.u32 (!%p165_p2), %s488_s16, 2 }
   0x6   : > { %168 = sbr.rel (%p165_p2) target bundleno = 250 (0xfa), region = 36  ;;  %p192_p3 = scmp.lt.s32.totalorder (!%p165_p2), %s493_s19, 7 }
   0xb   : > { %v575_v0 = vld [vmem:[%s709_s1 + $0x78] sm:$0xff]   ;;  %v577_v2 = vld [vmem:[%s709_s1 + $0x70] sm:$0xff]   ;;  %v579_v4 = vld [vmem:[%s709_s1 + $0x68] sm:$0xff]   ;;  %s714_s19 = smov (!%p192_p3, %s493_s19), 7 }
   0xc   : > { %v576_v1 = vld [vmem:[%s709_s1 + $0x38] sm:$0xff]   ;;  %523 = vmatprep.subr.bf16.mxu0 %v575_v0  ;;  %551 = vmatprep.subr.bf16.mxu1 %v575_v0  ;;  %v578_v3 = vld [vmem:[%s709_s1 + $0x30] sm:$0xff]   ;;  %v580_v5 = vld [vmem:[%s709_s1 + $0x28] sm:$0xff]   ;;  %s522_s8 = sshll.u32 %s714_s19, 3 }
   0xd   : > { %524 = vmatpush3.bf16.msra.mxu0 %v576_v1  ;;  %559 = vmatpush3.bf16.msra.mxu1 %v576_v1  ;;  %v581_v6 = vld [vmem:[%s709_s1 + $0x60] sm:$0xff]   ;;  %v583_v8 = vld [vmem:[%s709_s1 + $0x58] sm:$0xff]   ;;  %s196_s13 = scalar_lea.vmem %s708_s0, %s522_s8  ;;  %v585_v10 = vld [vmem:[%s709_s1 + $0x50] sm:$0xff]   ;;  %s202_s11 = scalar_lea.vmem %s712_s4, %s522_s8 }
   0xe   : > { %525 = vmatprep.subr.bf16.mxu0 %v577_v2  ;;  %552 = vmatprep.subr.bf16.mxu1 %v577_v2  ;;  %v582_v7 = vld [vmem:[%s709_s1 + $0x20] sm:$0xff]   ;;  %v584_v9 = vld [vmem:[%s709_s1 + $0x18] sm:$0xff]   ;;  %v586_v13 = vld [vmem:[%s709_s1 + $0x10] sm:$0xff]  }
   0xf   : > { %v593_v11 = vld [vmem:[%s196_s13 + $0x4] ss:$8 sps:$4 sm:$0xff]   ;;  %v596_v12 = vld [vmem:[%s196_s13 + $0x14] ss:$8 sps:$4 sm:$0xff]   ;;  %v591_v18 = vld [vmem:[%s196_s13] ss:$8 sps:$4 sm:$0xff]  }
  0x10   : > { %v587_v14 = vld [vmem:[%s709_s1 + $0x48] sm:$0xff]   ;;  %389 = vmatprep.mubr.bf16.mxu0 %v593_v11  ;;  %397 = vmatprep.mubr.bf16.mxu1 %v596_v12  ;;  %v589_v16 = vld [vmem:[%s709_s1 + $0x40] sm:$0xff]   ;;  %v594_v19 = vld [vmem:[%s196_s13 + $0x10] ss:$8 sps:$4 sm:$0xff]  }
  0x11   : > { %526 = vmatpush3.bf16.msra.mxu0 %v578_v3  ;;  %560 = vmatpush3.bf16.msra.mxu1 %v578_v3  ;;  %v588_v15 = vld [vmem:[%s709_s1 + $0x8] sm:$0xff]   ;;  %v590_v17 = vld [vmem:[%s709_s1] sm:$0xff]  }
  0x12   : > { %527 = vmatprep.subr.bf16.mxu0 %v579_v4  ;;  %553 = vmatprep.subr.bf16.mxu1 %v579_v4  ;;  %v518_v23 = vld [vmem:[%s710_s2] ss:$0 sm:$0xff] }
  0x13   : > { %v519_v26 = vld [vmem:[%s711_s3] ss:$0 sm:$0xff] }
  0x15   : > { %528 = vmatpush3.bf16.msra.mxu0 %v580_v5  ;;  %561 = vmatpush3.bf16.msra.mxu1 %v580_v5 }
  0x16   : > { %529 = vmatprep.subr.bf16.mxu0 %v581_v6  ;;  %554 = vmatprep.subr.bf16.mxu1 %v581_v6 }
  0x19   : > { %530 = vmatpush3.bf16.msra.mxu0 %v582_v7  ;;  %562 = vmatpush3.bf16.msra.mxu1 %v582_v7 }
  0x1a   : > { %531 = vmatprep.subr.bf16.mxu0 %v583_v8  ;;  %555 = vmatprep.subr.bf16.mxu1 %v583_v8 }
  0x1d   : > { %532 = vmatpush3.bf16.msra.mxu0 %v584_v9  ;;  %563 = vmatpush3.bf16.msra.mxu1 %v584_v9 }
  0x1e   : > { %533 = vmatprep.subr.bf16.mxu0 %v585_v10  ;;  %556 = vmatprep.subr.bf16.mxu1 %v585_v10 }
  0x21   : > { %534 = vmatpush3.bf16.msra.mxu0 %v586_v13  ;;  %564 = vmatpush3.bf16.msra.mxu1 %v586_v13 }
  0x22   : > { %535 = vmatprep.subr.bf16.mxu0 %v587_v14  ;;  %557 = vmatprep.subr.bf16.mxu1 %v587_v14 }
  0x25   : > { %536 = vmatpush3.bf16.msra.mxu0 %v588_v15  ;;  %565 = vmatpush3.bf16.msra.mxu1 %v588_v15 }
  0x26   : > { %537 = vmatprep.subr.bf16.mxu0 %v589_v16  ;;  %558 = vmatprep.subr.bf16.mxu1 %v589_v16 }
  0x29   : > { %538 = vmatpush3.bf16.msra.mxu0 %v590_v17  ;;  %566 = vmatpush3.bf16.msra.mxu1 %v590_v17 }
  0x2c   : > { %390 = vmatmul.mubr.bf16.vlgmr.msra.gmra.mxu0 %v591_v18  ;;  %398 = vmatmul.mubr.bf16.vlgmr.msra.gmra.mxu1 %v594_v19 }
  0xec   : > { %v539_v20 = vpop.f32.mrf.mxu0  ;;  %v545_v21 = vpop.f32.mrf.mxu1 }
  0xee   : > { %v540_v22 = vpop.f32.mrf.mxu0  ;;  %v546_v24 = vpop.f32.mrf.mxu1 }
  0xef   : > { %v541_v25 = vadd.f32 %v540_v22, %v539_v20  ;;  %v547_v27 = vadd.f32 %v546_v24, %v545_v21 }
  0xf0   : > { %v542_v28 = vpop.f32.mrf.mxu0  ;;  %v548_v29 = vpop.f32.mrf.mxu1 }
  0xf1   : > { %v413_v30 = vmul.f32 %v541_v25, %v518_v23  ;;  %v415_v36 = vmul.f32 %v547_v27, %v518_v23 }
  0xf2   : > { %v543_v31 = vpop.f32.mrf.mxu0  ;;  %v549_v32 = vpop.f32.mrf.mxu1 }
  0xf3   : > { %v424_v33 = vadd.f32 %v519_v26, %v413_v30  ;;  %v544_v34 = vadd.f32 %v543_v31, %v542_v28  ;;  %v550_v35 = vadd.f32 %v549_v32, %v548_v29  ;;  %v426_v40 = vadd.f32 %v519_v26, %v415_v36 }
  0xf5   : > { %428 = vst [vmem:[%s202_s11] sm:$0xff] %v424_v33  ;;  %v414_v37 = vmul.f32 %v544_v34, %v518_v23  ;;  %v416_v38 = vmul.f32 %v550_v35, %v518_v23  ;;  %430 = vst [vmem:[%s202_s11 + $0x10] sm:$0xff] %v426_v40 }
  0xf7   : > { %v425_v39 = vadd.f32 %v519_v26, %v414_v37  ;;  %v427_v41 = vadd.f32 %v519_v26, %v416_v38 }
  0xf9   : > { %429 = vst [vmem:[%s202_s11 + $0x8] sm:$0xff] %v425_v39  ;;  %431 = vst [vmem:[%s202_s11 + $0x18] sm:$0xff] %v427_v41 }
  0xfa PF: > { %s14_s15 = sadd.s32 1, %s603_s15  }
  0xfb   : > { %p11_p4 = scmp.ge.s32.totalorder %s14_s15, 4  }
  0xfd   :  { %13 = sbr.rel (!%p11_p4) target bundleno = 1 (0x1), region = 66 }

// kernel: cpd_d19_forward.159
= control target key start
LH: loop header
LB: loop body
LE: loop exit
PB: predicated region body
PF: predicated region fallthrough
CT: control target
= control target key end

     0   :  { %s517_s15 = smov 0   ;;  %s568_s0 = inlined_call_operand.vmem [shape: bf16[64,128], index: 0, kind: input, shape index: {}]   ;;  %s569_s1 = inlined_call_operand.vmem [shape: bf16[128,128], index: 1, kind: input, shape index: {}]   ;;  %s570_s2 = inlined_call_operand.vmem [shape: f32[1,128], index: 2, kind: input, shape index: {}]   ;;  %s571_s3 = inlined_call_operand.vmem [shape: f32[1,128], index: 3, kind: input, shape index: {}]   ;;  %s572_s4 = inlined_call_operand.vmem [shape: f32[64,128], index: 4, kind: output, shape index: {}]  }
   0x1 LB: > { %s413_s16 = sadd.s32 4294967295, %s490_s15   ;;  %p417_p0 = scmp.ge.s32.totalorder %s490_s15, 1  ;;  %s490_s15 = sphi %s517_s15, %s14_s15  }
   0x2   : > { %p163_p1 = scmp.lt.s32.totalorder %s490_s15, 3 }
   0x4   : > { %p164_p2 = pnand %p417_p0, %p163_p1 }
   0x5   : > { %s418_s19 = sshll.u32 (!%p164_p2), %s413_s16, 2 }
   0x6   : > { %167 = sbr.rel (%p164_p2) target bundleno = 248 (0xf8), region = 36  ;;  %p190_p3 = scmp.lt.s32.totalorder (!%p164_p2), %s418_s19, 7 }
   0xb   : > { %v474_v0 = vld [vmem:[%s569_s1 + $0x38] sm:$0xff]   ;;  %v475_v1 = vld [vmem:[%s569_s1 + $0x30] sm:$0xff]   ;;  %s574_s19 = smov (!%p190_p3, %s418_s19), 7  ;;  %v476_v2 = vld [vmem:[%s569_s1 + $0x28] sm:$0xff]  }
   0xc   : > { %446 = vmatprep.subr.bf16.mxu0 %v474_v0  ;;  %s419_s24 = sshll.u32 %s574_s19, 2  ;;  %v477_v3 = vld [vmem:[%s569_s1 + $0x20] sm:$0xff]   ;;  %v478_v5 = vld [vmem:[%s569_s1 + $0x18] sm:$0xff]   ;;  %v479_v6 = vld [vmem:[%s569_s1 + $0x10] sm:$0xff]   ;;  %s421_s12 = sshll.u32 %s574_s19, 3 }
   0xd   : > { %447 = vmatpush3.bf16.msra.mxu0 %v474_v0  ;;  %s193_s27 = scalar_lea.vmem %s568_s0, %s419_s24  ;;  %v480_v7 = vld [vmem:[%s569_s1 + $0x8] sm:$0xff]   ;;  %v481_v8 = vld [vmem:[%s569_s1] sm:$0xff]   ;;  %s199_s21 = scalar_lea.vmem %s572_s4, %s421_s12 }
   0xe   : > { %448 = vmatprep.subr.bf16.mxu0 %v475_v1  ;;  %v482_v4 = vld [vmem:[%s193_s27] sm:$0xff]   ;;  %v483_v9 = vld [vmem:[%s193_s27 + $0x8] sm:$0xff]  }
   0xf   : > { %462 = vmatprep.mubr.bf16.mxu0 %v482_v4  ;;  %v432_v11 = vld [vmem:[%s570_s2] ss:$0 sm:$0xff] }
  0x10   : > { %v433_v14 = vld [vmem:[%s571_s3] ss:$0 sm:$0xff] }
  0x11   : > { %449 = vmatpush3.bf16.msra.mxu0 %v475_v1 }
  0x12   : > { %450 = vmatprep.subr.bf16.mxu0 %v476_v2 }
  0x15   : > { %451 = vmatpush3.bf16.msra.mxu0 %v476_v2 }
  0x16   : > { %452 = vmatprep.subr.bf16.mxu0 %v477_v3 }
  0x19   : > { %453 = vmatpush3.bf16.msra.mxu0 %v477_v3 }
  0x1a   : > { %454 = vmatprep.subr.bf16.mxu0 %v478_v5 }
  0x1d   : > { %455 = vmatpush3.bf16.msra.mxu0 %v478_v5 }
  0x1e   : > { %456 = vmatprep.subr.bf16.mxu0 %v479_v6 }
  0x21   : > { %457 = vmatpush3.bf16.msra.mxu0 %v479_v6 }
  0x22   : > { %458 = vmatprep.subr.bf16.mxu0 %v480_v7 }
  0x25   : > { %459 = vmatpush3.bf16.msra.mxu0 %v480_v7 }
  0x26   : > { %460 = vmatprep.subr.bf16.mxu0 %v481_v8 }
  0x29   : > { %461 = vmatpush3.bf16.msra.mxu0 %v481_v8 }
  0x2c   : > { %463 = vmatmul.mubr.bf16.vlgmr.msra.gmra.mxu0 %v483_v9 }
  0xec   : > { %v464_v10 = vpop.f32.mrf.mxu0 }
  0xed   : > { %v340_v17 = vmul.f32 %v464_v10, %v432_v11 }
  0xee   : > { %v316_v12 = vpop.f32.mrf.mxu0 }
  0xef   : > { %v338_v13 = vmul.f32 %v432_v11, %v316_v12  ;;  %v351_v22 = vadd.f32 %v433_v14, %v340_v17 }
  0xf0   : > { %v465_v15 = vpop.f32.mrf.mxu0 }
  0xf1   : > { %v349_v16 = vadd.f32 %v433_v14, %v338_v13  ;;  %v341_v19 = vmul.f32 %v465_v15, %v432_v11  ;;  %355 = vst [vmem:[%s199_s21 + $0x10] sm:$0xff] %v351_v22 }
  0xf2   : > { %v319_v18 = vpop.f32.mrf.mxu0 }
  0xf3   : > { %353 = vst [vmem:[%s199_s21] sm:$0xff] %v349_v16  ;;  %v339_v20 = vmul.f32 %v432_v11, %v319_v18  ;;  %v352_v23 = vadd.f32 %v433_v14, %v341_v19 }
  0xf5   : > { %v350_v21 = vadd.f32 %v433_v14, %v339_v20  ;;  %356 = vst [vmem:[%s199_s21 + $0x18] sm:$0xff] %v352_v23 }
  0xf7   : > { %354 = vst [vmem:[%s199_s21 + $0x8] sm:$0xff] %v350_v21 }
  0xf8 PF: > { %s14_s15 = sadd.s32 1, %s490_s15  }
  0xf9   : > { %p11_p4 = scmp.ge.s32.totalorder %s14_s15, 4  }
  0xfb   :  { %13 = sbr.rel (!%p11_p4) target bundleno = 1 (0x1), region = 66 }

// kernel: cpd_d19_forward.161
= control target key start
LH: loop header
LB: loop body
LE: loop exit
PB: predicated region body
PF: predicated region fallthrough
CT: control target
= control target key end

     0   :  { %s792_s15 = smov 0   ;;  %s891_s0 = inlined_call_operand.vmem [shape: bf16[64,384], index: 0, kind: input, shape index: {}]   ;;  %s892_s1 = inlined_call_operand.vmem [shape: bf16[384,128], index: 1, kind: input, shape index: {}]   ;;  %s893_s2 = inlined_call_operand.vmem [shape: f32[1,128], index: 2, kind: input, shape index: {}]   ;;  %s894_s3 = inlined_call_operand.vmem [shape: f32[1,128], index: 3, kind: input, shape index: {}]   ;;  %s895_s4 = inlined_call_operand.vmem [shape: f32[64,128], index: 4, kind: output, shape index: {}]  }
   0x1 LB: > { %s617_s16 = sadd.s32 4294967295, %s765_s15   ;;  %p621_p0 = scmp.ge.s32.totalorder %s765_s15, 1  ;;  %s765_s15 = sphi %s792_s15, %s14_s15  }
   0x2   : > { %p164_p1 = scmp.lt.s32.totalorder %s765_s15, 3 }
   0x4   : > { %p165_p2 = pnand %p621_p0, %p164_p1 }
   0x5   : > { %s622_s7 = sshll.u32 (!%p165_p2), %s617_s16, 2 }
   0x6   : > { %168 = sbr.rel (%p165_p2) target bundleno = 260 (0x104), region = 36  ;;  %p192_p3 = scmp.lt.s32.totalorder (!%p165_p2), %s622_s7, 7 }
   0xb   : > { %v727_v0 = vld [vmem:[%s892_s1 + $0x78] sm:$0xff]   ;;  %v730_v3 = vld [vmem:[%s892_s1 + $0x70] sm:$0xff]   ;;  %v733_v6 = vld [vmem:[%s892_s1 + $0x68] sm:$0xff]   ;;  %s897_s7 = smov (!%p192_p3, %s622_s7), 7 }
   0xc   : > { %v728_v1 = vld [vmem:[%s892_s1 + $0x38] sm:$0xff]   ;;  %660 = vmatprep.subr.bf16.mxu0 %v727_v0  ;;  %v731_v4 = vld [vmem:[%s892_s1 + $0x30] sm:$0xff]   ;;  %v734_v7 = vld [vmem:[%s892_s1 + $0x28] sm:$0xff]   ;;  %s718_s27 = smul.u32 12, %s897_s7  ;;  %s625_s23 = sshll.u32 %s897_s7, 3 }
   0xd   : > { %v729_v2 = vld [vmem:[%s892_s1 + $0xb8] sm:$0xff]   ;;  %661 = vmatpush3.bf16.msra.mxu0 %v728_v1  ;;  %v732_v5 = vld [vmem:[%s892_s1 + $0xb0] sm:$0xff]   ;;  %v735_v8 = vld [vmem:[%s892_s1 + $0xa8] sm:$0xff]   ;;  %s202_s28 = scalar_lea.vmem %s895_s4, %s625_s23 }
   0xe   : > { %698 = vmatprep.subr.bf16.mxu1 %v729_v2  ;;  %662 = vmatprep.subr.bf16.mxu0 %v730_v3  ;;  %v736_v9 = vld [vmem:[%s892_s1 + $0x60] sm:$0xff]   ;;  %v739_v12 = vld [vmem:[%s892_s1 + $0x58] sm:$0xff]   ;;  %v742_v15 = vld [vmem:[%s892_s1 + $0x50] sm:$0xff]   ;;  %s196_s13 = scalar_lea.vmem %s891_s0, %s718_s27 }
   0xf   : > { %699 = vmatpush3.bf16.msra.mxu1 %v729_v2  ;;  %v737_v10 = vld [vmem:[%s892_s1 + $0x20] sm:$0xff]   ;;  %v741_v13 = vld [vmem:[%s892_s1 + $0x98] sm:$0xff]   ;;  %v744_v16 = vld [vmem:[%s892_s1 + $0x90] sm:$0xff]  }
  0x10   : > { %700 = vmatprep.subr.bf16.mxu1 %v732_v5  ;;  %v738_v11 = vld [vmem:[%s892_s1 + $0xa0] sm:$0xff]   ;;  %v740_v14 = vld [vmem:[%s892_s1 + $0x18] sm:$0xff]   ;;  %v743_v17 = vld [vmem:[%s892_s1 + $0x10] sm:$0xff]  }
  0x11   : > { %663 = vmatpush3.bf16.msra.mxu0 %v731_v4  ;;  %v745_v18 = vld [vmem:[%s892_s1 + $0x48] sm:$0xff]   ;;  %v748_v21 = vld [vmem:[%s892_s1 + $0x40] sm:$0xff]  }
  0x12   : > { %664 = vmatprep.subr.bf16.mxu0 %v733_v6  ;;  %v746_v19 = vld [vmem:[%s892_s1 + $0x8] sm:$0xff]   ;;  %v750_v22 = vld [vmem:[%s892_s1 + $0x80] sm:$0xff]  }
  0x13   : > { %701 = vmatpush3.bf16.msra.mxu1 %v732_v5  ;;  %v747_v20 = vld [vmem:[%s892_s1 + $0x88] sm:$0xff]   ;;  %v753_v23 = vld [vmem:[%s196_s13 + $0x4] ss:$12 sps:$4 sm:$0xff]   ;;  %v656_v36 = vld [vmem:[%s893_s2] ss:$0 sm:$0xff] }
  0x14   : > { %702 = vmatprep.subr.bf16.mxu1 %v735_v8  ;;  %v754_v24 = vld [vmem:[%s196_s13 + $0x8] ss:$12 sps:$4 sm:$0xff]   ;;  %v749_v25 = vld [vmem:[%s892_s1] sm:$0xff]   ;;  %469 = vmatprep.mubr.bf16.mxu0 %v753_v23 }
  0x15   : > { %665 = vmatpush3.bf16.msra.mxu0 %v734_v7  ;;  %714 = vmatprep.mubr.bf16.mxu1 %v754_v24  ;;  %v751_v26 = vld [vmem:[%s196_s13] ss:$12 sps:$4 sm:$0xff]   ;;  %v756_v27 = vld [vmem:[%s196_s13 + $0x1c] ss:$12 sps:$4 sm:$0xff]   ;;  %v758_v29 = vld [vmem:[%s196_s13 + $0x18] ss:$12 sps:$4 sm:$0xff]  }
  0x16   : > { %666 = vmatprep.subr.bf16.mxu0 %v736_v9  ;;  %v755_v28 = vld [vmem:[%s196_s13 + $0x20] ss:$12 sps:$4 sm:$0xff]  }
  0x17   : > { %703 = vmatpush3.bf16.msra.mxu1 %v735_v8  ;;  %v657_v38 = vld [vmem:[%s894_s3] ss:$0 sm:$0xff] }
  0x18   : > { %704 = vmatprep.subr.bf16.mxu1 %v738_v11 }
  0x19   : > { %667 = vmatpush3.bf16.msra.mxu0 %v737_v10 }
  0x1a   : > { %668 = vmatprep.subr.bf16.mxu0 %v739_v12 }
  0x1b   : > { %705 = vmatpush3.bf16.msra.mxu1 %v738_v11 }
  0x1c   : > { %706 = vmatprep.subr.bf16.mxu1 %v741_v13 }
  0x1d   : > { %669 = vmatpush3.bf16.msra.mxu0 %v740_v14 }
  0x1e   : > { %670 = vmatprep.subr.bf16.mxu0 %v742_v15 }
  0x1f   : > { %707 = vmatpush3.bf16.msra.mxu1 %v741_v13 }
  0x20   : > { %708 = vmatprep.subr.bf16.mxu1 %v744_v16 }
  0x21   : > { %671 = vmatpush3.bf16.msra.mxu0 %v743_v17 }
  0x22   : > { %672 = vmatprep.subr.bf16.mxu0 %v745_v18 }
  0x23   : > { %709 = vmatpush3.bf16.msra.mxu1 %v744_v16 }
  0x24   : > { %710 = vmatprep.subr.bf16.mxu1 %v747_v20 }
  0x25   : > { %673 = vmatpush3.bf16.msra.mxu0 %v746_v19 }
  0x26   : > { %674 = vmatprep.subr.bf16.mxu0 %v748_v21 }
  0x27   : > { %711 = vmatpush3.bf16.msra.mxu1 %v747_v20 }
  0x28   : > { %712 = vmatprep.subr.bf16.mxu1 %v750_v22 }
  0x29   : > { %675 = vmatpush3.bf16.msra.mxu0 %v749_v25 }
  0x2b   : > { %713 = vmatpush3.bf16.msra.mxu1 %v750_v22 }
  0x2c   : > { %470 = vmatmul.mubr.bf16.vlgmr.msra.gmra.mxu0 %v751_v26 }
  0x2d   : > { %477 = vmatprep.mubr.bf16.mxu0 %v756_v27 }
  0x2e   : > { %715 = vmatmul.mubr.bf16.vlgmr.msra.gmra.mxu1 %v755_v28 }
  0x34   : > { %478 = vmatmul.mubr.bf16.gmra.mxu0 %v758_v29 }
  0xec   : > { %v676_v30 = vpop.f32.mrf.mxu0 }
  0xee   : > { %v677_v31 = vpop.f32.mrf.mxu0  ;;  %v716_v32 = vpop.f32.mrf.mxu1 }
  0xef   : > { %v678_v33 = vadd.f32 %v677_v31, %v676_v30 }
  0xf0   : > { %v679_v34 = vpop.f32.mrf.mxu0  ;;  %v520_v35 = vpop.f32.mrf.mxu1 }
  0xf1   : > { %v521_v37 = vadd.f32 %v678_v33, %v520_v35 }
  0xf2   : > { %v680_v39 = vpop.f32.mrf.mxu0  ;;  %v717_v40 = vpop.f32.mrf.mxu1 }
  0xf3   : > { %v542_v41 = vmul.f32 %v656_v36, %v521_v37  ;;  %v681_v42 = vadd.f32 %v680_v39, %v679_v34 }
  0xf4   : > { %v682_v43 = vpop.f32.mrf.mxu0  ;;  %v523_v44 = vpop.f32.mrf.mxu1 }
  0xf5   : > { %v553_v45 = vadd.f32 %v657_v38, %v542_v41  ;;  %v524_v46 = vadd.f32 %v681_v42, %v523_v44 }
  0xf6   : > { %v683_v47 = vpop.f32.mrf.mxu0 }
  0xf7   : > { %557 = vst [vmem:[%s202_s28] sm:$0xff] %v553_v45  ;;  %v543_v48 = vmul.f32 %v656_v36, %v524_v46  ;;  %v684_v49 = vadd.f32 %v683_v47, %v682_v43 }
  0xf8   : > { %v685_v50 = vpop.f32.mrf.mxu0 }
  0xf9   : > { %v554_v51 = vadd.f32 %v657_v38, %v543_v48  ;;  %v529_v52 = vadd.f32 %v716_v32, %v684_v49 }
  0xfa   : > { %v686_v53 = vpop.f32.mrf.mxu0 }
  0xfb   : > { %558 = vst [vmem:[%s202_s28 + $0x8] sm:$0xff] %v554_v51  ;;  %v544_v54 = vmul.f32 %v656_v36, %v529_v52  ;;  %v687_v55 = vadd.f32 %v686_v53, %v685_v50 }
  0xfd   : > { %v555_v56 = vadd.f32 %v657_v38, %v544_v54  ;;  %v532_v57 = vadd.f32 %v717_v40, %v687_v55 }
  0xff   : > { %559 = vst [vmem:[%s202_s28 + $0x10] sm:$0xff] %v555_v56  ;;  %v545_v58 = vmul.f32 %v656_v36, %v532_v57 }
 0x101   : > { %v556_v59 = vadd.f32 %v657_v38, %v545_v58 }
 0x103   : > { %560 = vst [vmem:[%s202_s28 + $0x18] sm:$0xff] %v556_v59 }
 0x104 PF: > { %s14_s15 = sadd.s32 1, %s765_s15  }
 0x105   : > { %p11_p4 = scmp.ge.s32.totalorder %s14_s15, 4  }
 0x107   :  { %13 = sbr.rel (!%p11_p4) target bundleno = 1 (0x1), region = 66 }

// kernel: cpd_d19_forward.170
= control target key start
LH: loop header
LB: loop body
LE: loop exit
PB: predicated region body
PF: predicated region fallthrough
CT: control target
= control target key end

     0   :  { %s1605_s15 = smov 0   ;;  %s1870_s0 = inlined_call_operand.vmem [shape: bf16[64,1152], index: 0, kind: input, shape index: {}]   ;;  %s1871_s1 = inlined_call_operand.vmem [shape: bf16[1152,128], index: 1, kind: input, shape index: {}]   ;;  %s1872_s2 = inlined_call_operand.vmem [shape: f32[1,128], index: 2, kind: input, shape index: {}]   ;;  %s1873_s3 = inlined_call_operand.vmem [shape: f32[1,128], index: 3, kind: input, shape index: {}]   ;;  %s1874_s4 = inlined_call_operand.vmem [shape: f32[64,128], index: 4, kind: output, shape index: {}]  }
   0x1 LB: > { %s1220_s16 = sadd.s32 4294967295, %s1578_s15   ;;  %p1224_p0 = scmp.ge.s32.totalorder %s1578_s15, 1  ;;  %s1578_s15 = sphi %s1605_s15, %s14_s15  }
   0x2   : > { %p164_p1 = scmp.lt.s32.totalorder %s1578_s15, 3 }
   0x4   : > { %p165_p2 = pnand %p1224_p0, %p164_p1 }
   0x5   : > { %s1225_s23 = sshll.u32 (!%p165_p2), %s1220_s16, 2 }
   0x6   : > { %168 = sbr.rel (%p165_p2) target bundleno = 315 (0x13b), region = 36  ;;  %p192_p3 = scmp.lt.s32.totalorder (!%p165_p2), %s1225_s23, 7 }
   0xb   : > { %v1474_v0 = vld [vmem:[%s1871_s1 + $0x78] sm:$0xff]   ;;  %v1478_v4 = vld [vmem:[%s1871_s1 + $0x70] sm:$0xff]   ;;  %v1482_v8 = vld [vmem:[%s1871_s1 + $0x68] sm:$0xff]   ;;  %s1876_s23 = smov (!%p192_p3, %s1225_s23), 7 }
   0xc   : > { %v1475_v1 = vld [vmem:[%s1871_s1 + $0xf8] sm:$0xff]   ;;  %1323 = vmatprep.subr.bf16.mxu0 %v1474_v0  ;;  %v1479_v5 = vld [vmem:[%s1871_s1 + $0xf0] sm:$0xff]   ;;  %v1483_v9 = vld [vmem:[%s1871_s1 + $0xe8] sm:$0xff]   ;;  %s1465_s21 = smul.u32 36, %s1876_s23 }
   0xd   : > { %v1476_v2 = vld [vmem:[%s1871_s1 + $0x38] sm:$0xff]   ;;  %1351 = vmatprep.subr.bf16.mxu1 %v1475_v1  ;;  %v1480_v6 = vld [vmem:[%s1871_s1 + $0x30] sm:$0xff]   ;;  %v1484_v10 = vld [vmem:[%s1871_s1 + $0x28] sm:$0xff]  }
   0xe   : > { %v1477_v3 = vld [vmem:[%s1871_s1 + $0xb8] sm:$0xff]   ;;  %1324 = vmatpush3.bf16.msra.mxu0 %v1476_v2  ;;  %v1481_v7 = vld [vmem:[%s1871_s1 + $0xb0] sm:$0xff]   ;;  %v1485_v11 = vld [vmem:[%s1871_s1 + $0xa8] sm:$0xff]   ;;  %s1711_s6 = scalar_lea.vmem %s1870_s0, %s1465_s21 }
   0xf   : > { %1352 = vmatpush3.bf16.msra.mxu1 %v1477_v3  ;;  %1325 = vmatprep.subr.bf16.mxu0 %v1478_v4  ;;  %v1486_v12 = vld [vmem:[%s1871_s1 + $0x60] sm:$0xff]   ;;  %v1490_v16 = vld [vmem:[%s1871_s1 + $0x58] sm:$0xff]   ;;  %v1494_v20 = vld [vmem:[%s1871_s1 + $0x50] sm:$0xff]  }
  0x10   : > { %1353 = vmatprep.subr.bf16.mxu1 %v1479_v5  ;;  %v1487_v13 = vld [vmem:[%s1871_s1 + $0xe0] sm:$0xff]   ;;  %v1491_v17 = vld [vmem:[%s1871_s1 + $0xd8] sm:$0xff]   ;;  %v1495_v21 = vld [vmem:[%s1871_s1 + $0xd0] sm:$0xff]  }
  0x11   : > { %v1488_v14 = vld [vmem:[%s1871_s1 + $0x20] sm:$0xff]   ;;  %v1492_v18 = vld [vmem:[%s1871_s1 + $0x18] sm:$0xff]   ;;  %v1496_v22 = vld [vmem:[%s1871_s1 + $0x10] sm:$0xff]  }
  0x12   : > { %1326 = vmatpush3.bf16.msra.mxu0 %v1480_v6  ;;  %v1489_v15 = vld [vmem:[%s1871_s1 + $0xa0] sm:$0xff]   ;;  %v1493_v19 = vld [vmem:[%s1871_s1 + $0x98] sm:$0xff]   ;;  %v1497_v23 = vld [vmem:[%s1871_s1 + $0x90] sm:$0xff]  }
  0x13   : > { %1354 = vmatpush3.bf16.msra.mxu1 %v1481_v7  ;;  %1327 = vmatprep.subr.bf16.mxu0 %v1482_v8  ;;  %v1498_v24 = vld [vmem:[%s1871_s1 + $0x48] sm:$0xff]   ;;  %v1502_v28 = vld [vmem:[%s1871_s1 + $0x40] sm:$0xff]   ;;  %v1512_v36 = vld [vmem:[%s1871_s1 + $0x178] sm:$0xff]  }
  0x14   : > { %1355 = vmatprep.subr.bf16.mxu1 %v1483_v9  ;;  %v1499_v25 = vld [vmem:[%s1871_s1 + $0xc8] sm:$0xff]   ;;  %v1503_v29 = vld [vmem:[%s1871_s1 + $0xc0] sm:$0xff]   ;;  %v1513_v37 = vld [vmem:[%s1871_s1 + $0x138] sm:$0xff]  }
  0x15   : > { %v1500_v26 = vld [vmem:[%s1871_s1 + $0x8] sm:$0xff]   ;;  %v1504_v30 = vld [vmem:[%s1871_s1] sm:$0xff]   ;;  %v1514_v38 = vld [vmem:[%s1871_s1 + $0x1f8] sm:$0xff]  }
  0x16   : > { %1328 = vmatpush3.bf16.msra.mxu0 %v1484_v10  ;;  %v1501_v27 = vld [vmem:[%s1871_s1 + $0x88] sm:$0xff]   ;;  %v1505_v31 = vld [vmem:[%s1871_s1 + $0x80] sm:$0xff]   ;;  %v1515_v39 = vld [vmem:[%s1871_s1 + $0x1b8] sm:$0xff]  }
  0x17   : > { %1356 = vmatpush3.bf16.msra.mxu1 %v1485_v11  ;;  %1329 = vmatprep.subr.bf16.mxu0 %v1486_v12  ;;  %v1506_v32 = vld [vmem:[%s1711_s6] ss:$36 sps:$4 sm:$0xff]   ;;  %v1509_v34 = vld [vmem:[%s1711_s6 + $0x8] ss:$36 sps:$4 sm:$0xff]   ;;  %v1516_v40 = vld [vmem:[%s1871_s1 + $0x170] sm:$0xff]  }
  0x18   : > { %1357 = vmatprep.subr.bf16.mxu1 %v1487_v13  ;;  %v1508_v33 = vld [vmem:[%s1711_s6 + $0x4] ss:$36 sps:$4 sm:$0xff]   ;;  %v1511_v35 = vld [vmem:[%s1711_s6 + $0xc] ss:$36 sps:$4 sm:$0xff]   ;;  %v1528_v52 = vld [vmem:[%s1871_s1 + $0x158] sm:$0xff]  }
  0x19   : > { %925 = vmatprep.mubr.bf16.mxu0 %v1508_v33  ;;  %974 = vmatprep.mubr.bf16.mxu1 %v1511_v35  ;;  %v1517_v41 = vld [vmem:[%s1871_s1 + $0x130] sm:$0xff]   ;;  %v1520_v44 = vld [vmem:[%s1871_s1 + $0x168] sm:$0xff]   ;;  %v1524_v48 = vld [vmem:[%s1871_s1 + $0x160] sm:$0xff]  }
  0x1a   : > { %1330 = vmatpush3.bf16.msra.mxu0 %v1488_v14  ;;  %v1518_v42 = vld [vmem:[%s1871_s1 + $0x1f0] sm:$0xff]   ;;  %v1521_v45 = vld [vmem:[%s1871_s1 + $0x128] sm:$0xff]   ;;  %v1525_v49 = vld [vmem:[%s1871_s1 + $0x120] sm:$0xff]  }
  0x1b   : > { %1358 = vmatpush3.bf16.msra.mxu1 %v1489_v15  ;;  %1331 = vmatprep.subr.bf16.mxu0 %v1490_v16  ;;  %v1519_v43 = vld [vmem:[%s1871_s1 + $0x1b0] sm:$0xff]   ;;  %v1522_v46 = vld [vmem:[%s1871_s1 + $0x1e8] sm:$0xff]   ;;  %v1526_v50 = vld [vmem:[%s1871_s1 + $0x1e0] sm:$0xff]  }
  0x1c   : > { %1359 = vmatprep.subr.bf16.mxu1 %v1491_v17  ;;  %v1523_v47 = vld [vmem:[%s1871_s1 + $0x1a8] sm:$0xff]   ;;  %v1527_v51 = vld [vmem:[%s1871_s1 + $0x1a0] sm:$0xff]   ;;  %v1529_v53 = vld [vmem:[%s1871_s1 + $0x118] sm:$0xff]  }
  0x1d   : > { %v1530_v54 = vld [vmem:[%s1711_s6 + $0x4c] ss:$36 sps:$4 sm:$0xff]   ;;  %v1532_v55 = vld [vmem:[%s1711_s6 + $0x54] ss:$36 sps:$4 sm:$0xff]   ;;  %v1546_v4 = vld [vmem:[%s1871_s1 + $0x140] sm:$0xff]  }
  0x1e   : > { %1332 = vmatpush3.bf16.msra.mxu0 %v1492_v18  ;;  %v1534_v56 = vld [vmem:[%s1871_s1 + $0x1d8] sm:$0xff]   ;;  %v1535_v57 = vld [vmem:[%s1711_s6 + $0x48] ss:$36 sps:$4 sm:$0xff]   ;;  %v1536_v58 = vld [vmem:[%s1711_s6 + $0x50] ss:$36 sps:$4 sm:$0xff]  }
  0x1f   : > { %1360 = vmatpush3.bf16.msra.mxu1 %v1493_v19  ;;  %1333 = vmatprep.subr.bf16.mxu0 %v1494_v20  ;;  %v1537_v59 = vld [vmem:[%s1871_s1 + $0x198] sm:$0xff]   ;;  %v1538_v60 = vld [vmem:[%s1871_s1 + $0x150] sm:$0xff]   ;;  %v1542_v0 = vld [vmem:[%s1871_s1 + $0x148] sm:$0xff]  }
  0x20   : > { %1361 = vmatprep.subr.bf16.mxu1 %v1495_v21  ;;  %v1539_v61 = vld [vmem:[%s1871_s1 + $0x110] sm:$0xff]   ;;  %v1543_v1 = vld [vmem:[%s1871_s1 + $0x108] sm:$0xff]   ;;  %v1547_v5 = vld [vmem:[%s1871_s1 + $0x100] sm:$0xff]  }
  0x21   : > { %v1540_v62 = vld [vmem:[%s1871_s1 + $0x1d0] sm:$0xff]   ;;  %v1544_v2 = vld [vmem:[%s1871_s1 + $0x1c8] sm:$0xff]   ;;  %v1548_v6 = vld [vmem:[%s1871_s1 + $0x1c0] sm:$0xff]  }
  0x22   : > { %1334 = vmatpush3.bf16.msra.mxu0 %v1496_v22  ;;  %v1541_v63 = vld [vmem:[%s1871_s1 + $0x190] sm:$0xff]   ;;  %v1545_v3 = vld [vmem:[%s1871_s1 + $0x188] sm:$0xff]   ;;  %v1552_v9 = vld [vmem:[%s1871_s1 + $0x180] sm:$0xff]  }
  0x23   : > { %1362 = vmatpush3.bf16.msra.mxu1 %v1497_v23  ;;  %1335 = vmatprep.subr.bf16.mxu0 %v1498_v24  ;;  %v1549_v7 = vld [vmem:[%s1711_s6 + $0x10] ss:$36 sps:$4 sm:$0xff]   ;;  %v1553_v10 = vld [vmem:[%s1871_s1 + $0x238] sm:$0xff]   ;;  %v1561_v16 = vld [vmem:[%s1871_s1 + $0x228] sm:$0xff]  }
  0x24   : > { %1363 = vmatprep.subr.bf16.mxu1 %v1499_v25  ;;  %v1551_v8 = vld [vmem:[%s1711_s6 + $0x14] ss:$36 sps:$4 sm:$0xff]   ;;  %v1556_v12 = vld [vmem:[%s1711_s6 + $0x1c] ss:$36 sps:$4 sm:$0xff]   ;;  %v1562_v17 = vld [vmem:[%s1711_s6 + $0x64] ss:$36 sps:$4 sm:$0xff]  }
  0x25   : > { %v1554_v11 = vld [vmem:[%s1711_s6 + $0x18] ss:$36 sps:$4 sm:$0xff]   ;;  %v1557_v13 = vld [vmem:[%s1871_s1 + $0x230] sm:$0xff]   ;;  %v1564_v18 = vld [vmem:[%s1711_s6 + $0x60] ss:$36 sps:$4 sm:$0xff]  }
  0x26   : > { %1336 = vmatpush3.bf16.msra.mxu0 %v1500_v26  ;;  %v1558_v14 = vld [vmem:[%s1711_s6 + $0x5c] ss:$36 sps:$4 sm:$0xff]   ;;  %v1567_v22 = vld [vmem:[%s1871_s1 + $0x210] sm:$0xff]   ;;  %v1568_v23 = vld [vmem:[%s1871_s1 + $0x208] sm:$0xff]  }
  0x27   : > { %1364 = vmatpush3.bf16.msra.mxu1 %v1501_v27  ;;  %1337 = vmatprep.subr.bf16.mxu0 %v1502_v28  ;;  %v1560_v15 = vld [vmem:[%s1711_s6 + $0x58] ss:$36 sps:$4 sm:$0xff]   ;;  %v1565_v19 = vld [vmem:[%s1871_s1 + $0x220] sm:$0xff]   ;;  %v1571_v25 = vld [vmem:[%s1711_s6 + $0x68] ss:$36 sps:$4 sm:$0xff]  }
  0x28   : > { %1365 = vmatprep.subr.bf16.mxu1 %v1503_v29  ;;  %v1566_v20 = vld [vmem:[%s1871_s1 + $0x218] sm:$0xff]   ;;  %v1570_v21 = vld [vmem:[%s1711_s6 + $0x20] ss:$36 sps:$4 sm:$0xff]   ;;  %s1228_s6 = sshll.u32 %s1876_s23, 3 }
  0x29   : > { %v1569_v24 = vld [vmem:[%s1871_s1 + $0x200] sm:$0xff]   ;;  %s202_s5 = scalar_lea.vmem %s1874_s4, %s1228_s6 }
  0x2a   : > { %1338 = vmatpush3.bf16.msra.mxu0 %v1504_v30 }
  0x2b   : > { %1366 = vmatpush3.bf16.msra.mxu1 %v1505_v31  ;;  %1379 = vmatprep.subr.bf16.mxu0 %v1512_v36 }
  0x2c   : > { %1407 = vmatprep.subr.bf16.mxu1 %v1514_v38 }
  0x2d   : > { %926 = vmatmul.mubr.bf16.vlgmr.msra.gmra.mxu0 %v1506_v32 }
  0x2e   : > { %975 = vmatmul.mubr.bf16.vlgmr.msra.gmra.mxu1 %v1509_v34  ;;  %1380 = vmatpush3.bf16.msra.mxu0 %v1513_v37 }
  0x2f   : > { %1408 = vmatpush3.bf16.msra.mxu1 %v1515_v39  ;;  %1381 = vmatprep.subr.bf16.mxu0 %v1516_v40 }
  0x30   : > { %1409 = vmatprep.subr.bf16.mxu1 %v1518_v42  ;;  %933 = vmatprep.mubr.bf16.mxu0 %v1530_v54 }
  0x31   : > { %982 = vmatprep.mubr.bf16.mxu1 %v1532_v55 }
  0x32   : > { %1382 = vmatpush3.bf16.msra.mxu0 %v1517_v41 }
  0x33   : > { %1410 = vmatpush3.bf16.msra.mxu1 %v1519_v43  ;;  %1383 = vmatprep.subr.bf16.mxu0 %v1520_v44 }
  0x34   : > { %1411 = vmatprep.subr.bf16.mxu1 %v1522_v46 }
  0x35   : > { %934 = vmatmul.mubr.bf16.gmra.mxu0 %v1535_v57 }
  0x36   : > { %1384 = vmatpush3.bf16.msra.mxu0 %v1521_v45  ;;  %983 = vmatmul.mubr.bf16.gmra.mxu1 %v1536_v58 }
  0x37   : > { %1412 = vmatpush3.bf16.msra.mxu1 %v1523_v47  ;;  %1385 = vmatprep.subr.bf16.mxu0 %v1524_v48 }
  0x38   : > { %1413 = vmatprep.subr.bf16.mxu1 %v1526_v50  ;;  %1023 = vmatprep.mubr.bf16.mxu0 %v1551_v8 }
  0x39   : > { %1072 = vmatprep.mubr.bf16.mxu1 %v1556_v12 }
  0x3a   : > { %1386 = vmatpush3.bf16.msra.mxu0 %v1525_v49 }
  0x3b   : > { %1414 = vmatpush3.bf16.msra.mxu1 %v1527_v51  ;;  %1387 = vmatprep.subr.bf16.mxu0 %v1528_v52 }
  0x3c   : > { %1415 = vmatprep.subr.bf16.mxu1 %v1534_v56 }
  0x3e   : > { %1388 = vmatpush3.bf16.msra.mxu0 %v1529_v53 }
  0x3f   : > { %1416 = vmatpush3.bf16.msra.mxu1 %v1537_v59  ;;  %1389 = vmatprep.subr.bf16.mxu0 %v1538_v60 }
  0x40   : > { %1417 = vmatprep.subr.bf16.mxu1 %v1540_v62 }
  0x42   : > { %1390 = vmatpush3.bf16.msra.mxu0 %v1539_v61 }
  0x43   : > { %1418 = vmatpush3.bf16.msra.mxu1 %v1541_v63  ;;  %1391 = vmatprep.subr.bf16.mxu0 %v1542_v0 }
  0x44   : > { %1419 = vmatprep.subr.bf16.mxu1 %v1544_v2 }
  0x46   : > { %1392 = vmatpush3.bf16.msra.mxu0 %v1543_v1 }
  0x47   : > { %1420 = vmatpush3.bf16.msra.mxu1 %v1545_v3  ;;  %1393 = vmatprep.subr.bf16.mxu0 %v1546_v4 }
  0x48   : > { %1421 = vmatprep.subr.bf16.mxu1 %v1548_v6 }
  0x4a   : > { %1394 = vmatpush3.bf16.msra.mxu0 %v1547_v5 }
  0x4b   : > { %1422 = vmatpush3.bf16.msra.mxu1 %v1552_v9  ;;  %1445 = vmatprep.subr.bf16.mxu0 %v1553_v10 }
  0x4d   : > { %1024 = vmatmul.mubr.bf16.vlgmr.msra.gmra.mxu0 %v1549_v7 }
  0x4e   : > { %1446 = vmatpush3.bf16.msra.mxu0 %v1553_v10  ;;  %1073 = vmatmul.mubr.bf16.vlgmr.msra.gmra.mxu1 %v1554_v11 }
  0x4f   : > { %1447 = vmatprep.subr.bf16.mxu0 %v1557_v13  ;;  %1031 = vmatprep.mubr.bf16.mxu0 %v1558_v14 }
  0x50   : > { %1080 = vmatprep.mubr.bf16.mxu1 %v1562_v17 }
  0x52   : > { %1448 = vmatpush3.bf16.msra.mxu0 %v1557_v13 }
  0x53   : > { %1449 = vmatprep.subr.bf16.mxu0 %v1561_v16 }
  0x55   : > { %1032 = vmatmul.mubr.bf16.gmra.mxu0 %v1560_v15 }
  0x56   : > { %1450 = vmatpush3.bf16.msra.mxu0 %v1561_v16  ;;  %1081 = vmatmul.mubr.bf16.gmra.mxu1 %v1564_v18 }
  0x57   : > { %1451 = vmatprep.subr.bf16.mxu0 %v1565_v19  ;;  %1461 = vmatprep.mubr.bf16.mxu0 %v1570_v21 }
  0x5a   : > { %1452 = vmatpush3.bf16.msra.mxu0 %v1565_v19 }
  0x5b   : > { %1453 = vmatprep.subr.bf16.mxu0 %v1566_v20 }
  0x5e   : > { %1454 = vmatpush3.bf16.msra.mxu0 %v1566_v20 }
  0x5f   : > { %1455 = vmatprep.subr.bf16.mxu0 %v1567_v22 }
  0x62   : > { %1456 = vmatpush3.bf16.msra.mxu0 %v1567_v22 }
  0x63   : > { %1457 = vmatprep.subr.bf16.mxu0 %v1568_v23 }
  0x66   : > { %1458 = vmatpush3.bf16.msra.mxu0 %v1568_v23 }
  0x67   : > { %1459 = vmatprep.subr.bf16.mxu0 %v1569_v24 }
  0x6a   : > { %1460 = vmatpush3.bf16.msra.mxu0 %v1569_v24 }
  0x6d   : > { %1462 = vmatmul.mubr.bf16.vlgmr.msra.gmra.mxu0 %v1571_v25  ;;  %v1319_v25 = vld [vmem:[%s1872_s2] ss:$0 sm:$0xff] }
  0xed   : > { %v1339_v26 = vpop.f32.mrf.mxu0 }
  0xee   : > { %v1367_v27 = vpop.f32.mrf.mxu1 }
  0xef   : > { %v1340_v28 = vpop.f32.mrf.mxu0 }
  0xf0   : > { %v1368_v29 = vpop.f32.mrf.mxu1  ;;  %v1341_v55 = vadd.f32 %v1340_v28, %v1339_v26 }
  0xf1   : > { %v1342_v30 = vpop.f32.mrf.mxu0  ;;  %v1369_v56 = vadd.f32 %v1368_v29, %v1367_v27 }
  0xf2   : > { %v1370_v31 = vpop.f32.mrf.mxu1 }
  0xf3   : > { %v1343_v32 = vpop.f32.mrf.mxu0  ;;  %v977_v1 = vadd.f32 %v1369_v56, %v1341_v55 }
  0xf4   : > { %v1371_v34 = vpop.f32.mrf.mxu1  ;;  %v1344_v2 = vadd.f32 %v1343_v32, %v1342_v30  ;;  %v1320_v30 = vld [vmem:[%s1873_s3] ss:$0 sm:$0xff] }
  0xf5   : > { %v1345_v33 = vpop.f32.mrf.mxu0  ;;  %v1372_v3 = vadd.f32 %v1371_v34, %v1370_v31 }
  0xf6   : > { %v1373_v35 = vpop.f32.mrf.mxu1 }
  0xf7   : > { %v1346_v36 = vpop.f32.mrf.mxu0  ;;  %v980_v13 = vadd.f32 %v1372_v3, %v1344_v2 }
  0xf8   : > { %v1374_v37 = vpop.f32.mrf.mxu1  ;;  %v1347_v57 = vadd.f32 %v1346_v36, %v1345_v33 }
  0xf9   : > { %v1348_v38 = vpop.f32.mrf.mxu0  ;;  %v1375_v58 = vadd.f32 %v1374_v37, %v1373_v35 }
  0xfa   : > { %v1376_v39 = vpop.f32.mrf.mxu1 }
  0xfb   : > { %v1349_v40 = vpop.f32.mrf.mxu0  ;;  %v985_v5 = vadd.f32 %v1375_v58, %v1347_v57 }
  0xfc   : > { %v1377_v42 = vpop.f32.mrf.mxu1  ;;  %v1350_v61 = vadd.f32 %v1349_v40, %v1348_v38 }
  0xfd   : > { %v1378_v62 = vadd.f32 %v1377_v42, %v1376_v39 }
  0xff   : > { %v988_v7 = vadd.f32 %v1378_v62, %v1350_v61 }
 0x10d   : > { %v1395_v41 = vpop.f32.mrf.mxu0 }
 0x10e   : > { %v1423_v44 = vpop.f32.mrf.mxu1 }
 0x10f   : > { %v1396_v43 = vpop.f32.mrf.mxu0 }
 0x110   : > { %v1424_v46 = vpop.f32.mrf.mxu1  ;;  %v1397_v63 = vadd.f32 %v1396_v43, %v1395_v41 }
 0x111   : > { %v1398_v45 = vpop.f32.mrf.mxu0  ;;  %v1425_v9 = vadd.f32 %v1424_v46, %v1423_v44 }
 0x112   : > { %v1426_v48 = vpop.f32.mrf.mxu1  ;;  %v1026_v8 = vadd.f32 %v1397_v63, %v977_v1 }
 0x113   : > { %v1399_v47 = vpop.f32.mrf.mxu0 }
 0x114   : > { %v1427_v50 = vpop.f32.mrf.mxu1  ;;  %v1400_v10 = vadd.f32 %v1399_v47, %v1398_v45  ;;  %v1075_v19 = vadd.f32 %v1425_v9, %v1026_v8 }
 0x115   : > { %v1401_v49 = vpop.f32.mrf.mxu0  ;;  %v1428_v18 = vadd.f32 %v1427_v50, %v1426_v48 }
 0x116   : > { %v1429_v52 = vpop.f32.mrf.mxu1  ;;  %v1029_v17 = vadd.f32 %v1400_v10, %v980_v13 }
 0x117   : > { %v1402_v51 = vpop.f32.mrf.mxu0 }
 0x118   : > { %v1430_v54 = vpop.f32.mrf.mxu1  ;;  %v1403_v0 = vadd.f32 %v1402_v51, %v1401_v49  ;;  %v1078_v29 = vadd.f32 %v1428_v18, %v1029_v17 }
 0x119   : > { %v1404_v53 = vpop.f32.mrf.mxu0  ;;  %v1431_v12 = vadd.f32 %v1430_v54, %v1429_v52 }
 0x11a   : > { %v1432_v60 = vpop.f32.mrf.mxu1  ;;  %v1034_v11 = vadd.f32 %v1403_v0, %v985_v5 }
 0x11b   : > { %v1405_v59 = vpop.f32.mrf.mxu0 }
 0x11c   : > { %v1406_v4 = vadd.f32 %v1405_v59, %v1404_v53  ;;  %v1433_v6 = vpop.f32.mrf.mxu1  ;;  %v1083_v20 = vadd.f32 %v1431_v12, %v1034_v11 }
 0x11d   : > { %v1434_v15 = vadd.f32 %v1433_v6, %v1432_v60 }
 0x11e   : > { %v1037_v14 = vadd.f32 %v1406_v4, %v988_v7 }
 0x120   : > { %v1086_v23 = vadd.f32 %v1434_v15, %v1037_v14 }
 0x12d   : > { %v1463_v16 = vpop.f32.mrf.mxu0 }
 0x12e   : > { %v1132_v24 = vadd.f32 %v1463_v16, %v1083_v20 }
 0x12f   : > { %v1123_v21 = vpop.f32.mrf.mxu0 }
 0x130   : > { %v1124_v22 = vadd.f32 %v1123_v21, %v1075_v19  ;;  %v1147_v34 = vmul.f32 %v1319_v25, %v1132_v24 }
 0x131   : > { %v1464_v26 = vpop.f32.mrf.mxu0 }
 0x132   : > { %v1145_v27 = vmul.f32 %v1319_v25, %v1124_v22  ;;  %v1135_v28 = vadd.f32 %v1464_v26, %v1086_v23  ;;  %v1158_v38 = vadd.f32 %v1320_v30, %v1147_v34 }
 0x133   : > { %v1126_v31 = vpop.f32.mrf.mxu0 }
 0x134   : > { %v1156_v32 = vadd.f32 %v1320_v30, %v1145_v27  ;;  %v1127_v33 = vadd.f32 %v1126_v31, %v1078_v29  ;;  %v1148_v35 = vmul.f32 %v1319_v25, %v1135_v28  ;;  %1162 = vst [vmem:[%s202_s5 + $0x10] sm:$0xff] %v1158_v38 }
 0x136   : > { %1160 = vst [vmem:[%s202_s5] sm:$0xff] %v1156_v32  ;;  %v1146_v36 = vmul.f32 %v1319_v25, %v1127_v33  ;;  %v1159_v39 = vadd.f32 %v1320_v30, %v1148_v35 }
 0x138   : > { %v1157_v37 = vadd.f32 %v1320_v30, %v1146_v36  ;;  %1163 = vst [vmem:[%s202_s5 + $0x18] sm:$0xff] %v1159_v39 }
 0x13a   : > { %1161 = vst [vmem:[%s202_s5 + $0x8] sm:$0xff] %v1157_v37 }
 0x13b PF: > { %s14_s15 = sadd.s32 1, %s1578_s15  }
 0x13c   : > { %p11_p4 = scmp.ge.s32.totalorder %s14_s15, 4  }
 0x13e   :  { %13 = sbr.rel (!%p11_p4) target bundleno = 1 (0x1), region = 66 }

// kernel: cpd_d19_forward.138
= control target key start
LH: loop header
LB: loop body
LE: loop exit
PB: predicated region body
PF: predicated region fallthrough
CT: control target
= control target key end

     0   :  { %s1102_s15 = smov 0   ;;  %s1346_s0 = inlined_call_operand.vmem [shape: bf16[64,512], index: 0, kind: input, shape index: {}]   ;;  %s1347_s1 = inlined_call_operand.vmem [shape: bf16[512,256], index: 1, kind: input, shape index: {}]   ;;  %s1348_s2 = inlined_call_operand.vmem [shape: f32[1,256], index: 2, kind: input, shape index: {}]   ;;  %s1349_s3 = inlined_call_operand.vmem [shape: f32[1,256], index: 3, kind: input, shape index: {}]   ;;  %s1350_s4 = inlined_call_operand.vmem [shape: f32[64,256], index: 4, kind: output, shape index: {}]  }
   0x1 LB: > { %s866_s16 = sadd.s32 4294967295, %s1075_s15   ;;  %p870_p0 = scmp.ge.s32.totalorder %s1075_s15, 1  ;;  %s1075_s15 = sphi %s1102_s15, %s14_s15  }
   0x2   : > { %p164_p1 = scmp.lt.s32.totalorder %s1075_s15, 3 }
   0x4   : > { %p165_p2 = pnand %p870_p0, %p164_p1 }
   0x5   : > { %s871_s29 = sshll.u32 (!%p165_p2), %s866_s16, 2 }
   0x6   : > { %168 = sbr.rel (%p165_p2) target bundleno = 295 (0x127), region = 36  ;;  %p193_p3 = scmp.lt.s32.totalorder (!%p165_p2), %s871_s29, 7 }
   0xb   : > { %v961_v0 = vld [vmem:[%s1347_s1 + $0x74] ss:$8 sps:$4 sm:$0xff]   ;;  %v965_v2 = vld [vmem:[%s1347_s1 + $0x70] ss:$8 sps:$4 sm:$0xff]   ;;  %v967_v4 = vld [vmem:[%s1347_s1 + $0x64] ss:$8 sps:$4 sm:$0xff]  }
   0xc   : > { %v963_v1 = vld [vmem:[%s1347_s1 + $0x174] ss:$8 sps:$4 sm:$0xff]   ;;  %638 = vmatprep.subr.bf16.mxu0 %v961_v0  ;;  %v966_v3 = vld [vmem:[%s1347_s1 + $0x170] ss:$8 sps:$4 sm:$0xff]   ;;  %v969_v5 = vld [vmem:[%s1347_s1 + $0x164] ss:$8 sps:$4 sm:$0xff]  }
   0xd   : > { %691 = vmatprep.subr.bf16.mxu1 %v963_v1  ;;  %639 = vmatpush1.bf16.msra.mxu0 %v965_v2  ;;  %v971_v6 = vld [vmem:[%s1347_s1 + $0x60] ss:$8 sps:$4 sm:$0xff]   ;;  %v973_v8 = vld [vmem:[%s1347_s1 + $0x54] ss:$8 sps:$4 sm:$0xff]   ;;  %v977_v10 = vld [vmem:[%s1347_s1 + $0x50] ss:$8 sps:$4 sm:$0xff]  }
   0xe   : > { %692 = vmatpush1.bf16.msra.mxu1 %v966_v3  ;;  %640 = vmatprep.subr.bf16.mxu0 %v967_v4  ;;  %v972_v7 = vld [vmem:[%s1347_s1 + $0x160] ss:$8 sps:$4 sm:$0xff]   ;;  %v975_v9 = vld [vmem:[%s1347_s1 + $0x154] ss:$8 sps:$4 sm:$0xff]   ;;  %v978_v11 = vld [vmem:[%s1347_s1 + $0x150] ss:$8 sps:$4 sm:$0xff]  }
   0xf   : > { %693 = vmatprep.subr.bf16.mxu1 %v969_v5  ;;  %v979_v12 = vld [vmem:[%s1347_s1 + $0x44] ss:$8 sps:$4 sm:$0xff]   ;;  %v983_v14 = vld [vmem:[%s1347_s1 + $0x40] ss:$8 sps:$4 sm:$0xff]   ;;  %v985_v16 = vld [vmem:[%s1347_s1 + $0x34] ss:$8 sps:$4 sm:$0xff]  }
  0x10   : > { %v981_v13 = vld [vmem:[%s1347_s1 + $0x144] ss:$8 sps:$4 sm:$0xff]   ;;  %v984_v15 = vld [vmem:[%s1347_s1 + $0x140] ss:$8 sps:$4 sm:$0xff]   ;;  %v987_v17 = vld [vmem:[%s1347_s1 + $0x134] ss:$8 sps:$4 sm:$0xff]  }
  0x11   : > { %641 = vmatpush1.bf16.msra.mxu0 %v971_v6  ;;  %v989_v18 = vld [vmem:[%s1347_s1 + $0x30] ss:$8 sps:$4 sm:$0xff]   ;;  %v991_v20 = vld [vmem:[%s1347_s1 + $0x24] ss:$8 sps:$4 sm:$0xff]   ;;  %v995_v22 = vld [vmem:[%s1347_s1 + $0x20] ss:$8 sps:$4 sm:$0xff]  }
  0x12   : > { %694 = vmatpush1.bf16.msra.mxu1 %v972_v7  ;;  %642 = vmatprep.subr.bf16.mxu0 %v973_v8  ;;  %v990_v19 = vld [vmem:[%s1347_s1 + $0x130] ss:$8 sps:$4 sm:$0xff]   ;;  %v993_v21 = vld [vmem:[%s1347_s1 + $0x124] ss:$8 sps:$4 sm:$0xff]   ;;  %v996_v23 = vld [vmem:[%s1347_s1 + $0x120] ss:$8 sps:$4 sm:$0xff]   ;;  %v746_v8 = vlaneseq }
  0x13   : > { %695 = vmatprep.subr.bf16.mxu1 %v975_v9  ;;  %v997_v24 = vld [vmem:[%s1347_s1 + $0x14] ss:$8 sps:$4 sm:$0xff]   ;;  %v1001_v26 = vld [vmem:[%s1347_s1 + $0x10] ss:$8 sps:$4 sm:$0xff]   ;;  %v1003_v28 = vld [vmem:[%s1347_s1 + $0x4] ss:$8 sps:$4 sm:$0xff]  }
  0x14   : > { %v999_v25 = vld [vmem:[%s1347_s1 + $0x114] ss:$8 sps:$4 sm:$0xff]   ;;  %v1002_v27 = vld [vmem:[%s1347_s1 + $0x110] ss:$8 sps:$4 sm:$0xff]   ;;  %v1005_v29 = vld [vmem:[%s1347_s1 + $0x104] ss:$8 sps:$4 sm:$0xff]  }
  0x15   : > { %643 = vmatpush1.bf16.msra.mxu0 %v977_v10  ;;  %v1007_v30 = vld [vmem:[%s1347_s1] ss:$8 sps:$4 sm:$0xff]   ;;  %v1009_v32 = vld [vmem:[%s1347_s1 + $0xf4] ss:$8 sps:$4 sm:$0xff]   ;;  %v1013_v34 = vld [vmem:[%s1347_s1 + $0xf0] ss:$8 sps:$4 sm:$0xff]  }
  0x16   : > { %696 = vmatpush1.bf16.msra.mxu1 %v978_v11  ;;  %644 = vmatprep.subr.bf16.mxu0 %v979_v12  ;;  %v1008_v31 = vld [vmem:[%s1347_s1 + $0x100] ss:$8 sps:$4 sm:$0xff]   ;;  %v1011_v33 = vld [vmem:[%s1347_s1 + $0x1f4] ss:$8 sps:$4 sm:$0xff]   ;;  %v1014_v35 = vld [vmem:[%s1347_s1 + $0x1f0] ss:$8 sps:$4 sm:$0xff]  }
  0x17   : > { %697 = vmatprep.subr.bf16.mxu1 %v981_v13  ;;  %v1015_v36 = vld [vmem:[%s1347_s1 + $0xe4] ss:$8 sps:$4 sm:$0xff]   ;;  %s1352_s29 = smov (!%p193_p3, %s871_s29), 7  ;;  %v1019_v38 = vld [vmem:[%s1347_s1 + $0xe0] ss:$8 sps:$4 sm:$0xff]   ;;  %v747_v9 = vshrl.u32 %v746_v8, 7 }
  0x18   : > { %v1017_v37 = vld [vmem:[%s1347_s1 + $0x1e4] ss:$8 sps:$4 sm:$0xff]   ;;  %v1020_v39 = vld [vmem:[%s1347_s1 + $0x1e0] ss:$8 sps:$4 sm:$0xff]   ;;  %v1021_v40 = vld [vmem:[%s1347_s1 + $0xd4] ss:$8 sps:$4 sm:$0xff]  }
  0x19   : > { %645 = vmatpush1.bf16.msra.mxu0 %v983_v14  ;;  %v1023_v41 = vld [vmem:[%s1347_s1 + $0x1d4] ss:$8 sps:$4 sm:$0xff]   ;;  %s951_s30 = sshll.u32 %s1352_s29, 4  ;;  %v1025_v42 = vld [vmem:[%s1347_s1 + $0xd0] ss:$8 sps:$4 sm:$0xff]   ;;  %v748_v10 = vsub.s32 0, %v747_v9 }
  0x1a   : > { %698 = vmatpush1.bf16.msra.mxu1 %v984_v15  ;;  %646 = vmatprep.subr.bf16.mxu0 %v985_v16  ;;  %v1026_v43 = vld [vmem:[%s1347_s1 + $0x1d0] ss:$8 sps:$4 sm:$0xff]   ;;  %v1027_v44 = vld [vmem:[%s1347_s1 + $0xc4] ss:$8 sps:$4 sm:$0xff]   ;;  %s1255_s12 = scalar_lea.vmem %s1346_s0, %s951_s30  ;;  %v1031_v46 = vld [vmem:[%s1347_s1 + $0xc0] ss:$8 sps:$4 sm:$0xff]   ;;  %s1333_s16 = scalar_lea.vmem %s1350_s4, %s951_s30 }
  0x1b   : > { %699 = vmatprep.subr.bf16.mxu1 %v987_v17  ;;  %v1029_v45 = vld [vmem:[%s1347_s1 + $0x1c4] ss:$8 sps:$4 sm:$0xff]   ;;  %v1032_v47 = vld [vmem:[%s1347_s1 + $0x1c0] ss:$8 sps:$4 sm:$0xff]   ;;  %v1033_v48 = vld [vmem:[%s1347_s1 + $0xb4] ss:$8 sps:$4 sm:$0xff]  }
  0x1c   : > { %v1059_v49 = vld [vmem:[%s1255_s12 + $0x4] ss:$16 sps:$4 sm:$0xff]   ;;  %v1062_v51 = vld [vmem:[%s1255_s12 + $0xc] ss:$16 sps:$4 sm:$0xff]   ;;  %v1037_v52 = vld [vmem:[%s1347_s1 + $0xb0] ss:$8 sps:$4 sm:$0xff]  }
  0x1d   : > { %647 = vmatpush1.bf16.msra.mxu0 %v989_v18  ;;  %v1035_v50 = vld [vmem:[%s1347_s1 + $0x1b4] ss:$8 sps:$4 sm:$0xff]   ;;  %670 = vmatprep.mubr.bf16.mxu0 %v1059_v49  ;;  %v1038_v53 = vld [vmem:[%s1347_s1 + $0x1b0] ss:$8 sps:$4 sm:$0xff]   ;;  %v1039_v54 = vld [vmem:[%s1347_s1 + $0xa4] ss:$8 sps:$4 sm:$0xff]  }
  0x1e   : > { %700 = vmatpush1.bf16.msra.mxu1 %v990_v19  ;;  %648 = vmatprep.subr.bf16.mxu0 %v991_v20  ;;  %v1041_v55 = vld [vmem:[%s1347_s1 + $0x1a4] ss:$8 sps:$4 sm:$0xff]   ;;  %v1043_v56 = vld [vmem:[%s1347_s1 + $0xa0] ss:$8 sps:$4 sm:$0xff]   ;;  %v1045_v58 = vld [vmem:[%s1347_s1 + $0x94] ss:$8 sps:$4 sm:$0xff]  }
  0x1f   : > { %701 = vmatprep.subr.bf16.mxu1 %v993_v21  ;;  %723 = vmatprep.mubr.bf16.mxu1 %v1062_v51  ;;  %v1044_v57 = vld [vmem:[%s1347_s1 + $0x1a0] ss:$8 sps:$4 sm:$0xff]   ;;  %v1047_v59 = vld [vmem:[%s1347_s1 + $0x194] ss:$8 sps:$4 sm:$0xff]   ;;  %v1049_v60 = vld [vmem:[%s1347_s1 + $0x90] ss:$8 sps:$4 sm:$0xff]  }
  0x20   : > { %v1050_v61 = vld [vmem:[%s1347_s1 + $0x190] ss:$8 sps:$4 sm:$0xff]   ;;  %v1051_v62 = vld [vmem:[%s1347_s1 + $0x84] ss:$8 sps:$4 sm:$0xff]   ;;  %v1055_v0 = vld [vmem:[%s1347_s1 + $0x80] ss:$8 sps:$4 sm:$0xff]  }
  0x21   : > { %649 = vmatpush1.bf16.msra.mxu0 %v995_v22  ;;  %v1053_v63 = vld [vmem:[%s1347_s1 + $0x184] ss:$8 sps:$4 sm:$0xff]   ;;  %v1056_v1 = vld [vmem:[%s1347_s1 + $0x180] ss:$8 sps:$4 sm:$0xff]   ;;  %v752_v12 = vsub.s32 1, %v747_v9 }
  0x22   : > { %702 = vmatpush1.bf16.msra.mxu1 %v996_v23  ;;  %650 = vmatprep.subr.bf16.mxu0 %v997_v24  ;;  %v1057_v2 = vld [vmem:[%s1255_s12] ss:$16 sps:$4 sm:$0xff]   ;;  %v1060_v3 = vld [vmem:[%s1255_s12 + $0x8] ss:$16 sps:$4 sm:$0xff]   ;;  %v1063_v4 = vld [vmem:[%s1255_s12 + $0x24] ss:$16 sps:$4 sm:$0xff]  }
  0x23   : > { %703 = vmatprep.subr.bf16.mxu1 %v999_v25  ;;  %v1065_v5 = vld [vmem:[%s1255_s12 + $0x2c] ss:$16 sps:$4 sm:$0xff]   ;;  %v1067_v6 = vld [vmem:[%s1255_s12 + $0x20] ss:$16 sps:$4 sm:$0xff]   ;;  %v1068_v7 = vld [vmem:[%s1255_s12 + $0x28] ss:$16 sps:$4 sm:$0xff]  }
  0x24   : > { %v744_v11 = vld [vmem:[%s1348_s2] sm:$0x3] }
  0x25   : > { %651 = vmatpush1.bf16.msra.mxu0 %v1001_v26  ;;  %v764_v13 = vld [vmem:[%s1349_s3] sm:$0x3]  ;;  %v749_v14 = vrot.slane %v744_v11, %v748_v10  ;;  %v753_v19 = vrot.slane %v744_v11, %v752_v12 }
  0x26   : > { %704 = vmatpush1.bf16.msra.mxu1 %v1002_v27  ;;  %652 = vmatprep.subr.bf16.mxu0 %v1003_v28  ;;  %v769_v18 = vrot.slane %v764_v13, %v748_v10  ;;  %v773_v24 = vrot.slane %v764_v13, %v752_v12 }
  0x27   : > { %705 = vmatprep.subr.bf16.mxu1 %v1005_v29 }
  0x29   : > { %653 = vmatpush1.bf16.msra.mxu0 %v1007_v30 }
  0x2a   : > { %706 = vmatpush1.bf16.msra.mxu1 %v1008_v31  ;;  %654 = vmatprep.subr.bf16.mxu0 %v1009_v32 }
  0x2b   : > { %707 = vmatprep.subr.bf16.mxu1 %v1011_v33 }
  0x2d   : > { %655 = vmatpush2.bf16.msra.mxu0 %v1013_v34 }
  0x2e   : > { %708 = vmatpush2.bf16.msra.mxu1 %v1014_v35  ;;  %656 = vmatprep.subr.bf16.mxu0 %v1015_v36 }
  0x2f   : > { %709 = vmatprep.subr.bf16.mxu1 %v1017_v37 }
  0x31   : > { %657 = vmatpush2.bf16.msra.mxu0 %v1019_v38 }
  0x32   : > { %710 = vmatpush2.bf16.msra.mxu1 %v1020_v39  ;;  %658 = vmatprep.subr.bf16.mxu0 %v1021_v40 }
  0x33   : > { %711 = vmatprep.subr.bf16.mxu1 %v1023_v41 }
  0x35   : > { %659 = vmatpush2.bf16.msra.mxu0 %v1025_v42 }
  0x36   : > { %712 = vmatpush2.bf16.msra.mxu1 %v1026_v43  ;;  %660 = vmatprep.subr.bf16.mxu0 %v1027_v44 }
  0x37   : > { %713 = vmatprep.subr.bf16.mxu1 %v1029_v45 }
  0x39   : > { %661 = vmatpush2.bf16.msra.mxu0 %v1031_v46 }
  0x3a   : > { %714 = vmatpush2.bf16.msra.mxu1 %v1032_v47  ;;  %662 = vmatprep.subr.bf16.mxu0 %v1033_v48 }
  0x3b   : > { %715 = vmatprep.subr.bf16.mxu1 %v1035_v50 }
  0x3d   : > { %663 = vmatpush2.bf16.msra.mxu0 %v1037_v52 }
  0x3e   : > { %716 = vmatpush2.bf16.msra.mxu1 %v1038_v53  ;;  %664 = vmatprep.subr.bf16.mxu0 %v1039_v54 }
  0x3f   : > { %717 = vmatprep.subr.bf16.mxu1 %v1041_v55 }
  0x41   : > { %665 = vmatpush2.bf16.msra.mxu0 %v1043_v56 }
  0x42   : > { %718 = vmatpush2.bf16.msra.mxu1 %v1044_v57  ;;  %666 = vmatprep.subr.bf16.mxu0 %v1045_v58 }
  0x43   : > { %719 = vmatprep.subr.bf16.mxu1 %v1047_v59 }
  0x45   : > { %667 = vmatpush2.bf16.msra.mxu0 %v1049_v60 }
  0x46   : > { %720 = vmatpush2.bf16.msra.mxu1 %v1050_v61  ;;  %668 = vmatprep.subr.bf16.mxu0 %v1051_v62 }
  0x47   : > { %721 = vmatprep.subr.bf16.mxu1 %v1053_v63 }
  0x49   : > { %669 = vmatpush2.bf16.msra.mxu0 %v1055_v0 }
  0x4a   : > { %722 = vmatpush2.bf16.msra.mxu1 %v1056_v1 }
  0x4c   : > { %671 = vmatmul.mubr.bf16.vlgmr.msra.gmra.mxu0 %v1057_v2 }
  0x4d   : > { %724 = vmatmul.mubr.bf16.vlgmr.msra.gmra.mxu1 %v1060_v3  ;;  %680 = vmatprep.mubr.bf16.mxu0 %v1063_v4 }
  0x4e   : > { %733 = vmatprep.mubr.bf16.mxu1 %v1065_v5 }
  0x54   : > { %681 = vmatmul.mubr.bf16.gmra.mxu0 %v1067_v6 }
  0x55   : > { %734 = vmatmul.mubr.bf16.gmra.mxu1 %v1068_v7 }
 0x10c   : > { %v672_v15 = vpop.f32.mrf.mxu0 }
 0x10d   : > { %v725_v16 = vpop.f32.mrf.mxu1 }
 0x10e   : > { %v726_v17 = vadd.f32 %v725_v16, %v672_v15  ;;  %v674_v20 = vpop.f32.mrf.mxu0 }
 0x10f   : > { %v727_v21 = vpop.f32.mrf.mxu1 }
 0x110   : > { %v756_v22 = vmul.f32 %v749_v14, %v726_v17  ;;  %v728_v23 = vadd.f32 %v727_v21, %v674_v20  ;;  %v676_v25 = vpop.f32.mrf.mxu0 }
 0x111   : > { %v729_v26 = vpop.f32.mrf.mxu1 }
 0x112   : > { %v776_v27 = vadd.f32 %v769_v18, %v756_v22  ;;  %v757_v28 = vmul.f32 %v753_v19, %v728_v23  ;;  %v730_v29 = vadd.f32 %v729_v26, %v676_v25  ;;  %v678_v30 = vpop.f32.mrf.mxu0 }
 0x113   : > { %v731_v31 = vpop.f32.mrf.mxu1 }
 0x114   : > { %v784_v32 = vmul.f32 0.1, %v776_v27  ;;  %v777_v33 = vadd.f32 %v773_v24, %v757_v28  ;;  %v758_v34 = vmul.f32 %v749_v14, %v730_v29  ;;  %v732_v35 = vadd.f32 %v731_v31, %v678_v30  ;;  %v682_v36 = vpop.f32.mrf.mxu0 }
 0x115   : > { %v735_v37 = vpop.f32.mrf.mxu1 }
 0x116   : > { %v792_v38 = vmax.f32 %v776_v27, %v784_v32  ;;  %v785_v39 = vmul.f32 0.1, %v777_v33  ;;  %v778_v40 = vadd.f32 %v769_v18, %v758_v34  ;;  %v759_v41 = vmul.f32 %v753_v19, %v732_v35  ;;  %v684_v43 = vpop.f32.mrf.mxu0 }
 0x117   : > { %v736_v42 = vadd.f32 %v735_v37, %v682_v36  ;;  %v737_v44 = vpop.f32.mrf.mxu1 }
 0x118   : > { %800 = vst [vmem:[%s1333_s16] sm:$0xff] %v792_v38  ;;  %v793_v45 = vmax.f32 %v777_v33, %v785_v39  ;;  %v786_v46 = vmul.f32 0.1, %v778_v40  ;;  %v779_v47 = vadd.f32 %v773_v24, %v759_v41  ;;  %v738_v48 = vadd.f32 %v737_v44, %v684_v43  ;;  %v686_v50 = vpop.f32.mrf.mxu0 }
 0x119   : > { %v760_v49 = vmul.f32 %v749_v14, %v736_v42  ;;  %v739_v51 = vpop.f32.mrf.mxu1 }
 0x11a   : > { %801 = vst [vmem:[%s1333_s16 + $0x8] sm:$0xff] %v793_v45  ;;  %v794_v52 = vmax.f32 %v778_v40, %v786_v46  ;;  %v787_v53 = vmul.f32 0.1, %v779_v47  ;;  %v761_v54 = vmul.f32 %v753_v19, %v738_v48  ;;  %v740_v55 = vadd.f32 %v739_v51, %v686_v50  ;;  %v688_v57 = vpop.f32.mrf.mxu0 }
 0x11b   : > { %v780_v56 = vadd.f32 %v769_v18, %v760_v49  ;;  %v741_v58 = vpop.f32.mrf.mxu1 }
 0x11c   : > { %802 = vst [vmem:[%s1333_s16 + $0x10] sm:$0xff] %v794_v52  ;;  %v795_v59 = vmax.f32 %v779_v47, %v787_v53  ;;  %v781_v60 = vadd.f32 %v773_v24, %v761_v54  ;;  %v762_v61 = vmul.f32 %v749_v14, %v740_v55  ;;  %v742_v62 = vadd.f32 %v741_v58, %v688_v57 }
 0x11d   : > { %v788_v63 = vmul.f32 0.1, %v780_v56 }
 0x11e   : > { %803 = vst [vmem:[%s1333_s16 + $0x18] sm:$0xff] %v795_v59  ;;  %v789_v0 = vmul.f32 0.1, %v781_v60  ;;  %v782_v1 = vadd.f32 %v769_v18, %v762_v61  ;;  %v763_v2 = vmul.f32 %v753_v19, %v742_v62 }
 0x11f   : > { %v796_v3 = vmax.f32 %v780_v56, %v788_v63 }
 0x120   : > { %v797_v4 = vmax.f32 %v781_v60, %v789_v0  ;;  %v790_v5 = vmul.f32 0.1, %v782_v1  ;;  %v783_v6 = vadd.f32 %v773_v24, %v763_v2 }
 0x121   : > { %804 = vst [vmem:[%s1333_s16 + $0x20] sm:$0xff] %v796_v3 }
 0x122   : > { %805 = vst [vmem:[%s1333_s16 + $0x28] sm:$0xff] %v797_v4  ;;  %v798_v7 = vmax.f32 %v782_v1, %v790_v5  ;;  %v791_v8 = vmul.f32 0.1, %v783_v6 }
 0x124   : > { %806 = vst [vmem:[%s1333_s16 + $0x30] sm:$0xff] %v798_v7  ;;  %v799_v9 = vmax.f32 %v783_v6, %v791_v8 }
 0x126   : > { %807 = vst [vmem:[%s1333_s16 + $0x38] sm:$0xff] %v799_v9 }
 0x127 PF: > { %s14_s15 = sadd.s32 1, %s1075_s15  }
 0x128   : > { %p11_p4 = scmp.ge.s32.totalorder %s14_s15, 4  }
 0x12a   :  { %13 = sbr.rel (!%p11_p4) target bundleno = 1 (0x1), region = 66 }

// kernel: cpd_d19_forward.173
= control target key start
LH: loop header
LB: loop body
LE: loop exit
PB: predicated region body
PF: predicated region fallthrough
CT: control target
= control target key end

     0   :  { %s885_s15 = smov 0   ;;  %s1010_s0 = inlined_call_operand.vmem [shape: bf16[64,512], index: 0, kind: input, shape index: {}]   ;;  %s1011_s1 = inlined_call_operand.vmem [shape: bf16[512,128], index: 1, kind: input, shape index: {}]   ;;  %s1012_s2 = inlined_call_operand.vmem [shape: f32[1,128], index: 2, kind: input, shape index: {}]   ;;  %s1013_s3 = inlined_call_operand.vmem [shape: f32[1,128], index: 3, kind: input, shape index: {}]   ;;  %s1014_s4 = inlined_call_operand.vmem [shape: f32[64,128], index: 4, kind: output, shape index: {}]  }
   0x1 LB: > { %s689_s16 = sadd.s32 4294967295, %s858_s15   ;;  %p693_p0 = scmp.ge.s32.totalorder %s858_s15, 1  ;;  %s858_s15 = sphi %s885_s15, %s14_s15  }
   0x2   : > { %p164_p1 = scmp.lt.s32.totalorder %s858_s15, 3 }
   0x4   : > { %p165_p2 = pnand %p693_p0, %p164_p1 }
   0x5   : > { %s694_s25 = sshll.u32 (!%p165_p2), %s689_s16, 2 }
   0x6   : > { %168 = sbr.rel (%p165_p2) target bundleno = 262 (0x106), region = 36  ;;  %p192_p3 = scmp.lt.s32.totalorder (!%p165_p2), %s694_s25, 7 }
   0xb   : > { %v808_v0 = vld [vmem:[%s1011_s1 + $0x78] sm:$0xff]   ;;  %v812_v4 = vld [vmem:[%s1011_s1 + $0x70] sm:$0xff]   ;;  %v816_v8 = vld [vmem:[%s1011_s1 + $0x68] sm:$0xff]   ;;  %s1016_s25 = smov (!%p192_p3, %s694_s25), 7 }
   0xc   : > { %v809_v1 = vld [vmem:[%s1011_s1 + $0xf8] sm:$0xff]   ;;  %744 = vmatprep.subr.bf16.mxu0 %v808_v0  ;;  %v813_v5 = vld [vmem:[%s1011_s1 + $0xf0] sm:$0xff]   ;;  %v817_v9 = vld [vmem:[%s1011_s1 + $0xe8] sm:$0xff]   ;;  %s743_s23 = sshll.u32 %s1016_s25, 4  ;;  %s698_s13 = sshll.u32 %s1016_s25, 3 }
   0xd   : > { %v810_v2 = vld [vmem:[%s1011_s1 + $0x38] sm:$0xff]   ;;  %772 = vmatprep.subr.bf16.mxu1 %v809_v1  ;;  %v814_v6 = vld [vmem:[%s1011_s1 + $0x30] sm:$0xff]   ;;  %v818_v10 = vld [vmem:[%s1011_s1 + $0x28] sm:$0xff]   ;;  %s196_s7 = scalar_lea.vmem %s1010_s0, %s743_s23  ;;  %s202_s20 = scalar_lea.vmem %s1014_s4, %s698_s13 }
   0xe   : > { %v811_v3 = vld [vmem:[%s1011_s1 + $0xb8] sm:$0xff]   ;;  %745 = vmatpush3.bf16.msra.mxu0 %v810_v2  ;;  %v815_v7 = vld [vmem:[%s1011_s1 + $0xb0] sm:$0xff]   ;;  %v819_v11 = vld [vmem:[%s1011_s1 + $0xa8] sm:$0xff]  }
   0xf   : > { %773 = vmatpush3.bf16.msra.mxu1 %v811_v3  ;;  %746 = vmatprep.subr.bf16.mxu0 %v812_v4  ;;  %v820_v12 = vld [vmem:[%s1011_s1 + $0x60] sm:$0xff]   ;;  %v824_v16 = vld [vmem:[%s1011_s1 + $0x58] sm:$0xff]   ;;  %v828_v20 = vld [vmem:[%s1011_s1 + $0x50] sm:$0xff]  }
  0x10   : > { %774 = vmatprep.subr.bf16.mxu1 %v813_v5  ;;  %v821_v13 = vld [vmem:[%s1011_s1 + $0xe0] sm:$0xff]   ;;  %v825_v17 = vld [vmem:[%s1011_s1 + $0xd8] sm:$0xff]   ;;  %v829_v21 = vld [vmem:[%s1011_s1 + $0xd0] sm:$0xff]  }
  0x11   : > { %v822_v14 = vld [vmem:[%s1011_s1 + $0x20] sm:$0xff]   ;;  %v826_v18 = vld [vmem:[%s1011_s1 + $0x18] sm:$0xff]   ;;  %v830_v22 = vld [vmem:[%s1011_s1 + $0x10] sm:$0xff]  }
  0x12   : > { %747 = vmatpush3.bf16.msra.mxu0 %v814_v6  ;;  %v823_v15 = vld [vmem:[%s1011_s1 + $0xa0] sm:$0xff]   ;;  %v827_v19 = vld [vmem:[%s1011_s1 + $0x98] sm:$0xff]   ;;  %v831_v23 = vld [vmem:[%s1011_s1 + $0x90] sm:$0xff]  }
  0x13   : > { %775 = vmatpush3.bf16.msra.mxu1 %v815_v7  ;;  %748 = vmatprep.subr.bf16.mxu0 %v816_v8  ;;  %v832_v24 = vld [vmem:[%s1011_s1 + $0x48] sm:$0xff]   ;;  %v836_v28 = vld [vmem:[%s1011_s1 + $0x40] sm:$0xff]  }
  0x14   : > { %776 = vmatprep.subr.bf16.mxu1 %v817_v9  ;;  %v833_v25 = vld [vmem:[%s1011_s1 + $0xc8] sm:$0xff]   ;;  %v837_v29 = vld [vmem:[%s1011_s1 + $0xc0] sm:$0xff]  }
  0x15   : > { %v834_v26 = vld [vmem:[%s1011_s1 + $0x8] sm:$0xff]   ;;  %v838_v30 = vld [vmem:[%s1011_s1] sm:$0xff]  }
  0x16   : > { %749 = vmatpush3.bf16.msra.mxu0 %v818_v10  ;;  %v835_v27 = vld [vmem:[%s1011_s1 + $0x88] sm:$0xff]   ;;  %v839_v31 = vld [vmem:[%s1011_s1 + $0x80] sm:$0xff]  }
  0x17   : > { %777 = vmatpush3.bf16.msra.mxu1 %v819_v11  ;;  %750 = vmatprep.subr.bf16.mxu0 %v820_v12  ;;  %v840_v32 = vld [vmem:[%s196_s7] ss:$16 sps:$4 sm:$0xff]   ;;  %v842_v33 = vld [vmem:[%s196_s7 + $0x4] ss:$16 sps:$4 sm:$0xff]   ;;  %v843_v34 = vld [vmem:[%s196_s7 + $0x8] ss:$16 sps:$4 sm:$0xff]  }
  0x18   : > { %778 = vmatprep.subr.bf16.mxu1 %v821_v13  ;;  %v845_v35 = vld [vmem:[%s196_s7 + $0xc] ss:$16 sps:$4 sm:$0xff]   ;;  %541 = vmatprep.mubr.bf16.mxu0 %v842_v33  ;;  %v846_v36 = vld [vmem:[%s196_s7 + $0x24] ss:$16 sps:$4 sm:$0xff]   ;;  %v850_v38 = vld [vmem:[%s196_s7 + $0x20] ss:$16 sps:$4 sm:$0xff]  }
  0x19   : > { %590 = vmatprep.mubr.bf16.mxu1 %v845_v35  ;;  %v848_v37 = vld [vmem:[%s196_s7 + $0x2c] ss:$16 sps:$4 sm:$0xff]   ;;  %v851_v39 = vld [vmem:[%s196_s7 + $0x28] ss:$16 sps:$4 sm:$0xff]   ;;  %v739_v47 = vld [vmem:[%s1012_s2] ss:$0 sm:$0xff] }
  0x1a   : > { %751 = vmatpush3.bf16.msra.mxu0 %v822_v14  ;;  %v740_v51 = vld [vmem:[%s1013_s3] ss:$0 sm:$0xff] }
  0x1b   : > { %779 = vmatpush3.bf16.msra.mxu1 %v823_v15  ;;  %752 = vmatprep.subr.bf16.mxu0 %v824_v16 }
  0x1c   : > { %780 = vmatprep.subr.bf16.mxu1 %v825_v17 }
  0x1e   : > { %753 = vmatpush3.bf16.msra.mxu0 %v826_v18 }
  0x1f   : > { %781 = vmatpush3.bf16.msra.mxu1 %v827_v19  ;;  %754 = vmatprep.subr.bf16.mxu0 %v828_v20 }
  0x20   : > { %782 = vmatprep.subr.bf16.mxu1 %v829_v21 }
  0x22   : > { %755 = vmatpush3.bf16.msra.mxu0 %v830_v22 }
  0x23   : > { %783 = vmatpush3.bf16.msra.mxu1 %v831_v23  ;;  %756 = vmatprep.subr.bf16.mxu0 %v832_v24 }
  0x24   : > { %784 = vmatprep.subr.bf16.mxu1 %v833_v25 }
  0x26   : > { %757 = vmatpush3.bf16.msra.mxu0 %v834_v26 }
  0x27   : > { %785 = vmatpush3.bf16.msra.mxu1 %v835_v27  ;;  %758 = vmatprep.subr.bf16.mxu0 %v836_v28 }
  0x28   : > { %786 = vmatprep.subr.bf16.mxu1 %v837_v29 }
  0x2a   : > { %759 = vmatpush3.bf16.msra.mxu0 %v838_v30 }
  0x2b   : > { %787 = vmatpush3.bf16.msra.mxu1 %v839_v31 }
  0x2d   : > { %542 = vmatmul.mubr.bf16.vlgmr.msra.gmra.mxu0 %v840_v32 }
  0x2e   : > { %591 = vmatmul.mubr.bf16.vlgmr.msra.gmra.mxu1 %v843_v34  ;;  %549 = vmatprep.mubr.bf16.mxu0 %v846_v36 }
  0x2f   : > { %598 = vmatprep.mubr.bf16.mxu1 %v848_v37 }
  0x35   : > { %550 = vmatmul.mubr.bf16.gmra.mxu0 %v850_v38 }
  0x36   : > { %599 = vmatmul.mubr.bf16.gmra.mxu1 %v851_v39 }
  0xed   : > { %v760_v40 = vpop.f32.mrf.mxu0 }
  0xee   : > { %v788_v41 = vpop.f32.mrf.mxu1 }
  0xef   : > { %v761_v42 = vpop.f32.mrf.mxu0 }
  0xf0   : > { %v762_v43 = vadd.f32 %v761_v42, %v760_v40  ;;  %v789_v44 = vpop.f32.mrf.mxu1 }
  0xf1   : > { %v790_v45 = vadd.f32 %v789_v44, %v788_v41  ;;  %v763_v46 = vpop.f32.mrf.mxu0 }
  0xf2   : > { %v791_v48 = vpop.f32.mrf.mxu1 }
  0xf3   : > { %v593_v49 = vadd.f32 %v790_v45, %v762_v43  ;;  %v764_v50 = vpop.f32.mrf.mxu0 }
  0xf4   : > { %v765_v52 = vadd.f32 %v764_v50, %v763_v46  ;;  %v792_v53 = vpop.f32.mrf.mxu1 }
  0xf5   : > { %v614_v54 = vmul.f32 %v739_v47, %v593_v49  ;;  %v793_v55 = vadd.f32 %v792_v53, %v791_v48  ;;  %v766_v56 = vpop.f32.mrf.mxu0 }
  0xf6   : > { %v794_v57 = vpop.f32.mrf.mxu1 }
  0xf7   : > { %v625_v58 = vadd.f32 %v740_v51, %v614_v54  ;;  %v596_v59 = vadd.f32 %v793_v55, %v765_v52  ;;  %v767_v60 = vpop.f32.mrf.mxu0 }
  0xf8   : > { %v768_v61 = vadd.f32 %v767_v60, %v766_v56  ;;  %v795_v62 = vpop.f32.mrf.mxu1 }
  0xf9   : > { %629 = vst [vmem:[%s202_s20] sm:$0xff] %v625_v58  ;;  %v615_v63 = vmul.f32 %v739_v47, %v596_v59  ;;  %v796_v0 = vadd.f32 %v795_v62, %v794_v57  ;;  %v769_v1 = vpop.f32.mrf.mxu0 }
  0xfa   : > { %v797_v2 = vpop.f32.mrf.mxu1 }
  0xfb   : > { %v626_v3 = vadd.f32 %v740_v51, %v615_v63  ;;  %v601_v4 = vadd.f32 %v796_v0, %v768_v61  ;;  %v770_v5 = vpop.f32.mrf.mxu0 }
  0xfc   : > { %v771_v6 = vadd.f32 %v770_v5, %v769_v1  ;;  %v798_v7 = vpop.f32.mrf.mxu1 }
  0xfd   : > { %630 = vst [vmem:[%s202_s20 + $0x8] sm:$0xff] %v626_v3  ;;  %v616_v8 = vmul.f32 %v739_v47, %v601_v4  ;;  %v799_v9 = vadd.f32 %v798_v7, %v797_v2 }
  0xff   : > { %v627_v10 = vadd.f32 %v740_v51, %v616_v8  ;;  %v604_v11 = vadd.f32 %v799_v9, %v771_v6 }
 0x101   : > { %631 = vst [vmem:[%s202_s20 + $0x10] sm:$0xff] %v627_v10  ;;  %v617_v12 = vmul.f32 %v739_v47, %v604_v11 }
 0x103   : > { %v628_v13 = vadd.f32 %v740_v51, %v617_v12 }
 0x105   : > { %632 = vst [vmem:[%s202_s20 + $0x18] sm:$0xff] %v628_v13 }
 0x106 PF: > { %s14_s15 = sadd.s32 1, %s858_s15  }
 0x107   : > { %p11_p4 = scmp.ge.s32.totalorder %s14_s15, 4  }
 0x109   :  { %13 = sbr.rel (!%p11_p4) target bundleno = 1 (0x1), region = 66 }

// kernel: cpd_d19_forward.137
= control target key start
LH: loop header
LB: loop body
LE: loop exit
PB: predicated region body
PF: predicated region fallthrough
CT: control target
= control target key end

     0   :  { %s6635_s15 = smov 0   ;;  %s8751_s0 = inlined_call_operand.vmem [shape: bf16[64,2304], index: 0, kind: input, shape index: {}]   ;;  %s8752_s1 = inlined_call_operand.vmem [shape: bf16[2304,512], index: 1, kind: input, shape index: {}]   ;;  %s8753_s2 = inlined_call_operand.vmem [shape: f32[1,512], index: 2, kind: input, shape index: {}]   ;;  %s8754_s3 = inlined_call_operand.vmem [shape: f32[1,512], index: 3, kind: input, shape index: {}]   ;;  %s8755_s4 = inlined_call_operand.vmem [shape: f32[64,512], index: 4, kind: output, shape index: {}]  }
   0x1 LB: > { %s5014_s16 = sadd.s32 4294967295, %s6608_s15   ;;  %p5018_p0 = scmp.ge.s32.totalorder %s6608_s15, 1  ;;  %s6608_s15 = sphi %s6635_s15, %s14_s15  }
   0x2   : > { %p164_p1 = scmp.lt.s32.totalorder %s6608_s15, 3 }
   0x4   : > { %p165_p2 = pnand %p5018_p0, %p164_p1 }
   0x6   : > { %168 = sbr.rel (%p165_p2) target bundleno = 808 (0x328), region = 36 }
   0xb   : > { %v5648_v0 = vld [vmem:[%s8752_s1 + $0xe4] ss:$16 sps:$4 sm:$0xff]   ;;  %v5652_v2 = vld [vmem:[%s8752_s1 + $0xe0] ss:$16 sps:$4 sm:$0xff]   ;;  %s5019_s29 = sshll.u32 %s5014_s16, 2 }
   0xc   : > { %v5650_v1 = vld [vmem:[%s8752_s1 + $0x2e4] ss:$16 sps:$4 sm:$0xff]   ;;  %3878 = vmatprep.subr.bf16.mxu0 %v5648_v0  ;;  %v5653_v3 = vld [vmem:[%s8752_s1 + $0x2e0] ss:$16 sps:$4 sm:$0xff]   ;;  %p193_p3 = scmp.lt.s32.totalorder %s5019_s29, 7 }
   0xd   : > { %3931 = vmatprep.subr.bf16.mxu1 %v5650_v1  ;;  %v5654_v4 = vld [vmem:[%s8752_s1 + $0xc4] ss:$16 sps:$4 sm:$0xff]   ;;  %3879 = vmatpush1.bf16.msra.mxu0 %v5652_v2  ;;  %v5658_v6 = vld [vmem:[%s8752_s1 + $0xc0] ss:$16 sps:$4 sm:$0xff]  }
   0xe   : > { %3932 = vmatpush1.bf16.msra.mxu1 %v5653_v3  ;;  %v5656_v5 = vld [vmem:[%s8752_s1 + $0x2c4] ss:$16 sps:$4 sm:$0xff]   ;;  %3880 = vmatprep.subr.bf16.mxu0 %v5654_v4  ;;  %v5659_v7 = vld [vmem:[%s8752_s1 + $0x2c0] ss:$16 sps:$4 sm:$0xff]   ;;  %s8769_s29 = smov (!%p193_p3, %s5019_s29), 7 }
   0xf   : > { %3933 = vmatprep.subr.bf16.mxu1 %v5656_v5  ;;  %v5660_v8 = vld [vmem:[%s8752_s1 + $0xa4] ss:$16 sps:$4 sm:$0xff]   ;;  %v5664_v10 = vld [vmem:[%s8752_s1 + $0xa0] ss:$16 sps:$4 sm:$0xff]   ;;  %s5639_s27 = smul.u32 72, %s8769_s29  ;;  %s5638_s5 = sshll.u32 %s8769_s29, 5 }
  0x10   : > { %v5662_v9 = vld [vmem:[%s8752_s1 + $0x2a4] ss:$16 sps:$4 sm:$0xff]   ;;  %v5665_v11 = vld [vmem:[%s8752_s1 + $0x2a0] ss:$16 sps:$4 sm:$0xff]   ;;  %s8508_s17 = scalar_lea.vmem %s8755_s4, %s5638_s5 }
  0x11   : > { %3881 = vmatpush1.bf16.msra.mxu0 %v5658_v6  ;;  %v5666_v12 = vld [vmem:[%s8752_s1 + $0x84] ss:$16 sps:$4 sm:$0xff]   ;;  %v5670_v14 = vld [vmem:[%s8752_s1 + $0x80] ss:$16 sps:$4 sm:$0xff]   ;;  %s6786_s12 = scalar_lea.vmem %s8751_s0, %s5639_s27 }
  0x12   : > { %3934 = vmatpush1.bf16.msra.mxu1 %v5659_v7  ;;  %3882 = vmatprep.subr.bf16.mxu0 %v5660_v8  ;;  %v5668_v13 = vld [vmem:[%s8752_s1 + $0x284] ss:$16 sps:$4 sm:$0xff]   ;;  %v5671_v15 = vld [vmem:[%s8752_s1 + $0x280] ss:$16 sps:$4 sm:$0xff]  }
  0x13   : > { %3935 = vmatprep.subr.bf16.mxu1 %v5662_v9  ;;  %v5672_v16 = vld [vmem:[%s8752_s1 + $0x64] ss:$16 sps:$4 sm:$0xff]   ;;  %v5676_v18 = vld [vmem:[%s8752_s1 + $0x60] ss:$16 sps:$4 sm:$0xff]  }
  0x14   : > { %v5674_v17 = vld [vmem:[%s8752_s1 + $0x264] ss:$16 sps:$4 sm:$0xff]   ;;  %v5677_v19 = vld [vmem:[%s8752_s1 + $0x260] ss:$16 sps:$4 sm:$0xff]  }
  0x15   : > { %3883 = vmatpush1.bf16.msra.mxu0 %v5664_v10  ;;  %v5678_v20 = vld [vmem:[%s8752_s1 + $0x44] ss:$16 sps:$4 sm:$0xff]   ;;  %v5682_v22 = vld [vmem:[%s8752_s1 + $0x40] ss:$16 sps:$4 sm:$0xff]  }
  0x16   : > { %3936 = vmatpush1.bf16.msra.mxu1 %v5665_v11  ;;  %3884 = vmatprep.subr.bf16.mxu0 %v5666_v12  ;;  %v5680_v21 = vld [vmem:[%s8752_s1 + $0x244] ss:$16 sps:$4 sm:$0xff]   ;;  %v5683_v23 = vld [vmem:[%s8752_s1 + $0x240] ss:$16 sps:$4 sm:$0xff]  }
  0x17   : > { %3937 = vmatprep.subr.bf16.mxu1 %v5668_v13  ;;  %v5684_v24 = vld [vmem:[%s8752_s1 + $0x24] ss:$16 sps:$4 sm:$0xff]   ;;  %v5688_v26 = vld [vmem:[%s8752_s1 + $0x20] ss:$16 sps:$4 sm:$0xff]  }
  0x18   : > { %v5686_v25 = vld [vmem:[%s8752_s1 + $0x224] ss:$16 sps:$4 sm:$0xff]   ;;  %v5689_v27 = vld [vmem:[%s8752_s1 + $0x220] ss:$16 sps:$4 sm:$0xff]  }
  0x19   : > { %3885 = vmatpush1.bf16.msra.mxu0 %v5670_v14  ;;  %v5690_v28 = vld [vmem:[%s8752_s1 + $0x4] ss:$16 sps:$4 sm:$0xff]   ;;  %v5694_v30 = vld [vmem:[%s8752_s1] ss:$16 sps:$4 sm:$0xff]  }
  0x1a   : > { %3938 = vmatpush1.bf16.msra.mxu1 %v5671_v15  ;;  %3886 = vmatprep.subr.bf16.mxu0 %v5672_v16  ;;  %v5692_v29 = vld [vmem:[%s8752_s1 + $0x204] ss:$16 sps:$4 sm:$0xff]   ;;  %v5695_v31 = vld [vmem:[%s8752_s1 + $0x200] ss:$16 sps:$4 sm:$0xff]  }
  0x1b   : > { %3939 = vmatprep.subr.bf16.mxu1 %v5674_v17  ;;  %v5696_v32 = vld [vmem:[%s8752_s1 + $0x1e4] ss:$16 sps:$4 sm:$0xff]   ;;  %v5700_v34 = vld [vmem:[%s8752_s1 + $0x1e0] ss:$16 sps:$4 sm:$0xff]  }
  0x1c   : > { %v5698_v33 = vld [vmem:[%s8752_s1 + $0x3e4] ss:$16 sps:$4 sm:$0xff]   ;;  %v5701_v35 = vld [vmem:[%s8752_s1 + $0x3e0] ss:$16 sps:$4 sm:$0xff]  }
  0x1d   : > { %3887 = vmatpush1.bf16.msra.mxu0 %v5676_v18  ;;  %v5702_v36 = vld [vmem:[%s8752_s1 + $0x1c4] ss:$16 sps:$4 sm:$0xff]   ;;  %v5706_v38 = vld [vmem:[%s8752_s1 + $0x1c0] ss:$16 sps:$4 sm:$0xff]  }
  0x1e   : > { %3940 = vmatpush1.bf16.msra.mxu1 %v5677_v19  ;;  %3888 = vmatprep.subr.bf16.mxu0 %v5678_v20  ;;  %v5704_v37 = vld [vmem:[%s8752_s1 + $0x3c4] ss:$16 sps:$4 sm:$0xff]   ;;  %v5707_v39 = vld [vmem:[%s8752_s1 + $0x3c0] ss:$16 sps:$4 sm:$0xff]  }
  0x1f   : > { %3941 = vmatprep.subr.bf16.mxu1 %v5680_v21  ;;  %v5708_v40 = vld [vmem:[%s8752_s1 + $0x1a4] ss:$16 sps:$4 sm:$0xff]   ;;  %v5712_v42 = vld [vmem:[%s8752_s1 + $0x1a0] ss:$16 sps:$4 sm:$0xff]  }
  0x20   : > { %v5710_v41 = vld [vmem:[%s8752_s1 + $0x3a4] ss:$16 sps:$4 sm:$0xff]   ;;  %v5713_v43 = vld [vmem:[%s8752_s1 + $0x3a0] ss:$16 sps:$4 sm:$0xff]  }
  0x21   : > { %3889 = vmatpush1.bf16.msra.mxu0 %v5682_v22  ;;  %v5714_v44 = vld [vmem:[%s8752_s1 + $0x184] ss:$16 sps:$4 sm:$0xff]   ;;  %v5718_v46 = vld [vmem:[%s8752_s1 + $0x180] ss:$16 sps:$4 sm:$0xff]  }
  0x22   : > { %3942 = vmatpush1.bf16.msra.mxu1 %v5683_v23  ;;  %3890 = vmatprep.subr.bf16.mxu0 %v5684_v24  ;;  %v5716_v45 = vld [vmem:[%s8752_s1 + $0x384] ss:$16 sps:$4 sm:$0xff]   ;;  %v5719_v47 = vld [vmem:[%s8752_s1 + $0x380] ss:$16 sps:$4 sm:$0xff]  }
  0x23   : > { %3943 = vmatprep.subr.bf16.mxu1 %v5686_v25  ;;  %v5720_v48 = vld [vmem:[%s8752_s1 + $0x164] ss:$16 sps:$4 sm:$0xff]   ;;  %v5724_v52 = vld [vmem:[%s8752_s1 + $0x160] ss:$16 sps:$4 sm:$0xff]  }
  0x24   : > { %v5746_v49 = vld [vmem:[%s6786_s12 + $0x4] ss:$72 sps:$4 sm:$0xff]   ;;  %v5725_v53 = vld [vmem:[%s8752_s1 + $0x360] ss:$16 sps:$4 sm:$0xff]  }
  0x25   : > { %3891 = vmatpush1.bf16.msra.mxu0 %v5688_v26  ;;  %v5722_v50 = vld [vmem:[%s8752_s1 + $0x364] ss:$16 sps:$4 sm:$0xff]   ;;  %3910 = vmatprep.mubr.bf16.mxu0 %v5746_v49  ;;  %v5730_v56 = vld [vmem:[%s8752_s1 + $0x140] ss:$16 sps:$4 sm:$0xff]  }
  0x26   : > { %3944 = vmatpush1.bf16.msra.mxu1 %v5689_v27  ;;  %3892 = vmatprep.subr.bf16.mxu0 %v5690_v28  ;;  %v5749_v51 = vld [vmem:[%s6786_s12 + $0xc] ss:$72 sps:$4 sm:$0xff]   ;;  %v5731_v57 = vld [vmem:[%s8752_s1 + $0x340] ss:$16 sps:$4 sm:$0xff]   ;;  %v5830_v27 = vld [vmem:[%s6786_s12 + $0x9c] ss:$72 sps:$4 sm:$0xff]  }
  0x27   : > { %3945 = vmatprep.subr.bf16.mxu1 %v5692_v29  ;;  %3963 = vmatprep.mubr.bf16.mxu1 %v5749_v51  ;;  %v5726_v54 = vld [vmem:[%s8752_s1 + $0x144] ss:$16 sps:$4 sm:$0xff]   ;;  %v5736_v60 = vld [vmem:[%s8752_s1 + $0x120] ss:$16 sps:$4 sm:$0xff]  }
  0x28   : > { %v5728_v55 = vld [vmem:[%s8752_s1 + $0x344] ss:$16 sps:$4 sm:$0xff]   ;;  %v5737_v61 = vld [vmem:[%s8752_s1 + $0x320] ss:$16 sps:$4 sm:$0xff]  }
  0x29   : > { %3893 = vmatpush1.bf16.msra.mxu0 %v5694_v30  ;;  %v5732_v58 = vld [vmem:[%s8752_s1 + $0x124] ss:$16 sps:$4 sm:$0xff]   ;;  %v5742_v0 = vld [vmem:[%s8752_s1 + $0x100] ss:$16 sps:$4 sm:$0xff]  }
  0x2a   : > { %3946 = vmatpush1.bf16.msra.mxu1 %v5695_v31  ;;  %3894 = vmatprep.subr.bf16.mxu0 %v5696_v32  ;;  %v5734_v59 = vld [vmem:[%s8752_s1 + $0x324] ss:$16 sps:$4 sm:$0xff]   ;;  %v5743_v1 = vld [vmem:[%s8752_s1 + $0x300] ss:$16 sps:$4 sm:$0xff]  }
  0x2b   : > { %3947 = vmatprep.subr.bf16.mxu1 %v5698_v33  ;;  %v5738_v62 = vld [vmem:[%s8752_s1 + $0x104] ss:$16 sps:$4 sm:$0xff]   ;;  %v5744_v4 = vld [vmem:[%s6786_s12] ss:$72 sps:$4 sm:$0xff]   ;;  %v5832_v28 = vld [vmem:[%s6786_s12 + $0x90] ss:$72 sps:$4 sm:$0xff]  }
  0x2c   : > { %v5740_v63 = vld [vmem:[%s8752_s1 + $0x304] ss:$16 sps:$4 sm:$0xff]   ;;  %v5747_v5 = vld [vmem:[%s6786_s12 + $0x8] ss:$72 sps:$4 sm:$0xff]   ;;  %v5833_v29 = vld [vmem:[%s6786_s12 + $0x98] ss:$72 sps:$4 sm:$0xff]  }
  0x2d   : > { %3895 = vmatpush2.bf16.msra.mxu0 %v5700_v34  ;;  %v5752_v2 = vld [vmem:[%s8752_s1 + $0x4e4] ss:$16 sps:$4 sm:$0xff]   ;;  %v5750_v6 = vld [vmem:[%s8752_s1 + $0x4e0] ss:$16 sps:$4 sm:$0xff]  }
  0x2e   : > { %3948 = vmatpush2.bf16.msra.mxu1 %v5701_v35  ;;  %3896 = vmatprep.subr.bf16.mxu0 %v5702_v36  ;;  %v5755_v3 = vld [vmem:[%s8752_s1 + $0x6e4] ss:$16 sps:$4 sm:$0xff]   ;;  %v5753_v7 = vld [vmem:[%s8752_s1 + $0x6e0] ss:$16 sps:$4 sm:$0xff]  }
  0x2f   : > { %3949 = vmatprep.subr.bf16.mxu1 %v5704_v37  ;;  %v5758_v8 = vld [vmem:[%s8752_s1 + $0x4c4] ss:$16 sps:$4 sm:$0xff]   ;;  %v5756_v10 = vld [vmem:[%s8752_s1 + $0x4c0] ss:$16 sps:$4 sm:$0xff]  }
  0x30   : > { %v5761_v9 = vld [vmem:[%s8752_s1 + $0x6c4] ss:$16 sps:$4 sm:$0xff]   ;;  %v5759_v11 = vld [vmem:[%s8752_s1 + $0x6c0] ss:$16 sps:$4 sm:$0xff]  }
  0x31   : > { %3897 = vmatpush2.bf16.msra.mxu0 %v5706_v38  ;;  %v5764_v12 = vld [vmem:[%s8752_s1 + $0x4a4] ss:$16 sps:$4 sm:$0xff]   ;;  %v5762_v14 = vld [vmem:[%s8752_s1 + $0x4a0] ss:$16 sps:$4 sm:$0xff]  }
  0x32   : > { %3950 = vmatpush2.bf16.msra.mxu1 %v5707_v39  ;;  %3898 = vmatprep.subr.bf16.mxu0 %v5708_v40  ;;  %v5767_v13 = vld [vmem:[%s8752_s1 + $0x6a4] ss:$16 sps:$4 sm:$0xff]   ;;  %v5765_v15 = vld [vmem:[%s8752_s1 + $0x6a0] ss:$16 sps:$4 sm:$0xff]  }
  0x33   : > { %3951 = vmatprep.subr.bf16.mxu1 %v5710_v41  ;;  %v5770_v16 = vld [vmem:[%s8752_s1 + $0x484] ss:$16 sps:$4 sm:$0xff]   ;;  %v5768_v18 = vld [vmem:[%s8752_s1 + $0x480] ss:$16 sps:$4 sm:$0xff]  }
  0x34   : > { %v5773_v17 = vld [vmem:[%s8752_s1 + $0x684] ss:$16 sps:$4 sm:$0xff]   ;;  %v5771_v19 = vld [vmem:[%s8752_s1 + $0x680] ss:$16 sps:$4 sm:$0xff]  }
  0x35   : > { %3899 = vmatpush2.bf16.msra.mxu0 %v5712_v42  ;;  %v5776_v20 = vld [vmem:[%s8752_s1 + $0x464] ss:$16 sps:$4 sm:$0xff]   ;;  %v5774_v22 = vld [vmem:[%s8752_s1 + $0x460] ss:$16 sps:$4 sm:$0xff]  }
  0x36   : > { %3952 = vmatpush2.bf16.msra.mxu1 %v5713_v43  ;;  %3900 = vmatprep.subr.bf16.mxu0 %v5714_v44  ;;  %v5779_v21 = vld [vmem:[%s8752_s1 + $0x664] ss:$16 sps:$4 sm:$0xff]   ;;  %v5777_v23 = vld [vmem:[%s8752_s1 + $0x660] ss:$16 sps:$4 sm:$0xff]  }
  0x37   : > { %3953 = vmatprep.subr.bf16.mxu1 %v5716_v45  ;;  %v5782_v24 = vld [vmem:[%s8752_s1 + $0x444] ss:$16 sps:$4 sm:$0xff]   ;;  %v5780_v30 = vld [vmem:[%s8752_s1 + $0x440] ss:$16 sps:$4 sm:$0xff]  }
  0x38   : > { %v5785_v25 = vld [vmem:[%s8752_s1 + $0x644] ss:$16 sps:$4 sm:$0xff]   ;;  %v5783_v31 = vld [vmem:[%s8752_s1 + $0x640] ss:$16 sps:$4 sm:$0xff]  }
  0x39   : > { %3901 = vmatpush2.bf16.msra.mxu0 %v5718_v46  ;;  %v5828_v26 = vld [vmem:[%s6786_s12 + $0x94] ss:$72 sps:$4 sm:$0xff]   ;;  %v5786_v34 = vld [vmem:[%s8752_s1 + $0x420] ss:$16 sps:$4 sm:$0xff]  }
  0x3a   : > { %3954 = vmatpush2.bf16.msra.mxu1 %v5719_v47  ;;  %3902 = vmatprep.subr.bf16.mxu0 %v5720_v48  ;;  %v5788_v32 = vld [vmem:[%s8752_s1 + $0x424] ss:$16 sps:$4 sm:$0xff]   ;;  %v5789_v35 = vld [vmem:[%s8752_s1 + $0x620] ss:$16 sps:$4 sm:$0xff]  }
  0x3b   : > { %3955 = vmatprep.subr.bf16.mxu1 %v5722_v50  ;;  %v5791_v33 = vld [vmem:[%s8752_s1 + $0x624] ss:$16 sps:$4 sm:$0xff]   ;;  %v5792_v38 = vld [vmem:[%s8752_s1 + $0x400] ss:$16 sps:$4 sm:$0xff]  }
  0x3c   : > { %v5794_v36 = vld [vmem:[%s8752_s1 + $0x404] ss:$16 sps:$4 sm:$0xff]   ;;  %v5795_v39 = vld [vmem:[%s8752_s1 + $0x600] ss:$16 sps:$4 sm:$0xff]  }
  0x3d   : > { %3903 = vmatpush2.bf16.msra.mxu0 %v5724_v52  ;;  %v5797_v37 = vld [vmem:[%s8752_s1 + $0x604] ss:$16 sps:$4 sm:$0xff]   ;;  %v5798_v44 = vld [vmem:[%s8752_s1 + $0x5e0] ss:$16 sps:$4 sm:$0xff]  }
  0x3e   : > { %3956 = vmatpush2.bf16.msra.mxu1 %v5725_v53  ;;  %3904 = vmatprep.subr.bf16.mxu0 %v5726_v54  ;;  %v5800_v40 = vld [vmem:[%s8752_s1 + $0x5e4] ss:$16 sps:$4 sm:$0xff]   ;;  %v5801_v45 = vld [vmem:[%s8752_s1 + $0x7e0] ss:$16 sps:$4 sm:$0xff]  }
  0x3f   : > { %3957 = vmatprep.subr.bf16.mxu1 %v5728_v55  ;;  %v5854_v41 = vld [vmem:[%s6786_s12 + $0x14] ss:$72 sps:$4 sm:$0xff]   ;;  %v5804_v48 = vld [vmem:[%s8752_s1 + $0x5c0] ss:$16 sps:$4 sm:$0xff]  }
  0x40   : > { %v5803_v42 = vld [vmem:[%s8752_s1 + $0x7e4] ss:$16 sps:$4 sm:$0xff]   ;;  %v5807_v49 = vld [vmem:[%s8752_s1 + $0x7c0] ss:$16 sps:$4 sm:$0xff]  }
  0x41   : > { %3905 = vmatpush2.bf16.msra.mxu0 %v5730_v56  ;;  %v5857_v43 = vld [vmem:[%s6786_s12 + $0x1c] ss:$72 sps:$4 sm:$0xff]   ;;  %v5810_v52 = vld [vmem:[%s8752_s1 + $0x5a0] ss:$16 sps:$4 sm:$0xff]  }
  0x42   : > { %3958 = vmatpush2.bf16.msra.mxu1 %v5731_v57  ;;  %3906 = vmatprep.subr.bf16.mxu0 %v5732_v58  ;;  %v5806_v46 = vld [vmem:[%s8752_s1 + $0x5c4] ss:$16 sps:$4 sm:$0xff]   ;;  %v5813_v53 = vld [vmem:[%s8752_s1 + $0x7a0] ss:$16 sps:$4 sm:$0xff]  }
  0x43   : > { %3959 = vmatprep.subr.bf16.mxu1 %v5734_v59  ;;  %v5809_v47 = vld [vmem:[%s8752_s1 + $0x7c4] ss:$16 sps:$4 sm:$0xff]   ;;  %v5816_v56 = vld [vmem:[%s8752_s1 + $0x580] ss:$16 sps:$4 sm:$0xff]  }
  0x44   : > { %v5812_v50 = vld [vmem:[%s8752_s1 + $0x5a4] ss:$16 sps:$4 sm:$0xff]   ;;  %v5819_v57 = vld [vmem:[%s8752_s1 + $0x780] ss:$16 sps:$4 sm:$0xff]  }
  0x45   : > { %3907 = vmatpush2.bf16.msra.mxu0 %v5736_v60  ;;  %v5815_v51 = vld [vmem:[%s8752_s1 + $0x7a4] ss:$16 sps:$4 sm:$0xff]   ;;  %v5822_v60 = vld [vmem:[%s8752_s1 + $0x560] ss:$16 sps:$4 sm:$0xff]  }
  0x46   : > { %3960 = vmatpush2.bf16.msra.mxu1 %v5737_v61  ;;  %3908 = vmatprep.subr.bf16.mxu0 %v5738_v62  ;;  %v5818_v54 = vld [vmem:[%s8752_s1 + $0x584] ss:$16 sps:$4 sm:$0xff]   ;;  %v5825_v61 = vld [vmem:[%s8752_s1 + $0x760] ss:$16 sps:$4 sm:$0xff]  }
  0x47   : > { %3961 = vmatprep.subr.bf16.mxu1 %v5740_v63  ;;  %v5821_v55 = vld [vmem:[%s8752_s1 + $0x784] ss:$16 sps:$4 sm:$0xff]  }
  0x48   : > { %v5824_v58 = vld [vmem:[%s8752_s1 + $0x564] ss:$16 sps:$4 sm:$0xff]  }
  0x49   : > { %3909 = vmatpush2.bf16.msra.mxu0 %v5742_v0  ;;  %v5827_v59 = vld [vmem:[%s8752_s1 + $0x764] ss:$16 sps:$4 sm:$0xff]   ;;  %v5834_v0 = vld [vmem:[%s8752_s1 + $0x540] ss:$16 sps:$4 sm:$0xff]  }
  0x4a   : > { %3962 = vmatpush2.bf16.msra.mxu1 %v5743_v1  ;;  %3984 = vmatprep.subr.bf16.mxu0 %v5752_v2  ;;  %v5836_v62 = vld [vmem:[%s8752_s1 + $0x544] ss:$16 sps:$4 sm:$0xff]   ;;  %v5837_v1 = vld [vmem:[%s8752_s1 + $0x740] ss:$16 sps:$4 sm:$0xff]  }
  0x4b   : > { %4037 = vmatprep.subr.bf16.mxu1 %v5755_v3  ;;  %v5839_v63 = vld [vmem:[%s8752_s1 + $0x744] ss:$16 sps:$4 sm:$0xff]  }
  0x4c   : > { %3911 = vmatmul.mubr.bf16.vlgmr.msra.gmra.mxu0 %v5744_v4  ;;  %v5842_v2 = vld [vmem:[%s8752_s1 + $0x524] ss:$16 sps:$4 sm:$0xff]   ;;  %v5840_v4 = vld [vmem:[%s8752_s1 + $0x520] ss:$16 sps:$4 sm:$0xff]  }
  0x4d   : > { %3964 = vmatmul.mubr.bf16.vlgmr.msra.gmra.mxu1 %v5747_v5  ;;  %3985 = vmatpush1.bf16.msra.mxu0 %v5750_v6  ;;  %v5845_v3 = vld [vmem:[%s8752_s1 + $0x724] ss:$16 sps:$4 sm:$0xff]   ;;  %v5843_v5 = vld [vmem:[%s8752_s1 + $0x720] ss:$16 sps:$4 sm:$0xff]  }
  0x4e   : > { %4038 = vmatpush1.bf16.msra.mxu1 %v5753_v7  ;;  %3986 = vmatprep.subr.bf16.mxu0 %v5758_v8  ;;  %v5848_v6 = vld [vmem:[%s8752_s1 + $0x504] ss:$16 sps:$4 sm:$0xff]   ;;  %v5846_v8 = vld [vmem:[%s8752_s1 + $0x500] ss:$16 sps:$4 sm:$0xff]  }
  0x4f   : > { %4039 = vmatprep.subr.bf16.mxu1 %v5761_v9  ;;  %3920 = vmatprep.mubr.bf16.mxu0 %v5828_v26  ;;  %v5851_v7 = vld [vmem:[%s8752_s1 + $0x704] ss:$16 sps:$4 sm:$0xff]   ;;  %v5849_v9 = vld [vmem:[%s8752_s1 + $0x700] ss:$16 sps:$4 sm:$0xff]  }
  0x50   : > { %3973 = vmatprep.mubr.bf16.mxu1 %v5830_v27  ;;  %v5876_v26 = vld [vmem:[%s8752_s1 + $0xaa0] ss:$16 sps:$4 sm:$0xff]  }
  0x51   : > { %3987 = vmatpush1.bf16.msra.mxu0 %v5756_v10  ;;  %v5860_v10 = vld [vmem:[%s8752_s1 + $0x8e4] ss:$16 sps:$4 sm:$0xff]   ;;  %v5881_v27 = vld [vmem:[%s6786_s12 + $0xa8] ss:$72 sps:$4 sm:$0xff]  }
  0x52   : > { %4040 = vmatpush1.bf16.msra.mxu1 %v5759_v11  ;;  %3988 = vmatprep.subr.bf16.mxu0 %v5764_v12  ;;  %v5863_v11 = vld [vmem:[%s8752_s1 + $0xae4] ss:$16 sps:$4 sm:$0xff]   ;;  %v5852_v12 = vld [vmem:[%s6786_s12 + $0x10] ss:$72 sps:$4 sm:$0xff]  }
  0x53   : > { %4041 = vmatprep.subr.bf16.mxu1 %v5767_v13  ;;  %v5855_v13 = vld [vmem:[%s6786_s12 + $0x18] ss:$72 sps:$4 sm:$0xff]  }
  0x54   : > { %3921 = vmatmul.mubr.bf16.gmra.mxu0 %v5832_v28  ;;  %v5884_v28 = vld [vmem:[%s8752_s1 + $0x884] ss:$16 sps:$4 sm:$0xff]  }
  0x55   : > { %3989 = vmatpush1.bf16.msra.mxu0 %v5762_v14  ;;  %3974 = vmatmul.mubr.bf16.gmra.mxu1 %v5833_v29  ;;  %v5858_v14 = vld [vmem:[%s8752_s1 + $0x8e0] ss:$16 sps:$4 sm:$0xff]   ;;  %v5887_v29 = vld [vmem:[%s8752_s1 + $0xa84] ss:$16 sps:$4 sm:$0xff]  }
  0x56   : > { %4042 = vmatpush1.bf16.msra.mxu1 %v5765_v15  ;;  %3990 = vmatprep.subr.bf16.mxu0 %v5770_v16  ;;  %v5861_v15 = vld [vmem:[%s8752_s1 + $0xae0] ss:$16 sps:$4 sm:$0xff]   ;;  %v5866_v16 = vld [vmem:[%s8752_s1 + $0x8c4] ss:$16 sps:$4 sm:$0xff]  }
  0x57   : > { %4043 = vmatprep.subr.bf16.mxu1 %v5773_v17  ;;  %4016 = vmatprep.mubr.bf16.mxu0 %v5854_v41  ;;  %v5869_v17 = vld [vmem:[%s8752_s1 + $0xac4] ss:$16 sps:$4 sm:$0xff]   ;;  %v5897_v41 = vld [vmem:[%s8752_s1 + $0xa40] ss:$16 sps:$4 sm:$0xff]  }
  0x58   : > { %4069 = vmatprep.mubr.bf16.mxu1 %v5857_v43  ;;  %v5905_v43 = vld [vmem:[%s8752_s1 + $0xa24] ss:$16 sps:$4 sm:$0xff]  }
  0x59   : > { %3991 = vmatpush1.bf16.msra.mxu0 %v5768_v18  ;;  %v5870_v18 = vld [vmem:[%s6786_s12 + $0xa4] ss:$72 sps:$4 sm:$0xff]  }
  0x5a   : > { %4044 = vmatpush1.bf16.msra.mxu1 %v5771_v19  ;;  %3992 = vmatprep.subr.bf16.mxu0 %v5776_v20  ;;  %v5879_v19 = vld [vmem:[%s6786_s12 + $0xac] ss:$72 sps:$4 sm:$0xff]   ;;  %v5864_v20 = vld [vmem:[%s8752_s1 + $0x8c0] ss:$16 sps:$4 sm:$0xff]  }
  0x5b   : > { %4045 = vmatprep.subr.bf16.mxu1 %v5779_v21  ;;  %v5867_v21 = vld [vmem:[%s8752_s1 + $0xac0] ss:$16 sps:$4 sm:$0xff]  }
  0x5d   : > { %3993 = vmatpush1.bf16.msra.mxu0 %v5774_v22  ;;  %v5875_v22 = vld [vmem:[%s8752_s1 + $0x8a4] ss:$16 sps:$4 sm:$0xff]  }
  0x5e   : > { %4046 = vmatpush1.bf16.msra.mxu1 %v5777_v23  ;;  %3994 = vmatprep.subr.bf16.mxu0 %v5782_v24  ;;  %v5878_v23 = vld [vmem:[%s8752_s1 + $0xaa4] ss:$16 sps:$4 sm:$0xff]   ;;  %v5872_v24 = vld [vmem:[%s6786_s12 + $0xa0] ss:$72 sps:$4 sm:$0xff]  }
  0x5f   : > { %4047 = vmatprep.subr.bf16.mxu1 %v5785_v25  ;;  %v5873_v25 = vld [vmem:[%s8752_s1 + $0x8a0] ss:$16 sps:$4 sm:$0xff]  }
  0x61   : > { %3995 = vmatpush1.bf16.msra.mxu0 %v5780_v30  ;;  %v5882_v30 = vld [vmem:[%s8752_s1 + $0x880] ss:$16 sps:$4 sm:$0xff]  }
  0x62   : > { %4048 = vmatpush1.bf16.msra.mxu1 %v5783_v31  ;;  %3996 = vmatprep.subr.bf16.mxu0 %v5788_v32  ;;  %v5885_v31 = vld [vmem:[%s8752_s1 + $0xa80] ss:$16 sps:$4 sm:$0xff]   ;;  %v5890_v32 = vld [vmem:[%s8752_s1 + $0x864] ss:$16 sps:$4 sm:$0xff]  }
  0x63   : > { %4049 = vmatprep.subr.bf16.mxu1 %v5791_v33  ;;  %v5962_v33 = vld [vmem:[%s6786_s12 + $0x24] ss:$72 sps:$4 sm:$0xff]  }
  0x65   : > { %3997 = vmatpush1.bf16.msra.mxu0 %v5786_v34  ;;  %v5893_v34 = vld [vmem:[%s8752_s1 + $0xa64] ss:$16 sps:$4 sm:$0xff]  }
  0x66   : > { %4050 = vmatpush1.bf16.msra.mxu1 %v5789_v35  ;;  %3998 = vmatprep.subr.bf16.mxu0 %v5794_v36  ;;  %v5965_v35 = vld [vmem:[%s6786_s12 + $0x2c] ss:$72 sps:$4 sm:$0xff]   ;;  %v5888_v36 = vld [vmem:[%s8752_s1 + $0x860] ss:$16 sps:$4 sm:$0xff]  }
  0x67   : > { %4051 = vmatprep.subr.bf16.mxu1 %v5797_v37  ;;  %v5891_v37 = vld [vmem:[%s8752_s1 + $0xa60] ss:$16 sps:$4 sm:$0xff]  }
  0x69   : > { %3999 = vmatpush1.bf16.msra.mxu0 %v5792_v38  ;;  %v5896_v38 = vld [vmem:[%s8752_s1 + $0x844] ss:$16 sps:$4 sm:$0xff]  }
  0x6a   : > { %4052 = vmatpush1.bf16.msra.mxu1 %v5795_v39  ;;  %4000 = vmatprep.subr.bf16.mxu0 %v5800_v40  ;;  %v5899_v39 = vld [vmem:[%s8752_s1 + $0xa44] ss:$16 sps:$4 sm:$0xff]   ;;  %v5894_v40 = vld [vmem:[%s8752_s1 + $0x840] ss:$16 sps:$4 sm:$0xff]  }
  0x6b   : > { %4053 = vmatprep.subr.bf16.mxu1 %v5803_v42  ;;  %v5902_v42 = vld [vmem:[%s8752_s1 + $0x824] ss:$16 sps:$4 sm:$0xff]  }
  0x6d   : > { %4001 = vmatpush2.bf16.msra.mxu0 %v5798_v44  ;;  %v5900_v44 = vld [vmem:[%s8752_s1 + $0x820] ss:$16 sps:$4 sm:$0xff]  }
  0x6e   : > { %4054 = vmatpush2.bf16.msra.mxu1 %v5801_v45  ;;  %4002 = vmatprep.subr.bf16.mxu0 %v5806_v46  ;;  %v5903_v45 = vld [vmem:[%s8752_s1 + $0xa20] ss:$16 sps:$4 sm:$0xff]   ;;  %v5908_v46 = vld [vmem:[%s8752_s1 + $0x804] ss:$16 sps:$4 sm:$0xff]  }
  0x6f   : > { %4055 = vmatprep.subr.bf16.mxu1 %v5809_v47  ;;  %v5911_v47 = vld [vmem:[%s8752_s1 + $0xa04] ss:$16 sps:$4 sm:$0xff]  }
  0x71   : > { %4003 = vmatpush2.bf16.msra.mxu0 %v5804_v48  ;;  %v5906_v48 = vld [vmem:[%s8752_s1 + $0x800] ss:$16 sps:$4 sm:$0xff]  }
  0x72   : > { %4056 = vmatpush2.bf16.msra.mxu1 %v5807_v49  ;;  %4004 = vmatprep.subr.bf16.mxu0 %v5812_v50  ;;  %v5909_v49 = vld [vmem:[%s8752_s1 + $0xa00] ss:$16 sps:$4 sm:$0xff]   ;;  %v5914_v50 = vld [vmem:[%s8752_s1 + $0x9e4] ss:$16 sps:$4 sm:$0xff]  }
  0x73   : > { %4057 = vmatprep.subr.bf16.mxu1 %v5815_v51  ;;  %v5917_v51 = vld [vmem:[%s8752_s1 + $0xbe4] ss:$16 sps:$4 sm:$0xff]  }
  0x75   : > { %4005 = vmatpush2.bf16.msra.mxu0 %v5810_v52  ;;  %v5912_v52 = vld [vmem:[%s8752_s1 + $0x9e0] ss:$16 sps:$4 sm:$0xff]  }
  0x76   : > { %4058 = vmatpush2.bf16.msra.mxu1 %v5813_v53  ;;  %4006 = vmatprep.subr.bf16.mxu0 %v5818_v54  ;;  %v5915_v53 = vld [vmem:[%s8752_s1 + $0xbe0] ss:$16 sps:$4 sm:$0xff]   ;;  %v5920_v54 = vld [vmem:[%s8752_s1 + $0x9c4] ss:$16 sps:$4 sm:$0xff]  }
  0x77   : > { %4059 = vmatprep.subr.bf16.mxu1 %v5821_v55  ;;  %v5923_v55 = vld [vmem:[%s8752_s1 + $0xbc4] ss:$16 sps:$4 sm:$0xff]  }
  0x79   : > { %4007 = vmatpush2.bf16.msra.mxu0 %v5816_v56  ;;  %v5918_v56 = vld [vmem:[%s8752_s1 + $0x9c0] ss:$16 sps:$4 sm:$0xff]  }
  0x7a   : > { %4060 = vmatpush2.bf16.msra.mxu1 %v5819_v57  ;;  %4008 = vmatprep.subr.bf16.mxu0 %v5824_v58  ;;  %v5921_v57 = vld [vmem:[%s8752_s1 + $0xbc0] ss:$16 sps:$4 sm:$0xff]   ;;  %v5926_v58 = vld [vmem:[%s8752_s1 + $0x9a4] ss:$16 sps:$4 sm:$0xff]  }
  0x7b   : > { %4061 = vmatprep.subr.bf16.mxu1 %v5827_v59  ;;  %v5929_v59 = vld [vmem:[%s8752_s1 + $0xba4] ss:$16 sps:$4 sm:$0xff]  }
  0x7d   : > { %4009 = vmatpush2.bf16.msra.mxu0 %v5822_v60  ;;  %v5924_v60 = vld [vmem:[%s8752_s1 + $0x9a0] ss:$16 sps:$4 sm:$0xff]  }
  0x7e   : > { %4062 = vmatpush2.bf16.msra.mxu1 %v5825_v61  ;;  %4010 = vmatprep.subr.bf16.mxu0 %v5836_v62  ;;  %v5927_v61 = vld [vmem:[%s8752_s1 + $0xba0] ss:$16 sps:$4 sm:$0xff]   ;;  %v5932_v62 = vld [vmem:[%s8752_s1 + $0x984] ss:$16 sps:$4 sm:$0xff]  }
  0x7f   : > { %4063 = vmatprep.subr.bf16.mxu1 %v5839_v63  ;;  %v5935_v63 = vld [vmem:[%s8752_s1 + $0xb84] ss:$16 sps:$4 sm:$0xff]  }
  0x81   : > { %4011 = vmatpush2.bf16.msra.mxu0 %v5834_v0  ;;  %v5930_v0 = vld [vmem:[%s8752_s1 + $0x980] ss:$16 sps:$4 sm:$0xff]  }
  0x82   : > { %4064 = vmatpush2.bf16.msra.mxu1 %v5837_v1  ;;  %4012 = vmatprep.subr.bf16.mxu0 %v5842_v2  ;;  %v5933_v1 = vld [vmem:[%s8752_s1 + $0xb80] ss:$16 sps:$4 sm:$0xff]   ;;  %v5938_v2 = vld [vmem:[%s8752_s1 + $0x964] ss:$16 sps:$4 sm:$0xff]  }
  0x83   : > { %4065 = vmatprep.subr.bf16.mxu1 %v5845_v3  ;;  %v5941_v3 = vld [vmem:[%s8752_s1 + $0xb64] ss:$16 sps:$4 sm:$0xff]  }
  0x85   : > { %4013 = vmatpush2.bf16.msra.mxu0 %v5840_v4  ;;  %v5936_v4 = vld [vmem:[%s8752_s1 + $0x960] ss:$16 sps:$4 sm:$0xff]  }
  0x86   : > { %4066 = vmatpush2.bf16.msra.mxu1 %v5843_v5  ;;  %4014 = vmatprep.subr.bf16.mxu0 %v5848_v6  ;;  %v5939_v5 = vld [vmem:[%s8752_s1 + $0xb60] ss:$16 sps:$4 sm:$0xff]   ;;  %v5944_v6 = vld [vmem:[%s8752_s1 + $0x944] ss:$16 sps:$4 sm:$0xff]  }
  0x87   : > { %4067 = vmatprep.subr.bf16.mxu1 %v5851_v7  ;;  %v5947_v7 = vld [vmem:[%s8752_s1 + $0xb44] ss:$16 sps:$4 sm:$0xff]  }
  0x89   : > { %4015 = vmatpush2.bf16.msra.mxu0 %v5846_v8  ;;  %v5942_v8 = vld [vmem:[%s8752_s1 + $0x940] ss:$16 sps:$4 sm:$0xff]  }
  0x8a   : > { %4068 = vmatpush2.bf16.msra.mxu1 %v5849_v9  ;;  %4090 = vmatprep.subr.bf16.mxu0 %v5860_v10  ;;  %v5945_v9 = vld [vmem:[%s8752_s1 + $0xb40] ss:$16 sps:$4 sm:$0xff]   ;;  %v5950_v10 = vld [vmem:[%s8752_s1 + $0x924] ss:$16 sps:$4 sm:$0xff]  }
  0x8b   : > { %4143 = vmatprep.subr.bf16.mxu1 %v5863_v11  ;;  %v5953_v11 = vld [vmem:[%s8752_s1 + $0xb24] ss:$16 sps:$4 sm:$0xff]  }
  0x8c   : > { %4017 = vmatmul.mubr.bf16.vlgmr.msra.gmra.mxu0 %v5852_v12  ;;  %v5948_v12 = vld [vmem:[%s8752_s1 + $0x920] ss:$16 sps:$4 sm:$0xff]  }
  0x8d   : > { %4070 = vmatmul.mubr.bf16.vlgmr.msra.gmra.mxu1 %v5855_v13  ;;  %4091 = vmatpush1.bf16.msra.mxu0 %v5858_v14  ;;  %v5951_v13 = vld [vmem:[%s8752_s1 + $0xb20] ss:$16 sps:$4 sm:$0xff]   ;;  %v5956_v14 = vld [vmem:[%s8752_s1 + $0x904] ss:$16 sps:$4 sm:$0xff]  }
  0x8e   : > { %4144 = vmatpush1.bf16.msra.mxu1 %v5861_v15  ;;  %4092 = vmatprep.subr.bf16.mxu0 %v5866_v16  ;;  %v5959_v15 = vld [vmem:[%s8752_s1 + $0xb04] ss:$16 sps:$4 sm:$0xff]   ;;  %v5954_v16 = vld [vmem:[%s8752_s1 + $0x900] ss:$16 sps:$4 sm:$0xff]  }
  0x8f   : > { %4145 = vmatprep.subr.bf16.mxu1 %v5869_v17  ;;  %4026 = vmatprep.mubr.bf16.mxu0 %v5870_v18  ;;  %v5957_v17 = vld [vmem:[%s8752_s1 + $0xb00] ss:$16 sps:$4 sm:$0xff]   ;;  %v5968_v18 = vld [vmem:[%s8752_s1 + $0xce4] ss:$16 sps:$4 sm:$0xff]  }
  0x90   : > { %4079 = vmatprep.mubr.bf16.mxu1 %v5879_v19  ;;  %v5971_v19 = vld [vmem:[%s8752_s1 + $0xee4] ss:$16 sps:$4 sm:$0xff]  }
  0x91   : > { %4093 = vmatpush1.bf16.msra.mxu0 %v5864_v20  ;;  %v5960_v20 = vld [vmem:[%s6786_s12 + $0x20] ss:$72 sps:$4 sm:$0xff]  }
  0x92   : > { %4146 = vmatpush1.bf16.msra.mxu1 %v5867_v21  ;;  %4094 = vmatprep.subr.bf16.mxu0 %v5875_v22  ;;  %v5963_v21 = vld [vmem:[%s6786_s12 + $0x28] ss:$72 sps:$4 sm:$0xff]  }
  0x93   : > { %4147 = vmatprep.subr.bf16.mxu1 %v5878_v23  ;;  %v5966_v22 = vld [vmem:[%s8752_s1 + $0xce0] ss:$16 sps:$4 sm:$0xff]  }
  0x94   : > { %4027 = vmatmul.mubr.bf16.gmra.mxu0 %v5872_v24  ;;  %v5969_v23 = vld [vmem:[%s8752_s1 + $0xee0] ss:$16 sps:$4 sm:$0xff]   ;;  %v5974_v24 = vld [vmem:[%s8752_s1 + $0xcc4] ss:$16 sps:$4 sm:$0xff]  }
  0x95   : > { %4080 = vmatmul.mubr.bf16.gmra.mxu1 %v5881_v27  ;;  %4095 = vmatpush1.bf16.msra.mxu0 %v5873_v25  ;;  %v5977_v25 = vld [vmem:[%s8752_s1 + $0xec4] ss:$16 sps:$4 sm:$0xff]  }
  0x96   : > { %4148 = vmatpush1.bf16.msra.mxu1 %v5876_v26  ;;  %4096 = vmatprep.subr.bf16.mxu0 %v5884_v28  ;;  %v5978_v26 = vld [vmem:[%s6786_s12 + $0xb4] ss:$72 sps:$4 sm:$0xff]   ;;  %v5972_v28 = vld [vmem:[%s8752_s1 + $0xcc0] ss:$16 sps:$4 sm:$0xff]  }
  0x97   : > { %4149 = vmatprep.subr.bf16.mxu1 %v5887_v29  ;;  %4122 = vmatprep.mubr.bf16.mxu0 %v5962_v33  ;;  %v5987_v27 = vld [vmem:[%s6786_s12 + $0xbc] ss:$72 sps:$4 sm:$0xff]   ;;  %v5975_v29 = vld [vmem:[%s8752_s1 + $0xec0] ss:$16 sps:$4 sm:$0xff]  }
  0x98   : > { %4175 = vmatprep.mubr.bf16.mxu1 %v5965_v35  ;;  %v5981_v33 = vld [vmem:[%s8752_s1 + $0xca0] ss:$16 sps:$4 sm:$0xff]  }
  0x99   : > { %4097 = vmatpush1.bf16.msra.mxu0 %v5882_v30  ;;  %v5983_v30 = vld [vmem:[%s8752_s1 + $0xca4] ss:$16 sps:$4 sm:$0xff]   ;;  %v5989_v35 = vld [vmem:[%s6786_s12 + $0xb8] ss:$72 sps:$4 sm:$0xff]  }
  0x9a   : > { %4150 = vmatpush1.bf16.msra.mxu1 %v5885_v31  ;;  %4098 = vmatprep.subr.bf16.mxu0 %v5890_v32  ;;  %v5986_v31 = vld [vmem:[%s8752_s1 + $0xea4] ss:$16 sps:$4 sm:$0xff]   ;;  %v5980_v32 = vld [vmem:[%s6786_s12 + $0xb0] ss:$72 sps:$4 sm:$0xff]  }
  0x9b   : > { %4151 = vmatprep.subr.bf16.mxu1 %v5893_v34  ;;  %v5984_v34 = vld [vmem:[%s8752_s1 + $0xea0] ss:$16 sps:$4 sm:$0xff]  }
  0x9d   : > { %4099 = vmatpush1.bf16.msra.mxu0 %v5888_v36  ;;  %v5992_v36 = vld [vmem:[%s8752_s1 + $0xc84] ss:$16 sps:$4 sm:$0xff]  }
  0x9e   : > { %4152 = vmatpush1.bf16.msra.mxu1 %v5891_v37  ;;  %4100 = vmatprep.subr.bf16.mxu0 %v5896_v38  ;;  %v5995_v37 = vld [vmem:[%s8752_s1 + $0xe84] ss:$16 sps:$4 sm:$0xff]  }
  0x9f   : > { %4153 = vmatprep.subr.bf16.mxu1 %v5899_v39  ;;  %v6070_v38 = vld [vmem:[%s6786_s12 + $0x34] ss:$72 sps:$4 sm:$0xff]  }
  0xa0   : > { %v6073_v39 = vld [vmem:[%s6786_s12 + $0x3c] ss:$72 sps:$4 sm:$0xff]  }
  0xa1   : > { %4101 = vmatpush1.bf16.msra.mxu0 %v5894_v40  ;;  %v5990_v40 = vld [vmem:[%s8752_s1 + $0xc80] ss:$16 sps:$4 sm:$0xff]  }
  0xa2   : > { %4154 = vmatpush1.bf16.msra.mxu1 %v5897_v41  ;;  %4102 = vmatprep.subr.bf16.mxu0 %v5902_v42  ;;  %v5993_v41 = vld [vmem:[%s8752_s1 + $0xe80] ss:$16 sps:$4 sm:$0xff]   ;;  %v5998_v42 = vld [vmem:[%s8752_s1 + $0xc64] ss:$16 sps:$4 sm:$0xff]  }
  0xa3   : > { %4155 = vmatprep.subr.bf16.mxu1 %v5905_v43  ;;  %v6001_v43 = vld [vmem:[%s8752_s1 + $0xe64] ss:$16 sps:$4 sm:$0xff]  }
  0xa5   : > { %4103 = vmatpush1.bf16.msra.mxu0 %v5900_v44  ;;  %v5996_v44 = vld [vmem:[%s8752_s1 + $0xc60] ss:$16 sps:$4 sm:$0xff]  }
  0xa6   : > { %4156 = vmatpush1.bf16.msra.mxu1 %v5903_v45  ;;  %4104 = vmatprep.subr.bf16.mxu0 %v5908_v46  ;;  %v5999_v45 = vld [vmem:[%s8752_s1 + $0xe60] ss:$16 sps:$4 sm:$0xff]   ;;  %v6004_v46 = vld [vmem:[%s8752_s1 + $0xc44] ss:$16 sps:$4 sm:$0xff]  }
  0xa7   : > { %4157 = vmatprep.subr.bf16.mxu1 %v5911_v47  ;;  %v6007_v47 = vld [vmem:[%s8752_s1 + $0xe44] ss:$16 sps:$4 sm:$0xff]  }
  0xa9   : > { %4105 = vmatpush1.bf16.msra.mxu0 %v5906_v48  ;;  %v6002_v48 = vld [vmem:[%s8752_s1 + $0xc40] ss:$16 sps:$4 sm:$0xff]  }
  0xaa   : > { %4158 = vmatpush1.bf16.msra.mxu1 %v5909_v49  ;;  %4106 = vmatprep.subr.bf16.mxu0 %v5914_v50  ;;  %v6005_v49 = vld [vmem:[%s8752_s1 + $0xe40] ss:$16 sps:$4 sm:$0xff]   ;;  %v6010_v50 = vld [vmem:[%s8752_s1 + $0xc24] ss:$16 sps:$4 sm:$0xff]  }
  0xab   : > { %4159 = vmatprep.subr.bf16.mxu1 %v5917_v51  ;;  %v6013_v51 = vld [vmem:[%s8752_s1 + $0xe24] ss:$16 sps:$4 sm:$0xff]  }
  0xad   : > { %4107 = vmatpush2.bf16.msra.mxu0 %v5912_v52  ;;  %v6008_v52 = vld [vmem:[%s8752_s1 + $0xc20] ss:$16 sps:$4 sm:$0xff]  }
  0xae   : > { %4160 = vmatpush2.bf16.msra.mxu1 %v5915_v53  ;;  %4108 = vmatprep.subr.bf16.mxu0 %v5920_v54  ;;  %v6011_v53 = vld [vmem:[%s8752_s1 + $0xe20] ss:$16 sps:$4 sm:$0xff]   ;;  %v6016_v54 = vld [vmem:[%s8752_s1 + $0xc04] ss:$16 sps:$4 sm:$0xff]  }
  0xaf   : > { %4161 = vmatprep.subr.bf16.mxu1 %v5923_v55  ;;  %v6019_v55 = vld [vmem:[%s8752_s1 + $0xe04] ss:$16 sps:$4 sm:$0xff]  }
  0xb1   : > { %4109 = vmatpush2.bf16.msra.mxu0 %v5918_v56  ;;  %v6014_v56 = vld [vmem:[%s8752_s1 + $0xc00] ss:$16 sps:$4 sm:$0xff]  }
  0xb2   : > { %4162 = vmatpush2.bf16.msra.mxu1 %v5921_v57  ;;  %4110 = vmatprep.subr.bf16.mxu0 %v5926_v58  ;;  %v6017_v57 = vld [vmem:[%s8752_s1 + $0xe00] ss:$16 sps:$4 sm:$0xff]   ;;  %v6022_v58 = vld [vmem:[%s8752_s1 + $0xde4] ss:$16 sps:$4 sm:$0xff]  }
  0xb3   : > { %4163 = vmatprep.subr.bf16.mxu1 %v5929_v59  ;;  %v6025_v59 = vld [vmem:[%s8752_s1 + $0xfe4] ss:$16 sps:$4 sm:$0xff]  }
  0xb5   : > { %4111 = vmatpush2.bf16.msra.mxu0 %v5924_v60  ;;  %v6020_v60 = vld [vmem:[%s8752_s1 + $0xde0] ss:$16 sps:$4 sm:$0xff]  }
  0xb6   : > { %4164 = vmatpush2.bf16.msra.mxu1 %v5927_v61  ;;  %4112 = vmatprep.subr.bf16.mxu0 %v5932_v62  ;;  %v6023_v61 = vld [vmem:[%s8752_s1 + $0xfe0] ss:$16 sps:$4 sm:$0xff]   ;;  %v6028_v62 = vld [vmem:[%s8752_s1 + $0xdc4] ss:$16 sps:$4 sm:$0xff]  }
  0xb7   : > { %4165 = vmatprep.subr.bf16.mxu1 %v5935_v63  ;;  %v6031_v63 = vld [vmem:[%s8752_s1 + $0xfc4] ss:$16 sps:$4 sm:$0xff]  }
  0xb9   : > { %4113 = vmatpush2.bf16.msra.mxu0 %v5930_v0  ;;  %v6026_v0 = vld [vmem:[%s8752_s1 + $0xdc0] ss:$16 sps:$4 sm:$0xff]  }
  0xba   : > { %4166 = vmatpush2.bf16.msra.mxu1 %v5933_v1  ;;  %4114 = vmatprep.subr.bf16.mxu0 %v5938_v2  ;;  %v6029_v1 = vld [vmem:[%s8752_s1 + $0xfc0] ss:$16 sps:$4 sm:$0xff]   ;;  %v6034_v2 = vld [vmem:[%s8752_s1 + $0xda4] ss:$16 sps:$4 sm:$0xff]  }
  0xbb   : > { %4167 = vmatprep.subr.bf16.mxu1 %v5941_v3  ;;  %v6037_v3 = vld [vmem:[%s8752_s1 + $0xfa4] ss:$16 sps:$4 sm:$0xff]  }
  0xbd   : > { %4115 = vmatpush2.bf16.msra.mxu0 %v5936_v4  ;;  %v6032_v4 = vld [vmem:[%s8752_s1 + $0xda0] ss:$16 sps:$4 sm:$0xff]  }
  0xbe   : > { %4168 = vmatpush2.bf16.msra.mxu1 %v5939_v5  ;;  %4116 = vmatprep.subr.bf16.mxu0 %v5944_v6  ;;  %v6035_v5 = vld [vmem:[%s8752_s1 + $0xfa0] ss:$16 sps:$4 sm:$0xff]   ;;  %v6040_v6 = vld [vmem:[%s8752_s1 + $0xd84] ss:$16 sps:$4 sm:$0xff]  }
  0xbf   : > { %4169 = vmatprep.subr.bf16.mxu1 %v5947_v7  ;;  %v6043_v7 = vld [vmem:[%s8752_s1 + $0xf84] ss:$16 sps:$4 sm:$0xff]  }
  0xc1   : > { %4117 = vmatpush2.bf16.msra.mxu0 %v5942_v8  ;;  %v6038_v8 = vld [vmem:[%s8752_s1 + $0xd80] ss:$16 sps:$4 sm:$0xff]  }
  0xc2   : > { %4170 = vmatpush2.bf16.msra.mxu1 %v5945_v9  ;;  %4118 = vmatprep.subr.bf16.mxu0 %v5950_v10  ;;  %v6041_v9 = vld [vmem:[%s8752_s1 + $0xf80] ss:$16 sps:$4 sm:$0xff]   ;;  %v6046_v10 = vld [vmem:[%s8752_s1 + $0xd64] ss:$16 sps:$4 sm:$0xff]  }
  0xc3   : > { %4171 = vmatprep.subr.bf16.mxu1 %v5953_v11  ;;  %v6049_v11 = vld [vmem:[%s8752_s1 + $0xf64] ss:$16 sps:$4 sm:$0xff]  }
  0xc5   : > { %4119 = vmatpush2.bf16.msra.mxu0 %v5948_v12  ;;  %v6044_v12 = vld [vmem:[%s8752_s1 + $0xd60] ss:$16 sps:$4 sm:$0xff]  }
  0xc6   : > { %4172 = vmatpush2.bf16.msra.mxu1 %v5951_v13  ;;  %4120 = vmatprep.subr.bf16.mxu0 %v5956_v14  ;;  %v6047_v13 = vld [vmem:[%s8752_s1 + $0xf60] ss:$16 sps:$4 sm:$0xff]   ;;  %v6052_v14 = vld [vmem:[%s8752_s1 + $0xd44] ss:$16 sps:$4 sm:$0xff]  }
  0xc7   : > { %4173 = vmatprep.subr.bf16.mxu1 %v5959_v15  ;;  %v6055_v15 = vld [vmem:[%s8752_s1 + $0xf44] ss:$16 sps:$4 sm:$0xff]  }
  0xc9   : > { %4121 = vmatpush2.bf16.msra.mxu0 %v5954_v16  ;;  %v6050_v16 = vld [vmem:[%s8752_s1 + $0xd40] ss:$16 sps:$4 sm:$0xff]  }
  0xca   : > { %4174 = vmatpush2.bf16.msra.mxu1 %v5957_v17  ;;  %4196 = vmatprep.subr.bf16.mxu0 %v5968_v18  ;;  %v6053_v17 = vld [vmem:[%s8752_s1 + $0xf40] ss:$16 sps:$4 sm:$0xff]   ;;  %v6058_v18 = vld [vmem:[%s8752_s1 + $0xd24] ss:$16 sps:$4 sm:$0xff]  }
  0xcb   : > { %4249 = vmatprep.subr.bf16.mxu1 %v5971_v19  ;;  %v6061_v19 = vld [vmem:[%s8752_s1 + $0xf24] ss:$16 sps:$4 sm:$0xff]  }
  0xcc   : > { %4123 = vmatmul.mubr.bf16.vlgmr.msra.gmra.mxu0 %v5960_v20  ;;  %v6056_v20 = vld [vmem:[%s8752_s1 + $0xd20] ss:$16 sps:$4 sm:$0xff]  }
  0xcd   : > { %4176 = vmatmul.mubr.bf16.vlgmr.msra.gmra.mxu1 %v5963_v21  ;;  %4197 = vmatpush1.bf16.msra.mxu0 %v5966_v22  ;;  %v6059_v21 = vld [vmem:[%s8752_s1 + $0xf20] ss:$16 sps:$4 sm:$0xff]   ;;  %v6064_v22 = vld [vmem:[%s8752_s1 + $0xd04] ss:$16 sps:$4 sm:$0xff]  }
  0xce   : > { %4250 = vmatpush1.bf16.msra.mxu1 %v5969_v23  ;;  %4198 = vmatprep.subr.bf16.mxu0 %v5974_v24  ;;  %v6067_v23 = vld [vmem:[%s8752_s1 + $0xf04] ss:$16 sps:$4 sm:$0xff]   ;;  %v6062_v24 = vld [vmem:[%s8752_s1 + $0xd00] ss:$16 sps:$4 sm:$0xff]  }
  0xcf   : > { %4251 = vmatprep.subr.bf16.mxu1 %v5977_v25  ;;  %4132 = vmatprep.mubr.bf16.mxu0 %v5978_v26  ;;  %v6065_v25 = vld [vmem:[%s8752_s1 + $0xf00] ss:$16 sps:$4 sm:$0xff]   ;;  %v6076_v26 = vld [vmem:[%s8752_s1 + $0x10e4] ss:$16 sps:$4 sm:$0xff]  }
  0xd0   : > { %4185 = vmatprep.mubr.bf16.mxu1 %v5987_v27  ;;  %v6079_v27 = vld [vmem:[%s8752_s1 + $0xec] ss:$16 sps:$4 sm:$0xff]  }
  0xd1   : > { %4199 = vmatpush1.bf16.msra.mxu0 %v5972_v28  ;;  %v6068_v28 = vld [vmem:[%s6786_s12 + $0x30] ss:$72 sps:$4 sm:$0xff]  }
  0xd2   : > { %4252 = vmatpush1.bf16.msra.mxu1 %v5975_v29  ;;  %4200 = vmatprep.subr.bf16.mxu0 %v5983_v30  ;;  %v6071_v29 = vld [vmem:[%s6786_s12 + $0x38] ss:$72 sps:$4 sm:$0xff]  }
  0xd3   : > { %4253 = vmatprep.subr.bf16.mxu1 %v5986_v31  ;;  %v6074_v30 = vld [vmem:[%s8752_s1 + $0x10e0] ss:$16 sps:$4 sm:$0xff]   ;;  %v6077_v31 = vld [vmem:[%s8752_s1 + $0xe8] ss:$16 sps:$4 sm:$0xff]  }
  0xd4   : > { %4133 = vmatmul.mubr.bf16.gmra.mxu0 %v5980_v32  ;;  %v6082_v32 = vld [vmem:[%s8752_s1 + $0x10c4] ss:$16 sps:$4 sm:$0xff]  }
  0xd5   : > { %4186 = vmatmul.mubr.bf16.gmra.mxu1 %v5989_v35  ;;  %4201 = vmatpush1.bf16.msra.mxu0 %v5981_v33  ;;  %v6085_v33 = vld [vmem:[%s8752_s1 + $0xcc] ss:$16 sps:$4 sm:$0xff]  }
  0xd6   : > { %4254 = vmatpush1.bf16.msra.mxu1 %v5984_v34  ;;  %4202 = vmatprep.subr.bf16.mxu0 %v5992_v36  ;;  %v6086_v34 = vld [vmem:[%s6786_s12 + $0xc4] ss:$72 sps:$4 sm:$0xff]   ;;  %v6080_v36 = vld [vmem:[%s8752_s1 + $0x10c0] ss:$16 sps:$4 sm:$0xff]  }
  0xd7   : > { %4255 = vmatprep.subr.bf16.mxu1 %v5995_v37  ;;  %4228 = vmatprep.mubr.bf16.mxu0 %v6070_v38  ;;  %v6095_v35 = vld [vmem:[%s6786_s12 + $0xcc] ss:$72 sps:$4 sm:$0xff]   ;;  %v6083_v37 = vld [vmem:[%s8752_s1 + $0xc8] ss:$16 sps:$4 sm:$0xff]  }
  0xd8   : > { %4281 = vmatprep.mubr.bf16.mxu1 %v6073_v39  ;;  %v6091_v38 = vld [vmem:[%s8752_s1 + $0x10a4] ss:$16 sps:$4 sm:$0xff]   ;;  %v6094_v39 = vld [vmem:[%s8752_s1 + $0xac] ss:$16 sps:$4 sm:$0xff]  }
  0xd9   : > { %4203 = vmatpush1.bf16.msra.mxu0 %v5990_v40  ;;  %v6088_v40 = vld [vmem:[%s6786_s12 + $0xc0] ss:$72 sps:$4 sm:$0xff]  }
  0xda   : > { %4256 = vmatpush1.bf16.msra.mxu1 %v5993_v41  ;;  %4204 = vmatprep.subr.bf16.mxu0 %v5998_v42  ;;  %v6089_v41 = vld [vmem:[%s8752_s1 + $0x10a0] ss:$16 sps:$4 sm:$0xff]   ;;  %v6092_v42 = vld [vmem:[%s8752_s1 + $0xa8] ss:$16 sps:$4 sm:$0xff]  }
  0xdb   : > { %4257 = vmatprep.subr.bf16.mxu1 %v6001_v43  ;;  %v6097_v43 = vld [vmem:[%s6786_s12 + $0xc8] ss:$72 sps:$4 sm:$0xff]  }
  0xdd   : > { %4205 = vmatpush1.bf16.msra.mxu0 %v5996_v44  ;;  %v6100_v44 = vld [vmem:[%s8752_s1 + $0x1084] ss:$16 sps:$4 sm:$0xff]  }
  0xde   : > { %4258 = vmatpush1.bf16.msra.mxu1 %v5999_v45  ;;  %4206 = vmatprep.subr.bf16.mxu0 %v6004_v46  ;;  %v6103_v45 = vld [vmem:[%s8752_s1 + $0x8c] ss:$16 sps:$4 sm:$0xff]  }
  0xdf   : > { %4259 = vmatprep.subr.bf16.mxu1 %v6007_v47  ;;  %v6178_v46 = vld [vmem:[%s6786_s12 + $0x44] ss:$72 sps:$4 sm:$0xff]   ;;  %v6098_v47 = vld [vmem:[%s8752_s1 + $0x1080] ss:$16 sps:$4 sm:$0xff]  }
  0xe1   : > { %4207 = vmatpush1.bf16.msra.mxu0 %v6002_v48  ;;  %v6101_v48 = vld [vmem:[%s8752_s1 + $0x88] ss:$16 sps:$4 sm:$0xff]  }
  0xe2   : > { %4260 = vmatpush1.bf16.msra.mxu1 %v6005_v49  ;;  %4208 = vmatprep.subr.bf16.mxu0 %v6010_v50  ;;  %v6106_v49 = vld [vmem:[%s8752_s1 + $0x1064] ss:$16 sps:$4 sm:$0xff]   ;;  %v6109_v50 = vld [vmem:[%s8752_s1 + $0x6c] ss:$16 sps:$4 sm:$0xff]  }
  0xe3   : > { %4261 = vmatprep.subr.bf16.mxu1 %v6013_v51  ;;  %v6566_v51 = vld [vmem:[%s6786_s12 + $0x4] ss:$72 sps:$4 sm:$0xff]  }
  0xe5   : > { %4209 = vmatpush1.bf16.msra.mxu0 %v6008_v52  ;;  %v6104_v52 = vld [vmem:[%s8752_s1 + $0x1060] ss:$16 sps:$4 sm:$0xff]  }
  0xe6   : > { %4262 = vmatpush1.bf16.msra.mxu1 %v6011_v53  ;;  %4210 = vmatprep.subr.bf16.mxu0 %v6016_v54  ;;  %v6107_v53 = vld [vmem:[%s8752_s1 + $0x68] ss:$16 sps:$4 sm:$0xff]   ;;  %v6112_v54 = vld [vmem:[%s8752_s1 + $0x1044] ss:$16 sps:$4 sm:$0xff]  }
  0xe7   : > { %4263 = vmatprep.subr.bf16.mxu1 %v6019_v55  ;;  %v6115_v55 = vld [vmem:[%s8752_s1 + $0x4c] ss:$16 sps:$4 sm:$0xff]  }
  0xe9   : > { %4211 = vmatpush1.bf16.msra.mxu0 %v6014_v56  ;;  %v6110_v56 = vld [vmem:[%s8752_s1 + $0x1040] ss:$16 sps:$4 sm:$0xff]  }
  0xea   : > { %4264 = vmatpush1.bf16.msra.mxu1 %v6017_v57  ;;  %4212 = vmatprep.subr.bf16.mxu0 %v6022_v58  ;;  %v6113_v57 = vld [vmem:[%s8752_s1 + $0x48] ss:$16 sps:$4 sm:$0xff]   ;;  %v6118_v58 = vld [vmem:[%s8752_s1 + $0x1024] ss:$16 sps:$4 sm:$0xff]  }
  0xeb   : > { %4265 = vmatprep.subr.bf16.mxu1 %v6025_v59  ;;  %v6121_v59 = vld [vmem:[%s8752_s1 + $0x2c] ss:$16 sps:$4 sm:$0xff]  }
  0xed   : > { %4213 = vmatpush2.bf16.msra.mxu0 %v6020_v60  ;;  %v6116_v60 = vld [vmem:[%s8752_s1 + $0x1020] ss:$16 sps:$4 sm:$0xff]  }
  0xee   : > { %4266 = vmatpush2.bf16.msra.mxu1 %v6023_v61  ;;  %4214 = vmatprep.subr.bf16.mxu0 %v6028_v62  ;;  %v6119_v61 = vld [vmem:[%s8752_s1 + $0x28] ss:$16 sps:$4 sm:$0xff]   ;;  %v6124_v62 = vld [vmem:[%s8752_s1 + $0x1004] ss:$16 sps:$4 sm:$0xff]  }
  0xef   : > { %4267 = vmatprep.subr.bf16.mxu1 %v6031_v63  ;;  %v6127_v63 = vld [vmem:[%s8752_s1 + $0xc] ss:$16 sps:$4 sm:$0xff]  }
  0xf1   : > { %4215 = vmatpush2.bf16.msra.mxu0 %v6026_v0  ;;  %v6122_v0 = vld [vmem:[%s8752_s1 + $0x1000] ss:$16 sps:$4 sm:$0xff]  }
  0xf2   : > { %4268 = vmatpush2.bf16.msra.mxu1 %v6029_v1  ;;  %4216 = vmatprep.subr.bf16.mxu0 %v6034_v2  ;;  %v6125_v1 = vld [vmem:[%s8752_s1 + $0x8] ss:$16 sps:$4 sm:$0xff]   ;;  %v6130_v2 = vld [vmem:[%s8752_s1 + $0x11e4] ss:$16 sps:$4 sm:$0xff]  }
  0xf3   : > { %4269 = vmatprep.subr.bf16.mxu1 %v6037_v3  ;;  %v6133_v3 = vld [vmem:[%s8752_s1 + $0x1ec] ss:$16 sps:$4 sm:$0xff]  }
  0xf5   : > { %4217 = vmatpush2.bf16.msra.mxu0 %v6032_v4  ;;  %v6128_v4 = vld [vmem:[%s8752_s1 + $0x11e0] ss:$16 sps:$4 sm:$0xff]  }
  0xf6   : > { %4270 = vmatpush2.bf16.msra.mxu1 %v6035_v5  ;;  %4218 = vmatprep.subr.bf16.mxu0 %v6040_v6  ;;  %v6131_v5 = vld [vmem:[%s8752_s1 + $0x1e8] ss:$16 sps:$4 sm:$0xff]   ;;  %v6136_v6 = vld [vmem:[%s8752_s1 + $0x11c4] ss:$16 sps:$4 sm:$0xff]  }
  0xf7   : > { %4271 = vmatprep.subr.bf16.mxu1 %v6043_v7  ;;  %v6139_v7 = vld [vmem:[%s8752_s1 + $0x1cc] ss:$16 sps:$4 sm:$0xff]  }
  0xf9   : > { %4219 = vmatpush2.bf16.msra.mxu0 %v6038_v8  ;;  %v6134_v8 = vld [vmem:[%s8752_s1 + $0x11c0] ss:$16 sps:$4 sm:$0xff]  }
  0xfa   : > { %4272 = vmatpush2.bf16.msra.mxu1 %v6041_v9  ;;  %4220 = vmatprep.subr.bf16.mxu0 %v6046_v10  ;;  %v6137_v9 = vld [vmem:[%s8752_s1 + $0x1c8] ss:$16 sps:$4 sm:$0xff]   ;;  %v6142_v10 = vld [vmem:[%s8752_s1 + $0x11a4] ss:$16 sps:$4 sm:$0xff]  }
  0xfb   : > { %4273 = vmatprep.subr.bf16.mxu1 %v6049_v11  ;;  %v6145_v11 = vld [vmem:[%s8752_s1 + $0x1ac] ss:$16 sps:$4 sm:$0xff]  }
  0xfd   : > { %4221 = vmatpush2.bf16.msra.mxu0 %v6044_v12  ;;  %v6140_v12 = vld [vmem:[%s8752_s1 + $0x11a0] ss:$16 sps:$4 sm:$0xff]  }
  0xfe   : > { %4274 = vmatpush2.bf16.msra.mxu1 %v6047_v13  ;;  %4222 = vmatprep.subr.bf16.mxu0 %v6052_v14  ;;  %v6143_v13 = vld [vmem:[%s8752_s1 + $0x1a8] ss:$16 sps:$4 sm:$0xff]   ;;  %v6148_v14 = vld [vmem:[%s8752_s1 + $0x1184] ss:$16 sps:$4 sm:$0xff]  }
  0xff   : > { %4275 = vmatprep.subr.bf16.mxu1 %v6055_v15  ;;  %v6151_v15 = vld [vmem:[%s8752_s1 + $0x18c] ss:$16 sps:$4 sm:$0xff]  }
 0x101   : > { %4223 = vmatpush2.bf16.msra.mxu0 %v6050_v16  ;;  %v6146_v16 = vld [vmem:[%s8752_s1 + $0x1180] ss:$16 sps:$4 sm:$0xff]  }
 0x102   : > { %4276 = vmatpush2.bf16.msra.mxu1 %v6053_v17  ;;  %4224 = vmatprep.subr.bf16.mxu0 %v6058_v18  ;;  %v6149_v17 = vld [vmem:[%s8752_s1 + $0x188] ss:$16 sps:$4 sm:$0xff]   ;;  %v6154_v18 = vld [vmem:[%s8752_s1 + $0x1164] ss:$16 sps:$4 sm:$0xff]  }
 0x103   : > { %4277 = vmatprep.subr.bf16.mxu1 %v6061_v19  ;;  %v6157_v19 = vld [vmem:[%s8752_s1 + $0x16c] ss:$16 sps:$4 sm:$0xff]  }
 0x105   : > { %4225 = vmatpush2.bf16.msra.mxu0 %v6056_v20  ;;  %v6152_v20 = vld [vmem:[%s8752_s1 + $0x1160] ss:$16 sps:$4 sm:$0xff]  }
 0x106   : > { %4278 = vmatpush2.bf16.msra.mxu1 %v6059_v21  ;;  %4226 = vmatprep.subr.bf16.mxu0 %v6064_v22  ;;  %v6155_v21 = vld [vmem:[%s8752_s1 + $0x168] ss:$16 sps:$4 sm:$0xff]   ;;  %v6160_v22 = vld [vmem:[%s8752_s1 + $0x1144] ss:$16 sps:$4 sm:$0xff]  }
 0x107   : > { %4279 = vmatprep.subr.bf16.mxu1 %v6067_v23  ;;  %v6163_v23 = vld [vmem:[%s8752_s1 + $0x14c] ss:$16 sps:$4 sm:$0xff]  }
 0x109   : > { %4227 = vmatpush2.bf16.msra.mxu0 %v6062_v24  ;;  %v6158_v24 = vld [vmem:[%s8752_s1 + $0x1140] ss:$16 sps:$4 sm:$0xff]  }
 0x10a   : > { %4280 = vmatpush2.bf16.msra.mxu1 %v6065_v25  ;;  %4302 = vmatprep.subr.bf16.mxu0 %v6076_v26  ;;  %v6161_v25 = vld [vmem:[%s8752_s1 + $0x148] ss:$16 sps:$4 sm:$0xff]   ;;  %v6166_v26 = vld [vmem:[%s8752_s1 + $0x1124] ss:$16 sps:$4 sm:$0xff]  }
 0x10b   : > { %4355 = vmatprep.subr.bf16.mxu1 %v6079_v27  ;;  %v6169_v27 = vld [vmem:[%s8752_s1 + $0x12c] ss:$16 sps:$4 sm:$0xff]  }
 0x10c   : > { %4229 = vmatmul.mubr.bf16.vlgmr.msra.gmra.mxu0 %v6068_v28  ;;  %v6164_v28 = vld [vmem:[%s8752_s1 + $0x1120] ss:$16 sps:$4 sm:$0xff]  }
 0x10d   : > { %4282 = vmatmul.mubr.bf16.vlgmr.msra.gmra.mxu1 %v6071_v29  ;;  %4303 = vmatpush1.bf16.msra.mxu0 %v6074_v30  ;;  %v6167_v29 = vld [vmem:[%s8752_s1 + $0x128] ss:$16 sps:$4 sm:$0xff]   ;;  %v6172_v30 = vld [vmem:[%s8752_s1 + $0x1104] ss:$16 sps:$4 sm:$0xff]  }
 0x10e   : > { %4356 = vmatpush1.bf16.msra.mxu1 %v6077_v31  ;;  %4304 = vmatprep.subr.bf16.mxu0 %v6082_v32  ;;  %v6175_v31 = vld [vmem:[%s8752_s1 + $0x10c] ss:$16 sps:$4 sm:$0xff]   ;;  %v6170_v32 = vld [vmem:[%s8752_s1 + $0x1100] ss:$16 sps:$4 sm:$0xff]  }
 0x10f   : > { %4357 = vmatprep.subr.bf16.mxu1 %v6085_v33  ;;  %4238 = vmatprep.mubr.bf16.mxu0 %v6086_v34  ;;  %v6173_v33 = vld [vmem:[%s8752_s1 + $0x108] ss:$16 sps:$4 sm:$0xff]   ;;  %v6181_v34 = vld [vmem:[%s8752_s1 + $0x2ec] ss:$16 sps:$4 sm:$0xff]  }
 0x110   : > { %4291 = vmatprep.mubr.bf16.mxu1 %v6095_v35  ;;  %v6184_v35 = vld [vmem:[%s8752_s1 + $0x4ec] ss:$16 sps:$4 sm:$0xff]  }
 0x111   : > { %4305 = vmatpush1.bf16.msra.mxu0 %v6080_v36  ;;  %v6176_v36 = vld [vmem:[%s6786_s12 + $0x40] ss:$72 sps:$4 sm:$0xff]  }
 0x112   : > { %4358 = vmatpush1.bf16.msra.mxu1 %v6083_v37  ;;  %4306 = vmatprep.subr.bf16.mxu0 %v6091_v38  ;;  %v6179_v37 = vld [vmem:[%s8752_s1 + $0x2e8] ss:$16 sps:$4 sm:$0xff]  }
 0x113   : > { %4359 = vmatprep.subr.bf16.mxu1 %v6094_v39  ;;  %v6182_v38 = vld [vmem:[%s8752_s1 + $0x4e8] ss:$16 sps:$4 sm:$0xff]   ;;  %v6187_v39 = vld [vmem:[%s8752_s1 + $0x2cc] ss:$16 sps:$4 sm:$0xff]  }
 0x114   : > { %4239 = vmatmul.mubr.bf16.gmra.mxu0 %v6088_v40  ;;  %v6190_v40 = vld [vmem:[%s8752_s1 + $0x4cc] ss:$16 sps:$4 sm:$0xff]  }
 0x115   : > { %4292 = vmatmul.mubr.bf16.gmra.mxu1 %v6097_v43  ;;  %4307 = vmatpush1.bf16.msra.mxu0 %v6089_v41  ;;  %v6191_v41 = vld [vmem:[%s6786_s12 + $0xd4] ss:$72 sps:$4 sm:$0xff]   ;;  %v6185_v43 = vld [vmem:[%s8752_s1 + $0x2c8] ss:$16 sps:$4 sm:$0xff]  }
 0x116   : > { %4360 = vmatpush1.bf16.msra.mxu1 %v6092_v42  ;;  %4308 = vmatprep.subr.bf16.mxu0 %v6100_v44  ;;  %v6567_v42 = vld [vmem:[%s6786_s12] ss:$72 sps:$4 sm:$0xff]  }
 0x117   : > { %4361 = vmatprep.subr.bf16.mxu1 %v6103_v45  ;;  %4334 = vmatprep.mubr.bf16.mxu0 %v6178_v46  ;;  %v6188_v44 = vld [vmem:[%s8752_s1 + $0x4c8] ss:$16 sps:$4 sm:$0xff]   ;;  %v6196_v45 = vld [vmem:[%s8752_s1 + $0x2ac] ss:$16 sps:$4 sm:$0xff]  }
 0x118   : > { %4387 = vmatprep.mubr.bf16.mxu1 %v6566_v51  ;;  %v6199_v46 = vld [vmem:[%s8752_s1 + $0x4ac] ss:$16 sps:$4 sm:$0xff]  }
 0x119   : > { %4309 = vmatpush1.bf16.msra.mxu0 %v6098_v47  ;;  %v6193_v47 = vld [vmem:[%s6786_s12 + $0xd0] ss:$72 sps:$4 sm:$0xff]   ;;  %v6202_v51 = vld [vmem:[%s8752_s1 + $0x28c] ss:$16 sps:$4 sm:$0xff]  }
 0x11a   : > { %4362 = vmatpush1.bf16.msra.mxu1 %v6101_v48  ;;  %4310 = vmatprep.subr.bf16.mxu0 %v6106_v49  ;;  %v6568_v48 = vld [vmem:[%s6786_s12 + $0x94] ss:$72 sps:$4 sm:$0xff]   ;;  %v6194_v49 = vld [vmem:[%s8752_s1 + $0x2a8] ss:$16 sps:$4 sm:$0xff]  }
 0x11b   : > { %4363 = vmatprep.subr.bf16.mxu1 %v6109_v50  ;;  %v6197_v50 = vld [vmem:[%s8752_s1 + $0x4a8] ss:$16 sps:$4 sm:$0xff]  }
 0x11d   : > { %4311 = vmatpush1.bf16.msra.mxu0 %v6104_v52  ;;  %v6205_v52 = vld [vmem:[%s8752_s1 + $0x48c] ss:$16 sps:$4 sm:$0xff]  }
 0x11e   : > { %4364 = vmatpush1.bf16.msra.mxu1 %v6107_v53  ;;  %4312 = vmatprep.subr.bf16.mxu0 %v6112_v54  ;;  %v6200_v53 = vld [vmem:[%s8752_s1 + $0x288] ss:$16 sps:$4 sm:$0xff]  }
 0x11f   : > { %4365 = vmatprep.subr.bf16.mxu1 %v6115_v55  ;;  %v6203_v54 = vld [vmem:[%s8752_s1 + $0x488] ss:$16 sps:$4 sm:$0xff]  }
 0x120   : > { %v6569_v55 = vld [vmem:[%s6786_s12 + $0x90] ss:$72 sps:$4 sm:$0xff]  }
 0x121   : > { %4313 = vmatpush1.bf16.msra.mxu0 %v6110_v56  ;;  %v6208_v56 = vld [vmem:[%s8752_s1 + $0x26c] ss:$16 sps:$4 sm:$0xff]  }
 0x122   : > { %4366 = vmatpush1.bf16.msra.mxu1 %v6113_v57  ;;  %4314 = vmatprep.subr.bf16.mxu0 %v6118_v58  ;;  %v6211_v57 = vld [vmem:[%s8752_s1 + $0x46c] ss:$16 sps:$4 sm:$0xff]   ;;  %v6206_v58 = vld [vmem:[%s8752_s1 + $0x268] ss:$16 sps:$4 sm:$0xff]  }
 0x123   : > { %4367 = vmatprep.subr.bf16.mxu1 %v6121_v59  ;;  %v6209_v59 = vld [vmem:[%s8752_s1 + $0x468] ss:$16 sps:$4 sm:$0xff]  }
 0x125   : > { %4315 = vmatpush1.bf16.msra.mxu0 %v6116_v60  ;;  %v6570_v60 = vld [vmem:[%s6786_s12 + $0xc] ss:$72 sps:$4 sm:$0xff]  }
 0x126   : > { %4368 = vmatpush1.bf16.msra.mxu1 %v6119_v61  ;;  %4316 = vmatprep.subr.bf16.mxu0 %v6124_v62  ;;  %v6571_v61 = vld [vmem:[%s6786_s12 + $0x14] ss:$72 sps:$4 sm:$0xff]  }
 0x127   : > { %4369 = vmatprep.subr.bf16.mxu1 %v6127_v63  ;;  %v6214_v62 = vld [vmem:[%s8752_s1 + $0x24c] ss:$16 sps:$4 sm:$0xff]  }
 0x128   : > { %v6217_v63 = vld [vmem:[%s8752_s1 + $0x44c] ss:$16 sps:$4 sm:$0xff]  }
 0x129   : > { %4317 = vmatpush1.bf16.msra.mxu0 %v6122_v0  ;;  %v6212_v0 = vld [vmem:[%s8752_s1 + $0x248] ss:$16 sps:$4 sm:$0xff]  }
 0x12a   : > { %4370 = vmatpush1.bf16.msra.mxu1 %v6125_v1  ;;  %4318 = vmatprep.subr.bf16.mxu0 %v6130_v2  ;;  %v6215_v1 = vld [vmem:[%s8752_s1 + $0x448] ss:$16 sps:$4 sm:$0xff]   ;;  %v6220_v2 = vld [vmem:[%s8752_s1 + $0x22c] ss:$16 sps:$4 sm:$0xff]  }
 0x12b   : > { %4371 = vmatprep.subr.bf16.mxu1 %v6133_v3  ;;  %v6223_v3 = vld [vmem:[%s8752_s1 + $0x42c] ss:$16 sps:$4 sm:$0xff]  }
 0x12d   : > { %4319 = vmatpush2.bf16.msra.mxu0 %v6128_v4  ;;  %v6218_v4 = vld [vmem:[%s8752_s1 + $0x228] ss:$16 sps:$4 sm:$0xff]  }
 0x12e   : > { %4372 = vmatpush2.bf16.msra.mxu1 %v6131_v5  ;;  %4320 = vmatprep.subr.bf16.mxu0 %v6136_v6  ;;  %v6221_v5 = vld [vmem:[%s8752_s1 + $0x428] ss:$16 sps:$4 sm:$0xff]   ;;  %v6226_v6 = vld [vmem:[%s8752_s1 + $0x20c] ss:$16 sps:$4 sm:$0xff]  }
 0x12f   : > { %4373 = vmatprep.subr.bf16.mxu1 %v6139_v7  ;;  %v6229_v7 = vld [vmem:[%s8752_s1 + $0x40c] ss:$16 sps:$4 sm:$0xff]  }
 0x131   : > { %4321 = vmatpush2.bf16.msra.mxu0 %v6134_v8  ;;  %v6224_v8 = vld [vmem:[%s8752_s1 + $0x208] ss:$16 sps:$4 sm:$0xff]  }
 0x132   : > { %4374 = vmatpush2.bf16.msra.mxu1 %v6137_v9  ;;  %4322 = vmatprep.subr.bf16.mxu0 %v6142_v10  ;;  %v6227_v9 = vld [vmem:[%s8752_s1 + $0x408] ss:$16 sps:$4 sm:$0xff]   ;;  %v6232_v10 = vld [vmem:[%s8752_s1 + $0x3ec] ss:$16 sps:$4 sm:$0xff]  }
 0x133   : > { %4375 = vmatprep.subr.bf16.mxu1 %v6145_v11  ;;  %v6235_v11 = vld [vmem:[%s8752_s1 + $0x5ec] ss:$16 sps:$4 sm:$0xff]  }
 0x135   : > { %4323 = vmatpush2.bf16.msra.mxu0 %v6140_v12  ;;  %v6230_v12 = vld [vmem:[%s8752_s1 + $0x3e8] ss:$16 sps:$4 sm:$0xff]  }
 0x136   : > { %4376 = vmatpush2.bf16.msra.mxu1 %v6143_v13  ;;  %4324 = vmatprep.subr.bf16.mxu0 %v6148_v14  ;;  %v6233_v13 = vld [vmem:[%s8752_s1 + $0x5e8] ss:$16 sps:$4 sm:$0xff]   ;;  %v6238_v14 = vld [vmem:[%s8752_s1 + $0x3cc] ss:$16 sps:$4 sm:$0xff]  }
 0x137   : > { %4377 = vmatprep.subr.bf16.mxu1 %v6151_v15  ;;  %v6241_v15 = vld [vmem:[%s8752_s1 + $0x5cc] ss:$16 sps:$4 sm:$0xff]  }
 0x139   : > { %4325 = vmatpush2.bf16.msra.mxu0 %v6146_v16  ;;  %v6236_v16 = vld [vmem:[%s8752_s1 + $0x3c8] ss:$16 sps:$4 sm:$0xff]  }
 0x13a   : > { %4378 = vmatpush2.bf16.msra.mxu1 %v6149_v17  ;;  %4326 = vmatprep.subr.bf16.mxu0 %v6154_v18  ;;  %v6239_v17 = vld [vmem:[%s8752_s1 + $0x5c8] ss:$16 sps:$4 sm:$0xff]   ;;  %v6244_v18 = vld [vmem:[%s8752_s1 + $0x3ac] ss:$16 sps:$4 sm:$0xff]  }
 0x13b   : > { %4379 = vmatprep.subr.bf16.mxu1 %v6157_v19  ;;  %v6247_v19 = vld [vmem:[%s8752_s1 + $0x5ac] ss:$16 sps:$4 sm:$0xff]  }
 0x13d   : > { %4327 = vmatpush2.bf16.msra.mxu0 %v6152_v20  ;;  %v6242_v20 = vld [vmem:[%s8752_s1 + $0x3a8] ss:$16 sps:$4 sm:$0xff]  }
 0x13e   : > { %4380 = vmatpush2.bf16.msra.mxu1 %v6155_v21  ;;  %4328 = vmatprep.subr.bf16.mxu0 %v6160_v22  ;;  %v6245_v21 = vld [vmem:[%s8752_s1 + $0x5a8] ss:$16 sps:$4 sm:$0xff]   ;;  %v6250_v22 = vld [vmem:[%s8752_s1 + $0x38c] ss:$16 sps:$4 sm:$0xff]  }
 0x13f   : > { %4381 = vmatprep.subr.bf16.mxu1 %v6163_v23  ;;  %v6253_v23 = vld [vmem:[%s8752_s1 + $0x58c] ss:$16 sps:$4 sm:$0xff]  }
 0x141   : > { %4329 = vmatpush2.bf16.msra.mxu0 %v6158_v24  ;;  %v6248_v24 = vld [vmem:[%s8752_s1 + $0x388] ss:$16 sps:$4 sm:$0xff]  }
 0x142   : > { %4382 = vmatpush2.bf16.msra.mxu1 %v6161_v25  ;;  %4330 = vmatprep.subr.bf16.mxu0 %v6166_v26  ;;  %v6251_v25 = vld [vmem:[%s8752_s1 + $0x588] ss:$16 sps:$4 sm:$0xff]   ;;  %v6256_v26 = vld [vmem:[%s8752_s1 + $0x36c] ss:$16 sps:$4 sm:$0xff]  }
 0x143   : > { %4383 = vmatprep.subr.bf16.mxu1 %v6169_v27  ;;  %v6259_v27 = vld [vmem:[%s8752_s1 + $0x56c] ss:$16 sps:$4 sm:$0xff]  }
 0x145   : > { %4331 = vmatpush2.bf16.msra.mxu0 %v6164_v28  ;;  %v6254_v28 = vld [vmem:[%s8752_s1 + $0x368] ss:$16 sps:$4 sm:$0xff]  }
 0x146   : > { %4384 = vmatpush2.bf16.msra.mxu1 %v6167_v29  ;;  %4332 = vmatprep.subr.bf16.mxu0 %v6172_v30  ;;  %v6257_v29 = vld [vmem:[%s8752_s1 + $0x568] ss:$16 sps:$4 sm:$0xff]   ;;  %v6262_v30 = vld [vmem:[%s8752_s1 + $0x34c] ss:$16 sps:$4 sm:$0xff]  }
 0x147   : > { %4385 = vmatprep.subr.bf16.mxu1 %v6175_v31  ;;  %v6265_v31 = vld [vmem:[%s8752_s1 + $0x54c] ss:$16 sps:$4 sm:$0xff]  }
 0x149   : > { %4333 = vmatpush2.bf16.msra.mxu0 %v6170_v32  ;;  %v6260_v32 = vld [vmem:[%s8752_s1 + $0x348] ss:$16 sps:$4 sm:$0xff]  }
 0x14a   : > { %4386 = vmatpush2.bf16.msra.mxu1 %v6173_v33  ;;  %4408 = vmatprep.subr.bf16.mxu0 %v6181_v34  ;;  %v6263_v33 = vld [vmem:[%s8752_s1 + $0x548] ss:$16 sps:$4 sm:$0xff]   ;;  %v6268_v34 = vld [vmem:[%s8752_s1 + $0x32c] ss:$16 sps:$4 sm:$0xff]  }
 0x14b   : > { %4461 = vmatprep.subr.bf16.mxu1 %v6184_v35  ;;  %v6271_v35 = vld [vmem:[%s8752_s1 + $0x52c] ss:$16 sps:$4 sm:$0xff]  }
 0x14c   : > { %4335 = vmatmul.mubr.bf16.vlgmr.msra.gmra.mxu0 %v6176_v36  ;;  %v6266_v36 = vld [vmem:[%s8752_s1 + $0x328] ss:$16 sps:$4 sm:$0xff]  }
 0x14d   : > { %4388 = vmatmul.mubr.bf16.vlgmr.msra.gmra.mxu1 %v6567_v42  ;;  %4409 = vmatpush1.bf16.msra.mxu0 %v6179_v37  ;;  %v6269_v37 = vld [vmem:[%s8752_s1 + $0x528] ss:$16 sps:$4 sm:$0xff]   ;;  %v6280_v42 = vld [vmem:[%s8752_s1 + $0x6ec] ss:$16 sps:$4 sm:$0xff]  }
 0x14e   : > { %4462 = vmatpush1.bf16.msra.mxu1 %v6182_v38  ;;  %4410 = vmatprep.subr.bf16.mxu0 %v6187_v39  ;;  %v6274_v38 = vld [vmem:[%s8752_s1 + $0x30c] ss:$16 sps:$4 sm:$0xff]  }
 0x14f   : > { %4463 = vmatprep.subr.bf16.mxu1 %v6190_v40  ;;  %4344 = vmatprep.mubr.bf16.mxu0 %v6191_v41  ;;  %v6277_v39 = vld [vmem:[%s8752_s1 + $0x50c] ss:$16 sps:$4 sm:$0xff]   ;;  %v6272_v40 = vld [vmem:[%s8752_s1 + $0x308] ss:$16 sps:$4 sm:$0xff]  }
 0x150   : > { %4397 = vmatprep.mubr.bf16.mxu1 %v6568_v48  ;;  %v6275_v41 = vld [vmem:[%s8752_s1 + $0x508] ss:$16 sps:$4 sm:$0xff]  }
 0x151   : > { %4411 = vmatpush1.bf16.msra.mxu0 %v6185_v43  ;;  %v6283_v43 = vld [vmem:[%s8752_s1 + $0x8ec] ss:$16 sps:$4 sm:$0xff]   ;;  %v6572_v48 = vld [vmem:[%s6786_s12 + $0x8] ss:$72 sps:$4 sm:$0xff]  }
 0x152   : > { %4464 = vmatpush1.bf16.msra.mxu1 %v6188_v44  ;;  %4412 = vmatprep.subr.bf16.mxu0 %v6196_v45  ;;  %v6278_v44 = vld [vmem:[%s8752_s1 + $0x6e8] ss:$16 sps:$4 sm:$0xff]  }
 0x153   : > { %4465 = vmatprep.subr.bf16.mxu1 %v6199_v46  ;;  %v6281_v45 = vld [vmem:[%s8752_s1 + $0x8e8] ss:$16 sps:$4 sm:$0xff]   ;;  %v6286_v46 = vld [vmem:[%s8752_s1 + $0x6cc] ss:$16 sps:$4 sm:$0xff]  }
 0x154   : > { %4345 = vmatmul.mubr.bf16.gmra.mxu0 %v6193_v47  ;;  %v6289_v47 = vld [vmem:[%s8752_s1 + $0x8cc] ss:$16 sps:$4 sm:$0xff]  }
 0x155   : > { %4398 = vmatmul.mubr.bf16.gmra.mxu1 %v6569_v55  ;;  %4413 = vmatpush1.bf16.msra.mxu0 %v6194_v49  ;;  %v6573_v49 = vld [vmem:[%s6786_s12 + $0x10] ss:$72 sps:$4 sm:$0xff]   ;;  %v6575_v55 = vld [vmem:[%s6786_s12 + $0xa4] ss:$72 sps:$4 sm:$0xff]  }
 0x156   : > { %4466 = vmatpush1.bf16.msra.mxu1 %v6197_v50  ;;  %4414 = vmatprep.subr.bf16.mxu0 %v6202_v51  ;;  %v6284_v50 = vld [vmem:[%s8752_s1 + $0x6c8] ss:$16 sps:$4 sm:$0xff]  }
 0x157   : > { %4467 = vmatprep.subr.bf16.mxu1 %v6205_v52  ;;  %4440 = vmatprep.mubr.bf16.mxu0 %v6570_v60  ;;  %v6287_v51 = vld [vmem:[%s8752_s1 + $0x8c8] ss:$16 sps:$4 sm:$0xff]   ;;  %v6292_v52 = vld [vmem:[%s8752_s1 + $0x6ac] ss:$16 sps:$4 sm:$0xff]  }
 0x158   : > { %4493 = vmatprep.mubr.bf16.mxu1 %v6571_v61  ;;  %v6576_v60 = vld [vmem:[%s6786_s12 + $0x98] ss:$72 sps:$4 sm:$0xff]  }
 0x159   : > { %4415 = vmatpush1.bf16.msra.mxu0 %v6200_v53  ;;  %v6295_v53 = vld [vmem:[%s8752_s1 + $0x8ac] ss:$16 sps:$4 sm:$0xff]   ;;  %v6577_v61 = vld [vmem:[%s6786_s12 + $0xa0] ss:$72 sps:$4 sm:$0xff]  }
 0x15a   : > { %4468 = vmatpush1.bf16.msra.mxu1 %v6203_v54  ;;  %4416 = vmatprep.subr.bf16.mxu0 %v6208_v56  ;;  %v6574_v54 = vld [vmem:[%s6786_s12 + $0x9c] ss:$72 sps:$4 sm:$0xff]   ;;  %v6290_v56 = vld [vmem:[%s8752_s1 + $0x6a8] ss:$16 sps:$4 sm:$0xff]  }
 0x15b   : > { %4469 = vmatprep.subr.bf16.mxu1 %v6211_v57  ;;  %v6293_v57 = vld [vmem:[%s8752_s1 + $0x8a8] ss:$16 sps:$4 sm:$0xff]  }
 0x15d   : > { %4417 = vmatpush1.bf16.msra.mxu0 %v6206_v58  ;;  %v6298_v58 = vld [vmem:[%s8752_s1 + $0x68c] ss:$16 sps:$4 sm:$0xff]  }
 0x15e   : > { %4470 = vmatpush1.bf16.msra.mxu1 %v6209_v59  ;;  %4418 = vmatprep.subr.bf16.mxu0 %v6214_v62  ;;  %v6301_v59 = vld [vmem:[%s8752_s1 + $0x88c] ss:$16 sps:$4 sm:$0xff]   ;;  %v6296_v62 = vld [vmem:[%s8752_s1 + $0x688] ss:$16 sps:$4 sm:$0xff]  }
 0x15f   : > { %4471 = vmatprep.subr.bf16.mxu1 %v6217_v63  ;;  %v6299_v63 = vld [vmem:[%s8752_s1 + $0x888] ss:$16 sps:$4 sm:$0xff]  }
 0x161   : > { %4419 = vmatpush1.bf16.msra.mxu0 %v6212_v0  ;;  %v7901_v0 = vpop.f32.mrf.mxu0 }
 0x162   : > { %4472 = vmatpush1.bf16.msra.mxu1 %v6215_v1  ;;  %4420 = vmatprep.subr.bf16.mxu0 %v6220_v2  ;;  %v6304_v1 = vld [vmem:[%s8752_s1 + $0x66c] ss:$16 sps:$4 sm:$0xff]  }
 0x163   : > { %4473 = vmatprep.subr.bf16.mxu1 %v6223_v3  ;;  %v6307_v2 = vld [vmem:[%s8752_s1 + $0x86c] ss:$16 sps:$4 sm:$0xff]  }
 0x164   : > { %v6578_v3 = vld [vmem:[%s6786_s12 + $0x1c] ss:$72 sps:$4 sm:$0xff]  }
 0x165   : > { %4421 = vmatpush1.bf16.msra.mxu0 %v6218_v4  ;;  %v6579_v4 = vld [vmem:[%s6786_s12 + $0x24] ss:$72 sps:$4 sm:$0xff]  }
 0x166   : > { %4474 = vmatpush1.bf16.msra.mxu1 %v6221_v5  ;;  %4422 = vmatprep.subr.bf16.mxu0 %v6226_v6  ;;  %v6302_v5 = vld [vmem:[%s8752_s1 + $0x668] ss:$16 sps:$4 sm:$0xff]  }
 0x167   : > { %4475 = vmatprep.subr.bf16.mxu1 %v6229_v7  ;;  %v6305_v6 = vld [vmem:[%s8752_s1 + $0x868] ss:$16 sps:$4 sm:$0xff]   ;;  %v7917_v7 = vpop.f32.mrf.mxu0 }
 0x169   : > { %4423 = vmatpush1.bf16.msra.mxu0 %v6224_v8  ;;  %v6310_v8 = vld [vmem:[%s8752_s1 + $0x64c] ss:$16 sps:$4 sm:$0xff]  }
 0x16a   : > { %4476 = vmatpush1.bf16.msra.mxu1 %v6227_v9  ;;  %4424 = vmatprep.subr.bf16.mxu0 %v6232_v10  ;;  %v6313_v9 = vld [vmem:[%s8752_s1 + $0x84c] ss:$16 sps:$4 sm:$0xff]   ;;  %v6308_v10 = vld [vmem:[%s8752_s1 + $0x648] ss:$16 sps:$4 sm:$0xff]  }
 0x16b   : > { %4477 = vmatprep.subr.bf16.mxu1 %v6235_v11  ;;  %v6311_v11 = vld [vmem:[%s8752_s1 + $0x848] ss:$16 sps:$4 sm:$0xff]  }
 0x16d   : > { %4425 = vmatpush2.bf16.msra.mxu0 %v6230_v12  ;;  %v7931_v12 = vpop.f32.mrf.mxu0 }
 0x16e   : > { %4478 = vmatpush2.bf16.msra.mxu1 %v6233_v13  ;;  %4426 = vmatprep.subr.bf16.mxu0 %v6238_v14  ;;  %v6316_v13 = vld [vmem:[%s8752_s1 + $0x62c] ss:$16 sps:$4 sm:$0xff]  }
 0x16f   : > { %4479 = vmatprep.subr.bf16.mxu1 %v6241_v15  ;;  %v6319_v14 = vld [vmem:[%s8752_s1 + $0x82c] ss:$16 sps:$4 sm:$0xff]   ;;  %v6314_v15 = vld [vmem:[%s8752_s1 + $0x628] ss:$16 sps:$4 sm:$0xff]  }
 0x171   : > { %4427 = vmatpush2.bf16.msra.mxu0 %v6236_v16  ;;  %v6317_v16 = vld [vmem:[%s8752_s1 + $0x828] ss:$16 sps:$4 sm:$0xff]  }
 0x172   : > { %4480 = vmatpush2.bf16.msra.mxu1 %v6239_v17  ;;  %4428 = vmatprep.subr.bf16.mxu0 %v6244_v18  ;;  %v7945_v17 = vpop.f32.mrf.mxu0  ;;  %v6322_v18 = vld [vmem:[%s8752_s1 + $0x60c] ss:$16 sps:$4 sm:$0xff]  }
 0x173   : > { %4481 = vmatprep.subr.bf16.mxu1 %v6247_v19  ;;  %v6325_v19 = vld [vmem:[%s8752_s1 + $0x80c] ss:$16 sps:$4 sm:$0xff]  }
 0x175   : > { %4429 = vmatpush2.bf16.msra.mxu0 %v6242_v20  ;;  %v7953_v20 = vpop.f32.mrf.mxu0 }
 0x176   : > { %4482 = vmatpush2.bf16.msra.mxu1 %v6245_v21  ;;  %4430 = vmatprep.subr.bf16.mxu0 %v6250_v22  ;;  %v6320_v21 = vld [vmem:[%s8752_s1 + $0x608] ss:$16 sps:$4 sm:$0xff]  }
 0x177   : > { %4483 = vmatprep.subr.bf16.mxu1 %v6253_v23  ;;  %v6323_v22 = vld [vmem:[%s8752_s1 + $0x808] ss:$16 sps:$4 sm:$0xff]   ;;  %v6328_v23 = vld [vmem:[%s8752_s1 + $0x7ec] ss:$16 sps:$4 sm:$0xff]  }
 0x179   : > { %4431 = vmatpush2.bf16.msra.mxu0 %v6248_v24  ;;  %v6331_v24 = vld [vmem:[%s8752_s1 + $0x9ec] ss:$16 sps:$4 sm:$0xff]  }
 0x17a   : > { %4484 = vmatpush2.bf16.msra.mxu1 %v6251_v25  ;;  %4432 = vmatprep.subr.bf16.mxu0 %v6256_v26  ;;  %v7967_v25 = vpop.f32.mrf.mxu1  ;;  %v7969_v26 = vpop.f32.mrf.mxu0 }
 0x17b   : > { %4485 = vmatprep.subr.bf16.mxu1 %v6259_v27  ;;  %v6326_v27 = vld [vmem:[%s8752_s1 + $0x7e8] ss:$16 sps:$4 sm:$0xff]  }
 0x17d   : > { %4433 = vmatpush2.bf16.msra.mxu0 %v6254_v28  ;;  %v6329_v28 = vld [vmem:[%s8752_s1 + $0x9e8] ss:$16 sps:$4 sm:$0xff]  }
 0x17e   : > { %4486 = vmatpush2.bf16.msra.mxu1 %v6257_v29  ;;  %4434 = vmatprep.subr.bf16.mxu0 %v6262_v30  ;;  %v6334_v29 = vld [vmem:[%s8752_s1 + $0x7cc] ss:$16 sps:$4 sm:$0xff]  }
 0x17f   : > { %4487 = vmatprep.subr.bf16.mxu1 %v6265_v31  ;;  %v6337_v30 = vld [vmem:[%s8752_s1 + $0x9cc] ss:$16 sps:$4 sm:$0xff]   ;;  %v7983_v31 = vpop.f32.mrf.mxu1 }
 0x181   : > { %4435 = vmatpush2.bf16.msra.mxu0 %v6260_v32  ;;  %v7985_v32 = vpop.f32.mrf.mxu0 }
 0x182   : > { %4488 = vmatpush2.bf16.msra.mxu1 %v6263_v33  ;;  %4436 = vmatprep.subr.bf16.mxu0 %v6268_v34  ;;  %v6332_v33 = vld [vmem:[%s8752_s1 + $0x7c8] ss:$16 sps:$4 sm:$0xff]  }
 0x183   : > { %4489 = vmatprep.subr.bf16.mxu1 %v6271_v35  ;;  %v6335_v34 = vld [vmem:[%s8752_s1 + $0x9c8] ss:$16 sps:$4 sm:$0xff]   ;;  %v6340_v35 = vld [vmem:[%s8752_s1 + $0x7ac] ss:$16 sps:$4 sm:$0xff]  }
 0x185   : > { %4437 = vmatpush2.bf16.msra.mxu0 %v6266_v36  ;;  %v6343_v36 = vld [vmem:[%s8752_s1 + $0x9ac] ss:$16 sps:$4 sm:$0xff]  }
 0x186   : > { %4490 = vmatpush2.bf16.msra.mxu1 %v6269_v37  ;;  %4438 = vmatprep.subr.bf16.mxu0 %v6274_v38  ;;  %v7999_v37 = vpop.f32.mrf.mxu1  ;;  %v8001_v38 = vpop.f32.mrf.mxu0 }
 0x187   : > { %4491 = vmatprep.subr.bf16.mxu1 %v6277_v39  ;;  %v6338_v39 = vld [vmem:[%s8752_s1 + $0x7a8] ss:$16 sps:$4 sm:$0xff]  }
 0x189   : > { %4439 = vmatpush2.bf16.msra.mxu0 %v6272_v40  ;;  %v6341_v40 = vld [vmem:[%s8752_s1 + $0x9a8] ss:$16 sps:$4 sm:$0xff]  }
 0x18a   : > { %4492 = vmatpush2.bf16.msra.mxu1 %v6275_v41  ;;  %4514 = vmatprep.subr.bf16.mxu0 %v6280_v42  ;;  %v8009_v41 = vpop.f32.mrf.mxu0  ;;  %v6346_v42 = vld [vmem:[%s8752_s1 + $0x78c] ss:$16 sps:$4 sm:$0xff]  }
 0x18b   : > { %4567 = vmatprep.subr.bf16.mxu1 %v6283_v43  ;;  %v6349_v43 = vld [vmem:[%s8752_s1 + $0x98c] ss:$16 sps:$4 sm:$0xff]  }
 0x18c   : > { %4441 = vmatmul.mubr.bf16.vlgmr.msra.gmra.mxu0 %v6572_v48  ;;  %v8027_v48 = vpop.f32.mrf.mxu0 }
 0x18d   : > { %4494 = vmatmul.mubr.bf16.vlgmr.msra.gmra.mxu1 %v6573_v49  ;;  %4515 = vmatpush1.bf16.msra.mxu0 %v6278_v44  ;;  %v8017_v44 = vpop.f32.mrf.mxu1  ;;  %v6352_v49 = vld [vmem:[%s8752_s1 + $0x76c] ss:$16 sps:$4 sm:$0xff]  }
 0x18e   : > { %4568 = vmatpush1.bf16.msra.mxu1 %v6281_v45  ;;  %4516 = vmatprep.subr.bf16.mxu0 %v6286_v46  ;;  %v6344_v46 = vld [vmem:[%s8752_s1 + $0x788] ss:$16 sps:$4 sm:$0xff]  }
 0x18f   : > { %4569 = vmatprep.subr.bf16.mxu1 %v6289_v47  ;;  %4450 = vmatprep.mubr.bf16.mxu0 %v6574_v54  ;;  %v8019_v45 = vpop.f32.mrf.mxu1  ;;  %v6347_v47 = vld [vmem:[%s8752_s1 + $0x988] ss:$16 sps:$4 sm:$0xff]   ;;  %v8043_v54 = vpop.f32.mrf.mxu0 }
 0x190   : > { %4503 = vmatprep.mubr.bf16.mxu1 %v6575_v55  ;;  %v6358_v55 = vld [vmem:[%s8752_s1 + $0x74c] ss:$16 sps:$4 sm:$0xff]  }
 0x191   : > { %4517 = vmatpush1.bf16.msra.mxu0 %v6284_v50  ;;  %v6355_v50 = vld [vmem:[%s8752_s1 + $0x96c] ss:$16 sps:$4 sm:$0xff]  }
 0x192   : > { %4570 = vmatpush1.bf16.msra.mxu1 %v6287_v51  ;;  %4518 = vmatprep.subr.bf16.mxu0 %v6292_v52  ;;  %v8035_v51 = vpop.f32.mrf.mxu1  ;;  %v6350_v52 = vld [vmem:[%s8752_s1 + $0x768] ss:$16 sps:$4 sm:$0xff]  }
 0x193   : > { %4571 = vmatprep.subr.bf16.mxu1 %v6295_v53  ;;  %v6353_v53 = vld [vmem:[%s8752_s1 + $0x968] ss:$16 sps:$4 sm:$0xff]  }
 0x194   : > { %4451 = vmatmul.mubr.bf16.gmra.mxu0 %v6576_v60  ;;  %v8059_v60 = vpop.f32.mrf.mxu0 }
 0x195   : > { %4504 = vmatmul.mubr.bf16.gmra.mxu1 %v6577_v61  ;;  %4519 = vmatpush1.bf16.msra.mxu0 %v6290_v56  ;;  %v6361_v56 = vld [vmem:[%s8752_s1 + $0x94c] ss:$16 sps:$4 sm:$0xff]  }
 0x196   : > { %4572 = vmatpush1.bf16.msra.mxu1 %v6293_v57  ;;  %4520 = vmatprep.subr.bf16.mxu0 %v6298_v58  ;;  %v8051_v57 = vpop.f32.mrf.mxu1  ;;  %v6356_v58 = vld [vmem:[%s8752_s1 + $0x748] ss:$16 sps:$4 sm:$0xff]   ;;  %v6364_v61 = vld [vmem:[%s8752_s1 + $0x72c] ss:$16 sps:$4 sm:$0xff]  }
 0x197   : > { %4573 = vmatprep.subr.bf16.mxu1 %v6301_v59  ;;  %4546 = vmatprep.mubr.bf16.mxu0 %v6578_v3  ;;  %v6359_v59 = vld [vmem:[%s8752_s1 + $0x948] ss:$16 sps:$4 sm:$0xff]   ;;  %v8075_v3 = vpop.f32.mrf.mxu0 }
 0x198   : > { %4599 = vmatprep.mubr.bf16.mxu1 %v6579_v4  ;;  %v6370_v4 = vld [vmem:[%s8752_s1 + $0x70c] ss:$16 sps:$4 sm:$0xff]  }
 0x199   : > { %4521 = vmatpush1.bf16.msra.mxu0 %v6296_v62  ;;  %v6367_v62 = vld [vmem:[%s8752_s1 + $0x92c] ss:$16 sps:$4 sm:$0xff]  }
 0x19a   : > { %4574 = vmatpush1.bf16.msra.mxu1 %v6299_v63  ;;  %4522 = vmatprep.subr.bf16.mxu0 %v6304_v1  ;;  %v8067_v63 = vpop.f32.mrf.mxu1  ;;  %v6362_v1 = vld [vmem:[%s8752_s1 + $0x728] ss:$16 sps:$4 sm:$0xff]  }
 0x19b   : > { %4575 = vmatprep.subr.bf16.mxu1 %v6307_v2  ;;  %v6365_v2 = vld [vmem:[%s8752_s1 + $0x928] ss:$16 sps:$4 sm:$0xff]  }
 0x19d   : > { %4523 = vmatpush1.bf16.msra.mxu0 %v6302_v5  ;;  %v6373_v5 = vld [vmem:[%s8752_s1 + $0x90c] ss:$16 sps:$4 sm:$0xff]  }
 0x19e   : > { %4576 = vmatpush1.bf16.msra.mxu1 %v6305_v6  ;;  %4524 = vmatprep.subr.bf16.mxu0 %v6310_v8  ;;  %v8083_v6 = vpop.f32.mrf.mxu1  ;;  %v6368_v8 = vld [vmem:[%s8752_s1 + $0x708] ss:$16 sps:$4 sm:$0xff]  }
 0x19f   : > { %4577 = vmatprep.subr.bf16.mxu1 %v6313_v9  ;;  %v6371_v9 = vld [vmem:[%s8752_s1 + $0x908] ss:$16 sps:$4 sm:$0xff]  }
 0x1a1   : > { %4525 = vmatpush1.bf16.msra.mxu0 %v6308_v10  ;;  %v8091_v10 = vpop.f32.mrf.mxu0 }
 0x1a2   : > { %4578 = vmatpush1.bf16.msra.mxu1 %v6311_v11  ;;  %4526 = vmatprep.subr.bf16.mxu0 %v6316_v13  ;;  %v6376_v11 = vld [vmem:[%s8752_s1 + $0xaec] ss:$16 sps:$4 sm:$0xff]  }
 0x1a3   : > { %4579 = vmatprep.subr.bf16.mxu1 %v6319_v14  ;;  %v6379_v13 = vld [vmem:[%s8752_s1 + $0xcec] ss:$16 sps:$4 sm:$0xff]   ;;  %v8099_v14 = vpop.f32.mrf.mxu1 }
 0x1a5   : > { %4527 = vmatpush1.bf16.msra.mxu0 %v6314_v15  ;;  %v6374_v15 = vld [vmem:[%s8752_s1 + $0xae8] ss:$16 sps:$4 sm:$0xff]  }
 0x1a6   : > { %4580 = vmatpush1.bf16.msra.mxu1 %v6317_v16  ;;  %4528 = vmatprep.subr.bf16.mxu0 %v6322_v18  ;;  %v6377_v16 = vld [vmem:[%s8752_s1 + $0xce8] ss:$16 sps:$4 sm:$0xff]   ;;  %v8107_v18 = vpop.f32.mrf.mxu0 }
 0x1a7   : > { %4581 = vmatprep.subr.bf16.mxu1 %v6325_v19  ;;  %v6382_v19 = vld [vmem:[%s8752_s1 + $0xacc] ss:$16 sps:$4 sm:$0xff]  }
 0x1a9   : > { %4529 = vmatpush1.bf16.msra.mxu0 %v6320_v21  ;;  %v6385_v21 = vld [vmem:[%s8752_s1 + $0xccc] ss:$16 sps:$4 sm:$0xff]  }
 0x1aa   : > { %4582 = vmatpush1.bf16.msra.mxu1 %v6323_v22  ;;  %4530 = vmatprep.subr.bf16.mxu0 %v6328_v23  ;;  %v8115_v22 = vpop.f32.mrf.mxu1  ;;  %v6580_v23 = vld [vmem:[%s6786_s12 + $0x18] ss:$72 sps:$4 sm:$0xff]  }
 0x1ab   : > { %4583 = vmatprep.subr.bf16.mxu1 %v6331_v24  ;;  %v6581_v24 = vld [vmem:[%s6786_s12 + $0x20] ss:$72 sps:$4 sm:$0xff]  }
 0x1ad   : > { %4531 = vmatpush2.bf16.msra.mxu0 %v6326_v27  ;;  %v6380_v27 = vld [vmem:[%s8752_s1 + $0xac8] ss:$16 sps:$4 sm:$0xff]  }
 0x1ae   : > { %4584 = vmatpush2.bf16.msra.mxu1 %v6329_v28  ;;  %4532 = vmatprep.subr.bf16.mxu0 %v6334_v29  ;;  %v6383_v28 = vld [vmem:[%s8752_s1 + $0xcc8] ss:$16 sps:$4 sm:$0xff]   ;;  %v8125_v29 = vpop.f32.mrf.mxu0 }
 0x1af   : > { %4585 = vmatprep.subr.bf16.mxu1 %v6337_v30  ;;  %v6388_v30 = vld [vmem:[%s8752_s1 + $0xaac] ss:$16 sps:$4 sm:$0xff]  }
 0x1b1   : > { %4533 = vmatpush2.bf16.msra.mxu0 %v6332_v33  ;;  %v6391_v33 = vld [vmem:[%s8752_s1 + $0xcac] ss:$16 sps:$4 sm:$0xff]  }
 0x1b2   : > { %4586 = vmatpush2.bf16.msra.mxu1 %v6335_v34  ;;  %4534 = vmatprep.subr.bf16.mxu0 %v6340_v35  ;;  %v8133_v34 = vpop.f32.mrf.mxu1  ;;  %v6582_v35 = vld [vmem:[%s6786_s12 + $0xac] ss:$72 sps:$4 sm:$0xff]  }
 0x1b3   : > { %4587 = vmatprep.subr.bf16.mxu1 %v6343_v36  ;;  %v6583_v36 = vld [vmem:[%s6786_s12 + $0xb4] ss:$72 sps:$4 sm:$0xff]  }
 0x1b5   : > { %4535 = vmatpush2.bf16.msra.mxu0 %v6338_v39  ;;  %v8137_v39 = vpop.f32.mrf.mxu0 }
 0x1b6   : > { %4588 = vmatpush2.bf16.msra.mxu1 %v6341_v40  ;;  %4536 = vmatprep.subr.bf16.mxu0 %v6346_v42  ;;  %v8139_v40 = vpop.f32.mrf.mxu1  ;;  %v6386_v42 = vld [vmem:[%s8752_s1 + $0xaa8] ss:$16 sps:$4 sm:$0xff]  }
 0x1b7   : > { %4589 = vmatprep.subr.bf16.mxu1 %v6349_v43  ;;  %v6389_v43 = vld [vmem:[%s8752_s1 + $0xca8] ss:$16 sps:$4 sm:$0xff]  }
 0x1b9   : > { %4537 = vmatpush2.bf16.msra.mxu0 %v6344_v46  ;;  %v6394_v46 = vld [vmem:[%s8752_s1 + $0xa8c] ss:$16 sps:$4 sm:$0xff]  }
 0x1ba   : > { %4590 = vmatpush2.bf16.msra.mxu1 %v6347_v47  ;;  %4538 = vmatprep.subr.bf16.mxu0 %v6352_v49  ;;  %v6397_v47 = vld [vmem:[%s8752_s1 + $0xc8c] ss:$16 sps:$4 sm:$0xff]   ;;  %v8153_v49 = vpop.f32.mrf.mxu0 }
 0x1bb   : > { %4591 = vmatprep.subr.bf16.mxu1 %v6355_v50  ;;  %v6584_v50 = vld [vmem:[%s6786_s12 + $0xa8] ss:$72 sps:$4 sm:$0xff]  }
 0x1bd   : > { %4539 = vmatpush2.bf16.msra.mxu0 %v6350_v52  ;;  %v6585_v52 = vld [vmem:[%s6786_s12 + $0xb0] ss:$72 sps:$4 sm:$0xff]  }
 0x1be   : > { %4592 = vmatpush2.bf16.msra.mxu1 %v6353_v53  ;;  %4540 = vmatprep.subr.bf16.mxu0 %v6358_v55  ;;  %v8157_v53 = vpop.f32.mrf.mxu1  ;;  %v6392_v55 = vld [vmem:[%s8752_s1 + $0xa88] ss:$16 sps:$4 sm:$0xff]  }
 0x1bf   : > { %4593 = vmatprep.subr.bf16.mxu1 %v6361_v56  ;;  %v6395_v56 = vld [vmem:[%s8752_s1 + $0xc88] ss:$16 sps:$4 sm:$0xff]  }
 0x1c1   : > { %4541 = vmatpush2.bf16.msra.mxu0 %v6356_v58  ;;  %v6400_v58 = vld [vmem:[%s8752_s1 + $0xa6c] ss:$16 sps:$4 sm:$0xff]  }
 0x1c2   : > { %4594 = vmatpush2.bf16.msra.mxu1 %v6359_v59  ;;  %4542 = vmatprep.subr.bf16.mxu0 %v6364_v61  ;;  %v6403_v59 = vld [vmem:[%s8752_s1 + $0xc6c] ss:$16 sps:$4 sm:$0xff]  }
 0x1c3   : > { %4595 = vmatprep.subr.bf16.mxu1 %v6367_v62  ;;  %v6586_v61 = vld [vmem:[%s6786_s12 + $0x2c] ss:$72 sps:$4 sm:$0xff]  }
 0x1c4   : > { %v6587_v62 = vld [vmem:[%s6786_s12 + $0x34] ss:$72 sps:$4 sm:$0xff]  }
 0x1c5   : > { %4543 = vmatpush2.bf16.msra.mxu0 %v6362_v1  ;;  %v8173_v1 = vpop.f32.mrf.mxu0 }
 0x1c6   : > { %4596 = vmatpush2.bf16.msra.mxu1 %v6365_v2  ;;  %4544 = vmatprep.subr.bf16.mxu0 %v6370_v4  ;;  %v8175_v2 = vpop.f32.mrf.mxu1  ;;  %v6398_v4 = vld [vmem:[%s8752_s1 + $0xa68] ss:$16 sps:$4 sm:$0xff]  }
 0x1c7   : > { %4597 = vmatprep.subr.bf16.mxu1 %v6373_v5  ;;  %v6401_v5 = vld [vmem:[%s8752_s1 + $0xc68] ss:$16 sps:$4 sm:$0xff]  }
 0x1c9   : > { %4545 = vmatpush2.bf16.msra.mxu0 %v6368_v8  ;;  %v6406_v8 = vld [vmem:[%s8752_s1 + $0xa4c] ss:$16 sps:$4 sm:$0xff]  }
 0x1ca   : > { %4598 = vmatpush2.bf16.msra.mxu1 %v6371_v9  ;;  %4620 = vmatprep.subr.bf16.mxu0 %v6376_v11  ;;  %v6409_v9 = vld [vmem:[%s8752_s1 + $0xc4c] ss:$16 sps:$4 sm:$0xff]   ;;  %v8189_v11 = vpop.f32.mrf.mxu0 }
 0x1cb   : > { %4673 = vmatprep.subr.bf16.mxu1 %v6379_v13  ;;  %v8191_v13 = vpop.f32.mrf.mxu1 }
 0x1cc   : > { %4547 = vmatmul.mubr.bf16.vlgmr.msra.gmra.mxu0 %v6580_v23 }
 0x1cd   : > { %4600 = vmatmul.mubr.bf16.vlgmr.msra.gmra.mxu1 %v6581_v24  ;;  %4621 = vmatpush1.bf16.msra.mxu0 %v6374_v15  ;;  %v6404_v15 = vld [vmem:[%s8752_s1 + $0xa48] ss:$16 sps:$4 sm:$0xff]   ;;  %v8205_v23 = vpop.f32.mrf.mxu1  ;;  %v8207_v24 = vpop.f32.mrf.mxu0 }
 0x1ce   : > { %4674 = vmatpush1.bf16.msra.mxu1 %v6377_v16  ;;  %4622 = vmatprep.subr.bf16.mxu0 %v6382_v19  ;;  %v6407_v16 = vld [vmem:[%s8752_s1 + $0xc48] ss:$16 sps:$4 sm:$0xff]   ;;  %v6412_v19 = vld [vmem:[%s8752_s1 + $0xa2c] ss:$16 sps:$4 sm:$0xff]  }
 0x1cf   : > { %4675 = vmatprep.subr.bf16.mxu1 %v6385_v21  ;;  %4556 = vmatprep.mubr.bf16.mxu0 %v6582_v35  ;;  %v6415_v21 = vld [vmem:[%s8752_s1 + $0xc2c] ss:$16 sps:$4 sm:$0xff]   ;;  %v8221_v35 = vpop.f32.mrf.mxu1 }
 0x1d0   : > { %4609 = vmatprep.mubr.bf16.mxu1 %v6583_v36  ;;  %v8223_v36 = vpop.f32.mrf.mxu0 }
 0x1d1   : > { %4623 = vmatpush1.bf16.msra.mxu0 %v6380_v27  ;;  %v6410_v27 = vld [vmem:[%s8752_s1 + $0xa28] ss:$16 sps:$4 sm:$0xff]  }
 0x1d2   : > { %4676 = vmatpush1.bf16.msra.mxu1 %v6383_v28  ;;  %4624 = vmatprep.subr.bf16.mxu0 %v6388_v30  ;;  %v6413_v28 = vld [vmem:[%s8752_s1 + $0xc28] ss:$16 sps:$4 sm:$0xff]   ;;  %v6418_v30 = vld [vmem:[%s8752_s1 + $0xa0c] ss:$16 sps:$4 sm:$0xff]  }
 0x1d3   : > { %4677 = vmatprep.subr.bf16.mxu1 %v6391_v33  ;;  %v6421_v33 = vld [vmem:[%s8752_s1 + $0xc0c] ss:$16 sps:$4 sm:$0xff]  }
 0x1d4   : > { %4557 = vmatmul.mubr.bf16.gmra.mxu0 %v6584_v50  ;;  %v8237_v50 = vpop.f32.mrf.mxu1 }
 0x1d5   : > { %4610 = vmatmul.mubr.bf16.gmra.mxu1 %v6585_v52  ;;  %4625 = vmatpush1.bf16.msra.mxu0 %v6386_v42  ;;  %v6416_v42 = vld [vmem:[%s8752_s1 + $0xa08] ss:$16 sps:$4 sm:$0xff]   ;;  %v8239_v52 = vpop.f32.mrf.mxu0 }
 0x1d6   : > { %4678 = vmatpush1.bf16.msra.mxu1 %v6389_v43  ;;  %4626 = vmatprep.subr.bf16.mxu0 %v6394_v46  ;;  %v6419_v43 = vld [vmem:[%s8752_s1 + $0xc08] ss:$16 sps:$4 sm:$0xff]   ;;  %v6424_v46 = vld [vmem:[%s8752_s1 + $0xbec] ss:$16 sps:$4 sm:$0xff]  }
 0x1d7   : > { %4679 = vmatprep.subr.bf16.mxu1 %v6397_v47  ;;  %4652 = vmatprep.mubr.bf16.mxu0 %v6586_v61  ;;  %v6427_v47 = vld [vmem:[%s8752_s1 + $0xdec] ss:$16 sps:$4 sm:$0xff]   ;;  %v8253_v61 = vpop.f32.mrf.mxu1 }
 0x1d8   : > { %4705 = vmatprep.mubr.bf16.mxu1 %v6587_v62  ;;  %v8255_v62 = vpop.f32.mrf.mxu0 }
 0x1d9   : > { %4627 = vmatpush1.bf16.msra.mxu0 %v6392_v55  ;;  %v6422_v55 = vld [vmem:[%s8752_s1 + $0xbe8] ss:$16 sps:$4 sm:$0xff]  }
 0x1da   : > { %4680 = vmatpush1.bf16.msra.mxu1 %v6395_v56  ;;  %4628 = vmatprep.subr.bf16.mxu0 %v6400_v58  ;;  %v6425_v56 = vld [vmem:[%s8752_s1 + $0xde8] ss:$16 sps:$4 sm:$0xff]   ;;  %v6430_v58 = vld [vmem:[%s8752_s1 + $0xbcc] ss:$16 sps:$4 sm:$0xff]  }
 0x1db   : > { %4681 = vmatprep.subr.bf16.mxu1 %v6403_v59  ;;  %v6433_v59 = vld [vmem:[%s8752_s1 + $0xdcc] ss:$16 sps:$4 sm:$0xff]  }
 0x1dd   : > { %4629 = vmatpush1.bf16.msra.mxu0 %v6398_v4  ;;  %v8257_v4 = vpop.f32.mrf.mxu1 }
 0x1de   : > { %4682 = vmatpush1.bf16.msra.mxu1 %v6401_v5  ;;  %4630 = vmatprep.subr.bf16.mxu0 %v6406_v8  ;;  %v6428_v5 = vld [vmem:[%s8752_s1 + $0xbc8] ss:$16 sps:$4 sm:$0xff]  }
 0x1df   : > { %4683 = vmatprep.subr.bf16.mxu1 %v6409_v9  ;;  %v6431_v8 = vld [vmem:[%s8752_s1 + $0xdc8] ss:$16 sps:$4 sm:$0xff]   ;;  %v8265_v9 = vpop.f32.mrf.mxu0 }
 0x1e1   : > { %4631 = vmatpush1.bf16.msra.mxu0 %v6404_v15  ;;  %v6436_v15 = vld [vmem:[%s8752_s1 + $0xbac] ss:$16 sps:$4 sm:$0xff]  }
 0x1e2   : > { %4684 = vmatpush1.bf16.msra.mxu1 %v6407_v16  ;;  %4632 = vmatprep.subr.bf16.mxu0 %v6412_v19  ;;  %v6439_v16 = vld [vmem:[%s8752_s1 + $0xdac] ss:$16 sps:$4 sm:$0xff]   ;;  %v8273_v19 = vpop.f32.mrf.mxu1 }
 0x1e3   : > { %4685 = vmatprep.subr.bf16.mxu1 %v6415_v21  ;;  %v6434_v21 = vld [vmem:[%s8752_s1 + $0xba8] ss:$16 sps:$4 sm:$0xff]  }
 0x1e5   : > { %4633 = vmatpush1.bf16.msra.mxu0 %v6410_v27  ;;  %v6437_v27 = vld [vmem:[%s8752_s1 + $0xda8] ss:$16 sps:$4 sm:$0xff]  }
 0x1e6   : > { %4686 = vmatpush1.bf16.msra.mxu1 %v6413_v28  ;;  %4634 = vmatprep.subr.bf16.mxu0 %v6418_v30  ;;  %v8281_v28 = vpop.f32.mrf.mxu0  ;;  %v6442_v30 = vld [vmem:[%s8752_s1 + $0xb8c] ss:$16 sps:$4 sm:$0xff]  }
 0x1e7   : > { %4687 = vmatprep.subr.bf16.mxu1 %v6421_v33  ;;  %v6445_v33 = vld [vmem:[%s8752_s1 + $0xd8c] ss:$16 sps:$4 sm:$0xff]  }
 0x1e9   : > { %4635 = vmatpush1.bf16.msra.mxu0 %v6416_v42  ;;  %v8289_v42 = vpop.f32.mrf.mxu1 }
 0x1ea   : > { %4688 = vmatpush1.bf16.msra.mxu1 %v6419_v43  ;;  %4636 = vmatprep.subr.bf16.mxu0 %v6424_v46  ;;  %v6440_v43 = vld [vmem:[%s8752_s1 + $0xb88] ss:$16 sps:$4 sm:$0xff]  }
 0x1eb   : > { %4689 = vmatprep.subr.bf16.mxu1 %v6427_v47  ;;  %v6443_v46 = vld [vmem:[%s8752_s1 + $0xd88] ss:$16 sps:$4 sm:$0xff]   ;;  %v8297_v47 = vpop.f32.mrf.mxu0 }
 0x1ed   : > { %4637 = vmatpush2.bf16.msra.mxu0 %v6422_v55  ;;  %v6448_v55 = vld [vmem:[%s8752_s1 + $0xb6c] ss:$16 sps:$4 sm:$0xff]  }
 0x1ee   : > { %4690 = vmatpush2.bf16.msra.mxu1 %v6425_v56  ;;  %4638 = vmatprep.subr.bf16.mxu0 %v6430_v58  ;;  %v6451_v56 = vld [vmem:[%s8752_s1 + $0xd6c] ss:$16 sps:$4 sm:$0xff]   ;;  %v3966_v58 = vadd.f32 %v7967_v25, %v7901_v0 }
 0x1ef   : > { %4691 = vmatprep.subr.bf16.mxu1 %v6433_v59  ;;  %v8307_v59 = vpop.f32.mrf.mxu1  ;;  %v6454_v0 = vld [vmem:[%s8752_s1 + $0xb4c] ss:$16 sps:$4 sm:$0xff]  }
 0x1f0   : > { %v6457_v25 = vld [vmem:[%s8752_s1 + $0xd4c] ss:$16 sps:$4 sm:$0xff]  }
 0x1f1   : > { %4639 = vmatpush2.bf16.msra.mxu0 %v6428_v5  ;;  %v6446_v5 = vld [vmem:[%s8752_s1 + $0xb68] ss:$16 sps:$4 sm:$0xff]  }
 0x1f2   : > { %4692 = vmatpush2.bf16.msra.mxu1 %v6431_v8  ;;  %4640 = vmatprep.subr.bf16.mxu0 %v6436_v15  ;;  %v6449_v8 = vld [vmem:[%s8752_s1 + $0xd68] ss:$16 sps:$4 sm:$0xff]   ;;  %v8315_v15 = vpop.f32.mrf.mxu0 }
 0x1f3   : > { %4693 = vmatprep.subr.bf16.mxu1 %v6439_v16  ;;  %v3968_v16 = vadd.f32 %v7983_v31, %v7917_v7  ;;  %v3972_v7 = vadd.f32 %v8017_v44, %v7945_v17 }
 0x1f4   : > { %v8339_v31 = vpop.f32.mrf.mxu0 }
 0x1f5   : > { %4641 = vmatpush2.bf16.msra.mxu0 %v6434_v21  ;;  %v4019_v21 = vadd.f32 %v8009_v41, %v3966_v58  ;;  %v4025_v17 = vadd.f32 %v8059_v60, %v3972_v7  ;;  %v3978_v60 = vadd.f32 %v8035_v51, %v7969_v26  ;;  %v8413_v7 = vld [vmem:[%s8753_s2] sm:$0xf] }
 0x1f6   : > { %4694 = vmatpush2.bf16.msra.mxu1 %v6437_v27  ;;  %4642 = vmatprep.subr.bf16.mxu0 %v6442_v30  ;;  %v8326_v27 = vpop.f32.mrf.mxu1  ;;  %v3970_v30 = vadd.f32 %v7999_v37, %v7931_v12  ;;  %v6460_v12 = vld [vmem:[%s8752_s1 + $0xb2c] ss:$16 sps:$4 sm:$0xff]  }
 0x1f7   : > { %4695 = vmatprep.subr.bf16.mxu1 %v6445_v33  ;;  %v4021_v33 = vadd.f32 %v8027_v48, %v3968_v16  ;;  %v6463_v37 = vld [vmem:[%s8752_s1 + $0xd2c] ss:$16 sps:$4 sm:$0xff]   ;;  %v4072_v41 = vadd.f32 %v8083_v6, %v4019_v21  ;;  %v6461_v6 = vld [vmem:[%s8752_s1 + $0xd28] ss:$16 sps:$4 sm:$0xff]   ;;  %v4031_v16 = vadd.f32 %v8091_v10, %v3978_v60 }
 0x1f8   : > { %v4023_v48 = vadd.f32 %v8043_v54, %v3970_v30  ;;  %v3976_v54 = vadd.f32 %v8019_v45, %v7953_v20  ;;  %v3982_v20 = vadd.f32 %v8067_v63, %v8001_v38  ;;  %v6589_v60 = vld [vmem:[%s6786_s12 + $0x30] ss:$72 sps:$4 sm:$0xff]  }
 0x1f9   : > { %4643 = vmatpush2.bf16.msra.mxu0 %v6440_v43  ;;  %v6452_v43 = vld [vmem:[%s8752_s1 + $0xb48] ss:$16 sps:$4 sm:$0xff]   ;;  %v4074_v44 = vadd.f32 %v8099_v14, %v4021_v33  ;;  %v4125_v58 = vadd.f32 %v8137_v39, %v4072_v41  ;;  %v3980_v14 = vadd.f32 %v8051_v57, %v7985_v32  ;;  %v8366_v39 = vpop.f32.mrf.mxu0  ;;  %v4078_v57 = vadd.f32 %v8133_v34, %v4025_v17  ;;  %v6481_v17 = vld [vmem:[%s8752_s1 + $0x10cc] ss:$16 sps:$4 sm:$0xff]  }
 0x1fa   : > { %4696 = vmatpush2.bf16.msra.mxu1 %v6443_v46  ;;  %4644 = vmatprep.subr.bf16.mxu0 %v6448_v55  ;;  %v6455_v46 = vld [vmem:[%s8752_s1 + $0xd48] ss:$16 sps:$4 sm:$0xff]   ;;  %v8349_v55 = vpop.f32.mrf.mxu1  ;;  %v4076_v26 = vadd.f32 %v8115_v22, %v4023_v48  ;;  %v4035_v30 = vadd.f32 %v8125_v29, %v3982_v20  ;;  %v6475_v29 = vld [vmem:[%s8752_s1 + $0x10ec] ss:$16 sps:$4 sm:$0xff]  }
 0x1fb   : > { %4697 = vmatprep.subr.bf16.mxu1 %v6451_v56  ;;  %v4834_v56 = vlaneseq  ;;  %v4127_v45 = vadd.f32 %v8153_v49, %v4074_v44  ;;  %v4033_v21 = vadd.f32 %v8107_v18, %v3980_v14  ;;  %v4178_v38 = vadd.f32 %v8205_v23, %v4125_v58  ;;  %v6464_v22 = vld [vmem:[%s8752_s1 + $0xb08] ss:$16 sps:$4 sm:$0xff]   ;;  %v8396_v34 = vpop.f32.mrf.mxu0  ;;  %v6472_v18 = vld [vmem:[%s8752_s1 + $0xeec] ss:$16 sps:$4 sm:$0xff]  }
 0x1fc   : > { %v8378_v32 = vpop.f32.mrf.mxu1  ;;  %v4129_v63 = vadd.f32 %v8173_v1, %v4076_v26  ;;  %v4131_v10 = vadd.f32 %v8189_v11, %v4078_v57  ;;  %v6473_v41 = vld [vmem:[%s8752_s1 + $0x10e8] ss:$16 sps:$4 sm:$0xff]   ;;  %v6484_v57 = vld [vmem:[%s8752_s1 + $0xeac] ss:$16 sps:$4 sm:$0xff]  }
 0x1fd   : > { %4645 = vmatpush2.bf16.msra.mxu0 %v6446_v5  ;;  %v6458_v5 = vld [vmem:[%s8752_s1 + $0xb28] ss:$16 sps:$4 sm:$0xff]   ;;  %v8380_v51 = vshrl.u32 %v4834_v56, 7  ;;  %v4180_v49 = vadd.f32 %v8221_v35, %v4127_v45  ;;  %v4231_v1 = vadd.f32 %v8265_v9, %v4178_v38  ;;  %v8418_v35 = vld [vmem:[%s8754_s3] sm:$0xf] }
 0x1fe   : > { %4698 = vmatpush2.bf16.msra.mxu1 %v6449_v8  ;;  %4646 = vmatprep.subr.bf16.mxu0 %v6454_v0  ;;  %v6466_v8 = vld [vmem:[%s8752_s1 + $0xb0c] ss:$16 sps:$4 sm:$0xff]   ;;  %v4289_v23 = vpop.f32.mrf.mxu1  ;;  %8758 = vst [vmem:[#allocation2_spill] sm:$0xff] %v8418_v35  ;;  %v4184_v48 = vadd.f32 %v8253_v61, %v4131_v10 }
 0x1ff   : > { %4699 = vmatprep.subr.bf16.mxu1 %v6457_v25  ;;  %v6469_v0 = vld [vmem:[%s8752_s1 + $0xd0c] ss:$16 sps:$4 sm:$0xff]   ;;  %v4029_v25 = vadd.f32 %v8075_v3, %v3976_v54  ;;  %v6467_v3 = vld [vmem:[%s8752_s1 + $0xd08] ss:$16 sps:$4 sm:$0xff]   ;;  %v4836_v33 = vsub.s32 0, %v8380_v51  ;;  %v4840_v9 = vsub.s32 1, %v8380_v51  ;;  %v4284_v44 = vadd.f32 %v8326_v27, %v4231_v1 }
 0x200   : > { %v6478_v56 = vld [vmem:[%s8752_s1 + $0xecc] ss:$16 sps:$4 sm:$0xff]   ;;  %v6588_v54 = vld [vmem:[%s6786_s12 + $0x28] ss:$72 sps:$4 sm:$0xff]  }
 0x201   : > { %4647 = vmatpush2.bf16.msra.mxu0 %v6452_v43  ;;  %v4082_v11 = vadd.f32 %v8139_v40, %v4029_v25  ;;  %v4084_v43 = vadd.f32 %v8157_v53, %v4031_v16  ;;  %v4182_v40 = vadd.f32 %v8237_v50, %v4129_v63  ;;  %v4233_v53 = vadd.f32 %v8281_v28, %v4180_v49  ;;  %v8435_v28 = vpop.f32.mrf.mxu0  ;;  %v6487_v25 = vld [vmem:[%s8752_s1 + $0x10ac] ss:$16 sps:$4 sm:$0xff]   ;;  %v6482_v49 = vld [vmem:[%s8752_s1 + $0xea8] ss:$16 sps:$4 sm:$0xff]  }
 0x202   : > { %4700 = vmatpush2.bf16.msra.mxu1 %v6455_v46  ;;  %4648 = vmatprep.subr.bf16.mxu0 %v6460_v12  ;;  %v4086_v46 = vadd.f32 %v8175_v2, %v4033_v21  ;;  %v4088_v12 = vadd.f32 %v8191_v13, %v4035_v30  ;;  %v6470_v2 = vld [vmem:[%s8752_s1 + $0xee8] ss:$16 sps:$4 sm:$0xff]   ;;  %v8456_v14 = vrot.slane %v8413_v7, %v4840_v9 }
 0x203   : > { %4701 = vmatprep.subr.bf16.mxu1 %v6463_v37  ;;  %v8424_v37 = vpop.f32.mrf.mxu1  ;;  %v4135_v13 = vadd.f32 %v8207_v24, %v4082_v11  ;;  %v4137_v50 = vadd.f32 %v8223_v36, %v4084_v43  ;;  %v4235_v61 = vadd.f32 %v8297_v47, %v4182_v40  ;;  %v8446_v24 = vrot.slane %v8413_v7, %v4836_v33 }
 0x204   : > { %v8449_v36 = vrot.slane %v8418_v35, %v4836_v33  ;;  %v4139_v58 = vadd.f32 %v8239_v52, %v4086_v46  ;;  %v4286_v47 = vadd.f32 %v8349_v55, %v4233_v53  ;;  %v6476_v52 = vld [vmem:[%s8752_s1 + $0xec8] ss:$16 sps:$4 sm:$0xff]   ;;  %v4141_v26 = vadd.f32 %v8255_v62, %v4088_v12  ;;  %v6591_v62 = vld [vmem:[%s6786_s12 + $0xc4] ss:$72 sps:$4 sm:$0xff]  }
 0x205   : > { %4649 = vmatpush2.bf16.msra.mxu0 %v6458_v5  ;;  %v4237_v5 = vadd.f32 %v8315_v15, %v4184_v48  ;;  %v4295_v27 = vpop.f32.mrf.mxu1  ;;  %v6479_v15 = vld [vmem:[%s8752_s1 + $0x10c8] ss:$16 sps:$4 sm:$0xff]   ;;  %v4188_v20 = vadd.f32 %v8257_v4, %v4135_v13  ;;  %v4190_v55 = vadd.f32 %v8273_v19, %v4137_v50  ;;  %v4288_v16 = vadd.f32 %v8378_v32, %v4235_v61  ;;  %v6590_v19 = vld [vmem:[%s6786_s12 + $0xbc] ss:$72 sps:$4 sm:$0xff]  }
 0x206   : > { %4702 = vmatpush2.bf16.msra.mxu1 %v6461_v6  ;;  %4650 = vmatprep.subr.bf16.mxu0 %v6466_v8  ;;  %v4192_v30 = vadd.f32 %v8289_v42, %v4139_v58  ;;  %v6485_v42 = vld [vmem:[%s8752_s1 + $0x10a8] ss:$16 sps:$4 sm:$0xff]   ;;  %v6493_v33 = vld [vmem:[%s8752_s1 + $0x108c] ss:$16 sps:$4 sm:$0xff]  }
 0x207   : > { %4703 = vmatprep.subr.bf16.mxu1 %v6469_v0  ;;  %v8460_v0 = vrot.slane %v8418_v35, %v4840_v9  ;;  %v4290_v38 = vadd.f32 %v4289_v23, %v4237_v5  ;;  %v4241_v63 = vadd.f32 %v8339_v31, %v4188_v20  ;;  %v4297_v10 = vpop.f32.mrf.mxu1  ;;  %v4194_v31 = vadd.f32 %v8307_v59, %v4141_v26  ;;  %v6490_v23 = vld [vmem:[%s8752_s1 + $0xe8c] ss:$16 sps:$4 sm:$0xff]   ;;  %v6592_v53 = vld [vmem:[%s6786_s12 + $0xb8] ss:$72 sps:$4 sm:$0xff]  }
 0x208   : > { %v6496_v58 = vld [vmem:[%s8752_s1 + $0xe6c] ss:$16 sps:$4 sm:$0xff]  }
 0x209   : > { %4651 = vmatpush2.bf16.msra.mxu0 %v6464_v22  ;;  %v4243_v22 = vadd.f32 %v8366_v39, %v4190_v55  ;;  %v4245_v39 = vadd.f32 %v8396_v34, %v4192_v30  ;;  %v4294_v34 = vadd.f32 %v8424_v37, %v4241_v63  ;;  %v4247_v12 = vadd.f32 %v8435_v28, %v4194_v31  ;;  %v6488_v28 = vld [vmem:[%s8752_s1 + $0xe88] ss:$16 sps:$4 sm:$0xff]   ;;  %v6499_v5 = vld [vmem:[%s8752_s1 + $0x106c] ss:$16 sps:$4 sm:$0xff]  }
 0x20a   : > { %4704 = vmatpush2.bf16.msra.mxu1 %v6467_v3  ;;  %4726 = vmatprep.subr.bf16.mxu0 %v6472_v18 }
 0x20b   : > { %4779 = vmatprep.subr.bf16.mxu1 %v6475_v29  ;;  %v4296_v9 = vadd.f32 %v4295_v27, %v4243_v22  ;;  %v6594_v27 = vld [vmem:[%s6786_s12 + $0x3c] ss:$72 sps:$4 sm:$0xff]  }
 0x20c   : > { %v4336_v6 = vpop.f32.mrf.mxu0  ;;  %4653 = vmatmul.mubr.bf16.vlgmr.msra.gmra.mxu0 %v6588_v54 }
 0x20d   : > { %4706 = vmatmul.mubr.bf16.vlgmr.msra.gmra.mxu1 %v6589_v60  ;;  %v4337_v8 = vadd.f32 %v4336_v6, %v4284_v44  ;;  %4727 = vmatpush1.bf16.msra.mxu0 %v6470_v2  ;;  %v6593_v2 = vld [vmem:[%s6786_s12 + $0xc0] ss:$72 sps:$4 sm:$0xff]  }
 0x20e   : > { %4780 = vmatpush1.bf16.msra.mxu1 %v6473_v41  ;;  %v4338_v45 = vpop.f32.mrf.mxu0  ;;  %4728 = vmatprep.subr.bf16.mxu0 %v6478_v56  ;;  %v4299_v41 = vpop.f32.mrf.mxu1  ;;  %v6491_v56 = vld [vmem:[%s8752_s1 + $0x1088] ss:$16 sps:$4 sm:$0xff]  }
 0x20f   : > { %4781 = vmatprep.subr.bf16.mxu1 %v6481_v17  ;;  %v4854_v4 = vmul.f32 %v8446_v24, %v4337_v8  ;;  %v4339_v21 = vadd.f32 %v4338_v45, %v4286_v47  ;;  %4662 = vmatprep.mubr.bf16.mxu0 %v6590_v19  ;;  %v4298_v17 = vadd.f32 %v4297_v10, %v4245_v39  ;;  %v6595_v8 = vld [vmem:[%s6786_s12 + $0x44] ss:$72 sps:$4 sm:$0xff]  }
 0x210   : > { %4715 = vmatprep.mubr.bf16.mxu1 %v6591_v62  ;;  %v4340_v3 = vpop.f32.mrf.mxu0  ;;  %v6502_v19 = vld [vmem:[%s8752_s1 + $0xe4c] ss:$16 sps:$4 sm:$0xff]  }
 0x211   : > { %v4892_v18 = vadd.f32 %v8449_v36, %v4854_v4  ;;  %v4855_v32 = vmul.f32 %v8456_v14, %v4339_v21  ;;  %v4341_v29 = vadd.f32 %v4340_v3, %v4288_v16  ;;  %4729 = vmatpush1.bf16.msra.mxu0 %v6476_v52  ;;  %v4300_v52 = vadd.f32 %v4299_v41, %v4247_v12  ;;  %v6497_v16 = vld [vmem:[%s8752_s1 + $0x1068] ss:$16 sps:$4 sm:$0xff]   ;;  %v6505_v62 = vld [vmem:[%s8752_s1 + $0x104c] ss:$16 sps:$4 sm:$0xff]  }
 0x212   : > { %4782 = vmatpush1.bf16.msra.mxu1 %v6479_v15  ;;  %v4342_v1 = vpop.f32.mrf.mxu0  ;;  %4730 = vmatprep.subr.bf16.mxu0 %v6484_v57  ;;  %v6523_v12 = vld [vmem:[%s8752_s1 + $0x11ec] ss:$16 sps:$4 sm:$0xff]  }
 0x213   : > { %4783 = vmatprep.subr.bf16.mxu1 %v6487_v25  ;;  %v4908_v11 = vmul.f32 0.1, %v4892_v18  ;;  %v4893_v43 = vadd.f32 %v8460_v0, %v4855_v32  ;;  %v4858_v59 = vmul.f32 %v8446_v24, %v4341_v29  ;;  %v4343_v46 = vadd.f32 %v4342_v1, %v4290_v38  ;;  %v6494_v25 = vld [vmem:[%s8752_s1 + $0xe68] ss:$16 sps:$4 sm:$0xff]   ;;  %v6529_v41 = vld [vmem:[%s8752_s1 + $0x11cc] ss:$16 sps:$4 sm:$0xff]  }
 0x214   : > { %v4346_v40 = vpop.f32.mrf.mxu0  ;;  %4663 = vmatmul.mubr.bf16.gmra.mxu0 %v6592_v53  ;;  %v6500_v29 = vld [vmem:[%s8752_s1 + $0xe48] ss:$16 sps:$4 sm:$0xff]  }
 0x215   : > { %4716 = vmatmul.mubr.bf16.gmra.mxu1 %v6593_v2  ;;  %v4924_v48 = vmax.f32 %v4892_v18, %v4908_v11  ;;  %v4909_v13 = vmul.f32 0.1, %v4893_v43  ;;  %v4896_v50 = vadd.f32 %v8449_v36, %v4858_v59  ;;  %v4859_v37 = vmul.f32 %v8456_v14, %v4343_v46  ;;  %4731 = vmatpush1.bf16.msra.mxu0 %v6482_v49  ;;  %v6509_v11 = vld [vmem:[%s8752_s1 + $0x1028] ss:$16 sps:$4 sm:$0xff]   ;;  %v6526_v2 = vld [vmem:[%s8752_s1 + $0xfcc] ss:$16 sps:$4 sm:$0xff]  }
 0x216   : > { %4784 = vmatpush1.bf16.msra.mxu1 %v6485_v42  ;;  %v4347_v44 = vadd.f32 %v4346_v40, %v4294_v34  ;;  %v4348_v61 = vpop.f32.mrf.mxu0  ;;  %4732 = vmatprep.subr.bf16.mxu0 %v6490_v23  ;;  %v6508_v42 = vld [vmem:[%s8752_s1 + $0xe2c] ss:$16 sps:$4 sm:$0xff]   ;;  %v6512_v46 = vld [vmem:[%s8752_s1 + $0xe08] ss:$16 sps:$4 sm:$0xff]  }
 0x217   : > { %4785 = vmatprep.subr.bf16.mxu1 %v6493_v33  ;;  %4940 = vst [vmem:[%s8508_s17] sm:$0xff] %v4924_v48  ;;  %v4925_v6 = vmax.f32 %v4893_v43, %v4909_v13  ;;  %v4912_v54 = vmul.f32 0.1, %v4896_v50  ;;  %v4897_v60 = vadd.f32 %v8460_v0, %v4859_v37  ;;  %v4349_v47 = vadd.f32 %v4348_v61, %v4296_v9  ;;  %v6506_v33 = vld [vmem:[%s8752_s1 + $0xe28] ss:$16 sps:$4 sm:$0xff]   ;;  %v6517_v43 = vld [vmem:[%s8752_s1 + $0x100c] ss:$16 sps:$4 sm:$0xff]  }
 0x218   : > { %4758 = vmatprep.mubr.bf16.mxu0 %v6594_v27  ;;  %4811 = vmatprep.mubr.bf16.mxu1 %v6595_v8  ;;  %v4862_v15 = vmul.f32 %v8446_v24, %v4347_v44  ;;  %v4350_v20 = vpop.f32.mrf.mxu0  ;;  %v6515_v34 = vld [vmem:[%s8752_s1 + $0x1008] ss:$16 sps:$4 sm:$0xff]   ;;  %v6520_v9 = vld [vmem:[%s8752_s1 + $0xfec] ss:$16 sps:$4 sm:$0xff]  }
 0x219   : > { %4941 = vst [vmem:[%s8508_s17 + $0x8] sm:$0xff] %v4925_v6  ;;  %v4928_v55 = vmax.f32 %v4896_v50, %v4912_v54  ;;  %v4913_v26 = vmul.f32 0.1, %v4897_v60  ;;  %v4863_v45 = vmul.f32 %v8456_v14, %v4349_v47  ;;  %v4351_v57 = vadd.f32 %v4350_v20, %v4298_v17  ;;  %4733 = vmatpush1.bf16.msra.mxu0 %v6488_v28  ;;  %v6518_v40 = vld [vmem:[%s8752_s1 + $0xfe8] ss:$16 sps:$4 sm:$0xff]  }
 0x21a   : > { %4786 = vmatpush1.bf16.msra.mxu1 %v6491_v56  ;;  %v4900_v4 = vadd.f32 %v8449_v36, %v4862_v15  ;;  %v4352_v21 = vpop.f32.mrf.mxu0  ;;  %4734 = vmatprep.subr.bf16.mxu0 %v6496_v58  ;;  %v6521_v53 = vld [vmem:[%s8752_s1 + $0x11e8] ss:$16 sps:$4 sm:$0xff]   ;;  %v6532_v50 = vld [vmem:[%s8752_s1 + $0xfac] ss:$16 sps:$4 sm:$0xff]  }
 0x21b   : > { %4787 = vmatprep.subr.bf16.mxu1 %v6499_v5  ;;  %4944 = vst [vmem:[%s8508_s17 + $0x20] sm:$0xff] %v4928_v55  ;;  %v4929_v30 = vmax.f32 %v4897_v60, %v4913_v26  ;;  %v4901_v38 = vadd.f32 %v8460_v0, %v4863_v45  ;;  %v4866_v63 = vmul.f32 %v8446_v24, %v4351_v57  ;;  %v6503_v24 = vld [vmem:[%s8752_s1 + $0x1048] ss:$16 sps:$4 sm:$0xff]   ;;  %v6535_v37 = vld [vmem:[%s8752_s1 + $0x11ac] ss:$16 sps:$4 sm:$0xff]  }
 0x21c   : > { %v4353_v22 = vadd.f32 %v4352_v21, %v4300_v52  ;;  %v4916_v3 = vmul.f32 0.1, %v4900_v4  ;;  %v6524_v48 = vld [vmem:[%s8752_s1 + $0xfc8] ss:$16 sps:$4 sm:$0xff]   ;;  %v6538_v17 = vld [vmem:[%s8752_s1 + $0xf8c] ss:$16 sps:$4 sm:$0xff]  }
 0x21d   : > { %4945 = vst [vmem:[%s8508_s17 + $0x28] sm:$0xff] %v4929_v30  ;;  %v4917_v10 = vmul.f32 0.1, %v4901_v38  ;;  %v4904_v18 = vadd.f32 %v8449_v36, %v4866_v63  ;;  %4735 = vmatpush1.bf16.msra.mxu0 %v6494_v25  ;;  %v6511_v36 = vld [vmem:[%s8752_s1 + $0x102c] ss:$16 sps:$4 sm:$0xff]   ;;  %v4389_v63 = vpop.f32.mrf.mxu1 }
 0x21e   : > { %v4867_v32 = vmul.f32 %v8456_v14, %v4353_v22  ;;  %4788 = vmatpush1.bf16.msra.mxu1 %v6497_v16  ;;  %v4932_v49 = vmax.f32 %v4900_v4, %v4916_v3  ;;  %4736 = vmatprep.subr.bf16.mxu0 %v6502_v19  ;;  %v6527_v13 = vld [vmem:[%s8752_s1 + $0x11c8] ss:$16 sps:$4 sm:$0xff]   ;;  %v6541_v44 = vld [vmem:[%s8752_s1 + $0x118c] ss:$16 sps:$4 sm:$0xff]  }
 0x21f   : > { %4789 = vmatprep.subr.bf16.mxu1 %v6505_v62  ;;  %v4933_v14 = vmax.f32 %v4901_v38, %v4917_v10  ;;  %v4920_v31 = vmul.f32 0.1, %v4904_v18  ;;  %v6530_v28 = vld [vmem:[%s8752_s1 + $0xfa8] ss:$16 sps:$4 sm:$0xff]   ;;  %v6544_v5 = vld [vmem:[%s8752_s1 + $0xf6c] ss:$16 sps:$4 sm:$0xff]   ;;  %v4391_v22 = vpop.f32.mrf.mxu1 }
 0x220   : > { %v4905_v39 = vadd.f32 %v8460_v0, %v4867_v32  ;;  %4948 = vst [vmem:[%s8508_s17 + $0x40] sm:$0xff] %v4932_v49  ;;  %v6514_v0 = vld [vmem:[%s8752_s1 + $0xe0c] ss:$16 sps:$4 sm:$0xff]   ;;  %v6533_v56 = vld [vmem:[%s8752_s1 + $0x11a8] ss:$16 sps:$4 sm:$0xff]  }
 0x221   : > { %4949 = vst [vmem:[%s8508_s17 + $0x48] sm:$0xff] %v4933_v14  ;;  %v4936_v1 = vmax.f32 %v4904_v18, %v4920_v31  ;;  %4737 = vmatpush1.bf16.msra.mxu0 %v6500_v29  ;;  %v6536_v61 = vld [vmem:[%s8752_s1 + $0xf88] ss:$16 sps:$4 sm:$0xff]   ;;  %v6547_v6 = vld [vmem:[%s8752_s1 + $0x116c] ss:$16 sps:$4 sm:$0xff]   ;;  %v4393_v3 = vpop.f32.mrf.mxu1 }
 0x222   : > { %v4921_v23 = vmul.f32 0.1, %v4905_v39  ;;  %4790 = vmatpush1.bf16.msra.mxu1 %v6503_v24  ;;  %4738 = vmatprep.subr.bf16.mxu0 %v6508_v42  ;;  %v6539_v58 = vld [vmem:[%s8752_s1 + $0x1188] ss:$16 sps:$4 sm:$0xff]   ;;  %v6550_v47 = vld [vmem:[%s8752_s1 + $0xf4c] ss:$16 sps:$4 sm:$0xff]  }
 0x223   : > { %4791 = vmatprep.subr.bf16.mxu1 %v6511_v36  ;;  %4952 = vst [vmem:[%s8508_s17 + $0x60] sm:$0xff] %v4936_v1  ;;  %v6542_v54 = vld [vmem:[%s8752_s1 + $0xf68] ss:$16 sps:$4 sm:$0xff]   ;;  %v6553_v27 = vld [vmem:[%s8752_s1 + $0x114c] ss:$16 sps:$4 sm:$0xff]   ;;  %v4395_v10 = vpop.f32.mrf.mxu1 }
 0x224   : > { %v4937_v59 = vmax.f32 %v4905_v39, %v4921_v23  ;;  %v6545_v60 = vld [vmem:[%s8752_s1 + $0x1168] ss:$16 sps:$4 sm:$0xff]   ;;  %v6556_v15 = vld [vmem:[%s8752_s1 + $0xf2c] ss:$16 sps:$4 sm:$0xff]  }
 0x225   : > { %4739 = vmatpush1.bf16.msra.mxu0 %v6506_v33  ;;  %v6548_v8 = vld [vmem:[%s8752_s1 + $0xf48] ss:$16 sps:$4 sm:$0xff]   ;;  %v6559_v20 = vld [vmem:[%s8752_s1 + $0x112c] ss:$16 sps:$4 sm:$0xff]   ;;  %v4399_v18 = vpop.f32.mrf.mxu1 }
 0x226   : > { %4953 = vst [vmem:[%s8508_s17 + $0x68] sm:$0xff] %v4937_v59  ;;  %4792 = vmatpush1.bf16.msra.mxu1 %v6509_v11  ;;  %4740 = vmatprep.subr.bf16.mxu0 %v6514_v0  ;;  %v6551_v52 = vld [vmem:[%s8752_s1 + $0x1148] ss:$16 sps:$4 sm:$0xff]   ;;  %v6562_v45 = vld [vmem:[%s8752_s1 + $0xf0c] ss:$16 sps:$4 sm:$0xff]  }
 0x227   : > { %4793 = vmatprep.subr.bf16.mxu1 %v6517_v43  ;;  %v6554_v55 = vld [vmem:[%s8752_s1 + $0xf28] ss:$16 sps:$4 sm:$0xff]   ;;  %v6565_v57 = vld [vmem:[%s8752_s1 + $0x110c] ss:$16 sps:$4 sm:$0xff]   ;;  %v4401_v32 = vpop.f32.mrf.mxu1 }
 0x228   : > { %v6557_v26 = vld [vmem:[%s8752_s1 + $0x1128] ss:$16 sps:$4 sm:$0xff]   ;;  %v6598_v19 = vld [vmem:[%s6786_s12 + $0xcc] ss:$72 sps:$4 sm:$0xff]  }
 0x229   : > { %4741 = vmatpush1.bf16.msra.mxu0 %v6512_v46  ;;  %v6560_v25 = vld [vmem:[%s8752_s1 + $0xf08] ss:$16 sps:$4 sm:$0xff]   ;;  %v6599_v62 = vld [vmem:[%s6786_s12 + $0xd4] ss:$72 sps:$4 sm:$0xff]   ;;  %v4403_v29 = vpop.f32.mrf.mxu1 }
 0x22a   : > { %4794 = vmatpush1.bf16.msra.mxu1 %v6515_v34  ;;  %4742 = vmatprep.subr.bf16.mxu0 %v6520_v9  ;;  %v6563_v16 = vld [vmem:[%s8752_s1 + $0x1108] ss:$16 sps:$4 sm:$0xff]  }
 0x22b   : > { %4795 = vmatprep.subr.bf16.mxu1 %v6523_v12  ;;  %v6596_v4 = vld [vmem:[%s6786_s12 + $0x38] ss:$72 sps:$4 sm:$0xff]   ;;  %v6600_v30 = vld [vmem:[%s6786_s12 + $0xc8] ss:$72 sps:$4 sm:$0xff]   ;;  %v8689_v49 = vpop.f32.mrf.mxu1 }
 0x22c   : > { %v6597_v21 = vld [vmem:[%s6786_s12 + $0x40] ss:$72 sps:$4 sm:$0xff]   ;;  %v6601_v38 = vld [vmem:[%s6786_s12 + $0xd0] ss:$72 sps:$4 sm:$0xff]  }
 0x22d   : > { %4743 = vmatpush2.bf16.msra.mxu0 %v6518_v40 }
 0x22e   : > { %4796 = vmatpush2.bf16.msra.mxu1 %v6521_v53  ;;  %4744 = vmatprep.subr.bf16.mxu0 %v6526_v2 }
 0x22f   : > { %4797 = vmatprep.subr.bf16.mxu1 %v6529_v41 }
 0x231   : > { %4745 = vmatpush2.bf16.msra.mxu0 %v6524_v48 }
 0x232   : > { %4798 = vmatpush2.bf16.msra.mxu1 %v6527_v13  ;;  %4746 = vmatprep.subr.bf16.mxu0 %v6532_v50 }
 0x233   : > { %4799 = vmatprep.subr.bf16.mxu1 %v6535_v37 }
 0x235   : > { %4747 = vmatpush2.bf16.msra.mxu0 %v6530_v28 }
 0x236   : > { %4800 = vmatpush2.bf16.msra.mxu1 %v6533_v56  ;;  %4748 = vmatprep.subr.bf16.mxu0 %v6538_v17 }
 0x237   : > { %4801 = vmatprep.subr.bf16.mxu1 %v6541_v44 }
 0x239   : > { %4749 = vmatpush2.bf16.msra.mxu0 %v6536_v61 }
 0x23a   : > { %4802 = vmatpush2.bf16.msra.mxu1 %v6539_v58  ;;  %4750 = vmatprep.subr.bf16.mxu0 %v6544_v5 }
 0x23b   : > { %4803 = vmatprep.subr.bf16.mxu1 %v6547_v6 }
 0x23d   : > { %4751 = vmatpush2.bf16.msra.mxu0 %v6542_v54 }
 0x23e   : > { %4804 = vmatpush2.bf16.msra.mxu1 %v6545_v60  ;;  %4752 = vmatprep.subr.bf16.mxu0 %v6550_v47 }
 0x23f   : > { %4805 = vmatprep.subr.bf16.mxu1 %v6553_v27 }
 0x241   : > { %4753 = vmatpush2.bf16.msra.mxu0 %v6548_v8 }
 0x242   : > { %4806 = vmatpush2.bf16.msra.mxu1 %v6551_v52  ;;  %4754 = vmatprep.subr.bf16.mxu0 %v6556_v15 }
 0x243   : > { %4807 = vmatprep.subr.bf16.mxu1 %v6559_v20 }
 0x245   : > { %4755 = vmatpush2.bf16.msra.mxu0 %v6554_v55 }
 0x246   : > { %4808 = vmatpush2.bf16.msra.mxu1 %v6557_v26  ;;  %4756 = vmatprep.subr.bf16.mxu0 %v6562_v45 }
 0x247   : > { %4809 = vmatprep.subr.bf16.mxu1 %v6565_v57 }
 0x249   : > { %4757 = vmatpush2.bf16.msra.mxu0 %v6560_v25 }
 0x24a   : > { %4810 = vmatpush2.bf16.msra.mxu1 %v6563_v16 }
 0x24c   : > { %4759 = vmatmul.mubr.bf16.vlgmr.msra.gmra.mxu0 %v6596_v4  ;;  %v4442_v24 = vpop.f32.mrf.mxu0 }
 0x24d   : > { %4812 = vmatmul.mubr.bf16.vlgmr.msra.gmra.mxu1 %v6597_v21  ;;  %4768 = vmatprep.mubr.bf16.mxu0 %v6598_v19  ;;  %v4495_v36 = vpop.f32.mrf.mxu1  ;;  %v4443_v15 = vadd.f32 %v4442_v24, %v4389_v63 }
 0x24e   : > { %4821 = vmatprep.mubr.bf16.mxu1 %v6599_v62  ;;  %v4444_v42 = vpop.f32.mrf.mxu0 }
 0x24f   : > { %v4497_v31 = vpop.f32.mrf.mxu1  ;;  %v4445_v55 = vadd.f32 %v4444_v42, %v4391_v22  ;;  %v4496_v57 = vadd.f32 %v4495_v36, %v4443_v15 }
 0x250   : > { %v4446_v14 = vpop.f32.mrf.mxu0 }
 0x251   : > { %v4499_v1 = vpop.f32.mrf.mxu1  ;;  %v4447_v25 = vadd.f32 %v4446_v14, %v4393_v3  ;;  %v4498_v16 = vadd.f32 %v4497_v31, %v4445_v55 }
 0x252   : > { %v4448_v39 = vpop.f32.mrf.mxu0 }
 0x253   : > { %v4501_v33 = vpop.f32.mrf.mxu1  ;;  %v4449_v4 = vadd.f32 %v4448_v39, %v4395_v10 }
 0x254   : > { %4769 = vmatmul.mubr.bf16.gmra.mxu0 %v6600_v30  ;;  %v4452_v23 = vpop.f32.mrf.mxu0  ;;  %v4500_v30 = vadd.f32 %v4499_v1, %v4447_v25  ;;  %v4844_v1 = vsub.s32 2, %v8380_v51 }
 0x255   : > { %4822 = vmatmul.mubr.bf16.gmra.mxu1 %v6601_v38  ;;  %v4505_v0 = vpop.f32.mrf.mxu1 }
 0x256   : > { %v4454_v11 = vpop.f32.mrf.mxu0 }
 0x257   : > { %v4507_v59 = vpop.f32.mrf.mxu1  ;;  %v4455_v63 = vadd.f32 %v4454_v11, %v4401_v32 }
 0x258   : > { %v4456_v43 = vpop.f32.mrf.mxu0 }
 0x259   : > { %v4509_v34 = vpop.f32.mrf.mxu1  ;;  %v4457_v24 = vadd.f32 %v4456_v43, %v4403_v29  ;;  %v4848_v43 = vsub.s32 3, %v8380_v51 }
 0x25a   : > { %v4458_v46 = vpop.f32.mrf.mxu0 }
 0x25b   : > { %v4511_v12 = vpop.f32.mrf.mxu1  ;;  %v4459_v10 = vadd.f32 %v4458_v46, %v8689_v49 }
 0x28c   : > { %v4548_v9 = vpop.f32.mrf.mxu0 }
 0x28d   : > { %v4601_v40 = vpop.f32.mrf.mxu1  ;;  %v4549_v21 = vadd.f32 %v4548_v9, %v4496_v57  ;;  %v4508_v9 = vadd.f32 %v4507_v59, %v4455_v63 }
 0x28e   : > { %v4550_v53 = vpop.f32.mrf.mxu0 }
 0x28f   : > { %v4603_v2 = vpop.f32.mrf.mxu1  ;;  %v4551_v38 = vadd.f32 %v4550_v53, %v4498_v16  ;;  %v4512_v53 = vadd.f32 %v4511_v12, %v4459_v10 }
 0x290   : > { %v4552_v41 = vpop.f32.mrf.mxu0 }
 0x291   : > { %v4605_v48 = vpop.f32.mrf.mxu1  ;;  %v4553_v35 = vadd.f32 %v4552_v41, %v4500_v30 }
 0x292   : > { %v4554_v13 = vpop.f32.mrf.mxu0 }
 0x293   : > { %v4607_v50 = vpop.f32.mrf.mxu1  ;;  %v4606_v31 = vadd.f32 %v4605_v48, %v4553_v35  ;;  %v8707_v48 = vrot.slane %v8413_v7, %v4844_v1 }
 0x294   : > { %v4558_v37 = vpop.f32.mrf.mxu0 }
 0x295   : > { %v4611_v28 = vpop.f32.mrf.mxu1 }
 0x296   : > { %v4560_v56 = vpop.f32.mrf.mxu0 }
 0x297   : > { %v8691_v17 = vpop.f32.mrf.mxu1 }
 0x298   : > { %8759 = vst [vmem:[#allocation3_spill] sm:$0xff] %v8691_v17  ;;  %v4562_v44 = vpop.f32.mrf.mxu0  ;;  %v4602_v17 = vadd.f32 %v4601_v40, %v4549_v21 }
 0x299   : > { %v8693_v61 = vpop.f32.mrf.mxu1 }
 0x29a   : > { %8760 = vst [vmem:[#allocation4_spill] sm:$0xff] %v8693_v61  ;;  %v4564_v58 = vpop.f32.mrf.mxu0  ;;  %v4502_v61 = vadd.f32 %v4501_v33, %v4449_v4 }
 0x29b   : > { %v8695_v5 = vpop.f32.mrf.mxu1 }
 0x29c   : > { %8761 = vst [vmem:[#allocation5_spill] sm:$0xff] %v8695_v5  ;;  %v4453_v5 = vadd.f32 %v4452_v23, %v4399_v18  ;;  %v4555_v36 = vadd.f32 %v4554_v13, %v4502_v61  ;;  %v4510_v18 = vadd.f32 %v4509_v34, %v4457_v24  ;;  %v4565_v34 = vadd.f32 %v4564_v58, %v4512_v53 }
 0x29e   : > { %v4506_v14 = vadd.f32 %v4505_v0, %v4453_v5  ;;  %v4608_v32 = vadd.f32 %v4607_v50, %v4555_v36  ;;  %v4563_v41 = vadd.f32 %v4562_v44, %v4510_v18 }
 0x29f   : > { %v8764_v44 = vld [vmem:[#allocation3_spill] sm:$0xff] }
 0x2a0   : > { %v4559_v23 = vadd.f32 %v4558_v37, %v4506_v14  ;;  %v8763_v37 = vld [vmem:[#allocation2_spill] sm:$0xff] }
 0x2a2   : > { %v4612_v59 = vadd.f32 %v4611_v28, %v4559_v23 }
 0x2cc   : > { %v4654_v6 = vpop.f32.mrf.mxu0 }
 0x2cd   : > { %v4707_v54 = vpop.f32.mrf.mxu1  ;;  %v4655_v3 = vadd.f32 %v4654_v6, %v4602_v17  ;;  %v8710_v17 = vrot.slane %v8763_v37, %v4844_v1 }
 0x2ce   : > { %v4656_v60 = vpop.f32.mrf.mxu0 }
 0x2cf   : > { %v4709_v47 = vpop.f32.mrf.mxu1  ;;  %v4708_v29 = vadd.f32 %v4707_v54, %v4655_v3  ;;  %v8765_v54 = vld [vmem:[#allocation4_spill] sm:$0xff] }
 0x2d0   : > { %v4658_v27 = vpop.f32.mrf.mxu0 }
 0x2d1   : > { %v4711_v8 = vpop.f32.mrf.mxu1  ;;  %v4659_v11 = vadd.f32 %v4658_v27, %v4606_v31  ;;  %v8718_v27 = vrot.slane %v8763_v37, %v4848_v43 }
 0x2d2   : > { %v4660_v52 = vpop.f32.mrf.mxu0 }
 0x2d3   : > { %v4713_v20 = vpop.f32.mrf.mxu1  ;;  %v4661_v35 = vadd.f32 %v4660_v52, %v4608_v32  ;;  %v4712_v5 = vadd.f32 %v4711_v8, %v4659_v11 }
 0x2d4   : > { %v4664_v26 = vpop.f32.mrf.mxu0 }
 0x2d5   : > { %v8697_v45 = vpop.f32.mrf.mxu1  ;;  %v4714_v52 = vadd.f32 %v4713_v20, %v4661_v35 }
 0x2d6   : > { %8762 = vst [vmem:[#allocation6_spill] sm:$0xff] %v8697_v45  ;;  %v4666_v19 = vpop.f32.mrf.mxu0  ;;  %v4604_v45 = vadd.f32 %v4603_v2, %v4551_v38  ;;  %v4561_v2 = vadd.f32 %v4560_v56, %v4508_v9  ;;  %v8713_v56 = vrot.slane %v8413_v7, %v4848_v43 }
 0x2d7   : > { %v8699_v62 = vpop.f32.mrf.mxu1 }
 0x2d8   : > { %v4668_v22 = vpop.f32.mrf.mxu0  ;;  %v4657_v39 = vadd.f32 %v4656_v60, %v4604_v45  ;;  %v4614_v6 = vadd.f32 %v8764_v44, %v4561_v2  ;;  %v4616_v60 = vadd.f32 %v8765_v54, %v4563_v41  ;;  %v8766_v45 = vld [vmem:[#allocation5_spill] sm:$0xff] }
 0x2d9   : > { %v8701_v42 = vpop.f32.mrf.mxu1  ;;  %v4618_v57 = vadd.f32 %v8766_v45, %v4565_v34 }
 0x2da   : > { %v4670_v33 = vpop.f32.mrf.mxu0  ;;  %v4710_v49 = vadd.f32 %v4709_v47, %v4657_v39  ;;  %v4665_v47 = vadd.f32 %v4664_v26, %v4612_v59  ;;  %v4667_v25 = vadd.f32 %v4666_v19, %v4614_v6  ;;  %v4669_v7 = vadd.f32 %v4668_v22, %v4616_v60 }
 0x2db   : > { %v4723_v40 = vpop.f32.mrf.mxu1  ;;  %v4671_v36 = vadd.f32 %v4670_v33, %v4618_v57 }
 0x2dc   : > { %v4720_v22 = vadd.f32 %v8699_v62, %v4667_v25  ;;  %v4722_v39 = vadd.f32 %v8701_v42, %v4669_v7 }
 0x2dd   : > { %v8767_v63 = vld [vmem:[#allocation6_spill] sm:$0xff]  ;;  %v4724_v11 = vadd.f32 %v4723_v40, %v4671_v36 }
 0x2de   : > { %v4718_v24 = vadd.f32 %v8767_v63, %v4665_v47 }
 0x30c   : > { %v4760_v0 = vpop.f32.mrf.mxu0 }
 0x30d   : > { %v4813_v13 = vpop.f32.mrf.mxu1  ;;  %v4761_v46 = vadd.f32 %v4760_v0, %v4708_v29 }
 0x30e   : > { %v4762_v50 = vpop.f32.mrf.mxu0 }
 0x30f   : > { %v4815_v61 = vpop.f32.mrf.mxu1  ;;  %v4814_v51 = vadd.f32 %v4813_v13, %v4761_v46  ;;  %v4763_v12 = vadd.f32 %v4762_v50, %v4710_v49 }
 0x310   : > { %v4764_v28 = vpop.f32.mrf.mxu0 }
 0x311   : > { %v4817_v58 = vpop.f32.mrf.mxu1  ;;  %v4856_v15 = vmul.f32 %v8707_v48, %v4814_v51  ;;  %v4816_v55 = vadd.f32 %v4815_v61, %v4763_v12  ;;  %v4765_v8 = vadd.f32 %v4764_v28, %v4712_v5 }
 0x312   : > { %v4766_v16 = vpop.f32.mrf.mxu0 }
 0x313   : > { %v4819_v4 = vpop.f32.mrf.mxu1  ;;  %v4894_v21 = vadd.f32 %v8710_v17, %v4856_v15  ;;  %v4857_v26 = vmul.f32 %v8713_v56, %v4816_v55  ;;  %v4818_v30 = vadd.f32 %v4817_v58, %v4765_v8  ;;  %v4767_v38 = vadd.f32 %v4766_v16, %v4714_v52 }
 0x314   : > { %v4770_v20 = vpop.f32.mrf.mxu0 }
 0x315   : > { %v4823_v3 = vpop.f32.mrf.mxu1  ;;  %v4910_v14 = vmul.f32 0.1, %v4894_v21  ;;  %v4895_v10 = vadd.f32 %v8718_v27, %v4857_v26  ;;  %v4860_v31 = vmul.f32 %v8707_v48, %v4818_v30  ;;  %v4820_v19 = vadd.f32 %v4819_v4, %v4767_v38 }
 0x316   : > { %v4771_v1 = vadd.f32 %v4770_v20, %v4718_v24  ;;  %v4772_v9 = vpop.f32.mrf.mxu0 }
 0x317   : > { %v4825_v18 = vpop.f32.mrf.mxu1  ;;  %v4926_v23 = vmax.f32 %v4894_v21, %v4910_v14  ;;  %v4911_v32 = vmul.f32 0.1, %v4895_v10  ;;  %v4898_v33 = vadd.f32 %v8710_v17, %v4860_v31  ;;  %v4861_v29 = vmul.f32 %v8713_v56, %v4820_v19 }
 0x318   : > { %v4824_v43 = vadd.f32 %v4823_v3, %v4771_v1  ;;  %v4773_v53 = vadd.f32 %v4772_v9, %v4720_v22  ;;  %v4774_v2 = vpop.f32.mrf.mxu0 }
 0x319   : > { %v4827_v41 = vpop.f32.mrf.mxu1  ;;  %4942 = vst [vmem:[%s8508_s17 + $0x10] sm:$0xff] %v4926_v23  ;;  %v4927_v62 = vmax.f32 %v4895_v10, %v4911_v32  ;;  %v4914_v0 = vmul.f32 0.1, %v4898_v33  ;;  %v4899_v42 = vadd.f32 %v8718_v27, %v4861_v29  ;;  %v4775_v13 = vadd.f32 %v4774_v2, %v4722_v39 }
 0x31a   : > { %v4864_v49 = vmul.f32 %v8707_v48, %v4824_v43  ;;  %v4826_v35 = vadd.f32 %v4825_v18, %v4773_v53  ;;  %v4776_v46 = vpop.f32.mrf.mxu0 }
 0x31b   : > { %4943 = vst [vmem:[%s8508_s17 + $0x18] sm:$0xff] %v4927_v62  ;;  %v4930_v59 = vmax.f32 %v4898_v33, %v4914_v0  ;;  %v4915_v34 = vmul.f32 0.1, %v4899_v42  ;;  %v4828_v40 = vadd.f32 %v4827_v41, %v4775_v13  ;;  %v4777_v37 = vadd.f32 %v4776_v46, %v4724_v11  ;;  %v4829_v5 = vpop.f32.mrf.mxu1 }
 0x31c   : > { %v4902_v50 = vadd.f32 %v8710_v17, %v4864_v49  ;;  %v4865_v61 = vmul.f32 %v8713_v56, %v4826_v35 }
 0x31d   : > { %4946 = vst [vmem:[%s8508_s17 + $0x30] sm:$0xff] %v4930_v59  ;;  %v4931_v51 = vmax.f32 %v4899_v42, %v4915_v34  ;;  %v4868_v12 = vmul.f32 %v8707_v48, %v4828_v40  ;;  %v4830_v44 = vadd.f32 %v4829_v5, %v4777_v37 }
 0x31e   : > { %v4918_v6 = vmul.f32 0.1, %v4902_v50  ;;  %v4903_v54 = vadd.f32 %v8718_v27, %v4865_v61 }
 0x31f   : > { %4947 = vst [vmem:[%s8508_s17 + $0x38] sm:$0xff] %v4931_v51  ;;  %v4906_v60 = vadd.f32 %v8710_v17, %v4868_v12  ;;  %v4869_v47 = vmul.f32 %v8713_v56, %v4830_v44 }
 0x320   : > { %v4934_v28 = vmax.f32 %v4902_v50, %v4918_v6  ;;  %v4919_v58 = vmul.f32 0.1, %v4903_v54 }
 0x321   : > { %v4922_v52 = vmul.f32 0.1, %v4906_v60  ;;  %v4907_v15 = vadd.f32 %v8718_v27, %v4869_v47 }
 0x322   : > { %4950 = vst [vmem:[%s8508_s17 + $0x50] sm:$0xff] %v4934_v28  ;;  %v4935_v55 = vmax.f32 %v4903_v54, %v4919_v58 }
 0x323   : > { %v4938_v8 = vmax.f32 %v4906_v60, %v4922_v52  ;;  %v4923_v48 = vmul.f32 0.1, %v4907_v15 }
 0x324   : > { %4951 = vst [vmem:[%s8508_s17 + $0x58] sm:$0xff] %v4935_v55 }
 0x325   : > { %4954 = vst [vmem:[%s8508_s17 + $0x70] sm:$0xff] %v4938_v8  ;;  %v4939_v45 = vmax.f32 %v4907_v15, %v4923_v48 }
 0x327   : > { %4955 = vst [vmem:[%s8508_s17 + $0x78] sm:$0xff] %v4939_v45 }
 0x328 PF: > { %s14_s15 = sadd.s32 1, %s6608_s15  }
 0x329   : > { %p11_p4 = scmp.ge.s32.totalorder %s14_s15, 4  }
 0x32b   :  { %13 = sbr.rel (!%p11_p4) target bundleno = 1 (0x1), region = 66 }

// kernel: cpd_d19_forward.191
= control target key start
LH: loop header
LB: loop body
LE: loop exit
PB: predicated region body
PF: predicated region fallthrough
CT: control target
= control target key end

     0   :  { %s1063_s15 = smov 0   ;;  %s1224_s0 = inlined_call_operand.vmem [shape: bf16[64,640], index: 0, kind: input, shape index: {}]   ;;  %s1225_s1 = inlined_call_operand.vmem [shape: bf16[640,128], index: 1, kind: input, shape index: {}]   ;;  %s1226_s2 = inlined_call_operand.vmem [shape: f32[1,128], index: 2, kind: input, shape index: {}]   ;;  %s1227_s3 = inlined_call_operand.vmem [shape: f32[1,128], index: 3, kind: input, shape index: {}]   ;;  %s1228_s4 = inlined_call_operand.vmem [shape: f32[64,128], index: 4, kind: output, shape index: {}]  }
   0x1 LB: > { %s818_s16 = sadd.s32 4294967295, %s1036_s15   ;;  %p822_p0 = scmp.ge.s32.totalorder %s1036_s15, 1  ;;  %s1036_s15 = sphi %s1063_s15, %s14_s15  }
   0x2   : > { %p164_p1 = scmp.lt.s32.totalorder %s1036_s15, 3 }
   0x4   : > { %p165_p2 = pnand %p822_p0, %p164_p1 }
   0x5   : > { %s823_s23 = sshll.u32 (!%p165_p2), %s818_s16, 2 }
   0x6   : > { %168 = sbr.rel (%p165_p2) target bundleno = 283 (0x11b), region = 36  ;;  %p192_p3 = scmp.lt.s32.totalorder (!%p165_p2), %s823_s23, 7 }
   0xb   : > { %v976_v0 = vld [vmem:[%s1225_s1 + $0x78] sm:$0xff]   ;;  %v980_v4 = vld [vmem:[%s1225_s1 + $0x70] sm:$0xff]   ;;  %v984_v8 = vld [vmem:[%s1225_s1 + $0x68] sm:$0xff]   ;;  %s1230_s23 = smov (!%p192_p3, %s823_s23), 7 }
   0xc   : > { %v977_v1 = vld [vmem:[%s1225_s1 + $0xf8] sm:$0xff]   ;;  %881 = vmatprep.subr.bf16.mxu0 %v976_v0  ;;  %v981_v5 = vld [vmem:[%s1225_s1 + $0xf0] sm:$0xff]   ;;  %v985_v9 = vld [vmem:[%s1225_s1 + $0xe8] sm:$0xff]   ;;  %s967_s21 = smul.u32 20, %s1230_s23  ;;  %s826_s30 = sshll.u32 %s1230_s23, 3 }
   0xd   : > { %v978_v2 = vld [vmem:[%s1225_s1 + $0x38] sm:$0xff]   ;;  %909 = vmatprep.subr.bf16.mxu1 %v977_v1  ;;  %v982_v6 = vld [vmem:[%s1225_s1 + $0x30] sm:$0xff]   ;;  %v986_v10 = vld [vmem:[%s1225_s1 + $0x28] sm:$0xff]   ;;  %s202_s10 = scalar_lea.vmem %s1228_s4, %s826_s30 }
   0xe   : > { %v979_v3 = vld [vmem:[%s1225_s1 + $0xb8] sm:$0xff]   ;;  %882 = vmatpush3.bf16.msra.mxu0 %v978_v2  ;;  %v983_v7 = vld [vmem:[%s1225_s1 + $0xb0] sm:$0xff]   ;;  %v987_v11 = vld [vmem:[%s1225_s1 + $0xa8] sm:$0xff]   ;;  %s1169_s6 = scalar_lea.vmem %s1224_s0, %s967_s21 }
   0xf   : > { %910 = vmatpush3.bf16.msra.mxu1 %v979_v3  ;;  %883 = vmatprep.subr.bf16.mxu0 %v980_v4  ;;  %v988_v12 = vld [vmem:[%s1225_s1 + $0x60] sm:$0xff]   ;;  %v992_v16 = vld [vmem:[%s1225_s1 + $0x58] sm:$0xff]   ;;  %v996_v20 = vld [vmem:[%s1225_s1 + $0x50] sm:$0xff]  }
  0x10   : > { %911 = vmatprep.subr.bf16.mxu1 %v981_v5  ;;  %v989_v13 = vld [vmem:[%s1225_s1 + $0xe0] sm:$0xff]   ;;  %v993_v17 = vld [vmem:[%s1225_s1 + $0xd8] sm:$0xff]   ;;  %v997_v21 = vld [vmem:[%s1225_s1 + $0xd0] sm:$0xff]  }
  0x11   : > { %v990_v14 = vld [vmem:[%s1225_s1 + $0x20] sm:$0xff]   ;;  %v994_v18 = vld [vmem:[%s1225_s1 + $0x18] sm:$0xff]   ;;  %v998_v22 = vld [vmem:[%s1225_s1 + $0x10] sm:$0xff]  }
  0x12   : > { %884 = vmatpush3.bf16.msra.mxu0 %v982_v6  ;;  %v991_v15 = vld [vmem:[%s1225_s1 + $0xa0] sm:$0xff]   ;;  %v995_v19 = vld [vmem:[%s1225_s1 + $0x98] sm:$0xff]   ;;  %v999_v23 = vld [vmem:[%s1225_s1 + $0x90] sm:$0xff]  }
  0x13   : > { %912 = vmatpush3.bf16.msra.mxu1 %v983_v7  ;;  %885 = vmatprep.subr.bf16.mxu0 %v984_v8  ;;  %v1000_v24 = vld [vmem:[%s1225_s1 + $0x48] sm:$0xff]   ;;  %v1004_v28 = vld [vmem:[%s1225_s1 + $0x40] sm:$0xff]   ;;  %v1014_v36 = vld [vmem:[%s1225_s1 + $0x138] sm:$0xff]  }
  0x14   : > { %913 = vmatprep.subr.bf16.mxu1 %v985_v9  ;;  %v1001_v25 = vld [vmem:[%s1225_s1 + $0xc8] sm:$0xff]   ;;  %v1005_v29 = vld [vmem:[%s1225_s1 + $0xc0] sm:$0xff]   ;;  %v1015_v37 = vld [vmem:[%s1225_s1 + $0x130] sm:$0xff]  }
  0x15   : > { %v1002_v26 = vld [vmem:[%s1225_s1 + $0x8] sm:$0xff]   ;;  %v1006_v30 = vld [vmem:[%s1225_s1] sm:$0xff]   ;;  %v1018_v45 = vld [vmem:[%s1225_s1 + $0x118] sm:$0xff]  }
  0x16   : > { %886 = vmatpush3.bf16.msra.mxu0 %v986_v10  ;;  %v1003_v27 = vld [vmem:[%s1225_s1 + $0x88] sm:$0xff]   ;;  %v1007_v31 = vld [vmem:[%s1225_s1 + $0x80] sm:$0xff]   ;;  %v1025_v46 = vld [vmem:[%s1225_s1 + $0x110] sm:$0xff]  }
  0x17   : > { %914 = vmatpush3.bf16.msra.mxu1 %v987_v11  ;;  %887 = vmatprep.subr.bf16.mxu0 %v988_v12  ;;  %v1008_v32 = vld [vmem:[%s1169_s6] ss:$20 sps:$4 sm:$0xff]   ;;  %v1010_v33 = vld [vmem:[%s1169_s6 + $0x4] ss:$20 sps:$4 sm:$0xff]   ;;  %v1011_v34 = vld [vmem:[%s1169_s6 + $0x8] ss:$20 sps:$4 sm:$0xff]  }
  0x18   : > { %915 = vmatprep.subr.bf16.mxu1 %v989_v13  ;;  %v1013_v35 = vld [vmem:[%s1169_s6 + $0xc] ss:$20 sps:$4 sm:$0xff]   ;;  %621 = vmatprep.mubr.bf16.mxu0 %v1010_v33  ;;  %v1021_v40 = vld [vmem:[%s1169_s6 + $0x34] ss:$20 sps:$4 sm:$0xff]   ;;  %v1024_v42 = vld [vmem:[%s1169_s6 + $0x30] ss:$20 sps:$4 sm:$0xff]  }
  0x19   : > { %670 = vmatprep.mubr.bf16.mxu1 %v1013_v35  ;;  %v1016_v38 = vld [vmem:[%s1225_s1 + $0x128] sm:$0xff]   ;;  %v1017_v43 = vld [vmem:[%s1225_s1 + $0x120] sm:$0xff]  }
  0x1a   : > { %888 = vmatpush3.bf16.msra.mxu0 %v990_v14  ;;  %v1019_v39 = vld [vmem:[%s1169_s6 + $0x2c] ss:$20 sps:$4 sm:$0xff]   ;;  %v1023_v41 = vld [vmem:[%s1169_s6 + $0x28] ss:$20 sps:$4 sm:$0xff]   ;;  %v1028_v44 = vld [vmem:[%s1169_s6 + $0x10] ss:$20 sps:$4 sm:$0xff]  }
  0x1b   : > { %916 = vmatpush3.bf16.msra.mxu1 %v991_v15  ;;  %889 = vmatprep.subr.bf16.mxu0 %v992_v16  ;;  %v1026_v47 = vld [vmem:[%s1225_s1 + $0x108] sm:$0xff]   ;;  %v1027_v48 = vld [vmem:[%s1225_s1 + $0x100] sm:$0xff]  }
  0x1c   : > { %917 = vmatprep.subr.bf16.mxu1 %v993_v17  ;;  %v1029_v49 = vld [vmem:[%s1169_s6 + $0x38] ss:$20 sps:$4 sm:$0xff]   ;;  %v877_v17 = vld [vmem:[%s1226_s2] ss:$0 sm:$0xff] }
  0x1e   : > { %890 = vmatpush3.bf16.msra.mxu0 %v994_v18 }
  0x1f   : > { %918 = vmatpush3.bf16.msra.mxu1 %v995_v19  ;;  %891 = vmatprep.subr.bf16.mxu0 %v996_v20 }
  0x20   : > { %919 = vmatprep.subr.bf16.mxu1 %v997_v21 }
  0x22   : > { %892 = vmatpush3.bf16.msra.mxu0 %v998_v22  ;;  %v878_v22 = vld [vmem:[%s1227_s3] ss:$0 sm:$0xff] }
  0x23   : > { %920 = vmatpush3.bf16.msra.mxu1 %v999_v23  ;;  %893 = vmatprep.subr.bf16.mxu0 %v1000_v24 }
  0x24   : > { %921 = vmatprep.subr.bf16.mxu1 %v1001_v25 }
  0x26   : > { %894 = vmatpush3.bf16.msra.mxu0 %v1002_v26 }
  0x27   : > { %922 = vmatpush3.bf16.msra.mxu1 %v1003_v27  ;;  %895 = vmatprep.subr.bf16.mxu0 %v1004_v28 }
  0x28   : > { %923 = vmatprep.subr.bf16.mxu1 %v1005_v29 }
  0x2a   : > { %896 = vmatpush3.bf16.msra.mxu0 %v1006_v30 }
  0x2b   : > { %924 = vmatpush3.bf16.msra.mxu1 %v1007_v31  ;;  %947 = vmatprep.subr.bf16.mxu0 %v1014_v36 }
  0x2d   : > { %622 = vmatmul.mubr.bf16.vlgmr.msra.gmra.mxu0 %v1008_v32 }
  0x2e   : > { %671 = vmatmul.mubr.bf16.vlgmr.msra.gmra.mxu1 %v1011_v34  ;;  %948 = vmatpush3.bf16.msra.mxu0 %v1014_v36 }
  0x2f   : > { %949 = vmatprep.subr.bf16.mxu0 %v1015_v37  ;;  %629 = vmatprep.mubr.bf16.mxu0 %v1019_v39 }
  0x30   : > { %678 = vmatprep.mubr.bf16.mxu1 %v1021_v40 }
  0x32   : > { %950 = vmatpush3.bf16.msra.mxu0 %v1015_v37 }
  0x33   : > { %951 = vmatprep.subr.bf16.mxu0 %v1016_v38 }
  0x35   : > { %630 = vmatmul.mubr.bf16.gmra.mxu0 %v1023_v41 }
  0x36   : > { %679 = vmatmul.mubr.bf16.gmra.mxu1 %v1024_v42  ;;  %952 = vmatpush3.bf16.msra.mxu0 %v1016_v38 }
  0x37   : > { %953 = vmatprep.subr.bf16.mxu0 %v1017_v43  ;;  %963 = vmatprep.mubr.bf16.mxu0 %v1028_v44 }
  0x3a   : > { %954 = vmatpush3.bf16.msra.mxu0 %v1017_v43 }
  0x3b   : > { %955 = vmatprep.subr.bf16.mxu0 %v1018_v45 }
  0x3e   : > { %956 = vmatpush3.bf16.msra.mxu0 %v1018_v45 }
  0x3f   : > { %957 = vmatprep.subr.bf16.mxu0 %v1025_v46 }
  0x42   : > { %958 = vmatpush3.bf16.msra.mxu0 %v1025_v46 }
  0x43   : > { %959 = vmatprep.subr.bf16.mxu0 %v1026_v47 }
  0x46   : > { %960 = vmatpush3.bf16.msra.mxu0 %v1026_v47 }
  0x47   : > { %961 = vmatprep.subr.bf16.mxu0 %v1027_v48 }
  0x4a   : > { %962 = vmatpush3.bf16.msra.mxu0 %v1027_v48 }
  0x4d   : > { %964 = vmatmul.mubr.bf16.vlgmr.msra.gmra.mxu0 %v1029_v49 }
  0xed   : > { %v897_v50 = vpop.f32.mrf.mxu0 }
  0xee   : > { %v925_v51 = vpop.f32.mrf.mxu1 }
  0xef   : > { %v898_v52 = vpop.f32.mrf.mxu0 }
  0xf0   : > { %v926_v53 = vpop.f32.mrf.mxu1  ;;  %v899_v2 = vadd.f32 %v898_v52, %v897_v50 }
  0xf1   : > { %v900_v54 = vpop.f32.mrf.mxu0  ;;  %v927_v3 = vadd.f32 %v926_v53, %v925_v51 }
  0xf2   : > { %v928_v55 = vpop.f32.mrf.mxu1 }
  0xf3   : > { %v901_v56 = vpop.f32.mrf.mxu0  ;;  %v673_v11 = vadd.f32 %v927_v3, %v899_v2 }
  0xf4   : > { %v929_v57 = vpop.f32.mrf.mxu1  ;;  %v902_v9 = vadd.f32 %v901_v56, %v900_v54 }
  0xf5   : > { %v903_v58 = vpop.f32.mrf.mxu0  ;;  %v930_v10 = vadd.f32 %v929_v57, %v928_v55 }
  0xf6   : > { %v931_v59 = vpop.f32.mrf.mxu1 }
  0xf7   : > { %v904_v60 = vpop.f32.mrf.mxu0  ;;  %v676_v21 = vadd.f32 %v930_v10, %v902_v9 }
  0xf8   : > { %v932_v61 = vpop.f32.mrf.mxu1  ;;  %v905_v4 = vadd.f32 %v904_v60, %v903_v58 }
  0xf9   : > { %v906_v62 = vpop.f32.mrf.mxu0  ;;  %v933_v5 = vadd.f32 %v932_v61, %v931_v59 }
  0xfa   : > { %v934_v63 = vpop.f32.mrf.mxu1 }
  0xfb   : > { %v907_v0 = vpop.f32.mrf.mxu0  ;;  %v681_v12 = vadd.f32 %v933_v5, %v905_v4 }
  0xfc   : > { %v935_v1 = vpop.f32.mrf.mxu1  ;;  %v908_v6 = vadd.f32 %v907_v0, %v906_v62 }
  0xfd   : > { %v936_v7 = vadd.f32 %v935_v1, %v934_v63 }
  0xff   : > { %v684_v15 = vadd.f32 %v936_v7, %v908_v6 }
 0x10d   : > { %v965_v8 = vpop.f32.mrf.mxu0 }
 0x10e   : > { %v730_v16 = vadd.f32 %v965_v8, %v681_v12 }
 0x10f   : > { %v721_v13 = vpop.f32.mrf.mxu0 }
 0x110   : > { %v722_v14 = vadd.f32 %v721_v13, %v673_v11  ;;  %v745_v26 = vmul.f32 %v877_v17, %v730_v16 }
 0x111   : > { %v966_v18 = vpop.f32.mrf.mxu0 }
 0x112   : > { %v743_v19 = vmul.f32 %v877_v17, %v722_v14  ;;  %v733_v20 = vadd.f32 %v966_v18, %v684_v15  ;;  %v756_v30 = vadd.f32 %v878_v22, %v745_v26 }
 0x113   : > { %v724_v23 = vpop.f32.mrf.mxu0 }
 0x114   : > { %v754_v24 = vadd.f32 %v878_v22, %v743_v19  ;;  %v725_v25 = vadd.f32 %v724_v23, %v676_v21  ;;  %v746_v27 = vmul.f32 %v877_v17, %v733_v20  ;;  %760 = vst [vmem:[%s202_s10 + $0x10] sm:$0xff] %v756_v30 }
 0x116   : > { %758 = vst [vmem:[%s202_s10] sm:$0xff] %v754_v24  ;;  %v744_v28 = vmul.f32 %v877_v17, %v725_v25  ;;  %v757_v31 = vadd.f32 %v878_v22, %v746_v27 }
 0x118   : > { %v755_v29 = vadd.f32 %v878_v22, %v744_v28  ;;  %761 = vst [vmem:[%s202_s10 + $0x18] sm:$0xff] %v757_v31 }
 0x11a   : > { %759 = vst [vmem:[%s202_s10 + $0x8] sm:$0xff] %v755_v29 }
 0x11b PF: > { %s14_s15 = sadd.s32 1, %s1036_s15  }
 0x11c   : > { %p11_p4 = scmp.ge.s32.totalorder %s14_s15, 4  }
 0x11e   :  { %13 = sbr.rel (!%p11_p4) target bundleno = 1 (0x1), region = 66 }

// kernel: cpd_d19_forward.193
= control target key start
LH: loop header
LB: loop body
LE: loop exit
PB: predicated region body
PF: predicated region fallthrough
CT: control target
= control target key end

     0   :  { %s1334_s15 = smov 0   ;;  %s1547_s0 = inlined_call_operand.vmem [shape: bf16[64,896], index: 0, kind: input, shape index: {}]   ;;  %s1548_s1 = inlined_call_operand.vmem [shape: bf16[896,128], index: 1, kind: input, shape index: {}]   ;;  %s1549_s2 = inlined_call_operand.vmem [shape: f32[1,128], index: 2, kind: input, shape index: {}]   ;;  %s1550_s3 = inlined_call_operand.vmem [shape: f32[1,128], index: 3, kind: input, shape index: {}]   ;;  %s1551_s4 = inlined_call_operand.vmem [shape: f32[64,128], index: 4, kind: output, shape index: {}]  }
   0x1 LB: > { %s1019_s16 = sadd.s32 4294967295, %s1307_s15   ;;  %p1023_p0 = scmp.ge.s32.totalorder %s1307_s15, 1  ;;  %s1307_s15 = sphi %s1334_s15, %s14_s15  }
   0x2   : > { %p164_p1 = scmp.lt.s32.totalorder %s1307_s15, 3 }
   0x4   : > { %p165_p2 = pnand %p1023_p0, %p164_p1 }
   0x5   : > { %s1024_s23 = sshll.u32 (!%p165_p2), %s1019_s16, 2 }
   0x6   : > { %168 = sbr.rel (%p165_p2) target bundleno = 295 (0x127), region = 36  ;;  %p192_p3 = scmp.lt.s32.totalorder (!%p165_p2), %s1024_s23, 7 }
   0xb   : > { %v1225_v0 = vld [vmem:[%s1548_s1 + $0x78] sm:$0xff]   ;;  %v1229_v4 = vld [vmem:[%s1548_s1 + $0x70] sm:$0xff]   ;;  %v1233_v8 = vld [vmem:[%s1548_s1 + $0x68] sm:$0xff]   ;;  %s1553_s23 = smov (!%p192_p3, %s1024_s23), 7 }
   0xc   : > { %v1226_v1 = vld [vmem:[%s1548_s1 + $0xf8] sm:$0xff]   ;;  %1102 = vmatprep.subr.bf16.mxu0 %v1225_v0  ;;  %v1230_v5 = vld [vmem:[%s1548_s1 + $0xf0] sm:$0xff]   ;;  %v1234_v9 = vld [vmem:[%s1548_s1 + $0xe8] sm:$0xff]   ;;  %s1216_s21 = smul.u32 28, %s1553_s23  ;;  %s1027_s14 = sshll.u32 %s1553_s23, 3 }
   0xd   : > { %v1227_v2 = vld [vmem:[%s1548_s1 + $0x38] sm:$0xff]   ;;  %1130 = vmatprep.subr.bf16.mxu1 %v1226_v1  ;;  %v1231_v6 = vld [vmem:[%s1548_s1 + $0x30] sm:$0xff]   ;;  %v1235_v10 = vld [vmem:[%s1548_s1 + $0x28] sm:$0xff]  }
   0xe   : > { %v1228_v3 = vld [vmem:[%s1548_s1 + $0xb8] sm:$0xff]   ;;  %1103 = vmatpush3.bf16.msra.mxu0 %v1227_v2  ;;  %v1232_v7 = vld [vmem:[%s1548_s1 + $0xb0] sm:$0xff]   ;;  %v1236_v11 = vld [vmem:[%s1548_s1 + $0xa8] sm:$0xff]   ;;  %s1440_s6 = scalar_lea.vmem %s1547_s0, %s1216_s21  ;;  %s202_s21 = scalar_lea.vmem %s1551_s4, %s1027_s14 }
   0xf   : > { %1131 = vmatpush3.bf16.msra.mxu1 %v1228_v3  ;;  %1104 = vmatprep.subr.bf16.mxu0 %v1229_v4  ;;  %v1237_v12 = vld [vmem:[%s1548_s1 + $0x60] sm:$0xff]   ;;  %v1241_v16 = vld [vmem:[%s1548_s1 + $0x58] sm:$0xff]   ;;  %v1245_v20 = vld [vmem:[%s1548_s1 + $0x50] sm:$0xff]  }
  0x10   : > { %1132 = vmatprep.subr.bf16.mxu1 %v1230_v5  ;;  %v1238_v13 = vld [vmem:[%s1548_s1 + $0xe0] sm:$0xff]   ;;  %v1242_v17 = vld [vmem:[%s1548_s1 + $0xd8] sm:$0xff]   ;;  %v1246_v21 = vld [vmem:[%s1548_s1 + $0xd0] sm:$0xff]  }
  0x11   : > { %v1239_v14 = vld [vmem:[%s1548_s1 + $0x20] sm:$0xff]   ;;  %v1243_v18 = vld [vmem:[%s1548_s1 + $0x18] sm:$0xff]   ;;  %v1247_v22 = vld [vmem:[%s1548_s1 + $0x10] sm:$0xff]  }
  0x12   : > { %1105 = vmatpush3.bf16.msra.mxu0 %v1231_v6  ;;  %v1240_v15 = vld [vmem:[%s1548_s1 + $0xa0] sm:$0xff]   ;;  %v1244_v19 = vld [vmem:[%s1548_s1 + $0x98] sm:$0xff]   ;;  %v1248_v23 = vld [vmem:[%s1548_s1 + $0x90] sm:$0xff]  }
  0x13   : > { %1133 = vmatpush3.bf16.msra.mxu1 %v1232_v7  ;;  %1106 = vmatprep.subr.bf16.mxu0 %v1233_v8  ;;  %v1249_v24 = vld [vmem:[%s1548_s1 + $0x48] sm:$0xff]   ;;  %v1253_v28 = vld [vmem:[%s1548_s1 + $0x40] sm:$0xff]   ;;  %v1263_v36 = vld [vmem:[%s1548_s1 + $0x178] sm:$0xff]  }
  0x14   : > { %1134 = vmatprep.subr.bf16.mxu1 %v1234_v9  ;;  %v1250_v25 = vld [vmem:[%s1548_s1 + $0xc8] sm:$0xff]   ;;  %v1254_v29 = vld [vmem:[%s1548_s1 + $0xc0] sm:$0xff]   ;;  %v1264_v37 = vld [vmem:[%s1548_s1 + $0x138] sm:$0xff]  }
  0x15   : > { %v1251_v26 = vld [vmem:[%s1548_s1 + $0x8] sm:$0xff]   ;;  %v1255_v30 = vld [vmem:[%s1548_s1] sm:$0xff]   ;;  %v1265_v38 = vld [vmem:[%s1548_s1 + $0x170] sm:$0xff]  }
  0x16   : > { %1107 = vmatpush3.bf16.msra.mxu0 %v1235_v10  ;;  %v1252_v27 = vld [vmem:[%s1548_s1 + $0x88] sm:$0xff]   ;;  %v1256_v31 = vld [vmem:[%s1548_s1 + $0x80] sm:$0xff]   ;;  %v1266_v39 = vld [vmem:[%s1548_s1 + $0x1b8] sm:$0xff]  }
  0x17   : > { %1135 = vmatpush3.bf16.msra.mxu1 %v1236_v11  ;;  %1108 = vmatprep.subr.bf16.mxu0 %v1237_v12  ;;  %v1257_v32 = vld [vmem:[%s1440_s6] ss:$28 sps:$4 sm:$0xff]   ;;  %v1260_v34 = vld [vmem:[%s1440_s6 + $0x8] ss:$28 sps:$4 sm:$0xff]   ;;  %v1267_v40 = vld [vmem:[%s1548_s1 + $0x130] sm:$0xff]  }
  0x18   : > { %1136 = vmatprep.subr.bf16.mxu1 %v1238_v13  ;;  %v1259_v33 = vld [vmem:[%s1440_s6 + $0x4] ss:$28 sps:$4 sm:$0xff]   ;;  %v1262_v35 = vld [vmem:[%s1440_s6 + $0xc] ss:$28 sps:$4 sm:$0xff]   ;;  %v1269_v42 = vld [vmem:[%s1548_s1 + $0x1b0] sm:$0xff]  }
  0x19   : > { %773 = vmatprep.mubr.bf16.mxu0 %v1259_v33  ;;  %822 = vmatprep.mubr.bf16.mxu1 %v1262_v35  ;;  %v1268_v41 = vld [vmem:[%s1548_s1 + $0x168] sm:$0xff]   ;;  %v1271_v44 = vld [vmem:[%s1548_s1 + $0x160] sm:$0xff]   ;;  %v1274_v47 = vld [vmem:[%s1548_s1 + $0x158] sm:$0xff]  }
  0x1a   : > { %1109 = vmatpush3.bf16.msra.mxu0 %v1239_v14  ;;  %v1270_v43 = vld [vmem:[%s1548_s1 + $0x128] sm:$0xff]   ;;  %v1273_v46 = vld [vmem:[%s1548_s1 + $0x120] sm:$0xff]   ;;  %v1276_v49 = vld [vmem:[%s1440_s6 + $0x3c] ss:$28 sps:$4 sm:$0xff]  }
  0x1b   : > { %1137 = vmatpush3.bf16.msra.mxu1 %v1240_v15  ;;  %1110 = vmatprep.subr.bf16.mxu0 %v1241_v16  ;;  %v1272_v45 = vld [vmem:[%s1548_s1 + $0x1a8] sm:$0xff]   ;;  %v1275_v48 = vld [vmem:[%s1548_s1 + $0x1a0] sm:$0xff]   ;;  %v1280_v51 = vld [vmem:[%s1548_s1 + $0x118] sm:$0xff]  }
  0x1c   : > { %1138 = vmatprep.subr.bf16.mxu1 %v1242_v17  ;;  %v1278_v50 = vld [vmem:[%s1440_s6 + $0x44] ss:$28 sps:$4 sm:$0xff]   ;;  %v1281_v52 = vld [vmem:[%s1440_s6 + $0x38] ss:$28 sps:$4 sm:$0xff]   ;;  %v1286_v57 = vld [vmem:[%s1548_s1 + $0x148] sm:$0xff]  }
  0x1d   : > { %v1282_v53 = vld [vmem:[%s1440_s6 + $0x40] ss:$28 sps:$4 sm:$0xff]   ;;  %v1283_v54 = vld [vmem:[%s1548_s1 + $0x150] sm:$0xff]   ;;  %v1288_v59 = vld [vmem:[%s1548_s1 + $0x108] sm:$0xff]  }
  0x1e   : > { %1111 = vmatpush3.bf16.msra.mxu0 %v1243_v18  ;;  %v1284_v55 = vld [vmem:[%s1548_s1 + $0x198] sm:$0xff]   ;;  %v1285_v56 = vld [vmem:[%s1548_s1 + $0x110] sm:$0xff]   ;;  %v1289_v60 = vld [vmem:[%s1548_s1 + $0x140] sm:$0xff]  }
  0x1f   : > { %1139 = vmatpush3.bf16.msra.mxu1 %v1244_v19  ;;  %1112 = vmatprep.subr.bf16.mxu0 %v1245_v20  ;;  %v1287_v58 = vld [vmem:[%s1548_s1 + $0x190] sm:$0xff]   ;;  %v1290_v61 = vld [vmem:[%s1548_s1 + $0x188] sm:$0xff]   ;;  %v1291_v62 = vld [vmem:[%s1548_s1 + $0x100] sm:$0xff]  }
  0x20   : > { %1140 = vmatprep.subr.bf16.mxu1 %v1246_v21  ;;  %v1294_v63 = vld [vmem:[%s1440_s6 + $0x14] ss:$28 sps:$4 sm:$0xff]   ;;  %v1295_v0 = vld [vmem:[%s1548_s1 + $0x180] sm:$0xff]   ;;  %v1298_v3 = vld [vmem:[%s1440_s6 + $0x4c] ss:$28 sps:$4 sm:$0xff]  }
  0x21   : > { %v1296_v1 = vld [vmem:[%s1440_s6 + $0x18] ss:$28 sps:$4 sm:$0xff]   ;;  %v1292_v2 = vld [vmem:[%s1440_s6 + $0x10] ss:$28 sps:$4 sm:$0xff]   ;;  %v1300_v5 = vld [vmem:[%s1440_s6 + $0x48] ss:$28 sps:$4 sm:$0xff]  }
  0x22   : > { %1113 = vmatpush3.bf16.msra.mxu0 %v1247_v22  ;;  %v1297_v4 = vld [vmem:[%s1440_s6 + $0x50] ss:$28 sps:$4 sm:$0xff]  }
  0x23   : > { %1141 = vmatpush3.bf16.msra.mxu1 %v1248_v23  ;;  %1114 = vmatprep.subr.bf16.mxu0 %v1249_v24 }
  0x24   : > { %1142 = vmatprep.subr.bf16.mxu1 %v1250_v25 }
  0x26   : > { %1115 = vmatpush3.bf16.msra.mxu0 %v1251_v26 }
  0x27   : > { %1143 = vmatpush3.bf16.msra.mxu1 %v1252_v27  ;;  %1116 = vmatprep.subr.bf16.mxu0 %v1253_v28 }
  0x28   : > { %1144 = vmatprep.subr.bf16.mxu1 %v1254_v29 }
  0x2a   : > { %1117 = vmatpush3.bf16.msra.mxu0 %v1255_v30 }
  0x2b   : > { %1145 = vmatpush3.bf16.msra.mxu1 %v1256_v31  ;;  %1158 = vmatprep.subr.bf16.mxu0 %v1263_v36 }
  0x2c   : > { %1196 = vmatprep.subr.bf16.mxu1 %v1266_v39 }
  0x2d   : > { %774 = vmatmul.mubr.bf16.vlgmr.msra.gmra.mxu0 %v1257_v32 }
  0x2e   : > { %823 = vmatmul.mubr.bf16.vlgmr.msra.gmra.mxu1 %v1260_v34  ;;  %1159 = vmatpush3.bf16.msra.mxu0 %v1264_v37  ;;  %v1098_v37 = vld [vmem:[%s1549_s2] ss:$0 sm:$0xff] }
  0x2f   : > { %1160 = vmatprep.subr.bf16.mxu0 %v1265_v38  ;;  %1197 = vmatpush3.bf16.msra.mxu1 %v1266_v39 }
  0x30   : > { %1198 = vmatprep.subr.bf16.mxu1 %v1269_v42  ;;  %781 = vmatprep.mubr.bf16.mxu0 %v1276_v49 }
  0x31   : > { %830 = vmatprep.mubr.bf16.mxu1 %v1278_v50 }
  0x32   : > { %1161 = vmatpush3.bf16.msra.mxu0 %v1267_v40 }
  0x33   : > { %1162 = vmatprep.subr.bf16.mxu0 %v1268_v41  ;;  %1199 = vmatpush3.bf16.msra.mxu1 %v1269_v42  ;;  %v1099_v42 = vld [vmem:[%s1550_s3] ss:$0 sm:$0xff] }
  0x34   : > { %1200 = vmatprep.subr.bf16.mxu1 %v1272_v45 }
  0x35   : > { %782 = vmatmul.mubr.bf16.gmra.mxu0 %v1281_v52 }
  0x36   : > { %1163 = vmatpush3.bf16.msra.mxu0 %v1270_v43  ;;  %831 = vmatmul.mubr.bf16.gmra.mxu1 %v1282_v53 }
  0x37   : > { %1164 = vmatprep.subr.bf16.mxu0 %v1271_v44  ;;  %1201 = vmatpush3.bf16.msra.mxu1 %v1272_v45 }
  0x38   : > { %1202 = vmatprep.subr.bf16.mxu1 %v1275_v48  ;;  %871 = vmatprep.mubr.bf16.mxu0 %v1294_v63 }
  0x39   : > { %1212 = vmatprep.mubr.bf16.mxu1 %v1296_v1 }
  0x3a   : > { %1165 = vmatpush3.bf16.msra.mxu0 %v1273_v46 }
  0x3b   : > { %1166 = vmatprep.subr.bf16.mxu0 %v1274_v47  ;;  %1203 = vmatpush3.bf16.msra.mxu1 %v1275_v48 }
  0x3c   : > { %1204 = vmatprep.subr.bf16.mxu1 %v1284_v55 }
  0x3e   : > { %1167 = vmatpush3.bf16.msra.mxu0 %v1280_v51 }
  0x3f   : > { %1168 = vmatprep.subr.bf16.mxu0 %v1283_v54  ;;  %1205 = vmatpush3.bf16.msra.mxu1 %v1284_v55 }
  0x40   : > { %1206 = vmatprep.subr.bf16.mxu1 %v1287_v58 }
  0x42   : > { %1169 = vmatpush3.bf16.msra.mxu0 %v1285_v56 }
  0x43   : > { %1170 = vmatprep.subr.bf16.mxu0 %v1286_v57  ;;  %1207 = vmatpush3.bf16.msra.mxu1 %v1287_v58 }
  0x44   : > { %1208 = vmatprep.subr.bf16.mxu1 %v1290_v61 }
  0x46   : > { %1171 = vmatpush3.bf16.msra.mxu0 %v1288_v59 }
  0x47   : > { %1172 = vmatprep.subr.bf16.mxu0 %v1289_v60  ;;  %1209 = vmatpush3.bf16.msra.mxu1 %v1290_v61 }
  0x48   : > { %1210 = vmatprep.subr.bf16.mxu1 %v1295_v0 }
  0x4a   : > { %1173 = vmatpush3.bf16.msra.mxu0 %v1291_v62 }
  0x4b   : > { %1211 = vmatpush3.bf16.msra.mxu1 %v1295_v0 }
  0x4d   : > { %872 = vmatmul.mubr.bf16.vlgmr.msra.gmra.mxu0 %v1292_v2 }
  0x4e   : > { %879 = vmatprep.mubr.bf16.mxu0 %v1298_v3  ;;  %1213 = vmatmul.mubr.bf16.vlgmr.msra.gmra.mxu1 %v1297_v4 }
  0x55   : > { %880 = vmatmul.mubr.bf16.gmra.mxu0 %v1300_v5 }
  0xed   : > { %v1118_v6 = vpop.f32.mrf.mxu0 }
  0xee   : > { %v1146_v7 = vpop.f32.mrf.mxu1 }
  0xef   : > { %v1119_v8 = vpop.f32.mrf.mxu0 }
  0xf0   : > { %v1147_v9 = vpop.f32.mrf.mxu1  ;;  %v1120_v21 = vadd.f32 %v1119_v8, %v1118_v6 }
  0xf1   : > { %v1121_v10 = vpop.f32.mrf.mxu0  ;;  %v1148_v22 = vadd.f32 %v1147_v9, %v1146_v7 }
  0xf2   : > { %v1149_v11 = vpop.f32.mrf.mxu1 }
  0xf3   : > { %v1122_v12 = vpop.f32.mrf.mxu0  ;;  %v825_v26 = vadd.f32 %v1148_v22, %v1120_v21 }
  0xf4   : > { %v1150_v14 = vpop.f32.mrf.mxu1  ;;  %v1123_v27 = vadd.f32 %v1122_v12, %v1121_v10 }
  0xf5   : > { %v1124_v13 = vpop.f32.mrf.mxu0  ;;  %v1151_v28 = vadd.f32 %v1150_v14, %v1149_v11 }
  0xf6   : > { %v1152_v15 = vpop.f32.mrf.mxu1 }
  0xf7   : > { %v1125_v16 = vpop.f32.mrf.mxu0  ;;  %v828_v38 = vadd.f32 %v1151_v28, %v1123_v27 }
  0xf8   : > { %v1153_v17 = vpop.f32.mrf.mxu1  ;;  %v1126_v34 = vadd.f32 %v1125_v16, %v1124_v13 }
  0xf9   : > { %v1127_v18 = vpop.f32.mrf.mxu0  ;;  %v1154_v35 = vadd.f32 %v1153_v17, %v1152_v15 }
  0xfa   : > { %v1155_v19 = vpop.f32.mrf.mxu1 }
  0xfb   : > { %v1128_v20 = vpop.f32.mrf.mxu0  ;;  %v833_v47 = vadd.f32 %v1154_v35, %v1126_v34 }
  0xfc   : > { %v1156_v24 = vpop.f32.mrf.mxu1  ;;  %v1129_v48 = vadd.f32 %v1128_v20, %v1127_v18 }
  0xfd   : > { %v1157_v50 = vadd.f32 %v1156_v24, %v1155_v19 }
  0xff   : > { %v836_v58 = vadd.f32 %v1157_v50, %v1129_v48 }
 0x10d   : > { %v1174_v23 = vpop.f32.mrf.mxu0 }
 0x10e   : > { %v1214_v30 = vpop.f32.mrf.mxu1 }
 0x10f   : > { %v1175_v25 = vpop.f32.mrf.mxu0 }
 0x110   : > { %v1176_v29 = vadd.f32 %v1175_v25, %v1174_v23  ;;  %v922_v33 = vpop.f32.mrf.mxu1 }
 0x111   : > { %v1177_v31 = vpop.f32.mrf.mxu0 }
 0x112   : > { %v874_v32 = vadd.f32 %v1176_v29, %v825_v26  ;;  %v1215_v41 = vpop.f32.mrf.mxu1 }
 0x113   : > { %v1178_v36 = vpop.f32.mrf.mxu0 }
 0x114   : > { %v1179_v39 = vadd.f32 %v1178_v36, %v1177_v31  ;;  %v923_v40 = vadd.f32 %v922_v33, %v874_v32  ;;  %v925_v46 = vpop.f32.mrf.mxu1 }
 0x115   : > { %v1180_v43 = vpop.f32.mrf.mxu0 }
 0x116   : > { %v944_v44 = vmul.f32 %v1098_v37, %v923_v40  ;;  %v877_v45 = vadd.f32 %v1179_v39, %v828_v38 }
 0x117   : > { %v1181_v49 = vpop.f32.mrf.mxu0 }
 0x118   : > { %v955_v51 = vadd.f32 %v1099_v42, %v944_v44  ;;  %v1182_v52 = vadd.f32 %v1181_v49, %v1180_v43  ;;  %v926_v53 = vadd.f32 %v925_v46, %v877_v45 }
 0x119   : > { %v1183_v54 = vpop.f32.mrf.mxu0 }
 0x11a   : > { %959 = vst [vmem:[%s202_s21] sm:$0xff] %v955_v51  ;;  %v882_v55 = vadd.f32 %v1182_v52, %v833_v47  ;;  %v945_v56 = vmul.f32 %v1098_v37, %v926_v53 }
 0x11b   : > { %v1184_v57 = vpop.f32.mrf.mxu0 }
 0x11c   : > { %v931_v59 = vadd.f32 %v1214_v30, %v882_v55  ;;  %v956_v60 = vadd.f32 %v1099_v42, %v945_v56  ;;  %v1185_v61 = vadd.f32 %v1184_v57, %v1183_v54 }
 0x11e   : > { %v946_v62 = vmul.f32 %v1098_v37, %v931_v59  ;;  %960 = vst [vmem:[%s202_s21 + $0x8] sm:$0xff] %v956_v60  ;;  %v885_v63 = vadd.f32 %v1185_v61, %v836_v58 }
 0x120   : > { %v957_v0 = vadd.f32 %v1099_v42, %v946_v62  ;;  %v934_v1 = vadd.f32 %v1215_v41, %v885_v63 }
 0x122   : > { %961 = vst [vmem:[%s202_s21 + $0x10] sm:$0xff] %v957_v0  ;;  %v947_v2 = vmul.f32 %v1098_v37, %v934_v1 }
 0x124   : > { %v958_v3 = vadd.f32 %v1099_v42, %v947_v2 }
 0x126   : > { %962 = vst [vmem:[%s202_s21 + $0x18] sm:$0xff] %v958_v3 }
 0x127 PF: > { %s14_s15 = sadd.s32 1, %s1307_s15  }
 0x128   : > { %p11_p4 = scmp.ge.s32.totalorder %s14_s15, 4  }
 0x12a   :  { %13 = sbr.rel (!%p11_p4) target bundleno = 1 (0x1), region = 66 }

</bundles_post_ra>
